<compile_context>
chip_gen: v5e
topology: v5e:2x2
jax: 0.10.0
libtpu: 0.0.40
codegen_flags: <defaults>
</compile_context>

<pallas_src>
import jax
import jax.numpy as jnp
from jax.experimental import pallas as pl
from jax.experimental.pallas import tpu as pltpu


# ---------------------------------------------------------------------------
# Pallas kernels
# ---------------------------------------------------------------------------
def conv_mm_kernel(p_ref, w_ref, b_ref, o_ref):
    """One M-tile of conv-as-matmul + bias + ReLU.

    p: [TM, C*KH*KW] bf16, w: [C*KH*KW, F] bf16, b: [1, F] f32 -> o: [TM, F] bf16
    """
    acc = jnp.dot(p_ref[...], w_ref[...], preferred_element_type=jnp.float32)
    o_ref[...] = jnp.maximum(acc + b_ref[...], 0.0).astype(o_ref.dtype)


def mlp_head_kernel(x_ref, w1_ref, b1_ref, w2_ref, b2_ref, o_ref, acc_ref):
    """Fused fc1(+ReLU)+fc2, gridded over the contraction dimension D.

    x: [B, TK] bf16, w1: [TK, HP] bf16, b1/w2: [1, HP] f32, b2: [1, 1] f32 (SMEM).
    acc: [B, HP] f32 VMEM scratch persisting across the K grid.  o: [B, 1] f32.
    """
    k = pl.program_id(0)

    @pl.when(k == 0)
    def _():
        acc_ref[...] = jnp.zeros_like(acc_ref)

    acc_ref[...] += jnp.dot(x_ref[...], w1_ref[...],
                            preferred_element_type=jnp.float32)

    @pl.when(k == pl.num_programs(0) - 1)
    def _():
        h = jnp.maximum(acc_ref[...] + b1_ref[...], 0.0)          # [B, HP] f32
        # fc2 has N=1: do it on the VPU/XLU (multiply + lane reduce), not the MXU.
        s = jnp.sum(h * w2_ref[...], axis=-1, keepdims=True)      # [B, 1]
        o_ref[...] = (s + b2_ref[0, 0]).astype(o_ref.dtype)


# ---------------------------------------------------------------------------
# pallas_call wrappers
# ---------------------------------------------------------------------------
def conv_mm(patches, w, b, *, tile_m=128):
    m, kdim = patches.shape
    f = w.shape[1]
    assert m % tile_m == 0, (m, tile_m)
    return pl.pallas_call(
        conv_mm_kernel,
        out_shape=jax.ShapeDtypeStruct((m, f), jnp.bfloat16),
        grid_spec=pltpu.PrefetchScalarGridSpec(
            num_scalar_prefetch=0,
            grid=(m // tile_m,),
            in_specs=[
                pl.BlockSpec((tile_m, kdim), lambda i: (i, 0)),   # streamed rows
                pl.BlockSpec((kdim, f), lambda i: (0, 0)),        # pinned weight
                pl.BlockSpec((1, f), lambda i: (0, 0)),           # pinned bias
            ],
            out_specs=pl.BlockSpec((tile_m, f), lambda i: (i, 0)),
        ),
        compiler_params=pltpu.CompilerParams(
            dimension_semantics=("parallel",),      # megacore-shardable on v7x
            vmem_limit_bytes=32 * 1024 * 1024,
        ),
    )(patches, w, b)


def mlp_head(x, w1, b1, w2, b2, *, tile_k=2048):
    bsz, d = x.shape
    hp = w1.shape[1]
    tile_k = min(tile_k, d)
    assert d % tile_k == 0, (d, tile_k)
    return pl.pallas_call(
        mlp_head_kernel,
        out_shape=jax.ShapeDtypeStruct((bsz, 1), jnp.float32),
        grid_spec=pltpu.PrefetchScalarGridSpec(
            num_scalar_prefetch=0,
            grid=(d // tile_k,),
            in_specs=[
                pl.BlockSpec((bsz, tile_k), lambda k: (0, k)),    # streamed x tile
                pl.BlockSpec((tile_k, hp), lambda k: (k, 0)),     # streamed w1 tile
                pl.BlockSpec((1, hp), lambda k: (0, 0)),          # pinned b1
                pl.BlockSpec((1, hp), lambda k: (0, 0)),          # pinned w2 row
                pl.BlockSpec((1, 1), lambda k: (0, 0),
                             memory_space=pltpu.MemorySpace.SMEM),  # b2 scalar
            ],
            out_specs=pl.BlockSpec((bsz, 1), lambda k: (0, 0)),
            scratch_shapes=[pltpu.VMEM((bsz, hp), jnp.float32)],
        ),
        compiler_params=pltpu.CompilerParams(
            dimension_semantics=("arbitrary",),     # reduction axis: acc persists
            vmem_limit_bytes=32 * 1024 * 1024,
        ),
    )(x, w1, b1, w2, b2)


# ---------------------------------------------------------------------------
# Glue: im2col, parameter init / prep, forward pass
# ---------------------------------------------------------------------------
def im2col(x, kh, kw, stride, padding):
    """x: [B, C, H, W] -> patches [B, OH, OW, C*KH*KW] (C-major, then KH, KW)."""
    B, C, H, W = x.shape
    xp = jnp.pad(x, ((0, 0), (0, 0), (padding, padding), (padding, padding)))
    OH = (H + 2 * padding - kh) // stride + 1
    OW = (W + 2 * padding - kw) // stride + 1
    cols = []
    for i in range(kh):
        for j in range(kw):
            cols.append(xp[:, :, i:i + stride * OH:stride, j:j + stride * OW:stride])
    stacked = jnp.stack(cols, axis=2)                  # [B, C, KH*KW, OH, OW]
    patches = jnp.transpose(stacked, (0, 3, 4, 1, 2))  # [B, OH, OW, C, KH*KW]
    return patches.reshape(B, OH, OW, C * kh * kw), OH, OW


def kaiming_normal(key, shape, fan_in):
    # matches nn.init.kaiming_normal_ (fan_in mode, relu gain): std = sqrt(2/fan_in)
    return jax.random.normal(key, shape, dtype=jnp.float32) * jnp.sqrt(2.0 / fan_in)


def init_params(key, in_ch, feat_ch, kh, kw, backbone_out_dim, hidden=1000):
    """Parameters in PyTorch layout (conv [F,C,KH,KW], linear [out,in])."""
    k_conv, k_fc1, k_fc2 = jax.random.split(key, 3)
    return {
        "conv_w": kaiming_normal(k_conv, (feat_ch, in_ch, kh, kw), in_ch * kh * kw),
        "conv_b": jnp.zeros((feat_ch,), jnp.float32),
        "fc1_w": kaiming_normal(k_fc1, (hidden, backbone_out_dim), backbone_out_dim),
        "fc1_b": jnp.zeros((hidden,), jnp.float32),
        "fc2_w": kaiming_normal(k_fc2, (1, hidden), hidden),
        "fc2_b": jnp.zeros((1,), jnp.float32),
    }


def prepare_params(params, oh, ow, hidden_pad=1024):
    """One-time host-side weight prep: layouts, NHWC permutation, padding, bf16."""
    feat_ch = params["conv_w"].shape[0]
    hidden = params["fc1_w"].shape[0]

    conv_w = params["conv_w"].reshape(feat_ch, -1).T.astype(jnp.bfloat16)  # [C*K*K, F]
    conv_b = params["conv_b"].reshape(1, feat_ch).astype(jnp.float32)

    # Permute fc1 input columns from PyTorch's NCHW flatten (f, oh, ow) to our NHWC
    # flatten (oh, ow, f) so no transpose of the conv output is needed; pad hidden
    # 1000 -> 1024 with zero rows/cols (exactly equivalent numerically).
    w1 = params["fc1_w"].reshape(hidden, feat_ch, oh, ow)
    w1 = jnp.transpose(w1, (0, 2, 3, 1)).reshape(hidden, feat_ch * oh * ow)
    w1 = jnp.pad(w1, ((0, hidden_pad - hidden), (0, 0)))
    w1 = w1.T.astype(jnp.bfloat16)                                         # [D, HP]

    b1 = jnp.pad(params["fc1_b"], (0, hidden_pad - hidden))
    b1 = b1.reshape(1, hidden_pad).astype(jnp.float32)
    w2 = jnp.pad(params["fc2_w"].reshape(1, hidden),
                 ((0, 0), (0, hidden_pad - hidden))).astype(jnp.float32)   # [1, HP]
    b2 = params["fc2_b"].reshape(1, 1).astype(jnp.float32)

    return {"conv_w": conv_w, "conv_b": conv_b,
            "w1": w1, "b1": b1, "w2": w2, "b2": b2}


def view_finding_net_forward(p, image, *, kh=3, kw=3, stride=2, padding=1):
    """image: [B, C, H, W] f32 -> score [B, 1] f32."""
    B = image.shape[0]
    feat_ch = p["conv_w"].shape[1]

    # ---- backbone: conv(k=3, s=2, p=1) + ReLU as a tiled Pallas MXU matmul ----
    patches, OH, OW = im2col(image, kh, kw, stride, padding)
    patches2d = patches.reshape(B * OH * OW, -1).astype(jnp.bfloat16)
    feat = conv_mm(patches2d, p["conv_w"], p["conv_b"], tile_m=128)  # [B*OH*OW, F]

    # ---- flatten stays in NHWC order (fc1 weights were permuted to match) ----
    x = feat.reshape(B, OH * OW * feat_ch)                           # [B, D] bf16

    # ---- fused fc1(+ReLU)+fc2, streamed over D with an f32 accumulator ----
    return mlp_head(x, p["w1"], p["b1"], p["w2"], p["b2"], tile_k=2048)


if __name__ == "__main__":
    key = jax.random.PRNGKey(0)
    k_img, k_params = jax.random.split(key)

    # small shapes: batch=4, channels=4, spatial=16x16; synthetic backbone with
    # F=128 output channels (lane-dense conv output), hidden padded 1000->1024.
    B, C, H, W = 4, 4, 16, 16
    F, KH, KW, STRIDE, PAD = 128, 3, 3, 2, 1
    OH = (H + 2 * PAD - KH) // STRIDE + 1
    OW = (W + 2 * PAD - KW) // STRIDE + 1
    backbone_out_dim = F * OH * OW                   # 128 * 8 * 8 = 8192

    image = jax.random.normal(k_img, (B, C, H, W), dtype=jnp.float32)
    raw_params = init_params(k_params, C, F, KH, KW, backbone_out_dim, hidden=1000)
    params = prepare_params(raw_params, OH, OW, hidden_pad=1024)

    fwd = jax.jit(view_finding_net_forward)
    score = fwd(params, image)
    jax.block_until_ready(score)

    assert score.shape == (B, 1) and score.dtype == jnp.float32
    assert bool(jnp.all(jnp.isfinite(score)))
    print("KERNEL_OK")
</pallas_src>

<mosaic_0001>
module attributes {stable_mosaic.version = 11 : i64} {
  func.func @conv_mm_kernel(%arg0: i32, %arg1: memref<128x36xbf16, #tpu.memory_space<vmem>>, %arg2: memref<36x128xbf16, #tpu.memory_space<vmem>>, %arg3: memref<1x128xf32, #tpu.memory_space<vmem>>, %arg4: memref<128x128xbf16, #tpu.memory_space<vmem>>) attributes {dimension_semantics = [#tpu.dimension_semantics<parallel>], iteration_bounds = array<i64: 2>, scalar_prefetch = 0 : i64, scratch_operands = 0 : i64, tpu.core_type = #tpu.core_type<tc>, window_params = [{transform_indices = @transform_0, window_bounds = array<i64: 128, 36>}, {pipeline_mode = #tpu.pipeline_mode<synchronous>, transform_indices = @transform_1, window_bounds = array<i64: 36, 128>}, {pipeline_mode = #tpu.pipeline_mode<synchronous>, transform_indices = @transform_2, window_bounds = array<i64: 1, 128>}, {transform_indices = @transform_3, window_bounds = array<i64: 128, 128>}]} {
    %c0 = arith.constant 0 : index
    %c0_0 = arith.constant 0 : index
    %0 = vector.load %arg1[%c0, %c0_0] : memref<128x36xbf16, #tpu.memory_space<vmem>>, vector<128x36xbf16>
    %c0_1 = arith.constant 0 : index
    %c0_2 = arith.constant 0 : index
    %1 = vector.load %arg2[%c0_1, %c0_2] : memref<36x128xbf16, #tpu.memory_space<vmem>>, vector<36x128xbf16>
    %cst = arith.constant dense<0.000000e+00> : vector<128x128xf32>
    %2 = tpu.matmul %0, %1, %cst {dimension_numbers = #tpu.dot_dimension_numbers<[1], [0], [0], [1], [0, 0, 1, 1], [], []>} : vector<128x36xbf16>, vector<36x128xbf16>, vector<128x128xf32> -> vector<128x128xf32>
    %c0_3 = arith.constant 0 : index
    %c0_4 = arith.constant 0 : index
    %3 = vector.load %arg3[%c0_3, %c0_4] : memref<1x128xf32, #tpu.memory_space<vmem>>, vector<1x128xf32>
    %4 = vector.broadcast %3 : vector<1x128xf32> to vector<128x128xf32>
    %5 = arith.addf %2, %4 : vector<128x128xf32>
    %cst_5 = arith.constant 0.000000e+00 : f32
    %6 = vector.broadcast %cst_5 : f32 to vector<128x128xf32>
    %7 = arith.maximumf %5, %6 : vector<128x128xf32>
    %8 = arith.truncf %7 : vector<128x128xf32> to vector<128x128xbf16>
    %c0_6 = arith.constant 0 : index
    %c0_7 = arith.constant 0 : index
    %9 = vector.load %arg4[%c0_6, %c0_7] : memref<128x128xbf16, #tpu.memory_space<vmem>>, vector<128x128xbf16>
    tpu.vector_store %arg4[%c0_6, %c0_7], %8 {strides = array<i32>} : memref<128x128xbf16, #tpu.memory_space<vmem>>, vector<128x128xbf16>,
    return
  }
  func.func @transform_0(%arg0: i32) -> (i32, i32) {
    %c0_i32 = arith.constant 0 : i32
    %c0_i32_0 = arith.constant 0 : i32
    return %arg0, %c0_i32 : i32, i32
  }
  func.func @transform_1(%arg0: i32) -> (i32, i32) {
    %c0_i32 = arith.constant 0 : i32
    %c0_i32_0 = arith.constant 0 : i32
    %c0_i32_1 = arith.constant 0 : i32
    return %c0_i32, %c0_i32_0 : i32, i32
  }
  func.func @transform_2(%arg0: i32) -> (i32, i32) {
    %c0_i32 = arith.constant 0 : i32
    %c0_i32_0 = arith.constant 0 : i32
    %c0_i32_1 = arith.constant 0 : i32
    return %c0_i32, %c0_i32_0 : i32, i32
  }
  func.func @transform_3(%arg0: i32) -> (i32, i32) {
    %c0_i32 = arith.constant 0 : i32
    %c0_i32_0 = arith.constant 0 : i32
    return %arg0, %c0_i32 : i32, i32
  }
}

module attributes {stable_mosaic.version = 11 : i64} {
  func.func @mlp_head_kernel(%arg0: i32, %arg1: memref<4x2048xbf16, #tpu.memory_space<vmem>>, %arg2: memref<2048x1024xbf16, #tpu.memory_space<vmem>>, %arg3: memref<1x1024xf32, #tpu.memory_space<vmem>>, %arg4: memref<1x1024xf32, #tpu.memory_space<vmem>>, %arg5: memref<1x1xf32, #tpu.memory_space<smem>>, %arg6: memref<4x1xf32, #tpu.memory_space<vmem>>, %arg7: memref<4x1024xf32, #tpu.memory_space<vmem>>) attributes {dimension_semantics = [#tpu.dimension_semantics<arbitrary>], iteration_bounds = array<i64: 4>, scalar_prefetch = 0 : i64, scratch_operands = 1 : i64, tpu.core_type = #tpu.core_type<tc>, window_params = [{transform_indices = @transform_0, window_bounds = array<i64: 4, 2048>}, {transform_indices = @transform_1, window_bounds = array<i64: 2048, 1024>}, {pipeline_mode = #tpu.pipeline_mode<synchronous>, transform_indices = @transform_2, window_bounds = array<i64: 1, 1024>}, {pipeline_mode = #tpu.pipeline_mode<synchronous>, transform_indices = @transform_3, window_bounds = array<i64: 1, 1024>}, {transform_indices = @transform_4, window_bounds = array<i64: 1, 1>}, {pipeline_mode = #tpu.pipeline_mode<synchronous>, transform_indices = @transform_5, window_bounds = array<i64: 4, 1>}]} {
    %c0_i32 = arith.constant 0 : i32
    %0 = arith.cmpi eq, %arg0, %c0_i32 : i32
    %1 = arith.extui %0 : i1 to i32
    %c0_i32_0 = arith.constant 0 : i32
    %2 = arith.cmpi ne, %1, %c0_i32_0 : i32
    scf.if %2 {
      %cst_9 = arith.constant 0.000000e+00 : f32
      %12 = vector.broadcast %cst_9 : f32 to vector<4x1024xf32>
      %c0_10 = arith.constant 0 : index
      %c0_11 = arith.constant 0 : index
      %13 = vector.load %arg7[%c0_10, %c0_11] : memref<4x1024xf32, #tpu.memory_space<vmem>>, vector<4x1024xf32>
      tpu.vector_store %arg7[%c0_10, %c0_11], %12 {strides = array<i32>} : memref<4x1024xf32, #tpu.memory_space<vmem>>, vector<4x1024xf32>,
    } else {
    }
    %c0 = arith.constant 0 : index
    %c0_1 = arith.constant 0 : index
    %3 = vector.load %arg7[%c0, %c0_1] : memref<4x1024xf32, #tpu.memory_space<vmem>>, vector<4x1024xf32>
    %c0_2 = arith.constant 0 : index
    %c0_3 = arith.constant 0 : index
    %4 = vector.load %arg1[%c0_2, %c0_3] : memref<4x2048xbf16, #tpu.memory_space<vmem>>, vector<4x2048xbf16>
    %c0_4 = arith.constant 0 : index
    %c0_5 = arith.constant 0 : index
    %5 = vector.load %arg2[%c0_4, %c0_5] : memref<2048x1024xbf16, #tpu.memory_space<vmem>>, vector<2048x1024xbf16>
    %cst = arith.constant dense<0.000000e+00> : vector<4x1024xf32>
    %6 = tpu.matmul %4, %5, %cst {dimension_numbers = #tpu.dot_dimension_numbers<[1], [0], [0], [1], [0, 0, 1, 1], [], []>} : vector<4x2048xbf16>, vector<2048x1024xbf16>, vector<4x1024xf32> -> vector<4x1024xf32>
    %7 = arith.addf %3, %6 : vector<4x1024xf32>
    %c0_6 = arith.constant 0 : index
    %c0_7 = arith.constant 0 : index
    %8 = vector.load %arg7[%c0_6, %c0_7] : memref<4x1024xf32, #tpu.memory_space<vmem>>, vector<4x1024xf32>
    tpu.vector_store %arg7[%c0_6, %c0_7], %7 {strides = array<i32>} : memref<4x1024xf32, #tpu.memory_space<vmem>>, vector<4x1024xf32>,
    %c3_i32 = arith.constant 3 : i32
    %9 = arith.cmpi eq, %arg0, %c3_i32 : i32
    %10 = arith.extui %9 : i1 to i32
    %c0_i32_8 = arith.constant 0 : i32
    %11 = arith.cmpi ne, %10, %c0_i32_8 : i32
    scf.if %11 {
      %c0_9 = arith.constant 0 : index
      %c0_10 = arith.constant 0 : index
      %12 = vector.load %arg7[%c0_9, %c0_10] : memref<4x1024xf32, #tpu.memory_space<vmem>>, vector<4x1024xf32>
      %c0_11 = arith.constant 0 : index
      %c0_12 = arith.constant 0 : index
      %13 = vector.load %arg3[%c0_11, %c0_12] : memref<1x1024xf32, #tpu.memory_space<vmem>>, vector<1x1024xf32>
      %14 = vector.broadcast %13 : vector<1x1024xf32> to vector<4x1024xf32>
      %15 = arith.addf %12, %14 : vector<4x1024xf32>
      %cst_13 = arith.constant 0.000000e+00 : f32
      %16 = vector.broadcast %cst_13 : f32 to vector<4x1024xf32>
      %17 = arith.maximumf %15, %16 : vector<4x1024xf32>
      %c0_14 = arith.constant 0 : index
      %c0_15 = arith.constant 0 : index
      %18 = vector.load %arg4[%c0_14, %c0_15] : memref<1x1024xf32, #tpu.memory_space<vmem>>, vector<1x1024xf32>
      %19 = vector.broadcast %18 : vector<1x1024xf32> to vector<4x1024xf32>
      %20 = arith.mulf %17, %19 : vector<4x1024xf32>
      %cst_16 = arith.constant dense<0.000000e+00> : vector<4xf32>
      %21 = vector.multi_reduction <add>, %20, %cst_16 [1] : vector<4x1024xf32> to vector<4xf32>
      %22 = vector.shape_cast %21 : vector<4xf32> to vector<4x1xf32>
      %c0_17 = arith.constant 0 : index
      %c0_18 = arith.constant 0 : index
      %23 = memref.load %arg5[%c0_17, %c0_18] : memref<1x1xf32, #tpu.memory_space<smem>>
      %24 = vector.broadcast %23 : f32 to vector<4x1xf32>
      %25 = arith.addf %22, %24 : vector<4x1xf32>
      %c0_19 = arith.constant 0 : index
      %c0_20 = arith.constant 0 : index
      %26 = vector.load %arg6[%c0_19, %c0_20] : memref<4x1xf32, #tpu.memory_space<vmem>>, vector<4x1xf32>
      tpu.vector_store %arg6[%c0_19, %c0_20], %25 {strides = array<i32>} : memref<4x1xf32, #tpu.memory_space<vmem>>, vector<4x1xf32>,
    } else {
    }
    return
  }
  func.func @transform_0(%arg0: i32) -> (i32, i32) {
    %c0_i32 = arith.constant 0 : i32
    %c0_i32_0 = arith.constant 0 : i32
    return %c0_i32, %arg0 : i32, i32
  }
  func.func @transform_1(%arg0: i32) -> (i32, i32) {
    %c0_i32 = arith.constant 0 : i32
    %c0_i32_0 = arith.constant 0 : i32
    return %arg0, %c0_i32 : i32, i32
  }
  func.func @transform_2(%arg0: i32) -> (i32, i32) {
    %c0_i32 = arith.constant 0 : i32
    %c0_i32_0 = arith.constant 0 : i32
    %c0_i32_1 = arith.constant 0 : i32
    return %c0_i32, %c0_i32_0 : i32, i32
  }
  func.func @transform_3(%arg0: i32) -> (i32, i32) {
    %c0_i32 = arith.constant 0 : i32
    %c0_i32_0 = arith.constant 0 : i32
    %c0_i32_1 = arith.constant 0 : i32
    return %c0_i32, %c0_i32_0 : i32, i32
  }
  func.func @transform_4(%arg0: i32) -> (i32, i32) {
    %c0_i32 = arith.constant 0 : i32
    %c0_i32_0 = arith.constant 0 : i32
    %c0_i32_1 = arith.constant 0 : i32
    return %c0_i32, %c0_i32_0 : i32, i32
  }
  func.func @transform_5(%arg0: i32) -> (i32, i32) {
    %c0_i32 = arith.constant 0 : i32
    %c0_i32_0 = arith.constant 0 : i32
    %c0_i32_1 = arith.constant 0 : i32
    return %c0_i32, %c0_i32_0 : i32, i32
  }
}

</mosaic_0001>

<bundles_post_ra>
// kernel: view_finding_net_forward.2
= control target key start
LH: loop header
LB: loop body
LE: loop exit
PB: predicated region body
PF: predicated region fallthrough
CT: control target
= control target key end

     0   :  { %8 = vsyncpa [#allocation3], 0  ;;  %s822_s0 = inlined_call_operand.vmem [shape: bf16[256,36], index: 0, kind: input, shape index: {}]   ;;  %s823_s1 = inlined_call_operand.hbm [shape: bf16[36,128], index: 1, kind: input, shape index: {}]   ;;  %s824_s2 = inlined_call_operand.hbm [shape: f32[1,128], index: 2, kind: input, shape index: {}]   ;;  %s825_s3 = inlined_call_operand.vmem [shape: bf16[256,128], index: 3, kind: output, shape index: {}]  }
   0x1   :  { %9 = vsyncpa [#allocation5], 0  ;;  %s752_s12 = smov 0  }
   0x2 LB: > { %s125_s15 = sshll.u32 %s823_s1, 4  ;;  %s491_s16 = sadd.s32 4294967295, %s726_s12   ;;  %s726_s12 = sphi %s752_s12, %s15_s12   ;;  %s126_s15 = int_to_ptr.hbm [resolvable:$true] %s125_s15 }
   0x3   : > { %p493_p0 = scmp.ge.s32.totalorder %s726_s12, 1  ;;  %p114_p1 = scmp.lt.s32.totalorder %s726_s12, 3 }
   0x4   : > { %p763_p2 = scmp.eq.s32.totalorder %s491_s16, 0  ;;  %s728_s19 = smov [#allocation2]  }
   0x5   : > { %p767_p3 = pnand %p493_p0, %p114_p1  ;;  %s127_s20 = sshll.u32 %s728_s19, 4  ;;  %s128_s20 = int_to_ptr.vmem [resolvable:$true] %s127_s20 }
   0x6   : > { %s140_s23 = sshll.u32 %s824_s2, 4  ;;  %s729_s24 = smov [#allocation4]   ;;  %s141_s23 = int_to_ptr.hbm [resolvable:$true] %s140_s23 }
   0x7   : > { %p628_p4 = pneg %p767_p3  ;;  %s142_s25 = sshll.u32 %s729_s24, 4  ;;  %s143_s25 = int_to_ptr.vmem [resolvable:$true] %s142_s25 }
   0x8   : > { %s730_s26 = smov 64   ;;  %s731_s27 = smov 4  }
   0x9   : > { %p629_p5 = pnand %p763_p2, %p628_p4  ;;  %164 = sbr.rel (%p767_p3) target bundleno = 199 (0xc7), region = 32 }
   0xb   : > { %631 = dma.hbm_to_vmem [thread:$0]  (!%p629_p5), %s126_s15, 320, %s128_s20, [#allocation3], %s730_s26, %s730_s26, %s731_s27  }
   0xc   : > { %634 = dma.hbm_to_vmem [thread:$0]  (!%p629_p5), %s141_s23, 16, %s143_s25, [#allocation5]  }
   0xe   : > { %717 = dma.done.wait (%p763_p2), [#allocation3], 320  }
   0xf   : > { %719 = vsyncadd (%p763_p2), [#allocation3], 4294966976 }
  0x10   : > { %721 = dma.done.wait (%p763_p2), [#allocation5], 16  }
  0x11   : > { %723 = vsyncadd (%p763_p2), [#allocation5], 4294967280  ;;  %s500_s28 = sshll.u32 %s491_s16, 4  ;;  %v227_v0 = vld [vmem:[#allocation2 + $0x10] sm:$0x3]  ;;  %vm312_vm0 = vcmask 1041408  }
  0x12   : > { %p195_p6 = scmp.lt.s32.totalorder %s500_s28, 31  ;;  %v281_v1 = vunpack.c.l.b16 %v227_v0  ;;  %v563_v4 = vld [vmem:[#allocation2 + $0x8] sm:$0xff]  ;;  %v562_v5 = vld [vmem:[#allocation2] sm:$0xff]  ;;  %vm287_vm1 = vcmask 293888   ;;  %v651_v16 = vld [vmem:[#allocation4] ss:$0 sm:$0xff] }
  0x14   : > { %v284_v2 = vpack.c.b16 %v281_v1, %v281_v1  ;;  %s829_s28 = smov (!%p195_p6, %s500_s28), 31 }
  0x15   : > { %s501_s29 = sshll.u32 %s829_s28, 2 }
  0x16   : > { %v314_v3 = vsel %vm312_vm0, %v284_v2, 0  ;;  %s198_s5 = scalar_lea.vmem %s822_s0, %s501_s29  ;;  %s809_s8 = scalar_lea.vmem %s825_s3, %s501_s29 }
  0x17   : > { %321 = vmatpush.bf16.msra.mxu0 %v314_v3  ;;  %611 = vmatpush.bf16.msra.mxu1 %v314_v3  ;;  %v554_v6 = vld [vmem:[%s198_s5] sm:$0xff]  ;;  %v556_v7 = vld [vmem:[%s198_s5 + $0x10] sm:$0xff]  ;;  %v555_v10 = vld [vmem:[%s198_s5 + $0x8] sm:$0xff] }
  0x18   : > { %612 = vmatpush.bf16.msra.mxu2 %v314_v3  ;;  %613 = vmatpush.bf16.msra.mxu3 %v314_v3  ;;  %v558_v8 = vld [vmem:[%s198_s5 + $0x20] sm:$0xff]  ;;  %v560_v9 = vld [vmem:[%s198_s5 + $0x30] sm:$0xff]  ;;  %v557_v11 = vld [vmem:[%s198_s5 + $0x18] sm:$0xff] }
  0x19   : > { %v559_v12 = vld [vmem:[%s198_s5 + $0x28] sm:$0xff]  ;;  %v561_v13 = vld [vmem:[%s198_s5 + $0x38] sm:$0xff] }
  0x1b   : > { %322 = vmatpush.bf16.msra.mxu0 %v563_v4  ;;  %614 = vmatpush.bf16.msra.mxu1 %v563_v4 }
  0x1c   : > { %615 = vmatpush.bf16.msra.mxu2 %v563_v4  ;;  %616 = vmatpush.bf16.msra.mxu3 %v563_v4 }
  0x1f   : > { %323 = vmatpush.bf16.msra.mxu0 %v562_v5  ;;  %617 = vmatpush.bf16.msra.mxu1 %v562_v5 }
  0x20   : > { %618 = vmatpush.bf16.msra.mxu2 %v562_v5  ;;  %619 = vmatpush.bf16.msra.mxu3 %v562_v5 }
  0x22   : > { %544 = vmatmul.msk.bf16.vlgmr.msra.gmra.mxu0 %vm287_vm1, %v554_v6  ;;  %546 = vmatmul.msk.bf16.vlgmr.msra.gmra.mxu1 %vm287_vm1, %v556_v7 }
  0x23   : > { %548 = vmatmul.msk.bf16.vlgmr.msra.gmra.mxu2 %vm287_vm1, %v558_v8  ;;  %550 = vmatmul.msk.bf16.vlgmr.msra.gmra.mxu3 %vm287_vm1, %v560_v9 }
  0x32   : > { %545 = vmatmul.msk.bf16.gmra.mxu0 %vm287_vm1, %v555_v10  ;;  %547 = vmatmul.msk.bf16.gmra.mxu1 %vm287_vm1, %v557_v11 }
  0x33   : > { %549 = vmatmul.msk.bf16.gmra.mxu2 %vm287_vm1, %v559_v12  ;;  %551 = vmatmul.msk.bf16.gmra.mxu3 %vm287_vm1, %v561_v13 }
  0x9f   : > { %v325_v14 = vpop.f32.mrf.mxu0  ;;  %v335_v15 = vpop.f32.mrf.mxu1 }
  0xa0   : > { %v326_v17 = vadd.f32 %v651_v16, %v325_v14  ;;  %v336_v18 = vadd.f32 %v651_v16, %v335_v15 }
  0xa2   : > { %v365_v25 = vmax.f32 %v326_v17, 0.0  ;;  %v369_v26 = vmax.f32 %v336_v18, 0.0 }
  0xa6   : > { %v345_v19 = vpop.f32.mrf.mxu2  ;;  %v355_v20 = vpop.f32.mrf.mxu3 }
  0xa7   : > { %v327_v21 = vpop.f32.mrf.mxu0  ;;  %v337_v22 = vpop.f32.mrf.mxu1  ;;  %v346_v31 = vadd.f32 %v651_v16, %v345_v19  ;;  %v356_v32 = vadd.f32 %v651_v16, %v355_v20 }
  0xa8   : > { %v328_v23 = vadd.f32 %v651_v16, %v327_v21  ;;  %v338_v24 = vadd.f32 %v651_v16, %v337_v22 }
  0xa9   : > { %v373_v39 = vmax.f32 %v346_v31, 0.0  ;;  %v377_v40 = vmax.f32 %v356_v32, 0.0 }
  0xaa   : > { %v366_v27 = vmax.f32 %v328_v23, 0.0  ;;  %v370_v28 = vmax.f32 %v338_v24, 0.0 }
  0xac   : > { %v567_v29 = vpack.c.bf16 %v366_v27, %v365_v25  ;;  %v577_v30 = vpack.c.bf16 %v370_v28, %v369_v26 }
  0xae   : > { %568 = vst [vmem:[%s809_s8] sm:$0xff] %v567_v29   ;;  %v347_v33 = vpop.f32.mrf.mxu2  ;;  %v357_v34 = vpop.f32.mrf.mxu3 }
  0xaf   : > { %605 = vst [vmem:[%s809_s8 + $0x10] sm:$0xff] %v577_v30   ;;  %v348_v35 = vadd.f32 %v651_v16, %v347_v33  ;;  %v358_v36 = vadd.f32 %v651_v16, %v357_v34  ;;  %v330_v37 = vpop.f32.mrf.mxu0  ;;  %v340_v38 = vpop.f32.mrf.mxu1 }
  0xb0   : > { %v331_v45 = vadd.f32 %v651_v16, %v330_v37  ;;  %v341_v46 = vadd.f32 %v651_v16, %v340_v38 }
  0xb1   : > { %v374_v41 = vmax.f32 %v348_v35, 0.0  ;;  %v378_v42 = vmax.f32 %v358_v36, 0.0 }
  0xb2   : > { %v367_v53 = vmax.f32 %v331_v45, 0.0  ;;  %v371_v54 = vmax.f32 %v341_v46, 0.0 }
  0xb3   : > { %v587_v43 = vpack.c.bf16 %v374_v41, %v373_v39  ;;  %v597_v44 = vpack.c.bf16 %v378_v42, %v377_v40 }
  0xb5   : > { %607 = vst [vmem:[%s809_s8 + $0x20] sm:$0xff] %v587_v43  }
  0xb6   : > { %609 = vst [vmem:[%s809_s8 + $0x30] sm:$0xff] %v597_v44   ;;  %v350_v47 = vpop.f32.mrf.mxu2  ;;  %v360_v48 = vpop.f32.mrf.mxu3 }
  0xb7   : > { %v332_v49 = vpop.f32.mrf.mxu0  ;;  %v342_v50 = vpop.f32.mrf.mxu1  ;;  %v351_v59 = vadd.f32 %v651_v16, %v350_v47  ;;  %v361_v60 = vadd.f32 %v651_v16, %v360_v48 }
  0xb8   : > { %v333_v51 = vadd.f32 %v651_v16, %v332_v49  ;;  %v343_v52 = vadd.f32 %v651_v16, %v342_v50 }
  0xb9   : > { %v375_v1 = vmax.f32 %v351_v59, 0.0  ;;  %v379_v2 = vmax.f32 %v361_v60, 0.0 }
  0xba   : > { %v368_v55 = vmax.f32 %v333_v51, 0.0  ;;  %v372_v56 = vmax.f32 %v343_v52, 0.0 }
  0xbc   : > { %v572_v57 = vpack.c.bf16 %v368_v55, %v367_v53  ;;  %v582_v58 = vpack.c.bf16 %v372_v56, %v371_v54 }
  0xbe   : > { %604 = vst [vmem:[%s809_s8 + $0x8] sm:$0xff] %v572_v57   ;;  %v352_v61 = vpop.f32.mrf.mxu2  ;;  %v362_v62 = vpop.f32.mrf.mxu3 }
  0xbf   : > { %606 = vst [vmem:[%s809_s8 + $0x18] sm:$0xff] %v582_v58   ;;  %v353_v63 = vadd.f32 %v651_v16, %v352_v61  ;;  %v363_v0 = vadd.f32 %v651_v16, %v362_v62 }
  0xc1   : > { %v376_v3 = vmax.f32 %v353_v63, 0.0  ;;  %v380_v4 = vmax.f32 %v363_v0, 0.0 }
  0xc3   : > { %v592_v5 = vpack.c.bf16 %v376_v3, %v375_v1  ;;  %v602_v6 = vpack.c.bf16 %v380_v4, %v379_v2 }
  0xc5   : > { %608 = vst [vmem:[%s809_s8 + $0x28] sm:$0xff] %v592_v5  }
  0xc6   : > { %610 = vst [vmem:[%s809_s8 + $0x38] sm:$0xff] %v602_v6  }
  0xc7 PF: > { %s15_s12 = sadd.s32 1, %s726_s12  }
  0xc8   : > { %p12_p7 = scmp.ge.s32.totalorder %s15_s12, 4  }
  0xca   :  { %14 = sbr.rel (!%p12_p7) target bundleno = 2 (0x2), region = 71 }
  0xcf   :  { %435 = vsyncpa [#allocation3], 1 }
  0xd0   :  { %437 = vsyncpa [#allocation3 + $0x1], 1 }
  0xd1   :  { %438 = vsyncpa [#allocation5], 1 }

// kernel: view_finding_net_forward.3
= control target key start
LH: loop header
LB: loop body
LE: loop exit
PB: predicated region body
PF: predicated region fallthrough
CT: control target
= control target key end

     0   :  { %s16188_s0 = inlined_call_operand.vmem [shape: bf16[4,8192], index: 0, kind: input, shape index: {}]   ;;  %s16189_s1 = inlined_call_operand.hbm [shape: bf16[8192,1024], index: 1, kind: input, shape index: {}]   ;;  %s16190_s2 = inlined_call_operand.hbm [shape: f32[1,1024], index: 2, kind: input, shape index: {}]   ;;  %s16191_s3 = inlined_call_operand.hbm [shape: f32[1,1024], index: 3, kind: input, shape index: {}]   ;;  %s16192_s4 = inlined_call_operand.<no memory space> [shape: f32[1,1], index: 4, kind: input, shape index: {}]   ;;  %s16193_s5 = inlined_call_operand.vmem [shape: f32[4,1], index: 5, kind: output, shape index: {}]  }
   0x1   :  { %10 = sst [smem:[#allocation3]] %s16192_s4 }
   0x2   :  { %11 = vsyncpa [#allocation5], 0 }
   0x3   :  { %13 = vsyncpa [#allocation5 + $0x1], 0 }
   0x4   :  { %14 = vsyncpa [#allocation7], 0  ;;  %s13791_s20 = smov 0   ;;  %s13793_s21 = smov 0  }
   0x5   :  { %s13795_s22 = smov 0   ;;  %s13797_s23 = smov 0  }
   0x6 LB: > { %s13810_s4 = sadd.s32 4294967295, %s13751_s23   ;;  %s13813_s24 = sadd.s32 1, %s13751_s23   ;;  %s13751_s23 = sphi %s13797_s23, %s16201_s23   ;;  %s13747_s22 = sphi %s13795_s22, %s16200_s22   ;;  %s13743_s21 = sphi %s13793_s21, %s16199_s21   ;;  %s13739_s20 = sphi %s13791_s20, %s16198_s20  }
   0x7   : > { %s50_s25 = ssub.s32 %s13751_s23, %s13813_s24  ;;  %s53_s26 = sadd.s32 1, %s13747_s22 }
   0x8   : > { %p51_p0 = scmp.eq.s32.totalorder %s50_s25, 0  ;;  %p60_p1 = scmp.ne.s32.totalorder %s13747_s22, %s13743_s21 }
   0x9   : > { %p61_p2 = scmp.eq.s32.totalorder %s13751_s23, 0  ;;  %p66_p3 = scmp.ne.s32.totalorder %s13743_s21, %s13739_s20 }
   0xa   : > { %s13823_s27 = scalar_select %p51_p0, %s13747_s22, %s53_s26  }
   0xb   : > { %p13825_p4 = por %p61_p2, %p60_p1  ;;  %p67_p5 = scmp.eq.s32.totalorder %s13810_s4, 0 }
   0xc   : > { %p8364_p6 = scmp.ge.s32.totalorder %s13751_s23, 1  ;;  %p161_p7 = scmp.lt.s32.totalorder %s13751_s23, 5 }
   0xd   : > { %p13834_p8 = por %p67_p5, %p66_p3  ;;  %p8365_p9 = scmp.ne.s32.totalorder %s13810_s4, 0 }
   0xe   : > { %p13839_p10 = pnand %p8364_p6, %p161_p7  ;;  %s173_s8 = sshll.u32 %s16190_s2, 4  ;;  %s174_s8 = int_to_ptr.hbm [resolvable:$true] %s173_s8 }
   0xf   : > { %s13753_s9 = smov [#allocation6]   ;;  %p13527_p13 = scmp.lt.s32.totalorder %s13751_s23, 4 }
  0x10   : > { %p13514_p11 = pneg %p13839_p10  ;;  %s175_s10 = sshll.u32 %s13753_s9, 4  ;;  %s176_s10 = int_to_ptr.vmem [resolvable:$true] %s175_s10 }
  0x11   : > { %s185_s13 = sshll.u32 %s16191_s3, 4  ;;  %p13856_p0 = pnand %p13527_p13, %p13825_p4  ;;  %s186_s13 = int_to_ptr.hbm [resolvable:$true] %s185_s13 }
  0x12   : > { %p13515_p12 = pnand %p13514_p11, %p67_p5  ;;  %s13754_s15 = smov [#allocation8]  }
  0x13   : > { %s187_s16 = sshll.u32 %s13754_s15, 4  ;;  %s210_s17 = sand.u32 1, %s13747_s22   ;;  %s188_s16 = int_to_ptr.vmem [resolvable:$true] %s187_s16 }
  0x14   : > { %13517 = dma.hbm_to_vmem [thread:$0]  (!%p13515_p12), %s174_s8, 128, %s176_s10, [#allocation7]  }
  0x15   : > { %13520 = dma.hbm_to_vmem [thread:$0]  (!%p13515_p12), %s186_s13, 128, %s188_s16, [#allocation7]  }
  0x16   : > { %s8368_s18 = sshll.u32 %s210_s17, 13  ;;  %s12479_s19 = sshll.u32 %s13751_s23, 13 }
  0x17   : > { %s220_s26 = scalar_lea.hbm %s16189_s1, %s12479_s19  ;;  %s214_s28 = scalar_lea.vmem [#allocation4], %s8368_s18 }
  0x18   : > { %s221_s6 = sshll.u32 %s220_s26, 4  ;;  %s223_s7 = sshll.u32 %s214_s28, 4  ;;  %s222_s6 = int_to_ptr.hbm [resolvable:$true] %s221_s6  ;;  %s224_s7 = int_to_ptr.vmem [resolvable:$true] %s223_s7 }
  0x19   : > { %s211_s9 = scalar_lea.sflag [#allocation5], %s210_s17  ;;  %s13683_s8 = sshra.s32 %s222_s6, 4  ;;  %s13684_s8 = int_to_ptr.hbm [resolvable:$true] %s13683_s8 }
  0x1a   : > { %s13685_s10 = scalar_lea.hbm %s13684_s8, 8192  ;;  %p13687_p2 = pneg %p13856_p0 }
  0x1b   : > { %p13686_p1 = scmp.ne.s32.totalorder %s13684_s8, %s13685_s10  ;;  %s13690_s12 = scalar_lea.hbm %s16189_s1, 32768 }
  0x1c   : > { %p13691_p6 = scmp.lt.s32.totalorder %s13684_s8, %s16189_s1  ;;  %p13692_p7 = scmp.lt.s32.totalorder %s13690_s12, %s13685_s10 }
  0x1d   : > { %p13688_p3 = pnand %p13687_p2, %p13686_p1 }
  0x1e   : > { %p13693_p11 = por %p13692_p7, %p13691_p6 }
  0x1f   : > { %p13689_p4 = pneg %p13688_p3 }
  0x21   : > { %p13694_p12 = pnand %p13693_p11, %p13689_p4 }
  0x23   : > { %13697 = shalt.err (!%p13694_p12)
}
  0x24   : > { %s13755_s16 = smov 512   ;;  %s13756_s17 = smov 32  }
  0x25   : > { %13524 = dma.hbm_to_vmem [thread:$0]  (!%p13856_p0), %s222_s6, 131072, %s224_s7, %s211_s9, %s13755_s16, %s13755_s16, %s13756_s17  }
  0x26   : > { %235 = sbr.rel (%p13839_p10) target bundleno = 2196 (0x894), region = 40  ;;  %s237_s18 = sand.u32 (!%p13839_p10), 1, %s13743_s21  }
  0x27   : > { %s8373_s19 = sshll.u32 (!%p13839_p10), %s237_s18, 13  ;;  %s238_s20 = scalar_lea.sflag (!%p13839_p10), [#allocation5], %s237_s18 }
  0x28   : > { %s13878_s25 = scalar_lea.vmem (!%p13839_p10), [#allocation4], %s8373_s19 }
  0x2b   : > { %13730 = dma.done.wait (%p13834_p8), %s238_s20, 131072  }
  0x2c   : > { %13732 = vsyncadd (%p13834_p8), %s238_s20, 4294836224 }
  0x2d   : > { %13734 = dma.done.wait (%p67_p5), [#allocation7], 256  }
  0x2e   : > { %13736 = vsyncadd (%p67_p5), [#allocation7], 4294967040  ;;  %s8376_s30 = sshll.u32 %s13810_s4, 4 }
  0x2f   : > { %p280_p10 = scmp.lt.s32.totalorder %s8376_s30, 63  ;;  %289 = sbr.rel (%p8365_p9) target bundleno = 57 (0x39), region = 56 }
  0x31   : > { %s16203_s30 = smov (!%p280_p10, %s8376_s30), 63 }
  0x32   : > { %s8377_s14 = sshll.u32 %s16203_s30, 1 }
  0x33   : > { %s13892_s28 = scalar_lea.vmem %s16188_s0, %s8377_s14 }
  0x34   : > { %v13757_v0 = vmov 0.0  }
  0x35   : > { %290 = vst [vmem:[#allocation2 + $0x10] sm:$0xff] %v13757_v0 }
  0x36   : > { %291 = vst [vmem:[#allocation2] sm:$0xff] %v13757_v0 }
  0x37   : > { %292 = vst [vmem:[#allocation2 + $0x18] sm:$0xff] %v13757_v0 }
  0x38   : > { %293 = vst [vmem:[#allocation2 + $0x8] sm:$0xff] %v13757_v0 }
  0x39 PF: > { %v8605_v1 = vld [vmem:[%s13878_s25 + $0x1c0] sm:$0xf]  ;;  %vm8163_vm0 = vcmask 1043456   ;;  %p12475_p5 = scmp.ne.s32.totalorder %s13810_s4, 3 }
  0x3a   : > { %v12540_v2 = vld [vmem:[%s13878_s25 + $0x1dc] sm:$0xf0]  ;;  %s8288_s4 = sld [smem:[#allocation3]] (!%p12475_p5) }
  0x3b   : > { %v8861_v3 = vld [vmem:[%s13878_s25 + $0x3c0] sm:$0xf]  ;;  %v8606_v4 = vor.u32 %v12540_v2, %v8605_v1 }
  0x3c   : > { %v12604_v5 = vld [vmem:[%s13878_s25 + $0x3dc] sm:$0xf0] }
  0x3d   : > { %v9117_v6 = vld [vmem:[%s13878_s25 + $0x5c0] sm:$0xf]  ;;  %v8862_v8 = vor.u32 %v12604_v5, %v8861_v3  ;;  %6487 = vmatpush.bf16.msra.mxu0 %v8606_v4 }
  0x3e   : > { %v12668_v7 = vld [vmem:[%s13878_s25 + $0x5dc] sm:$0xf0] }
  0x3f   : > { %v9118_v9 = vor.u32 %v12668_v7, %v9117_v6  ;;  %v9373_v10 = vld [vmem:[%s13878_s25 + $0x7c0] sm:$0xf]  ;;  %6500 = vmatpush.bf16.msra.mxu1 %v8862_v8 }
  0x40   : > { %v12732_v11 = vld [vmem:[%s13878_s25 + $0x7dc] sm:$0xf0] }
  0x41   : > { %v8573_v12 = vld [vmem:[%s13878_s25 + $0x180] sm:$0xf]  ;;  %v9374_v13 = vor.u32 %v12732_v11, %v9373_v10  ;;  %6513 = vmatpush.bf16.msra.mxu2 %v9118_v9 }
  0x42   : > { %v12532_v14 = vld [vmem:[%s13878_s25 + $0x19c] sm:$0xf0] }
  0x43   : > { %v8829_v15 = vld [vmem:[%s13878_s25 + $0x380] sm:$0xf]  ;;  %v8574_v17 = vor.u32 %v12532_v14, %v8573_v12  ;;  %6526 = vmatpush.bf16.msra.mxu3 %v9374_v13 }
  0x44   : > { %v12596_v16 = vld [vmem:[%s13878_s25 + $0x39c] sm:$0xf0] }
  0x45   : > { %v8830_v18 = vor.u32 %v12596_v16, %v8829_v15  ;;  %v9085_v19 = vld [vmem:[%s13878_s25 + $0x580] sm:$0xf]  ;;  %6488 = vmatpush.bf16.msra.mxu0 %v8574_v17 }
  0x46   : > { %v12660_v20 = vld [vmem:[%s13878_s25 + $0x59c] sm:$0xf0] }
  0x47   : > { %v9341_v21 = vld [vmem:[%s13878_s25 + $0x780] sm:$0xf]  ;;  %v9086_v22 = vor.u32 %v12660_v20, %v9085_v19  ;;  %6501 = vmatpush.bf16.msra.mxu1 %v8830_v18 }
  0x48   : > { %v12724_v23 = vld [vmem:[%s13878_s25 + $0x79c] sm:$0xf0] }
  0x49   : > { %v8541_v24 = vld [vmem:[%s13878_s25 + $0x140] sm:$0xf]  ;;  %v9342_v26 = vor.u32 %v12724_v23, %v9341_v21  ;;  %6514 = vmatpush.bf16.msra.mxu2 %v9086_v22 }
  0x4a   : > { %v12524_v25 = vld [vmem:[%s13878_s25 + $0x15c] sm:$0xf0] }
  0x4b   : > { %v8797_v27 = vld [vmem:[%s13878_s25 + $0x340] sm:$0xf]  ;;  %v8542_v30 = vor.u32 %v12524_v25, %v8541_v24  ;;  %6527 = vmatpush.bf16.msra.mxu3 %v9342_v26 }
  0x4c   : > { %v12588_v28 = vld [vmem:[%s13878_s25 + $0x35c] sm:$0xf0] }
  0x4d   : > { %v9053_v29 = vld [vmem:[%s13878_s25 + $0x540] sm:$0xf]  ;;  %v8798_v34 = vor.u32 %v12588_v28, %v8797_v27  ;;  %6489 = vmatpush.bf16.msra.mxu0 %v8542_v30 }
  0x4e   : > { %v12652_v31 = vld [vmem:[%s13878_s25 + $0x55c] sm:$0xf0] }
  0x4f   : > { %v9309_v32 = vld [vmem:[%s13878_s25 + $0x740] sm:$0xf]  ;;  %v9054_v35 = vor.u32 %v12652_v31, %v9053_v29  ;;  %6502 = vmatpush.bf16.msra.mxu1 %v8798_v34 }
  0x50   : > { %v12716_v33 = vld [vmem:[%s13878_s25 + $0x75c] sm:$0xf0] }
  0x51   : > { %v8509_v36 = vld [vmem:[%s13878_s25 + $0x100] sm:$0xf]  ;;  %v9310_v39 = vor.u32 %v12716_v33, %v9309_v32  ;;  %6515 = vmatpush.bf16.msra.mxu2 %v9054_v35 }
  0x52   : > { %v12516_v37 = vld [vmem:[%s13878_s25 + $0x11c] sm:$0xf0] }
  0x53   : > { %v8765_v38 = vld [vmem:[%s13878_s25 + $0x300] sm:$0xf]  ;;  %v8510_v45 = vor.u32 %v12516_v37, %v8509_v36  ;;  %6528 = vmatpush.bf16.msra.mxu3 %v9310_v39 }
  0x54   : > { %v12580_v40 = vld [vmem:[%s13878_s25 + $0x31c] sm:$0xf0] }
  0x55   : > { %v9021_v41 = vld [vmem:[%s13878_s25 + $0x500] sm:$0xf]  ;;  %v8766_v46 = vor.u32 %v12580_v40, %v8765_v38  ;;  %6490 = vmatpush.bf16.msra.mxu0 %v8510_v45 }
  0x56   : > { %v12644_v42 = vld [vmem:[%s13878_s25 + $0x51c] sm:$0xf0] }
  0x57   : > { %v9277_v43 = vld [vmem:[%s13878_s25 + $0x700] sm:$0xf]  ;;  %v9022_v47 = vor.u32 %v12644_v42, %v9021_v41  ;;  %6503 = vmatpush.bf16.msra.mxu1 %v8766_v46 }
  0x58   : > { %v12708_v44 = vld [vmem:[%s13878_s25 + $0x71c] sm:$0xf0] }
  0x59   : > { %v8477_v48 = vld [vmem:[%s13878_s25 + $0xc0] sm:$0xf]  ;;  %v9278_v51 = vor.u32 %v12708_v44, %v9277_v43  ;;  %6516 = vmatpush.bf16.msra.mxu2 %v9022_v47 }
  0x5a   : > { %v12508_v49 = vld [vmem:[%s13878_s25 + $0xdc] sm:$0xf0] }
  0x5b   : > { %v8733_v50 = vld [vmem:[%s13878_s25 + $0x2c0] sm:$0xf]  ;;  %v8478_v57 = vor.u32 %v12508_v49, %v8477_v48  ;;  %6529 = vmatpush.bf16.msra.mxu3 %v9278_v51 }
  0x5c   : > { %v12572_v52 = vld [vmem:[%s13878_s25 + $0x2dc] sm:$0xf0] }
  0x5d   : > { %v8989_v53 = vld [vmem:[%s13878_s25 + $0x4c0] sm:$0xf]  ;;  %v8734_v58 = vor.u32 %v12572_v52, %v8733_v50  ;;  %6491 = vmatpush.bf16.msra.mxu0 %v8478_v57 }
  0x5e   : > { %v12636_v54 = vld [vmem:[%s13878_s25 + $0x4dc] sm:$0xf0] }
  0x5f   : > { %v9245_v55 = vld [vmem:[%s13878_s25 + $0x6c0] sm:$0xf]  ;;  %v8990_v59 = vor.u32 %v12636_v54, %v8989_v53  ;;  %6504 = vmatpush.bf16.msra.mxu1 %v8734_v58 }
  0x60   : > { %v12700_v56 = vld [vmem:[%s13878_s25 + $0x6dc] sm:$0xf0] }
  0x61   : > { %v8445_v60 = vld [vmem:[%s13878_s25 + $0x80] sm:$0xf]  ;;  %v9246_v63 = vor.u32 %v12700_v56, %v9245_v55  ;;  %6517 = vmatpush.bf16.msra.mxu2 %v8990_v59 }
  0x62   : > { %v12500_v61 = vld [vmem:[%s13878_s25 + $0x9c] sm:$0xf0] }
  0x63   : > { %v8701_v62 = vld [vmem:[%s13878_s25 + $0x280] sm:$0xf]  ;;  %v8446_v5 = vor.u32 %v12500_v61, %v8445_v60  ;;  %6530 = vmatpush.bf16.msra.mxu3 %v9246_v63  ;;  %v298_v60 = vld [vmem:[%s13892_s28] sm:$0xff] }
  0x64   : > { %v12564_v0 = vld [vmem:[%s13878_s25 + $0x29c] sm:$0xf0]  ;;  %1327 = vst [vmem:[#allocation1] ss:$4 sm:$0xff] %v298_v60 }
  0x65   : > { %v8957_v1 = vld [vmem:[%s13878_s25 + $0x480] sm:$0xf]  ;;  %v8702_v6 = vor.u32 %v12564_v0, %v8701_v62  ;;  %6492 = vmatpush.bf16.msra.mxu0 %v8446_v5 }
  0x66   : > { %v12628_v2 = vld [vmem:[%s13878_s25 + $0x49c] sm:$0xf0] }
  0x67   : > { %v9213_v3 = vld [vmem:[%s13878_s25 + $0x680] sm:$0xf]  ;;  %v8958_v7 = vor.u32 %v12628_v2, %v8957_v1  ;;  %6505 = vmatpush.bf16.msra.mxu1 %v8702_v6 }
  0x68   : > { %v12692_v4 = vld [vmem:[%s13878_s25 + $0x69c] sm:$0xf0] }
  0x69   : > { %v8413_v8 = vld [vmem:[%s13878_s25 + $0x40] sm:$0xf]  ;;  %v9214_v11 = vor.u32 %v12692_v4, %v9213_v3  ;;  %6518 = vmatpush.bf16.msra.mxu2 %v8958_v7 }
  0x6a   : > { %v12492_v9 = vld [vmem:[%s13878_s25 + $0x5c] sm:$0xf0] }
  0x6b   : > { %v8669_v10 = vld [vmem:[%s13878_s25 + $0x240] sm:$0xf]  ;;  %v8414_v17 = vor.u32 %v12492_v9, %v8413_v8  ;;  %6531 = vmatpush.bf16.msra.mxu3 %v9214_v11 }
  0x6c   : > { %v12556_v12 = vld [vmem:[%s13878_s25 + $0x25c] sm:$0xf0] }
  0x6d   : > { %v8925_v13 = vld [vmem:[%s13878_s25 + $0x440] sm:$0xf]  ;;  %v8670_v20 = vor.u32 %v12556_v12, %v8669_v10  ;;  %6493 = vmatpush.bf16.msra.mxu0 %v8414_v17 }
  0x6e   : > { %v12620_v14 = vld [vmem:[%s13878_s25 + $0x45c] sm:$0xf0] }
  0x6f   : > { %v9181_v15 = vld [vmem:[%s13878_s25 + $0x640] sm:$0xf]  ;;  %v8926_v21 = vor.u32 %v12620_v14, %v8925_v13  ;;  %6506 = vmatpush.bf16.msra.mxu1 %v8670_v20 }
  0x70   : > { %v12684_v16 = vld [vmem:[%s13878_s25 + $0x65c] sm:$0xf0] }
  0x71   : > { %v8381_v18 = vld [vmem:[%s13878_s25] sm:$0xf]  ;;  %v9182_v25 = vor.u32 %v12684_v16, %v9181_v15  ;;  %6519 = vmatpush.bf16.msra.mxu2 %v8926_v21  ;;  %v300_v21 = vld [vmem:[%s13892_s28 + $0x10] sm:$0xff] }
  0x72   : > { %v12484_v19 = vld [vmem:[%s13878_s25 + $0x1c] sm:$0xf0] }
  0x73   : > { %v8637_v22 = vld [vmem:[%s13878_s25 + $0x200] sm:$0xf]  ;;  %v8382_v32 = vor.u32 %v12484_v19, %v8381_v18  ;;  %6532 = vmatpush.bf16.msra.mxu3 %v9182_v25  ;;  %v14002_v25 = vld.sshfl [vmem:[#allocation1] sm:$0xff pattern:$0x73625140] }
  0x74   : > { %v12548_v23 = vld [vmem:[%s13878_s25 + $0x21c] sm:$0xf0] }
  0x75   : > { %v8893_v24 = vld [vmem:[%s13878_s25 + $0x400] sm:$0xf]  ;;  %v8638_v36 = vor.u32 %v12548_v23, %v8637_v22  ;;  %6494 = vmatpush.bf16.msra.mxu0 %v8382_v32 }
  0x76   : > { %v12612_v26 = vld [vmem:[%s13878_s25 + $0x41c] sm:$0xf0] }
  0x77   : > { %v9149_v27 = vld [vmem:[%s13878_s25 + $0x600] sm:$0xf]  ;;  %v8894_v37 = vor.u32 %v12612_v26, %v8893_v24  ;;  %6507 = vmatpush.bf16.msra.mxu1 %v8638_v36  ;;  %v14000_v24 = vld.sshfl [vmem:[#allocation1 + $0x10] sm:$0xff pattern:$0x73625140] }
  0x78   : > { %v12676_v28 = vld [vmem:[%s13878_s25 + $0x61c] sm:$0xf0]  ;;  %6495 = vmatmul.bf16.vlgmr.msra.gmra.mxu0 %v14002_v25 }
  0x79   : > { %v9629_v29 = vld [vmem:[%s13878_s25 + $0x9c0] sm:$0xf]  ;;  %v9150_v40 = vor.u32 %v12676_v28, %v9149_v27  ;;  %6520 = vmatpush.bf16.msra.mxu2 %v8894_v37  ;;  %v14005_v27 = vld.sshfl [vmem:[#allocation1 + $0x18] sm:$0xff pattern:$0x73625140] }
  0x7a   : > { %v12796_v30 = vld [vmem:[%s13878_s25 + $0x9dc] sm:$0xf0] }
  0x7b   : > { %v9885_v31 = vld [vmem:[%s13878_s25 + $0xbc0] sm:$0xf]  ;;  %v9630_v41 = vor.u32 %v12796_v30, %v9629_v29  ;;  %6533 = vmatpush.bf16.msra.mxu3 %v9150_v40 }
  0x7c   : > { %v12860_v33 = vld [vmem:[%s13878_s25 + $0xbdc] sm:$0xf0]  ;;  %6521 = vmatmul.bf16.vlgmr.msra.gmra.mxu2 %v14000_v24 }
  0x7d   : > { %v10141_v34 = vld [vmem:[%s13878_s25 + $0xdc0] sm:$0xf]  ;;  %v9886_v42 = vor.u32 %v12860_v33, %v9885_v31  ;;  %6539 = vmatpush.bf16.msrb.mxu0 %v9630_v41 }
  0x7e   : > { %v12924_v35 = vld [vmem:[%s13878_s25 + $0xddc] sm:$0xf0]  ;;  %6534 = vmatmul.bf16.vlgmr.msra.gmra.mxu3 %v14005_v27 }
  0x7f   : > { %v10397_v38 = vld [vmem:[%s13878_s25 + $0xfc0] sm:$0xf]  ;;  %v10142_v43 = vor.u32 %v12924_v35, %v10141_v34  ;;  %6552 = vmatpush.bf16.msrb.mxu1 %v9886_v42 }
  0x80   : > { %v12988_v39 = vld [vmem:[%s13878_s25 + $0xfdc] sm:$0xf0] }
  0x81   : > { %v9597_v44 = vld [vmem:[%s13878_s25 + $0x980] sm:$0xf]  ;;  %v10398_v47 = vor.u32 %v12988_v39, %v10397_v38  ;;  %6565 = vmatpush.bf16.msrb.mxu2 %v10142_v43 }
  0x82   : > { %v12788_v45 = vld [vmem:[%s13878_s25 + $0x99c] sm:$0xf0] }
  0x83   : > { %v9853_v46 = vld [vmem:[%s13878_s25 + $0xb80] sm:$0xf]  ;;  %v9598_v53 = vor.u32 %v12788_v45, %v9597_v44  ;;  %6578 = vmatpush.bf16.msrb.mxu3 %v10398_v47 }
  0x84   : > { %v12852_v48 = vld [vmem:[%s13878_s25 + $0xb9c] sm:$0xf0] }
  0x85   : > { %v10109_v49 = vld [vmem:[%s13878_s25 + $0xd80] sm:$0xf]  ;;  %v9854_v56 = vor.u32 %v12852_v48, %v9853_v46  ;;  %6540 = vmatpush.bf16.msrb.mxu0 %v9598_v53 }
  0x86   : > { %v12916_v50 = vld [vmem:[%s13878_s25 + $0xd9c] sm:$0xf0] }
  0x87   : > { %v10365_v51 = vld [vmem:[%s13878_s25 + $0xf80] sm:$0xf]  ;;  %v10110_v57 = vor.u32 %v12916_v50, %v10109_v49  ;;  %6553 = vmatpush.bf16.msrb.mxu1 %v9854_v56 }
  0x88   : > { %v12980_v52 = vld [vmem:[%s13878_s25 + $0xf9c] sm:$0xf0] }
  0x89   : > { %v9565_v54 = vld [vmem:[%s13878_s25 + $0x940] sm:$0xf]  ;;  %v10366_v61 = vor.u32 %v12980_v52, %v10365_v51  ;;  %6566 = vmatpush.bf16.msrb.mxu2 %v10110_v57 }
  0x8a   : > { %v12780_v55 = vld [vmem:[%s13878_s25 + $0x95c] sm:$0xf0] }
  0x8b   : > { %v9821_v58 = vld [vmem:[%s13878_s25 + $0xb40] sm:$0xf]  ;;  %v9566_v2 = vor.u32 %v12780_v55, %v9565_v54  ;;  %6579 = vmatpush.bf16.msrb.mxu3 %v10366_v61 }
  0x8c   : > { %v12844_v59 = vld [vmem:[%s13878_s25 + $0xb5c] sm:$0xf0] }
  0x8d   : > { %v10077_v62 = vld [vmem:[%s13878_s25 + $0xd40] sm:$0xf]  ;;  %v9822_v4 = vor.u32 %v12844_v59, %v9821_v58  ;;  %6541 = vmatpush.bf16.msrb.mxu0 %v9566_v2 }
  0x8e   : > { %v12908_v63 = vld [vmem:[%s13878_s25 + $0xd5c] sm:$0xf0] }
  0x8f   : > { %v10333_v0 = vld [vmem:[%s13878_s25 + $0xf40] sm:$0xf]  ;;  %v10078_v5 = vor.u32 %v12908_v63, %v10077_v62  ;;  %6554 = vmatpush.bf16.msrb.mxu1 %v9822_v4 }
  0x90   : > { %v12972_v1 = vld [vmem:[%s13878_s25 + $0xf5c] sm:$0xf0] }
  0x91   : > { %v9533_v3 = vld [vmem:[%s13878_s25 + $0x900] sm:$0xf]  ;;  %v10334_v9 = vor.u32 %v12972_v1, %v10333_v0  ;;  %6567 = vmatpush.bf16.msrb.mxu2 %v10078_v5 }
  0x92   : > { %v12772_v6 = vld [vmem:[%s13878_s25 + $0x91c] sm:$0xf0] }
  0x93   : > { %v9789_v7 = vld [vmem:[%s13878_s25 + $0xb00] sm:$0xf]  ;;  %v9534_v16 = vor.u32 %v12772_v6, %v9533_v3  ;;  %6580 = vmatpush.bf16.msrb.mxu3 %v10334_v9 }
  0x94   : > { %v12836_v8 = vld [vmem:[%s13878_s25 + $0xb1c] sm:$0xf0] }
  0x95   : > { %v10045_v10 = vld [vmem:[%s13878_s25 + $0xd00] sm:$0xf]  ;;  %v9790_v22 = vor.u32 %v12836_v8, %v9789_v7  ;;  %6542 = vmatpush.bf16.msrb.mxu0 %v9534_v16 }
  0x96   : > { %v12900_v11 = vld [vmem:[%s13878_s25 + $0xd1c] sm:$0xf0] }
  0x97   : > { %v10301_v12 = vld [vmem:[%s13878_s25 + $0xf00] sm:$0xf]  ;;  %v10046_v23 = vor.u32 %v12900_v11, %v10045_v10  ;;  %6555 = vmatpush.bf16.msrb.mxu1 %v9790_v22 }
  0x98   : > { %v12964_v13 = vld [vmem:[%s13878_s25 + $0xf1c] sm:$0xf0] }
  0x99   : > { %v9501_v14 = vld [vmem:[%s13878_s25 + $0x8c0] sm:$0xf]  ;;  %v10302_v26 = vor.u32 %v12964_v13, %v10301_v12  ;;  %6568 = vmatpush.bf16.msrb.mxu2 %v10046_v23 }
  0x9a   : > { %v12764_v15 = vld [vmem:[%s13878_s25 + $0x8dc] sm:$0xf0] }
  0x9b   : > { %v9757_v17 = vld [vmem:[%s13878_s25 + $0xac0] sm:$0xf]  ;;  %v9502_v31 = vor.u32 %v12764_v15, %v9501_v14  ;;  %6581 = vmatpush.bf16.msrb.mxu3 %v10302_v26 }
  0x9c   : > { %v12828_v18 = vld [vmem:[%s13878_s25 + $0xadc] sm:$0xf0] }
  0x9d   : > { %v10013_v19 = vld [vmem:[%s13878_s25 + $0xcc0] sm:$0xf]  ;;  %v9758_v32 = vor.u32 %v12828_v18, %v9757_v17  ;;  %6543 = vmatpush.bf16.msrb.mxu0 %v9502_v31  ;;  %v301_v17 = vld [vmem:[%s13892_s28 + $0x18] sm:$0xff] }
  0x9e   : > { %v12892_v20 = vld [vmem:[%s13878_s25 + $0xcdc] sm:$0xf0] }
  0x9f   : > { %v14007_v28 = vld.sshfl [vmem:[#allocation1 + $0x8] sm:$0xff pattern:$0x73625140]  ;;  %v10014_v33 = vor.u32 %v12892_v20, %v10013_v19  ;;  %6556 = vmatpush.bf16.msrb.mxu1 %v9758_v32 }
  0xa0   : > { %v10269_v29 = vld [vmem:[%s13878_s25 + $0xec0] sm:$0xf]  ;;  %1340 = vst [vmem:[#allocation1] ss:$4 sm:$0xff] %v300_v21  ;;  %6508 = vmatmul.bf16.vlgmr.msra.gmra.mxu1 %v14007_v28 }
  0xa1   : > { %v12956_v30 = vld [vmem:[%s13878_s25 + $0xedc] sm:$0xf0]  ;;  %6569 = vmatpush.bf16.msrb.mxu2 %v10014_v33 }
  0xa2   : > { %v9469_v34 = vld [vmem:[%s13878_s25 + $0x880] sm:$0xf]  ;;  %v10270_v37 = vor.u32 %v12956_v30, %v10269_v29 }
  0xa3   : > { %v12756_v35 = vld [vmem:[%s13878_s25 + $0x89c] sm:$0xf0] }
  0xa4   : > { %v9725_v36 = vld [vmem:[%s13878_s25 + $0xa80] sm:$0xf]  ;;  %v9470_v43 = vor.u32 %v12756_v35, %v9469_v34  ;;  %6582 = vmatpush.bf16.msrb.mxu3 %v10270_v37 }
  0xa5   : > { %v12820_v38 = vld [vmem:[%s13878_s25 + $0xa9c] sm:$0xf0] }
  0xa6   : > { %v9981_v39 = vld [vmem:[%s13878_s25 + $0xc80] sm:$0xf]  ;;  %v9726_v46 = vor.u32 %v12820_v38, %v9725_v36  ;;  %6544 = vmatpush.bf16.msrb.mxu0 %v9470_v43 }
  0xa7   : > { %v12884_v40 = vld [vmem:[%s13878_s25 + $0xc9c] sm:$0xf0] }
  0xa8   : > { %v10237_v41 = vld [vmem:[%s13878_s25 + $0xe80] sm:$0xf]  ;;  %v9982_v47 = vor.u32 %v12884_v40, %v9981_v39  ;;  %6557 = vmatpush.bf16.msrb.mxu1 %v9726_v46 }
  0xa9   : > { %v12948_v42 = vld [vmem:[%s13878_s25 + $0xe9c] sm:$0xf0] }
  0xaa   : > { %v9437_v44 = vld [vmem:[%s13878_s25 + $0x840] sm:$0xf]  ;;  %v10238_v51 = vor.u32 %v12948_v42, %v10237_v41  ;;  %6570 = vmatpush.bf16.msrb.mxu2 %v9982_v47 }
  0xab   : > { %v12748_v45 = vld [vmem:[%s13878_s25 + $0x85c] sm:$0xf0] }
  0xac   : > { %v9693_v48 = vld [vmem:[%s13878_s25 + $0xa40] sm:$0xf]  ;;  %v9438_v57 = vor.u32 %v12748_v45, %v9437_v44  ;;  %6583 = vmatpush.bf16.msrb.mxu3 %v10238_v51 }
  0xad   : > { %v12812_v49 = vld [vmem:[%s13878_s25 + $0xa5c] sm:$0xf0] }
  0xae   : > { %v9949_v50 = vld [vmem:[%s13878_s25 + $0xc40] sm:$0xf]  ;;  %v9694_v61 = vor.u32 %v12812_v49, %v9693_v48  ;;  %6545 = vmatpush.bf16.msrb.mxu0 %v9438_v57 }
  0xaf   : > { %v12876_v52 = vld [vmem:[%s13878_s25 + $0xc5c] sm:$0xf0] }
  0xb0   : > { %v10205_v53 = vld [vmem:[%s13878_s25 + $0xe40] sm:$0xf]  ;;  %v9950_v62 = vor.u32 %v12876_v52, %v9949_v50  ;;  %6558 = vmatpush.bf16.msrb.mxu1 %v9694_v61 }
  0xb1   : > { %v299_v54 = vld [vmem:[%s13892_s28 + $0x8] sm:$0xff] }
  0xb2   : > { %v12940_v55 = vld [vmem:[%s13878_s25 + $0xe5c] sm:$0xf0]  ;;  %1330 = vst [vmem:[#allocation1 + $0x20] ss:$4 sm:$0xff] %v299_v54  ;;  %6571 = vmatpush.bf16.msrb.mxu2 %v9950_v62 }
  0xb3   : > { %v9405_v56 = vld [vmem:[%s13878_s25 + $0x800] sm:$0xf]  ;;  %v10206_v2 = vor.u32 %v12940_v55, %v10205_v53 }
  0xb4   : > { %v12740_v58 = vld [vmem:[%s13878_s25 + $0x81c] sm:$0xf0] }
  0xb5   : > { %v9661_v59 = vld [vmem:[%s13878_s25 + $0xa00] sm:$0xf]  ;;  %v9406_v9 = vor.u32 %v12740_v58, %v9405_v56  ;;  %6584 = vmatpush.bf16.msrb.mxu3 %v10206_v2 }
  0xb6   : > { %v12804_v60 = vld [vmem:[%s13878_s25 + $0xa1c] sm:$0xf0] }
  0xb7   : > { %v9917_v63 = vld [vmem:[%s13878_s25 + $0xc00] sm:$0xf]  ;;  %v9662_v13 = vor.u32 %v12804_v60, %v9661_v59  ;;  %6546 = vmatpush.bf16.msrb.mxu0 %v9406_v9 }
  0xb8   : > { %v12868_v0 = vld [vmem:[%s13878_s25 + $0xc1c] sm:$0xf0] }
  0xb9   : > { %v10173_v1 = vld [vmem:[%s13878_s25 + $0xe00] sm:$0xf]  ;;  %v9918_v14 = vor.u32 %v12868_v0, %v9917_v63  ;;  %v14052_v22 = vld.sshfl [vmem:[#allocation1 + $0x30] sm:$0xff pattern:$0x73625140]  ;;  %6559 = vmatpush.bf16.msrb.mxu1 %v9662_v13 }
  0xba   : > { %v12932_v3 = vld [vmem:[%s13878_s25 + $0xe1c] sm:$0xf0]  ;;  %v14054_v23 = vld.sshfl [vmem:[#allocation1 + $0x20] sm:$0xff pattern:$0x73625140] }
  0xbb   : > { %v10653_v4 = vld [vmem:[%s13878_s25 + $0x11c0] sm:$0xf]  ;;  %v10174_v18 = vor.u32 %v12932_v3, %v10173_v1  ;;  %v14056_v30 = vld.sshfl [vmem:[#allocation1 + $0x38] sm:$0xff pattern:$0x73625140]  ;;  %6572 = vmatpush.bf16.msrb.mxu2 %v9918_v14  ;;  %6547 = vmatmul.bf16.vlgmr.msrb.gmra.mxu0 %v14054_v23 }
  0xbc   : > { %v13052_v5 = vld [vmem:[%s13878_s25 + $0x11dc] sm:$0xf0] }
  0xbd   : > { %v10909_v6 = vld [vmem:[%s13878_s25 + $0x13c0] sm:$0xf]  ;;  %v10654_v19 = vor.u32 %v13052_v5, %v10653_v4  ;;  %6585 = vmatpush.bf16.msrb.mxu3 %v10174_v18 }
  0xbe   : > { %v13116_v7 = vld [vmem:[%s13878_s25 + $0x13dc] sm:$0xf0]  ;;  %6573 = vmatmul.bf16.vlgmr.msrb.gmra.mxu2 %v14052_v22 }
  0xbf   : > { %v11165_v8 = vld [vmem:[%s13878_s25 + $0x15c0] sm:$0xf]  ;;  %v10910_v26 = vor.u32 %v13116_v7, %v10909_v6  ;;  %6591 = vmatpush.bf16.msra.mxu0 %v10654_v19 }
  0xc0   : > { %v13180_v10 = vld [vmem:[%s13878_s25 + $0x15dc] sm:$0xf0]  ;;  %6586 = vmatmul.bf16.vlgmr.msrb.gmra.mxu3 %v14056_v30 }
  0xc1   : > { %v11421_v11 = vld [vmem:[%s13878_s25 + $0x17c0] sm:$0xf]  ;;  %v11166_v29 = vor.u32 %v13180_v10, %v11165_v8  ;;  %6604 = vmatpush.bf16.msra.mxu1 %v10910_v26 }
  0xc2   : > { %v13244_v12 = vld [vmem:[%s13878_s25 + $0x17dc] sm:$0xf0] }
  0xc3   : > { %v10621_v15 = vld [vmem:[%s13878_s25 + $0x1180] sm:$0xf]  ;;  %v11422_v32 = vor.u32 %v13244_v12, %v11421_v11  ;;  %6617 = vmatpush.bf16.msra.mxu2 %v11166_v29 }
  0xc4   : > { %v13044_v16 = vld [vmem:[%s13878_s25 + $0x119c] sm:$0xf0] }
  0xc5   : > { %v10877_v20 = vld [vmem:[%s13878_s25 + $0x1380] sm:$0xf]  ;;  %v10622_v37 = vor.u32 %v13044_v16, %v10621_v15  ;;  %6630 = vmatpush.bf16.msra.mxu3 %v11422_v32 }
  0xc6   : > { %v13108_v21 = vld [vmem:[%s13878_s25 + $0x139c] sm:$0xf0] }
  0xc7   : > { %v14058_v31 = vld.sshfl [vmem:[#allocation1 + $0x28] sm:$0xff pattern:$0x73625140]  ;;  %v10878_v38 = vor.u32 %v13108_v21, %v10877_v20  ;;  %6592 = vmatpush.bf16.msra.mxu0 %v10622_v37 }
  0xc8   : > { %v11133_v33 = vld [vmem:[%s13878_s25 + $0x1580] sm:$0xf]  ;;  %1342 = vst [vmem:[#allocation1 + $0x20] ss:$4 sm:$0xff] %v301_v17  ;;  %6560 = vmatmul.bf16.vlgmr.msrb.gmra.mxu1 %v14058_v31 }
  0xc9   : > { %v13172_v34 = vld [vmem:[%s13878_s25 + $0x159c] sm:$0xf0]  ;;  %6605 = vmatpush.bf16.msra.mxu1 %v10878_v38 }
  0xca   : > { %v11389_v35 = vld [vmem:[%s13878_s25 + $0x1780] sm:$0xf]  ;;  %v11134_v39 = vor.u32 %v13172_v34, %v11133_v33 }
  0xcb   : > { %v13236_v36 = vld [vmem:[%s13878_s25 + $0x179c] sm:$0xf0] }
  0xcc   : > { %v10589_v40 = vld [vmem:[%s13878_s25 + $0x1140] sm:$0xf]  ;;  %v11390_v43 = vor.u32 %v13236_v36, %v11389_v35  ;;  %6618 = vmatpush.bf16.msra.mxu2 %v11134_v39 }
  0xcd   : > { %v13036_v41 = vld [vmem:[%s13878_s25 + $0x115c] sm:$0xf0] }
  0xce   : > { %v10845_v42 = vld [vmem:[%s13878_s25 + $0x1340] sm:$0xf]  ;;  %v10590_v49 = vor.u32 %v13036_v41, %v10589_v40  ;;  %6631 = vmatpush.bf16.msra.mxu3 %v11390_v43 }
  0xcf   : > { %v13100_v44 = vld [vmem:[%s13878_s25 + $0x135c] sm:$0xf0] }
  0xd0   : > { %v11101_v45 = vld [vmem:[%s13878_s25 + $0x1540] sm:$0xf]  ;;  %v10846_v50 = vor.u32 %v13100_v44, %v10845_v42  ;;  %6593 = vmatpush.bf16.msra.mxu0 %v10590_v49 }
  0xd1   : > { %v13164_v46 = vld [vmem:[%s13878_s25 + $0x155c] sm:$0xf0] }
  0xd2   : > { %v11357_v47 = vld [vmem:[%s13878_s25 + $0x1740] sm:$0xf]  ;;  %v11102_v51 = vor.u32 %v13164_v46, %v11101_v45  ;;  %6606 = vmatpush.bf16.msra.mxu1 %v10846_v50 }
  0xd3   : > { %v13228_v48 = vld [vmem:[%s13878_s25 + $0x175c] sm:$0xf0] }
  0xd4   : > { %v10557_v52 = vld [vmem:[%s13878_s25 + $0x1100] sm:$0xf]  ;;  %v11358_v55 = vor.u32 %v13228_v48, %v11357_v47  ;;  %6619 = vmatpush.bf16.msra.mxu2 %v11102_v51 }
  0xd5   : > { %v13028_v53 = vld [vmem:[%s13878_s25 + $0x111c] sm:$0xf0] }
  0xd6   : > { %v10813_v54 = vld [vmem:[%s13878_s25 + $0x1300] sm:$0xf]  ;;  %v10558_v61 = vor.u32 %v13028_v53, %v10557_v52  ;;  %6632 = vmatpush.bf16.msra.mxu3 %v11358_v55 }
  0xd7   : > { %v13092_v56 = vld [vmem:[%s13878_s25 + $0x131c] sm:$0xf0] }
  0xd8   : > { %v11069_v57 = vld [vmem:[%s13878_s25 + $0x1500] sm:$0xf]  ;;  %v10814_v62 = vor.u32 %v13092_v56, %v10813_v54  ;;  %6594 = vmatpush.bf16.msra.mxu0 %v10558_v61 }
  0xd9   : > { %v13156_v58 = vld [vmem:[%s13878_s25 + $0x151c] sm:$0xf0] }
  0xda   : > { %v11325_v59 = vld [vmem:[%s13878_s25 + $0x1700] sm:$0xf]  ;;  %v11070_v63 = vor.u32 %v13156_v58, %v11069_v57  ;;  %6607 = vmatpush.bf16.msra.mxu1 %v10814_v62 }
  0xdb   : > { %v13220_v60 = vld [vmem:[%s13878_s25 + $0x171c] sm:$0xf0] }
  0xdc   : > { %v10525_v0 = vld [vmem:[%s13878_s25 + $0x10c0] sm:$0xf]  ;;  %v11326_v3 = vor.u32 %v13220_v60, %v11325_v59  ;;  %6620 = vmatpush.bf16.msra.mxu2 %v11070_v63 }
  0xdd   : > { %v13020_v1 = vld [vmem:[%s13878_s25 + $0x10dc] sm:$0xf0] }
  0xde   : > { %v10781_v2 = vld [vmem:[%s13878_s25 + $0x12c0] sm:$0xf]  ;;  %v10526_v9 = vor.u32 %v13020_v1, %v10525_v0  ;;  %6633 = vmatpush.bf16.msra.mxu3 %v11326_v3 }
  0xdf   : > { %v13084_v4 = vld [vmem:[%s13878_s25 + $0x12dc] sm:$0xf0] }
  0xe0   : > { %v11037_v5 = vld [vmem:[%s13878_s25 + $0x14c0] sm:$0xf]  ;;  %v10782_v10 = vor.u32 %v13084_v4, %v10781_v2  ;;  %6595 = vmatpush.bf16.msra.mxu0 %v10526_v9  ;;  %v1343_v4 = vld.sshfl [vmem:[#allocation1] sm:$0xff pattern:$0x73625140] }
  0xe1   : > { %v13148_v6 = vld [vmem:[%s13878_s25 + $0x14dc] sm:$0xf0]  ;;  %v1345_v9 = vld.sshfl [vmem:[#allocation1 + $0x10] sm:$0xff pattern:$0x73625140] }
  0xe2   : > { %v11293_v7 = vld [vmem:[%s13878_s25 + $0x16c0] sm:$0xf]  ;;  %v11038_v11 = vor.u32 %v13148_v6, %v11037_v5  ;;  %6608 = vmatpush.bf16.msra.mxu1 %v10782_v10 }
  0xe3   : > { %v13212_v8 = vld [vmem:[%s13878_s25 + $0x16dc] sm:$0xf0] }
  0xe4   : > { %v10493_v12 = vld [vmem:[%s13878_s25 + $0x1080] sm:$0xf]  ;;  %v11294_v15 = vor.u32 %v13212_v8, %v11293_v7  ;;  %6621 = vmatpush.bf16.msra.mxu2 %v11038_v11 }
  0xe5   : > { %v13012_v13 = vld [vmem:[%s13878_s25 + $0x109c] sm:$0xf0] }
  0xe6   : > { %v10749_v14 = vld [vmem:[%s13878_s25 + $0x1280] sm:$0xf]  ;;  %v10494_v21 = vor.u32 %v13012_v13, %v10493_v12  ;;  %6634 = vmatpush.bf16.msra.mxu3 %v11294_v15 }
  0xe7   : > { %v13076_v16 = vld [vmem:[%s13878_s25 + $0x129c] sm:$0xf0] }
  0xe8   : > { %v11005_v17 = vld [vmem:[%s13878_s25 + $0x1480] sm:$0xf]  ;;  %v10750_v26 = vor.u32 %v13076_v16, %v10749_v14  ;;  %6596 = vmatpush.bf16.msra.mxu0 %v10494_v21  ;;  %v1346_v16 = vld.sshfl [vmem:[#allocation1 + $0x18] sm:$0xff pattern:$0x73625140] }
  0xe9   : > { %v13140_v18 = vld [vmem:[%s13878_s25 + $0x149c] sm:$0xf0] }
  0xea   : > { %v11261_v19 = vld [vmem:[%s13878_s25 + $0x1680] sm:$0xf]  ;;  %v11006_v29 = vor.u32 %v13140_v18, %v11005_v17  ;;  %6609 = vmatpush.bf16.msra.mxu1 %v10750_v26 }
  0xeb   : > { %v13204_v20 = vld [vmem:[%s13878_s25 + $0x169c] sm:$0xf0] }
  0xec   : > { %v10461_v32 = vld [vmem:[%s13878_s25 + $0x1040] sm:$0xf]  ;;  %v11262_v35 = vor.u32 %v13204_v20, %v11261_v19  ;;  %6622 = vmatpush.bf16.msra.mxu2 %v11006_v29 }
  0xed   : > { %v13004_v33 = vld [vmem:[%s13878_s25 + $0x105c] sm:$0xf0] }
  0xee   : > { %v10717_v34 = vld [vmem:[%s13878_s25 + $0x1240] sm:$0xf]  ;;  %v10462_v41 = vor.u32 %v13004_v33, %v10461_v32  ;;  %6635 = vmatpush.bf16.msra.mxu3 %v11262_v35 }
  0xef   : > { %v13068_v36 = vld [vmem:[%s13878_s25 + $0x125c] sm:$0xf0] }
  0xf0   : > { %v10973_v37 = vld [vmem:[%s13878_s25 + $0x1440] sm:$0xf]  ;;  %v10718_v44 = vor.u32 %v13068_v36, %v10717_v34  ;;  %6597 = vmatpush.bf16.msra.mxu0 %v10462_v41 }
  0xf1   : > { %v13132_v38 = vld [vmem:[%s13878_s25 + $0x145c] sm:$0xf0] }
  0xf2   : > { %v11229_v39 = vld [vmem:[%s13878_s25 + $0x1640] sm:$0xf]  ;;  %v10974_v45 = vor.u32 %v13132_v38, %v10973_v37  ;;  %6610 = vmatpush.bf16.msra.mxu1 %v10718_v44 }
  0xf3   : > { %v13196_v40 = vld [vmem:[%s13878_s25 + $0x165c] sm:$0xf0] }
  0xf4   : > { %v10429_v42 = vld [vmem:[%s13878_s25 + $0x1000] sm:$0xf]  ;;  %v11230_v49 = vor.u32 %v13196_v40, %v11229_v39  ;;  %6623 = vmatpush.bf16.msra.mxu2 %v10974_v45 }
  0xf5   : > { %v12996_v43 = vld [vmem:[%s13878_s25 + $0x101c] sm:$0xf0] }
  0xf6   : > { %v10685_v46 = vld [vmem:[%s13878_s25 + $0x1200] sm:$0xf]  ;;  %v10430_v56 = vor.u32 %v12996_v43, %v10429_v42  ;;  %6636 = vmatpush.bf16.msra.mxu3 %v11230_v49 }
  0xf7   : > { %v13060_v47 = vld [vmem:[%s13878_s25 + $0x121c] sm:$0xf0] }
  0xf8   : > { %v10941_v48 = vld [vmem:[%s13878_s25 + $0x1400] sm:$0xf]  ;;  %v10686_v60 = vor.u32 %v13060_v47, %v10685_v46  ;;  %6598 = vmatpush.bf16.msra.mxu0 %v10430_v56 }
  0xf9   : > { %v13124_v50 = vld [vmem:[%s13878_s25 + $0x141c] sm:$0xf0] }
  0xfa   : > { %v11197_v51 = vld [vmem:[%s13878_s25 + $0x1600] sm:$0xf]  ;;  %v10942_v61 = vor.u32 %v13124_v50, %v10941_v48  ;;  %6611 = vmatpush.bf16.msra.mxu1 %v10686_v60 }
  0xfb   : > { %v13188_v52 = vld [vmem:[%s13878_s25 + $0x161c] sm:$0xf0]  ;;  %6599 = vmatmul.bf16.vlgmr.msra.gmra.mxu0 %v1343_v4 }
  0xfc   : > { %v11677_v53 = vld [vmem:[%s13878_s25 + $0x19c0] sm:$0xf]  ;;  %v11198_v0 = vor.u32 %v13188_v52, %v11197_v51  ;;  %6624 = vmatpush.bf16.msra.mxu2 %v10942_v61 }
  0xfd   : > { %v13308_v54 = vld [vmem:[%s13878_s25 + $0x19dc] sm:$0xf0] }
  0xfe   : > { %v11933_v55 = vld [vmem:[%s13878_s25 + $0x1bc0] sm:$0xf]  ;;  %v11678_v1 = vor.u32 %v13308_v54, %v11677_v53  ;;  %6637 = vmatpush.bf16.msra.mxu3 %v11198_v0 }
  0xff   : > { %v13372_v57 = vld [vmem:[%s13878_s25 + $0x1bdc] sm:$0xf0]  ;;  %6625 = vmatmul.bf16.vlgmr.msra.gmra.mxu2 %v1345_v9 }
 0x100   : > { %v12189_v58 = vld [vmem:[%s13878_s25 + $0x1dc0] sm:$0xf]  ;;  %v11934_v2 = vor.u32 %v13372_v57, %v11933_v55  ;;  %6643 = vmatpush.bf16.msrb.mxu0 %v11678_v1 }
 0x101   : > { %v13436_v59 = vld [vmem:[%s13878_s25 + $0x1ddc] sm:$0xf0]  ;;  %6638 = vmatmul.bf16.vlgmr.msra.gmra.mxu3 %v1346_v16 }
 0x102   : > { %v12445_v62 = vld [vmem:[%s13878_s25 + $0x1fc0] sm:$0xf]  ;;  %v12190_v3 = vor.u32 %v13436_v59, %v12189_v58  ;;  %6656 = vmatpush.bf16.msrb.mxu1 %v11934_v2 }
 0x103   : > { %v13500_v63 = vld [vmem:[%s13878_s25 + $0x1fdc] sm:$0xf0] }
 0x104   : > { %v11645_v5 = vld [vmem:[%s13878_s25 + $0x1980] sm:$0xf]  ;;  %v12446_v8 = vor.u32 %v13500_v63, %v12445_v62  ;;  %6669 = vmatpush.bf16.msrb.mxu2 %v12190_v3 }
 0x105   : > { %v13300_v6 = vld [vmem:[%s13878_s25 + $0x199c] sm:$0xf0] }
 0x106   : > { %v11901_v7 = vld [vmem:[%s13878_s25 + $0x1b80] sm:$0xf]  ;;  %v11646_v17 = vor.u32 %v13300_v6, %v11645_v5  ;;  %6682 = vmatpush.bf16.msrb.mxu3 %v12446_v8 }
 0x107   : > { %v13364_v10 = vld [vmem:[%s13878_s25 + $0x1b9c] sm:$0xf0] }
 0x108   : > { %v12157_v11 = vld [vmem:[%s13878_s25 + $0x1d80] sm:$0xf]  ;;  %v11902_v18 = vor.u32 %v13364_v10, %v11901_v7  ;;  %6644 = vmatpush.bf16.msrb.mxu0 %v11646_v17 }
 0x109   : > { %v13428_v12 = vld [vmem:[%s13878_s25 + $0x1d9c] sm:$0xf0] }
 0x10a   : > { %v12413_v13 = vld [vmem:[%s13878_s25 + $0x1f80] sm:$0xf]  ;;  %v12158_v19 = vor.u32 %v13428_v12, %v12157_v11  ;;  %6657 = vmatpush.bf16.msrb.mxu1 %v11902_v18 }
 0x10b   : > { %v13492_v14 = vld [vmem:[%s13878_s25 + $0x1f9c] sm:$0xf0] }
 0x10c   : > { %v1344_v15 = vld.sshfl [vmem:[#allocation1 + $0x8] sm:$0xff pattern:$0x73625140]  ;;  %v12414_v29 = vor.u32 %v13492_v14, %v12413_v13  ;;  %6670 = vmatpush.bf16.msrb.mxu2 %v12158_v19 }
 0x10d   : > { %v11613_v20 = vld [vmem:[%s13878_s25 + $0x1940] sm:$0xf]  ;;  %6612 = vmatmul.bf16.vlgmr.msra.gmra.mxu1 %v1344_v15 }
 0x10e   : > { %v13292_v21 = vld [vmem:[%s13878_s25 + $0x195c] sm:$0xf0]  ;;  %6683 = vmatpush.bf16.msrb.mxu3 %v12414_v29 }
 0x10f   : > { %v11869_v26 = vld [vmem:[%s13878_s25 + $0x1b40] sm:$0xf]  ;;  %v11614_v37 = vor.u32 %v13292_v21, %v11613_v20 }
 0x110   : > { %v13356_v32 = vld [vmem:[%s13878_s25 + $0x1b5c] sm:$0xf0] }
 0x111   : > { %v12125_v33 = vld [vmem:[%s13878_s25 + $0x1d40] sm:$0xf]  ;;  %v11870_v38 = vor.u32 %v13356_v32, %v11869_v26  ;;  %6645 = vmatpush.bf16.msrb.mxu0 %v11614_v37 }
 0x112   : > { %v13420_v34 = vld [vmem:[%s13878_s25 + $0x1d5c] sm:$0xf0] }
 0x113   : > { %v12381_v35 = vld [vmem:[%s13878_s25 + $0x1f40] sm:$0xf]  ;;  %v12126_v39 = vor.u32 %v13420_v34, %v12125_v33  ;;  %6658 = vmatpush.bf16.msrb.mxu1 %v11870_v38 }
 0x114   : > { %v13484_v36 = vld [vmem:[%s13878_s25 + $0x1f5c] sm:$0xf0] }
 0x115   : > { %v11581_v40 = vld [vmem:[%s13878_s25 + $0x1900] sm:$0xf]  ;;  %v12382_v43 = vor.u32 %v13484_v36, %v12381_v35  ;;  %6671 = vmatpush.bf16.msrb.mxu2 %v12126_v39 }
 0x116   : > { %v13284_v41 = vld [vmem:[%s13878_s25 + $0x191c] sm:$0xf0] }
 0x117   : > { %v11837_v42 = vld [vmem:[%s13878_s25 + $0x1b00] sm:$0xf]  ;;  %v11582_v49 = vor.u32 %v13284_v41, %v11581_v40  ;;  %6684 = vmatpush.bf16.msrb.mxu3 %v12382_v43  ;;  %v12536_v41 = vld [vmem:[%s13878_s25 + $0x1c4] sm:$0xf] }
 0x118   : > { %v13348_v44 = vld [vmem:[%s13878_s25 + $0x1b1c] sm:$0xf0]  ;;  %v12600_v43 = vld [vmem:[%s13878_s25 + $0x3c4] sm:$0xf] }
 0x119   : > { %v12093_v45 = vld [vmem:[%s13878_s25 + $0x1d00] sm:$0xf]  ;;  %v11838_v50 = vor.u32 %v13348_v44, %v11837_v42  ;;  %6646 = vmatpush.bf16.msrb.mxu0 %v11582_v49  ;;  %v8607_v42 = vld [vmem:[%s13878_s25 + $0x1e0] sm:$0xf0] }
 0x11a   : > { %v13412_v46 = vld [vmem:[%s13878_s25 + $0x1d1c] sm:$0xf0] }
 0x11b   : > { %v12349_v47 = vld [vmem:[%s13878_s25 + $0x1f00] sm:$0xf]  ;;  %v12094_v51 = vor.u32 %v13412_v46, %v12093_v45  ;;  %6659 = vmatpush.bf16.msrb.mxu1 %v11838_v50  ;;  %v8863_v45 = vld [vmem:[%s13878_s25 + $0x3e0] sm:$0xf0] }
 0x11c   : > { %v13476_v48 = vld [vmem:[%s13878_s25 + $0x1f1c] sm:$0xf0]  ;;  %v12664_v46 = vld [vmem:[%s13878_s25 + $0x5c4] sm:$0xf] }
 0x11d   : > { %v11549_v52 = vld [vmem:[%s13878_s25 + $0x18c0] sm:$0xf]  ;;  %v12350_v55 = vor.u32 %v13476_v48, %v12349_v47  ;;  %6672 = vmatpush.bf16.msrb.mxu2 %v12094_v51  ;;  %v9119_v47 = vld [vmem:[%s13878_s25 + $0x5e0] sm:$0xf0] }
 0x11e   : > { %v13276_v53 = vld [vmem:[%s13878_s25 + $0x18dc] sm:$0xf0]  ;;  %v12728_v50 = vld [vmem:[%s13878_s25 + $0x7c4] sm:$0xf] }
 0x11f   : > { %v11805_v54 = vld [vmem:[%s13878_s25 + $0x1ac0] sm:$0xf]  ;;  %v11550_v61 = vor.u32 %v13276_v53, %v11549_v52  ;;  %6685 = vmatpush.bf16.msrb.mxu3 %v12350_v55  ;;  %v9375_v51 = vld [vmem:[%s13878_s25 + $0x7e0] sm:$0xf0]  ;;  %v8610_v53 = vor.u32 %v12536_v41, %v8607_v42  ;;  %v9122_v55 = vor.u32 %v12664_v46, %v9119_v47 }
 0x120   : > { %v13340_v56 = vld [vmem:[%s13878_s25 + $0x1adc] sm:$0xf0]  ;;  %v8479_v41 = vld [vmem:[%s13878_s25 + $0xe0] sm:$0xf0] }
 0x121   : > { %v12061_v57 = vld [vmem:[%s13878_s25 + $0x1cc0] sm:$0xf]  ;;  %v11806_v62 = vor.u32 %v13340_v56, %v11805_v54  ;;  %6647 = vmatpush.bf16.msrb.mxu0 %v11550_v61  ;;  %v8866_v54 = vor.u32 %v12600_v43, %v8863_v45  ;;  %v1347_v56 = vld.sshfl [vmem:[#allocation1 + $0x20] sm:$0xff pattern:$0x73625140] }
 0x122   : > { %v13404_v58 = vld [vmem:[%s13878_s25 + $0x1cdc] sm:$0xf0]  ;;  %v1349_v61 = vld.sshfl [vmem:[#allocation1 + $0x30] sm:$0xff pattern:$0x73625140] }
 0x123   : > { %v12317_v59 = vld [vmem:[%s13878_s25 + $0x1ec0] sm:$0xf]  ;;  %v12062_v63 = vor.u32 %v13404_v58, %v12061_v57  ;;  %6660 = vmatpush.bf16.msrb.mxu1 %v11806_v62  ;;  %v12528_v57 = vld [vmem:[%s13878_s25 + $0x184] sm:$0xf] }
 0x124   : > { %v13468_v60 = vld [vmem:[%s13878_s25 + $0x1edc] sm:$0xf0]  ;;  %v8575_v58 = vld [vmem:[%s13878_s25 + $0x1a0] sm:$0xf0] }
 0x125   : > { %v11517_v0 = vld [vmem:[%s13878_s25 + $0x1880] sm:$0xf]  ;;  %v12318_v3 = vor.u32 %v13468_v60, %v12317_v59  ;;  %6673 = vmatpush.bf16.msrb.mxu2 %v12062_v63  ;;  %v12592_v59 = vld [vmem:[%s13878_s25 + $0x384] sm:$0xf]  ;;  %v9378_v60 = vor.u32 %v12728_v50, %v9375_v51 }
 0x126   : > { %v13268_v1 = vld [vmem:[%s13878_s25 + $0x189c] sm:$0xf0]  ;;  %v8831_v62 = vld [vmem:[%s13878_s25 + $0x3a0] sm:$0xf0] }
 0x127   : > { %v11773_v2 = vld [vmem:[%s13878_s25 + $0x1a80] sm:$0xf]  ;;  %v11518_v9 = vor.u32 %v13268_v1, %v11517_v0  ;;  %6686 = vmatpush.bf16.msrb.mxu3 %v12318_v3  ;;  %v12656_v63 = vld [vmem:[%s13878_s25 + $0x584] sm:$0xf] }
 0x128   : > { %v13332_v4 = vld [vmem:[%s13878_s25 + $0x1a9c] sm:$0xf0]  ;;  %v9087_v0 = vld [vmem:[%s13878_s25 + $0x5a0] sm:$0xf0] }
 0x129   : > { %v12029_v5 = vld [vmem:[%s13878_s25 + $0x1c80] sm:$0xf]  ;;  %v11774_v10 = vor.u32 %v13332_v4, %v11773_v2  ;;  %6648 = vmatpush.bf16.msrb.mxu0 %v11518_v9  ;;  %v12720_v1 = vld [vmem:[%s13878_s25 + $0x784] sm:$0xf] }
 0x12a   : > { %v13396_v6 = vld [vmem:[%s13878_s25 + $0x1c9c] sm:$0xf0]  ;;  %v9343_v2 = vld [vmem:[%s13878_s25 + $0x7a0] sm:$0xf0] }
 0x12b   : > { %v12285_v7 = vld [vmem:[%s13878_s25 + $0x1e80] sm:$0xf]  ;;  %v12030_v11 = vor.u32 %v13396_v6, %v12029_v5  ;;  %6661 = vmatpush.bf16.msrb.mxu1 %v11774_v10  ;;  %v1350_v4 = vld.sshfl [vmem:[#allocation1 + $0x38] sm:$0xff pattern:$0x73625140]  ;;  %v8578_v5 = vor.u32 %v12528_v57, %v8575_v58  ;;  %v8834_v6 = vor.u32 %v12592_v59, %v8831_v62 }
 0x12c   : > { %v13460_v8 = vld [vmem:[%s13878_s25 + $0x1e9c] sm:$0xf0]  ;;  %v8543_v9 = vld [vmem:[%s13878_s25 + $0x160] sm:$0xf0] }
 0x12d   : > { %v11485_v12 = vld [vmem:[%s13878_s25 + $0x1840] sm:$0xf]  ;;  %v12286_v15 = vor.u32 %v13460_v8, %v12285_v7  ;;  %6674 = vmatpush.bf16.msrb.mxu2 %v12030_v11  ;;  %v9090_v7 = vor.u32 %v12656_v63, %v9087_v0  ;;  %v12520_v8 = vld [vmem:[%s13878_s25 + $0x144] sm:$0xf]  ;;  %v9346_v11 = vor.u32 %v12720_v1, %v9343_v2 }
 0x12e   : > { %v13260_v13 = vld [vmem:[%s13878_s25 + $0x185c] sm:$0xf0]  ;;  %v12584_v10 = vld [vmem:[%s13878_s25 + $0x344] sm:$0xf] }
 0x12f   : > { %v11741_v14 = vld [vmem:[%s13878_s25 + $0x1a40] sm:$0xf]  ;;  %v11486_v21 = vor.u32 %v13260_v13, %v11485_v12  ;;  %6687 = vmatpush.bf16.msrb.mxu3 %v12286_v15  ;;  %v8799_v12 = vld [vmem:[%s13878_s25 + $0x360] sm:$0xf0] }
 0x130   : > { %v13324_v16 = vld [vmem:[%s13878_s25 + $0x1a5c] sm:$0xf0]  ;;  %v12648_v13 = vld [vmem:[%s13878_s25 + $0x544] sm:$0xf] }
 0x131   : > { %v11997_v17 = vld [vmem:[%s13878_s25 + $0x1c40] sm:$0xf]  ;;  %v11742_v32 = vor.u32 %v13324_v16, %v11741_v14  ;;  %6649 = vmatpush.bf16.msrb.mxu0 %v11486_v21  ;;  %v9055_v14 = vld [vmem:[%s13878_s25 + $0x560] sm:$0xf0] }
 0x132   : > { %v13388_v18 = vld [vmem:[%s13878_s25 + $0x1c5c] sm:$0xf0]  ;;  %v12712_v15 = vld [vmem:[%s13878_s25 + $0x744] sm:$0xf] }
 0x133   : > { %v12253_v19 = vld [vmem:[%s13878_s25 + $0x1e40] sm:$0xf]  ;;  %v11998_v33 = vor.u32 %v13388_v18, %v11997_v17  ;;  %6662 = vmatpush.bf16.msrb.mxu1 %v11742_v32  ;;  %v9311_v16 = vld [vmem:[%s13878_s25 + $0x760] sm:$0xf0]  ;;  %v8546_v17 = vor.u32 %v12520_v8, %v8543_v9  ;;  %v8802_v18 = vor.u32 %v12584_v10, %v8799_v12 }
 0x134   : > { %v13452_v20 = vld [vmem:[%s13878_s25 + $0x1e5c] sm:$0xf0]  ;;  %v8511_v21 = vld [vmem:[%s13878_s25 + $0x120] sm:$0xf0] }
 0x135   : > { %v11453_v26 = vld [vmem:[%s13878_s25 + $0x1800] sm:$0xf]  ;;  %v12254_v37 = vor.u32 %v13452_v20, %v12253_v19  ;;  %6675 = vmatpush.bf16.msrb.mxu2 %v11998_v33  ;;  %v9058_v19 = vor.u32 %v12648_v13, %v9055_v14  ;;  %v12512_v20 = vld [vmem:[%s13878_s25 + $0x104] sm:$0xf] }
 0x136   : > { %v13252_v29 = vld [vmem:[%s13878_s25 + $0x181c] sm:$0xf0]  ;;  %v8767_v32 = vld [vmem:[%s13878_s25 + $0x320] sm:$0xf0] }
 0x137   : > { %v11709_v34 = vld [vmem:[%s13878_s25 + $0x1a00] sm:$0xf]  ;;  %v11454_v44 = vor.u32 %v13252_v29, %v11453_v26  ;;  %6688 = vmatpush.bf16.msrb.mxu3 %v12254_v37  ;;  %v12576_v26 = vld [vmem:[%s13878_s25 + $0x304] sm:$0xf]  ;;  %v9314_v29 = vor.u32 %v12712_v15, %v9311_v16  ;;  %v8514_v37 = vor.u32 %v12512_v20, %v8511_v21 }
 0x138   : > { %v13316_v35 = vld [vmem:[%s13878_s25 + $0x1a1c] sm:$0xf0]  ;;  %v12640_v33 = vld [vmem:[%s13878_s25 + $0x504] sm:$0xf] }
 0x139   : > { %v11965_v36 = vld [vmem:[%s13878_s25 + $0x1c00] sm:$0xf]  ;;  %v11710_v48 = vor.u32 %v13316_v35, %v11709_v34  ;;  %6650 = vmatpush.bf16.msrb.mxu0 %v11454_v44  ;;  %v9023_v34 = vld [vmem:[%s13878_s25 + $0x520] sm:$0xf0] }
 0x13a   : > { %v13380_v38 = vld [vmem:[%s13878_s25 + $0x1c1c] sm:$0xf0]  ;;  %v12704_v35 = vld [vmem:[%s13878_s25 + $0x704] sm:$0xf] }
 0x13b   : > { %v12221_v39 = vld [vmem:[%s13878_s25 + $0x1e00] sm:$0xf]  ;;  %v11966_v49 = vor.u32 %v13380_v38, %v11965_v36  ;;  %6663 = vmatpush.bf16.msrb.mxu1 %v11710_v48  ;;  %v9279_v36 = vld [vmem:[%s13878_s25 + $0x720] sm:$0xf0]  ;;  %v8770_v38 = vor.u32 %v12576_v26, %v8767_v32 }
 0x13c   : > { %v13444_v40 = vld [vmem:[%s13878_s25 + $0x1e1c] sm:$0xf0]  ;;  %6651 = vmatmul.bf16.vlgmr.msrb.gmra.mxu0 %v1347_v56  ;;  %v12568_v42 = vld [vmem:[%s13878_s25 + $0x2c4] sm:$0xf]  ;;  %v9282_v43 = vor.u32 %v12704_v35, %v9279_v36 }
 0x13d   : > { %v12222_v52 = vor.u32 %v13444_v40, %v12221_v39  ;;  %6676 = vmatpush.bf16.msrb.mxu2 %v11966_v49  ;;  %6695 = vmatpush.bf16.msra.mxu0 %v8610_v53  ;;  %v1348_v3 = vld.sshfl [vmem:[#allocation1 + $0x28] sm:$0xff pattern:$0x73625140]  ;;  %v9026_v39 = vor.u32 %v12640_v33, %v9023_v34 }
 0x13e   : > { %6664 = vmatmul.bf16.vlgmr.msrb.gmra.mxu1 %v1348_v3  ;;  %v12504_v40 = vld [vmem:[%s13878_s25 + $0xc4] sm:$0xf] }
 0x13f   : > { %6689 = vmatpush.bf16.msrb.mxu3 %v12222_v52  ;;  %6708 = vmatpush.bf16.msra.mxu1 %v8866_v54  ;;  %v8735_v44 = vld [vmem:[%s13878_s25 + $0x2e0] sm:$0xf0]  ;;  %v8482_v49 = vor.u32 %v12504_v40, %v8479_v41 }
 0x140   : > { %6677 = vmatmul.bf16.vlgmr.msrb.gmra.mxu2 %v1349_v61  ;;  %v12632_v45 = vld [vmem:[%s13878_s25 + $0x4c4] sm:$0xf]  ;;  %v8738_v50 = vor.u32 %v12568_v42, %v8735_v44 }
 0x141   : > { %6721 = vmatpush.bf16.msra.mxu2 %v9122_v55  ;;  %6696 = vmatpush.bf16.msra.mxu0 %v8578_v5  ;;  %v8991_v46 = vld [vmem:[%s13878_s25 + $0x4e0] sm:$0xf0] }
 0x142   : > { %6690 = vmatmul.bf16.vlgmr.msrb.gmra.mxu3 %v1350_v4  ;;  %v12696_v47 = vld [vmem:[%s13878_s25 + $0x6c4] sm:$0xf]  ;;  %v8994_v51 = vor.u32 %v12632_v45, %v8991_v46 }
 0x143   : > { %6734 = vmatpush.bf16.msra.mxu3 %v9378_v60  ;;  %6709 = vmatpush.bf16.msra.mxu1 %v8834_v6  ;;  %v9247_v48 = vld [vmem:[%s13878_s25 + $0x6e0] sm:$0xf0] }
 0x144   : > { %v12496_v52 = vld [vmem:[%s13878_s25 + $0x84] sm:$0xf]  ;;  %v9250_v55 = vor.u32 %v12696_v47, %v9247_v48 }
 0x145   : > { %6722 = vmatpush.bf16.msra.mxu2 %v9090_v7  ;;  %6697 = vmatpush.bf16.msra.mxu0 %v8546_v17  ;;  %v8447_v53 = vld [vmem:[%s13878_s25 + $0xa0] sm:$0xf0] }
 0x146   : > { %v12560_v54 = vld [vmem:[%s13878_s25 + $0x284] sm:$0xf]  ;;  %v8450_v61 = vor.u32 %v12496_v52, %v8447_v53 }
 0x147   : > { %6735 = vmatpush.bf16.msra.mxu3 %v9346_v11  ;;  %6710 = vmatpush.bf16.msra.mxu1 %v8802_v18  ;;  %v8703_v56 = vld [vmem:[%s13878_s25 + $0x2a0] sm:$0xf0] }
 0x148   : > { %v12624_v57 = vld [vmem:[%s13878_s25 + $0x484] sm:$0xf]  ;;  %v8706_v62 = vor.u32 %v12560_v54, %v8703_v56 }
 0x149   : > { %6723 = vmatpush.bf16.msra.mxu2 %v9058_v19  ;;  %6698 = vmatpush.bf16.msra.mxu0 %v8514_v37  ;;  %v8959_v58 = vld [vmem:[%s13878_s25 + $0x4a0] sm:$0xf0] }
 0x14a   : > { %v12688_v59 = vld [vmem:[%s13878_s25 + $0x684] sm:$0xf]  ;;  %v8962_v63 = vor.u32 %v12624_v57, %v8959_v58 }
 0x14b   : > { %6736 = vmatpush.bf16.msra.mxu3 %v9314_v29  ;;  %6711 = vmatpush.bf16.msra.mxu1 %v8770_v38  ;;  %v9215_v60 = vld [vmem:[%s13878_s25 + $0x6a0] sm:$0xf0] }
 0x14c   : > { %v12488_v0 = vld [vmem:[%s13878_s25 + $0x44] sm:$0xf]  ;;  %v9218_v3 = vor.u32 %v12688_v59, %v9215_v60 }
 0x14d   : > { %6724 = vmatpush.bf16.msra.mxu2 %v9026_v39  ;;  %6699 = vmatpush.bf16.msra.mxu0 %v8482_v49  ;;  %v8415_v1 = vld [vmem:[%s13878_s25 + $0x60] sm:$0xf0] }
 0x14e   : > { %v12552_v2 = vld [vmem:[%s13878_s25 + $0x244] sm:$0xf]  ;;  %v8418_v9 = vor.u32 %v12488_v0, %v8415_v1 }
 0x14f   : > { %6737 = vmatpush.bf16.msra.mxu3 %v9282_v43  ;;  %6712 = vmatpush.bf16.msra.mxu1 %v8738_v50  ;;  %v8671_v4 = vld [vmem:[%s13878_s25 + $0x260] sm:$0xf0] }
 0x150   : > { %v12616_v5 = vld [vmem:[%s13878_s25 + $0x444] sm:$0xf]  ;;  %v8674_v12 = vor.u32 %v12552_v2, %v8671_v4 }
 0x151   : > { %6725 = vmatpush.bf16.msra.mxu2 %v8994_v51  ;;  %v8927_v6 = vld [vmem:[%s13878_s25 + $0x460] sm:$0xf0]  ;;  %6700 = vmatpush.bf16.msra.mxu0 %v8450_v61 }
 0x152   : > { %v12680_v7 = vld [vmem:[%s13878_s25 + $0x644] sm:$0xf]  ;;  %v8930_v13 = vor.u32 %v12616_v5, %v8927_v6 }
 0x153   : > { %6738 = vmatpush.bf16.msra.mxu3 %v9250_v55  ;;  %v9183_v8 = vld [vmem:[%s13878_s25 + $0x660] sm:$0xf0]  ;;  %6713 = vmatpush.bf16.msra.mxu1 %v8706_v62 }
 0x154   : > { %v12480_v10 = vld [vmem:[%s13878_s25 + $0x4] sm:$0xf]  ;;  %v9186_v17 = vor.u32 %v12680_v7, %v9183_v8 }
 0x155   : > { %v8383_v11 = vld [vmem:[%s13878_s25 + $0x20] sm:$0xf0]  ;;  %6726 = vmatpush.bf16.msra.mxu2 %v8962_v63  ;;  %6701 = vmatpush.bf16.msra.mxu0 %v8418_v9 }
 0x156   : > { %v12544_v14 = vld [vmem:[%s13878_s25 + $0x204] sm:$0xf]  ;;  %v8386_v32 = vor.u32 %v12480_v10, %v8383_v11 }
 0x157   : > { %v8639_v15 = vld [vmem:[%s13878_s25 + $0x220] sm:$0xf0]  ;;  %6739 = vmatpush.bf16.msra.mxu3 %v9218_v3  ;;  %6714 = vmatpush.bf16.msra.mxu1 %v8674_v12 }
 0x158   : > { %v12608_v16 = vld [vmem:[%s13878_s25 + $0x404] sm:$0xf]  ;;  %v8642_v36 = vor.u32 %v12544_v14, %v8639_v15 }
 0x159   : > { %v8895_v18 = vld [vmem:[%s13878_s25 + $0x420] sm:$0xf0]  ;;  %6727 = vmatpush.bf16.msra.mxu2 %v8930_v13  ;;  %6702 = vmatpush.bf16.msra.mxu0 %v8386_v32 }
 0x15a   : > { %v12672_v19 = vld [vmem:[%s13878_s25 + $0x604] sm:$0xf]  ;;  %v8898_v37 = vor.u32 %v12608_v16, %v8895_v18 }
 0x15b   : > { %v9151_v20 = vld [vmem:[%s13878_s25 + $0x620] sm:$0xf0]  ;;  %6740 = vmatpush.bf16.msra.mxu3 %v9186_v17  ;;  %6715 = vmatpush.bf16.msra.mxu1 %v8642_v36 }
 0x15c   : > { %v12792_v21 = vld [vmem:[%s13878_s25 + $0x9c4] sm:$0xf]  ;;  %v9154_v40 = vor.u32 %v12672_v19, %v9151_v20  ;;  %6703 = vmatmul.bf16.vlgmr.msra.gmra.mxu0 %v14002_v25 }
 0x15d   : > { %v9631_v26 = vld [vmem:[%s13878_s25 + $0x9e0] sm:$0xf0]  ;;  %6728 = vmatpush.bf16.msra.mxu2 %v8898_v37 }
 0x15e   : > { %v12856_v29 = vld [vmem:[%s13878_s25 + $0xbc4] sm:$0xf]  ;;  %v9634_v41 = vor.u32 %v12792_v21, %v9631_v26  ;;  %6716 = vmatmul.bf16.vlgmr.msra.gmra.mxu1 %v14007_v28 }
 0x15f   : > { %v9887_v33 = vld [vmem:[%s13878_s25 + $0xbe0] sm:$0xf0]  ;;  %6741 = vmatpush.bf16.msra.mxu3 %v9154_v40 }
 0x160   : > { %v12920_v34 = vld [vmem:[%s13878_s25 + $0xdc4] sm:$0xf]  ;;  %v9890_v42 = vor.u32 %v12856_v29, %v9887_v33  ;;  %6747 = vmatpush.bf16.msrb.mxu0 %v9634_v41  ;;  %6729 = vmatmul.bf16.vlgmr.msra.gmra.mxu2 %v14000_v24 }
 0x161   : > { %v10143_v35 = vld [vmem:[%s13878_s25 + $0xde0] sm:$0xf0] }
 0x162   : > { %v12984_v38 = vld [vmem:[%s13878_s25 + $0xfc4] sm:$0xf]  ;;  %v10146_v43 = vor.u32 %v12920_v34, %v10143_v35  ;;  %6760 = vmatpush.bf16.msrb.mxu1 %v9890_v42  ;;  %6742 = vmatmul.bf16.vlgmr.msra.gmra.mxu3 %v14005_v27 }
 0x163   : > { %v10399_v39 = vld [vmem:[%s13878_s25 + $0xfe0] sm:$0xf0] }
 0x164   : > { %v12784_v44 = vld [vmem:[%s13878_s25 + $0x984] sm:$0xf]  ;;  %v10402_v47 = vor.u32 %v12984_v38, %v10399_v39  ;;  %6773 = vmatpush.bf16.msrb.mxu2 %v10146_v43 }
 0x165   : > { %v9599_v45 = vld [vmem:[%s13878_s25 + $0x9a0] sm:$0xf0] }
 0x166   : > { %v12848_v46 = vld [vmem:[%s13878_s25 + $0xb84] sm:$0xf]  ;;  %v9602_v53 = vor.u32 %v12784_v44, %v9599_v45  ;;  %6786 = vmatpush.bf16.msrb.mxu3 %v10402_v47 }
 0x167   : > { %v9855_v48 = vld [vmem:[%s13878_s25 + $0xba0] sm:$0xf0] }
 0x168   : > { %v12912_v49 = vld [vmem:[%s13878_s25 + $0xd84] sm:$0xf]  ;;  %v9858_v54 = vor.u32 %v12848_v46, %v9855_v48  ;;  %6748 = vmatpush.bf16.msrb.mxu0 %v9602_v53  ;;  %v6496_v46 = vpop.f32.mrf.mxu0 }
 0x169   : > { %v10111_v50 = vld [vmem:[%s13878_s25 + $0xda0] sm:$0xf0] }
 0x16a   : > { %v12976_v51 = vld [vmem:[%s13878_s25 + $0xf84] sm:$0xf]  ;;  %v10114_v55 = vor.u32 %v12912_v49, %v10111_v50  ;;  %6761 = vmatpush.bf16.msrb.mxu1 %v9858_v54 }
 0x16b   : > { %v10367_v52 = vld [vmem:[%s13878_s25 + $0xfa0] sm:$0xf0] }
 0x16c   : > { %v12776_v56 = vld [vmem:[%s13878_s25 + $0x944] sm:$0xf]  ;;  %v10370_v59 = vor.u32 %v12976_v51, %v10367_v52  ;;  %6774 = vmatpush.bf16.msrb.mxu2 %v10114_v55  ;;  %v6509_v52 = vpop.f32.mrf.mxu1 }
 0x16d   : > { %v9567_v57 = vld [vmem:[%s13878_s25 + $0x960] sm:$0xf0] }
 0x16e   : > { %v12840_v58 = vld [vmem:[%s13878_s25 + $0xb44] sm:$0xf]  ;;  %v9570_v1 = vor.u32 %v12776_v56, %v9567_v57  ;;  %6787 = vmatpush.bf16.msrb.mxu3 %v10370_v59  ;;  %v6510_v57 = vadd.f32 %v6509_v52, %v6496_v46 }
 0x16f   : > { %v9823_v60 = vld [vmem:[%s13878_s25 + $0xb60] sm:$0xf0] }
 0x170   : > { %v12904_v61 = vld [vmem:[%s13878_s25 + $0xd44] sm:$0xf]  ;;  %v9826_v2 = vor.u32 %v12840_v58, %v9823_v60  ;;  %6749 = vmatpush.bf16.msrb.mxu0 %v9570_v1 }
 0x171   : > { %v10079_v62 = vld [vmem:[%s13878_s25 + $0xd60] sm:$0xf0] }
 0x172   : > { %v12968_v63 = vld [vmem:[%s13878_s25 + $0xf44] sm:$0xf]  ;;  %v10082_v3 = vor.u32 %v12904_v61, %v10079_v62  ;;  %6762 = vmatpush.bf16.msrb.mxu1 %v9826_v2 }
 0x173   : > { %v10335_v0 = vld [vmem:[%s13878_s25 + $0xf60] sm:$0xf0] }
 0x174   : > { %v12768_v4 = vld [vmem:[%s13878_s25 + $0x904] sm:$0xf]  ;;  %v10338_v7 = vor.u32 %v12968_v63, %v10335_v0  ;;  %6775 = vmatpush.bf16.msrb.mxu2 %v10082_v3 }
 0x175   : > { %v9535_v5 = vld [vmem:[%s13878_s25 + $0x920] sm:$0xf0] }
 0x176   : > { %v12832_v6 = vld [vmem:[%s13878_s25 + $0xb04] sm:$0xf]  ;;  %v9538_v13 = vor.u32 %v12768_v4, %v9535_v5  ;;  %6788 = vmatpush.bf16.msrb.mxu3 %v10338_v7  ;;  %v6522_v4 = vpop.f32.mrf.mxu2 }
 0x177   : > { %v9791_v8 = vld [vmem:[%s13878_s25 + $0xb20] sm:$0xf0] }
 0x178   : > { %v12896_v9 = vld [vmem:[%s13878_s25 + $0xd04] sm:$0xf]  ;;  %v9794_v14 = vor.u32 %v12832_v6, %v9791_v8  ;;  %6750 = vmatpush.bf16.msrb.mxu0 %v9538_v13 }
 0x179   : > { %v10047_v10 = vld [vmem:[%s13878_s25 + $0xd20] sm:$0xf0] }
 0x17a   : > { %v12960_v11 = vld [vmem:[%s13878_s25 + $0xf04] sm:$0xf]  ;;  %v10050_v15 = vor.u32 %v12896_v9, %v10047_v10  ;;  %6763 = vmatpush.bf16.msrb.mxu1 %v9794_v14  ;;  %v6523_v9 = vadd.f32 %v6522_v4, %v6510_v57  ;;  %v6535_v10 = vpop.f32.mrf.mxu3 }
 0x17b   : > { %v10303_v12 = vld [vmem:[%s13878_s25 + $0xf20] sm:$0xf0] }
 0x17c   : > { %v12760_v16 = vld [vmem:[%s13878_s25 + $0x8c4] sm:$0xf]  ;;  %v10306_v19 = vor.u32 %v12960_v11, %v10303_v12  ;;  %6776 = vmatpush.bf16.msrb.mxu2 %v10050_v15 }
 0x17d   : > { %v9503_v17 = vld [vmem:[%s13878_s25 + $0x8e0] sm:$0xf0] }
 0x17e   : > { %v12824_v18 = vld [vmem:[%s13878_s25 + $0xac4] sm:$0xf]  ;;  %v9506_v33 = vor.u32 %v12760_v16, %v9503_v17  ;;  %6789 = vmatpush.bf16.msrb.mxu3 %v10306_v19  ;;  %v6498_v19 = vpop.f32.mrf.mxu0  ;;  %v6524_v46 = vpop.f32.mrf.mxu2 }
 0x17f   : > { %v9759_v20 = vld [vmem:[%s13878_s25 + $0xae0] sm:$0xf0] }
 0x180   : > { %v12888_v21 = vld [vmem:[%s13878_s25 + $0xcc4] sm:$0xf]  ;;  %v9762_v34 = vor.u32 %v12824_v18, %v9759_v20  ;;  %6751 = vmatpush.bf16.msrb.mxu0 %v9506_v33  ;;  %v14318_v18 = vadd.f32 %v6535_v10, %v6523_v9 }
 0x181   : > { %v10015_v26 = vld [vmem:[%s13878_s25 + $0xce0] sm:$0xf0] }
 0x182   : > { %v12952_v29 = vld [vmem:[%s13878_s25 + $0xec4] sm:$0xf]  ;;  %v10018_v35 = vor.u32 %v12888_v21, %v10015_v26  ;;  %6764 = vmatpush.bf16.msrb.mxu1 %v9762_v34 }
 0x183   : > { %v10271_v32 = vld [vmem:[%s13878_s25 + $0xee0] sm:$0xf0] }
 0x184   : > { %v12752_v36 = vld [vmem:[%s13878_s25 + $0x884] sm:$0xf]  ;;  %v10274_v39 = vor.u32 %v12952_v29, %v10271_v32  ;;  %6777 = vmatpush.bf16.msrb.mxu2 %v10018_v35  ;;  %v6511_v32 = vpop.f32.mrf.mxu1 }
 0x185   : > { %v9471_v37 = vld [vmem:[%s13878_s25 + $0x8a0] sm:$0xf0] }
 0x186   : > { %v12816_v38 = vld [vmem:[%s13878_s25 + $0xa84] sm:$0xf]  ;;  %v9474_v45 = vor.u32 %v12752_v36, %v9471_v37  ;;  %6790 = vmatpush.bf16.msrb.mxu3 %v10274_v39  ;;  %v6548_v9 = vpop.f32.mrf.mxu0 }
 0x187   : > { %v9727_v40 = vld [vmem:[%s13878_s25 + $0xaa0] sm:$0xf0] }
 0x188   : > { %v12880_v41 = vld [vmem:[%s13878_s25 + $0xc84] sm:$0xf]  ;;  %v9730_v47 = vor.u32 %v12816_v38, %v9727_v40  ;;  %6752 = vmatpush.bf16.msrb.mxu0 %v9474_v45 }
 0x189   : > { %v9983_v42 = vld [vmem:[%s13878_s25 + $0xca0] sm:$0xf0] }
 0x18a   : > { %v12944_v43 = vld [vmem:[%s13878_s25 + $0xe84] sm:$0xf]  ;;  %v9986_v48 = vor.u32 %v12880_v41, %v9983_v42  ;;  %6765 = vmatpush.bf16.msrb.mxu1 %v9730_v47 }
 0x18b   : > { %v10239_v44 = vld [vmem:[%s13878_s25 + $0xea0] sm:$0xf0] }
 0x18c   : > { %v12744_v49 = vld [vmem:[%s13878_s25 + $0x844] sm:$0xf]  ;;  %v10242_v53 = vor.u32 %v12944_v43, %v10239_v44  ;;  %6778 = vmatpush.bf16.msrb.mxu2 %v9986_v48  ;;  %v6537_v48 = vpop.f32.mrf.mxu3 }
 0x18d   : > { %v9439_v50 = vld [vmem:[%s13878_s25 + $0x860] sm:$0xf0] }
 0x18e   : > { %v12808_v51 = vld [vmem:[%s13878_s25 + $0xa44] sm:$0xf]  ;;  %v9442_v60 = vor.u32 %v12744_v49, %v9439_v50  ;;  %6791 = vmatpush.bf16.msrb.mxu3 %v10242_v53 }
 0x18f   : > { %v9695_v54 = vld [vmem:[%s13878_s25 + $0xa60] sm:$0xf0] }
 0x190   : > { %v12872_v55 = vld [vmem:[%s13878_s25 + $0xc44] sm:$0xf]  ;;  %v9698_v63 = vor.u32 %v12808_v51, %v9695_v54  ;;  %6753 = vmatpush.bf16.msrb.mxu0 %v9442_v60 }
 0x191   : > { %v9951_v56 = vld [vmem:[%s13878_s25 + $0xc60] sm:$0xf0] }
 0x192   : > { %v12936_v58 = vld [vmem:[%s13878_s25 + $0xe44] sm:$0xf]  ;;  %v9954_v0 = vor.u32 %v12872_v55, %v9951_v56  ;;  %6766 = vmatpush.bf16.msrb.mxu1 %v9698_v63 }
 0x193   : > { %v10207_v59 = vld [vmem:[%s13878_s25 + $0xe60] sm:$0xf0] }
 0x194   : > { %v12736_v61 = vld [vmem:[%s13878_s25 + $0x804] sm:$0xf]  ;;  %v10210_v5 = vor.u32 %v12936_v58, %v10207_v59  ;;  %6779 = vmatpush.bf16.msrb.mxu2 %v9954_v0 }
 0x195   : > { %v9407_v62 = vld [vmem:[%s13878_s25 + $0x820] sm:$0xf0] }
 0x196   : > { %v12800_v1 = vld [vmem:[%s13878_s25 + $0xa04] sm:$0xf]  ;;  %v9410_v14 = vor.u32 %v12736_v61, %v9407_v62  ;;  %6792 = vmatpush.bf16.msrb.mxu3 %v10210_v5 }
 0x197   : > { %v9663_v2 = vld [vmem:[%s13878_s25 + $0xa20] sm:$0xf0] }
 0x198   : > { %v12864_v3 = vld [vmem:[%s13878_s25 + $0xc04] sm:$0xf]  ;;  %v9666_v20 = vor.u32 %v12800_v1, %v9663_v2  ;;  %6754 = vmatpush.bf16.msrb.mxu0 %v9410_v14 }
 0x199   : > { %v9919_v6 = vld [vmem:[%s13878_s25 + $0xc20] sm:$0xf0] }
 0x19a   : > { %v12928_v7 = vld [vmem:[%s13878_s25 + $0xe04] sm:$0xf]  ;;  %v9922_v21 = vor.u32 %v12864_v3, %v9919_v6  ;;  %6767 = vmatpush.bf16.msrb.mxu1 %v9666_v20 }
 0x19b   : > { %v10175_v8 = vld [vmem:[%s13878_s25 + $0xe20] sm:$0xf0]  ;;  %6755 = vmatmul.bf16.vlgmr.msrb.gmra.mxu0 %v14054_v23 }
 0x19c   : > { %v13048_v11 = vld [vmem:[%s13878_s25 + $0x11c4] sm:$0xf]  ;;  %v10178_v33 = vor.u32 %v12928_v7, %v10175_v8  ;;  %6780 = vmatpush.bf16.msrb.mxu2 %v9922_v21 }
 0x19d   : > { %v10655_v12 = vld [vmem:[%s13878_s25 + $0x11e0] sm:$0xf0]  ;;  %6768 = vmatmul.bf16.vlgmr.msrb.gmra.mxu1 %v14058_v31 }
 0x19e   : > { %v13112_v13 = vld [vmem:[%s13878_s25 + $0x13c4] sm:$0xf]  ;;  %v10658_v34 = vor.u32 %v13048_v11, %v10655_v12  ;;  %6793 = vmatpush.bf16.msrb.mxu3 %v10178_v33 }
 0x19f   : > { %v10911_v15 = vld [vmem:[%s13878_s25 + $0x13e0] sm:$0xf0]  ;;  %6781 = vmatmul.bf16.vlgmr.msrb.gmra.mxu2 %v14052_v22 }
 0x1a0   : > { %v13176_v16 = vld [vmem:[%s13878_s25 + $0x15c4] sm:$0xf]  ;;  %v10914_v35 = vor.u32 %v13112_v13, %v10911_v15  ;;  %6799 = vmatpush.bf16.msra.mxu0 %v10658_v34  ;;  %v6549_v15 = vadd.f32 %v6548_v9, %v14318_v18 }
 0x1a1   : > { %v11167_v17 = vld [vmem:[%s13878_s25 + $0x15e0] sm:$0xf0]  ;;  %6794 = vmatmul.bf16.vlgmr.msrb.gmra.mxu3 %v14056_v30 }
 0x1a2   : > { %v13240_v26 = vld [vmem:[%s13878_s25 + $0x17c4] sm:$0xf]  ;;  %v11170_v36 = vor.u32 %v13176_v16, %v11167_v17  ;;  %6812 = vmatpush.bf16.msra.mxu1 %v10914_v35  ;;  %v6561_v16 = vpop.f32.mrf.mxu1 }
 0x1a3   : > { %v11423_v29 = vld [vmem:[%s13878_s25 + $0x17e0] sm:$0xf0]  ;;  %v6562_v32 = vadd.f32 %v6561_v16, %v6549_v15 }
 0x1a4   : > { %v13040_v37 = vld [vmem:[%s13878_s25 + $0x1184] sm:$0xf]  ;;  %v11426_v40 = vor.u32 %v13240_v26, %v11423_v29  ;;  %6825 = vmatpush.bf16.msra.mxu2 %v11170_v36 }
 0x1a5   : > { %v10623_v38 = vld [vmem:[%s13878_s25 + $0x11a0] sm:$0xf0] }
 0x1a6   : > { %v13104_v39 = vld [vmem:[%s13878_s25 + $0x1384] sm:$0xf]  ;;  %v10626_v47 = vor.u32 %v13040_v37, %v10623_v38  ;;  %6838 = vmatpush.bf16.msra.mxu3 %v11426_v40  ;;  %v6574_v38 = vpop.f32.mrf.mxu2 }
 0x1a7   : > { %v10879_v41 = vld [vmem:[%s13878_s25 + $0x13a0] sm:$0xf0] }
 0x1a8   : > { %v13168_v42 = vld [vmem:[%s13878_s25 + $0x1584] sm:$0xf]  ;;  %v10882_v49 = vor.u32 %v13104_v39, %v10879_v41  ;;  %6800 = vmatpush.bf16.msra.mxu0 %v10626_v47 }
 0x1a9   : > { %v11135_v43 = vld [vmem:[%s13878_s25 + $0x15a0] sm:$0xf0] }
 0x1aa   : > { %v13232_v44 = vld [vmem:[%s13878_s25 + $0x1784] sm:$0xf]  ;;  %v11138_v50 = vor.u32 %v13168_v42, %v11135_v43  ;;  %6813 = vmatpush.bf16.msra.mxu1 %v10882_v49  ;;  %v6575_v43 = vadd.f32 %v6574_v38, %v6562_v32  ;;  %v6550_v49 = vpop.f32.mrf.mxu0 }
 0x1ab   : > { %v11391_v45 = vld [vmem:[%s13878_s25 + $0x17a0] sm:$0xf0] }
 0x1ac   : > { %v13032_v51 = vld [vmem:[%s13878_s25 + $0x1144] sm:$0xf]  ;;  %v11394_v54 = vor.u32 %v13232_v44, %v11391_v45  ;;  %6826 = vmatpush.bf16.msra.mxu2 %v11138_v50  ;;  %v6587_v44 = vpop.f32.mrf.mxu3 }
 0x1ad   : > { %v10591_v52 = vld [vmem:[%s13878_s25 + $0x1160] sm:$0xf0]  ;;  %v14367_v48 = vadd.f32 %v6587_v44, %v6575_v43 }
 0x1ae   : > { %v13096_v53 = vld [vmem:[%s13878_s25 + $0x1344] sm:$0xf]  ;;  %v10594_v60 = vor.u32 %v13032_v51, %v10591_v52  ;;  %6839 = vmatpush.bf16.msra.mxu3 %v11394_v54 }
 0x1af   : > { %v10847_v55 = vld [vmem:[%s13878_s25 + $0x1360] sm:$0xf0] }
 0x1b0   : > { %v13160_v56 = vld [vmem:[%s13878_s25 + $0x1544] sm:$0xf]  ;;  %v10850_v61 = vor.u32 %v13096_v53, %v10847_v55  ;;  %6801 = vmatpush.bf16.msra.mxu0 %v10594_v60  ;;  %v6563_v55 = vpop.f32.mrf.mxu1 }
 0x1b1   : > { %v11103_v57 = vld [vmem:[%s13878_s25 + $0x1560] sm:$0xf0] }
 0x1b2   : > { %v13224_v58 = vld [vmem:[%s13878_s25 + $0x1744] sm:$0xf]  ;;  %v11106_v62 = vor.u32 %v13160_v56, %v11103_v57  ;;  %6814 = vmatpush.bf16.msra.mxu1 %v10850_v61 }
 0x1b3   : > { %v11359_v59 = vld [vmem:[%s13878_s25 + $0x1760] sm:$0xf0] }
 0x1b4   : > { %v13024_v63 = vld [vmem:[%s13878_s25 + $0x1104] sm:$0xf]  ;;  %v11362_v2 = vor.u32 %v13224_v58, %v11359_v59  ;;  %6827 = vmatpush.bf16.msra.mxu2 %v11106_v62 }
 0x1b5   : > { %v10559_v0 = vld [vmem:[%s13878_s25 + $0x1120] sm:$0xf0] }
 0x1b6   : > { %v13088_v1 = vld [vmem:[%s13878_s25 + $0x1304] sm:$0xf]  ;;  %v10562_v8 = vor.u32 %v13024_v63, %v10559_v0  ;;  %6840 = vmatpush.bf16.msra.mxu3 %v11362_v2 }
 0x1b7   : > { %v10815_v3 = vld [vmem:[%s13878_s25 + $0x1320] sm:$0xf0] }
 0x1b8   : > { %v13152_v4 = vld [vmem:[%s13878_s25 + $0x1504] sm:$0xf]  ;;  %v10818_v10 = vor.u32 %v13088_v1, %v10815_v3  ;;  %6802 = vmatpush.bf16.msra.mxu0 %v10562_v8 }
 0x1b9   : > { %v11071_v5 = vld [vmem:[%s13878_s25 + $0x1520] sm:$0xf0] }
 0x1ba   : > { %v13216_v6 = vld [vmem:[%s13878_s25 + $0x1704] sm:$0xf]  ;;  %v11074_v11 = vor.u32 %v13152_v4, %v11071_v5  ;;  %6815 = vmatpush.bf16.msra.mxu1 %v10818_v10 }
 0x1bb   : > { %v11327_v7 = vld [vmem:[%s13878_s25 + $0x1720] sm:$0xf0] }
 0x1bc   : > { %v13016_v12 = vld [vmem:[%s13878_s25 + $0x10c4] sm:$0xf]  ;;  %v11330_v17 = vor.u32 %v13216_v6, %v11327_v7  ;;  %6828 = vmatpush.bf16.msra.mxu2 %v11074_v11  ;;  %v6576_v6 = vpop.f32.mrf.mxu2  ;;  %v6589_v11 = vpop.f32.mrf.mxu3 }
 0x1bd   : > { %v10527_v13 = vld [vmem:[%s13878_s25 + $0x10e0] sm:$0xf0] }
 0x1be   : > { %v13080_v14 = vld [vmem:[%s13878_s25 + $0x12c4] sm:$0xf]  ;;  %v10530_v33 = vor.u32 %v13016_v12, %v10527_v13  ;;  %6841 = vmatpush.bf16.msra.mxu3 %v11330_v17 }
 0x1bf   : > { %v10783_v19 = vld [vmem:[%s13878_s25 + $0x12e0] sm:$0xf0] }
 0x1c0   : > { %v13144_v20 = vld [vmem:[%s13878_s25 + $0x14c4] sm:$0xf]  ;;  %v10786_v18 = vor.u32 %v13080_v14, %v10783_v19  ;;  %6803 = vmatpush.bf16.msra.mxu0 %v10530_v33 }
 0x1c1   : > { %v11039_v21 = vld [vmem:[%s13878_s25 + $0x14e0] sm:$0xf0] }
 0x1c2   : > { %v13208_v26 = vld [vmem:[%s13878_s25 + $0x16c4] sm:$0xf]  ;;  %v11042_v34 = vor.u32 %v13144_v20, %v11039_v21  ;;  %6816 = vmatpush.bf16.msra.mxu1 %v10786_v18 }
 0x1c3   : > { %v11295_v29 = vld [vmem:[%s13878_s25 + $0x16e0] sm:$0xf0] }
 0x1c4   : > { %v13008_v35 = vld [vmem:[%s13878_s25 + $0x1084] sm:$0xf]  ;;  %v11298_v39 = vor.u32 %v13208_v26, %v11295_v29  ;;  %6829 = vmatpush.bf16.msra.mxu2 %v11042_v34 }
 0x1c5   : > { %v10495_v36 = vld [vmem:[%s13878_s25 + $0x10a0] sm:$0xf0] }
 0x1c6   : > { %v13072_v37 = vld [vmem:[%s13878_s25 + $0x1284] sm:$0xf]  ;;  %v10498_v47 = vor.u32 %v13008_v35, %v10495_v36  ;;  %6842 = vmatpush.bf16.msra.mxu3 %v11298_v39 }
 0x1c7   : > { %v10751_v40 = vld [vmem:[%s13878_s25 + $0x12a0] sm:$0xf0] }
 0x1c8   : > { %v13136_v41 = vld [vmem:[%s13878_s25 + $0x1484] sm:$0xf]  ;;  %v10754_v50 = vor.u32 %v13072_v37, %v10751_v40  ;;  %6804 = vmatpush.bf16.msra.mxu0 %v10498_v47 }
 0x1c9   : > { %v11007_v42 = vld [vmem:[%s13878_s25 + $0x14a0] sm:$0xf0] }
 0x1ca   : > { %v13200_v45 = vld [vmem:[%s13878_s25 + $0x1684] sm:$0xf]  ;;  %v11010_v51 = vor.u32 %v13136_v41, %v11007_v42  ;;  %6817 = vmatpush.bf16.msra.mxu1 %v10754_v50 }
 0x1cb   : > { %v11263_v46 = vld [vmem:[%s13878_s25 + $0x16a0] sm:$0xf0] }
 0x1cc   : > { %v13000_v52 = vld [vmem:[%s13878_s25 + $0x1044] sm:$0xf]  ;;  %v11266_v56 = vor.u32 %v13200_v45, %v11263_v46  ;;  %6830 = vmatpush.bf16.msra.mxu2 %v11010_v51  ;;  %v13567_v51 = vld.sshfl [vmem:[#allocation1] sm:$0xff pattern:$0x73625140] }
 0x1cd   : > { %v10463_v53 = vld [vmem:[%s13878_s25 + $0x1060] sm:$0xf0] }
 0x1ce   : > { %v13064_v54 = vld [vmem:[%s13878_s25 + $0x1244] sm:$0xf]  ;;  %v10466_v62 = vor.u32 %v13000_v52, %v10463_v53  ;;  %6843 = vmatpush.bf16.msra.mxu3 %v11266_v56  ;;  %v13568_v56 = vld.sshfl [vmem:[#allocation1 + $0x10] sm:$0xff pattern:$0x73625140] }
 0x1cf   : > { %v10719_v57 = vld [vmem:[%s13878_s25 + $0x1260] sm:$0xf0] }
 0x1d0   : > { %v13128_v58 = vld [vmem:[%s13878_s25 + $0x1444] sm:$0xf]  ;;  %v10722_v1 = vor.u32 %v13064_v54, %v10719_v57  ;;  %6805 = vmatpush.bf16.msra.mxu0 %v10466_v62 }
 0x1d1   : > { %v10975_v59 = vld [vmem:[%s13878_s25 + $0x1460] sm:$0xf0] }
 0x1d2   : > { %v13192_v60 = vld [vmem:[%s13878_s25 + $0x1644] sm:$0xf]  ;;  %v10978_v2 = vor.u32 %v13128_v58, %v10975_v59  ;;  %6818 = vmatpush.bf16.msra.mxu1 %v10722_v1 }
 0x1d3   : > { %v11231_v61 = vld [vmem:[%s13878_s25 + $0x1660] sm:$0xf0] }
 0x1d4   : > { %v12992_v63 = vld [vmem:[%s13878_s25 + $0x1004] sm:$0xf]  ;;  %v11234_v7 = vor.u32 %v13192_v60, %v11231_v61  ;;  %6831 = vmatpush.bf16.msra.mxu2 %v10978_v2  ;;  %v13570_v60 = vld.sshfl [vmem:[#allocation1 + $0x18] sm:$0xff pattern:$0x73625140] }
 0x1d5   : > { %v10431_v0 = vld [vmem:[%s13878_s25 + $0x1020] sm:$0xf0] }
 0x1d6   : > { %v13056_v3 = vld [vmem:[%s13878_s25 + $0x1204] sm:$0xf]  ;;  %v10434_v15 = vor.u32 %v12992_v63, %v10431_v0  ;;  %6844 = vmatpush.bf16.msra.mxu3 %v11234_v7  ;;  %v6600_v7 = vpop.f32.mrf.mxu0 }
 0x1d7   : > { %v10687_v4 = vld [vmem:[%s13878_s25 + $0x1220] sm:$0xf0] }
 0x1d8   : > { %v13120_v5 = vld [vmem:[%s13878_s25 + $0x1404] sm:$0xf]  ;;  %v10690_v20 = vor.u32 %v13056_v3, %v10687_v4  ;;  %6806 = vmatpush.bf16.msra.mxu0 %v10434_v15 }
 0x1d9   : > { %v10943_v8 = vld [vmem:[%s13878_s25 + $0x1420] sm:$0xf0] }
 0x1da   : > { %v13184_v9 = vld [vmem:[%s13878_s25 + $0x1604] sm:$0xf]  ;;  %v10946_v21 = vor.u32 %v13120_v5, %v10943_v8  ;;  %6819 = vmatpush.bf16.msra.mxu1 %v10690_v20 }
 0x1db   : > { %v11199_v10 = vld [vmem:[%s13878_s25 + $0x1620] sm:$0xf0]  ;;  %6807 = vmatmul.bf16.vlgmr.msra.gmra.mxu0 %v13567_v51 }
 0x1dc   : > { %v13304_v12 = vld [vmem:[%s13878_s25 + $0x19c4] sm:$0xf]  ;;  %v11202_v32 = vor.u32 %v13184_v9, %v11199_v10  ;;  %6832 = vmatpush.bf16.msra.mxu2 %v10946_v21  ;;  %v6601_v10 = vadd.f32 %v6600_v7, %v14367_v48 }
 0x1dd   : > { %v11679_v13 = vld [vmem:[%s13878_s25 + $0x19e0] sm:$0xf0] }
 0x1de   : > { %v13368_v14 = vld [vmem:[%s13878_s25 + $0x1bc4] sm:$0xf]  ;;  %v11682_v33 = vor.u32 %v13304_v12, %v11679_v13  ;;  %6845 = vmatpush.bf16.msra.mxu3 %v11202_v32  ;;  %v6613_v12 = vpop.f32.mrf.mxu1 }
 0x1df   : > { %v11935_v16 = vld [vmem:[%s13878_s25 + $0x1be0] sm:$0xf0]  ;;  %6833 = vmatmul.bf16.vlgmr.msra.gmra.mxu2 %v13568_v56  ;;  %v6614_v20 = vadd.f32 %v6613_v12, %v6601_v10  ;;  %v8613_v12 = vld [vmem:[%s13878_s25 + $0x1c8] sm:$0xf] }
 0x1e0   : > { %v13432_v17 = vld [vmem:[%s13878_s25 + $0x1dc4] sm:$0xf]  ;;  %v11938_v18 = vor.u32 %v13368_v14, %v11935_v16  ;;  %6851 = vmatpush.bf16.msrb.mxu0 %v11682_v33 }
 0x1e1   : > { %v12191_v19 = vld [vmem:[%s13878_s25 + $0x1de0] sm:$0xf0]  ;;  %6846 = vmatmul.bf16.vlgmr.msra.gmra.mxu3 %v13570_v60 }
 0x1e2   : > { %v13496_v26 = vld [vmem:[%s13878_s25 + $0x1fc4] sm:$0xf]  ;;  %v12194_v34 = vor.u32 %v13432_v17, %v12191_v19  ;;  %6864 = vmatpush.bf16.msrb.mxu1 %v11938_v18 }
 0x1e3   : > { %v12447_v29 = vld [vmem:[%s13878_s25 + $0x1fe0] sm:$0xf0] }
 0x1e4   : > { %v13296_v35 = vld [vmem:[%s13878_s25 + $0x1984] sm:$0xf]  ;;  %v12450_v38 = vor.u32 %v13496_v26, %v12447_v29  ;;  %6877 = vmatpush.bf16.msrb.mxu2 %v12194_v34 }
 0x1e5   : > { %v11647_v36 = vld [vmem:[%s13878_s25 + $0x19a0] sm:$0xf0] }
 0x1e6   : > { %v13360_v37 = vld [vmem:[%s13878_s25 + $0x1b84] sm:$0xf]  ;;  %v11650_v44 = vor.u32 %v13296_v35, %v11647_v36  ;;  %6890 = vmatpush.bf16.msrb.mxu3 %v12450_v38 }
 0x1e7   : > { %v11903_v39 = vld [vmem:[%s13878_s25 + $0x1ba0] sm:$0xf0] }
 0x1e8   : > { %v13424_v40 = vld [vmem:[%s13878_s25 + $0x1d84] sm:$0xf]  ;;  %v11906_v45 = vor.u32 %v13360_v37, %v11903_v39  ;;  %6852 = vmatpush.bf16.msrb.mxu0 %v11650_v44  ;;  %v6626_v39 = vpop.f32.mrf.mxu2  ;;  %v6639_v44 = vpop.f32.mrf.mxu3 }
 0x1e9   : > { %v12159_v41 = vld [vmem:[%s13878_s25 + $0x1da0] sm:$0xf0] }
 0x1ea   : > { %v13488_v42 = vld [vmem:[%s13878_s25 + $0x1f84] sm:$0xf]  ;;  %v12162_v46 = vor.u32 %v13424_v40, %v12159_v41  ;;  %6865 = vmatpush.bf16.msrb.mxu1 %v11906_v45 }
 0x1eb   : > { %v12415_v43 = vld [vmem:[%s13878_s25 + $0x1fa0] sm:$0xf0] }
 0x1ec   : > { %v13288_v47 = vld [vmem:[%s13878_s25 + $0x1944] sm:$0xf]  ;;  %v12418_v52 = vor.u32 %v13488_v42, %v12415_v43  ;;  %6878 = vmatpush.bf16.msrb.mxu2 %v12162_v46  ;;  %v6627_v43 = vadd.f32 %v6626_v39, %v6614_v20  ;;  %v12669_v20 = vld [vmem:[%s13878_s25 + $0x5e4] sm:$0xf0] }
 0x1ed   : > { %v11615_v49 = vld [vmem:[%s13878_s25 + $0x1960] sm:$0xf0]  ;;  %v12597_v39 = vld [vmem:[%s13878_s25 + $0x3a4] sm:$0xf0] }
 0x1ee   : > { %v13352_v50 = vld [vmem:[%s13878_s25 + $0x1b44] sm:$0xf]  ;;  %v11618_v61 = vor.u32 %v13288_v47, %v11615_v49  ;;  %6891 = vmatpush.bf16.msrb.mxu3 %v12418_v52  ;;  %v6602_v47 = vpop.f32.mrf.mxu0  ;;  %v14434_v51 = vadd.f32 %v6639_v44, %v6627_v43  ;;  %v12725_v43 = vld [vmem:[%s13878_s25 + $0x7a4] sm:$0xf0] }
 0x1ef   : > { %v11871_v53 = vld [vmem:[%s13878_s25 + $0x1b60] sm:$0xf0]  ;;  %v8549_v47 = vld [vmem:[%s13878_s25 + $0x148] sm:$0xf] }
 0x1f0   : > { %v13416_v54 = vld [vmem:[%s13878_s25 + $0x1d44] sm:$0xf]  ;;  %v11874_v62 = vor.u32 %v13352_v50, %v11871_v53  ;;  %6853 = vmatpush.bf16.msrb.mxu0 %v11618_v61  ;;  %v6615_v50 = vpop.f32.mrf.mxu1 }
 0x1f1   : > { %v12127_v55 = vld [vmem:[%s13878_s25 + $0x1d60] sm:$0xf0]  ;;  %v8805_v50 = vld [vmem:[%s13878_s25 + $0x348] sm:$0xf] }
 0x1f2   : > { %v13569_v57 = vld.sshfl [vmem:[#allocation1 + $0x8] sm:$0xff pattern:$0x73625140]  ;;  %v12130_v63 = vor.u32 %v13416_v54, %v12127_v55  ;;  %6866 = vmatpush.bf16.msrb.mxu1 %v11874_v62 }
 0x1f3   : > { %6820 = vmatmul.bf16.vlgmr.msra.gmra.mxu1 %v13569_v57  ;;  %v13480_v58 = vld [vmem:[%s13878_s25 + $0x1f44] sm:$0xf] }
 0x1f4   : > { %v12383_v59 = vld [vmem:[%s13878_s25 + $0x1f60] sm:$0xf0]  ;;  %6879 = vmatpush.bf16.msrb.mxu2 %v12130_v63 }
 0x1f5   : > { %v13280_v0 = vld [vmem:[%s13878_s25 + $0x1904] sm:$0xf]  ;;  %v12386_v3 = vor.u32 %v13480_v58, %v12383_v59 }
 0x1f6   : > { %v11583_v1 = vld [vmem:[%s13878_s25 + $0x1920] sm:$0xf0] }
 0x1f7   : > { %v13344_v2 = vld [vmem:[%s13878_s25 + $0x1b04] sm:$0xf]  ;;  %v11586_v11 = vor.u32 %v13280_v0, %v11583_v1  ;;  %6892 = vmatpush.bf16.msrb.mxu3 %v12386_v3 }
 0x1f8   : > { %v11839_v4 = vld [vmem:[%s13878_s25 + $0x1b20] sm:$0xf0] }
 0x1f9   : > { %v13408_v5 = vld [vmem:[%s13878_s25 + $0x1d04] sm:$0xf]  ;;  %v11842_v13 = vor.u32 %v13344_v2, %v11839_v4  ;;  %6854 = vmatpush.bf16.msrb.mxu0 %v11586_v11  ;;  %v6628_v11 = vpop.f32.mrf.mxu2 }
 0x1fa   : > { %v12095_v6 = vld [vmem:[%s13878_s25 + $0x1d20] sm:$0xf0] }
 0x1fb   : > { %v13472_v8 = vld [vmem:[%s13878_s25 + $0x1f04] sm:$0xf]  ;;  %v12098_v14 = vor.u32 %v13408_v5, %v12095_v6  ;;  %6867 = vmatpush.bf16.msrb.mxu1 %v11842_v13  ;;  %v12541_v13 = vld [vmem:[%s13878_s25 + $0x1e4] sm:$0xf0] }
 0x1fc   : > { %v12351_v9 = vld [vmem:[%s13878_s25 + $0x1f20] sm:$0xf0] }
 0x1fd   : > { %v13272_v15 = vld [vmem:[%s13878_s25 + $0x18c4] sm:$0xf]  ;;  %v12354_v19 = vor.u32 %v13472_v8, %v12351_v9  ;;  %6880 = vmatpush.bf16.msrb.mxu2 %v12098_v14  ;;  %v8869_v14 = vld [vmem:[%s13878_s25 + $0x3c8] sm:$0xf] }
 0x1fe   : > { %v11551_v16 = vld [vmem:[%s13878_s25 + $0x18e0] sm:$0xf0] }
 0x1ff   : > { %v13336_v17 = vld [vmem:[%s13878_s25 + $0x1ac4] sm:$0xf]  ;;  %v11554_v33 = vor.u32 %v13272_v15, %v11551_v16  ;;  %6893 = vmatpush.bf16.msrb.mxu3 %v12354_v19  ;;  %v6641_v15 = vpop.f32.mrf.mxu3  ;;  %v9125_v19 = vld [vmem:[%s13878_s25 + $0x5c8] sm:$0xf] }
 0x200   : > { %v11807_v21 = vld [vmem:[%s13878_s25 + $0x1ae0] sm:$0xf0] }
 0x201   : > { %v13400_v26 = vld [vmem:[%s13878_s25 + $0x1cc4] sm:$0xf]  ;;  %v11810_v18 = vor.u32 %v13336_v17, %v11807_v21  ;;  %6855 = vmatpush.bf16.msrb.mxu0 %v11554_v33  ;;  %v12605_v17 = vld [vmem:[%s13878_s25 + $0x3e4] sm:$0xf0]  ;;  %v8614_v33 = vor.u32 %v12541_v13, %v8613_v12  ;;  %v6665_v13 = vpop.f32.mrf.mxu1 }
 0x202   : > { %v12063_v48 = vld [vmem:[%s13878_s25 + $0x1ce0] sm:$0xf0] }
 0x203   : > { %v13464_v29 = vld [vmem:[%s13878_s25 + $0x1ec4] sm:$0xf]  ;;  %v12066_v34 = vor.u32 %v13400_v26, %v12063_v48  ;;  %6868 = vmatpush.bf16.msrb.mxu1 %v11810_v18  ;;  %v9381_v48 = vld [vmem:[%s13878_s25 + $0x7c8] sm:$0xf]  ;;  %v8870_v18 = vor.u32 %v12605_v17, %v8869_v14 }
 0x204   : > { %v12319_v32 = vld [vmem:[%s13878_s25 + $0x1ee0] sm:$0xf0]  ;;  %v12509_v17 = vld [vmem:[%s13878_s25 + $0xe4] sm:$0xf0] }
 0x205   : > { %v13264_v35 = vld [vmem:[%s13878_s25 + $0x1884] sm:$0xf]  ;;  %v12322_v38 = vor.u32 %v13464_v29, %v12319_v32  ;;  %6881 = vmatpush.bf16.msrb.mxu2 %v12066_v34  ;;  %v12733_v29 = vld [vmem:[%s13878_s25 + $0x7e4] sm:$0xf0]  ;;  %v9126_v34 = vor.u32 %v12669_v20, %v9125_v19 }
 0x206   : > { %v11519_v36 = vld [vmem:[%s13878_s25 + $0x18a0] sm:$0xf0]  ;;  %v8741_v19 = vld [vmem:[%s13878_s25 + $0x2c8] sm:$0xf] }
 0x207   : > { %v13328_v37 = vld [vmem:[%s13878_s25 + $0x1a84] sm:$0xf]  ;;  %v11522_v49 = vor.u32 %v13264_v35, %v11519_v36  ;;  %6894 = vmatpush.bf16.msrb.mxu3 %v12322_v38  ;;  %v8581_v35 = vld [vmem:[%s13878_s25 + $0x188] sm:$0xf]  ;;  %v9382_v38 = vor.u32 %v12733_v29, %v9381_v48 }
 0x208   : > { %v11775_v40 = vld [vmem:[%s13878_s25 + $0x1aa0] sm:$0xf0]  ;;  %v12533_v36 = vld [vmem:[%s13878_s25 + $0x1a4] sm:$0xf0] }
 0x209   : > { %v13392_v41 = vld [vmem:[%s13878_s25 + $0x1c84] sm:$0xf]  ;;  %v11778_v52 = vor.u32 %v13328_v37, %v11775_v40  ;;  %6856 = vmatpush.bf16.msrb.mxu0 %v11522_v49  ;;  %v8837_v37 = vld [vmem:[%s13878_s25 + $0x388] sm:$0xf]  ;;  %v8582_v44 = vor.u32 %v12533_v36, %v8581_v35 }
 0x20a   : > { %v12031_v42 = vld [vmem:[%s13878_s25 + $0x1ca0] sm:$0xf0]  ;;  %v9093_v40 = vld [vmem:[%s13878_s25 + $0x588] sm:$0xf] }
 0x20b   : > { %v13456_v45 = vld [vmem:[%s13878_s25 + $0x1e84] sm:$0xf]  ;;  %v12034_v53 = vor.u32 %v13392_v41, %v12031_v42  ;;  %6869 = vmatpush.bf16.msrb.mxu1 %v11778_v52  ;;  %v12661_v41 = vld [vmem:[%s13878_s25 + $0x5a4] sm:$0xf0] }
 0x20c   : > { %v12287_v46 = vld [vmem:[%s13878_s25 + $0x1ea0] sm:$0xf0]  ;;  %v9349_v42 = vld [vmem:[%s13878_s25 + $0x788] sm:$0xf] }
 0x20d   : > { %v13256_v54 = vld [vmem:[%s13878_s25 + $0x1844] sm:$0xf]  ;;  %v12290_v57 = vor.u32 %v13456_v45, %v12287_v46  ;;  %6882 = vmatpush.bf16.msrb.mxu2 %v12034_v53  ;;  %v8838_v45 = vor.u32 %v12597_v39, %v8837_v37  ;;  %v9094_v46 = vor.u32 %v12661_v41, %v9093_v40  ;;  %v12525_v49 = vld [vmem:[%s13878_s25 + $0x164] sm:$0xf0]  ;;  %v9350_v53 = vor.u32 %v12725_v43, %v9349_v42  ;;  %v6678_v39 = vpop.f32.mrf.mxu2 }
 0x20e   : > { %v11487_v55 = vld [vmem:[%s13878_s25 + $0x1860] sm:$0xf0]  ;;  %v13571_v52 = vld.sshfl [vmem:[#allocation1 + $0x20] sm:$0xff pattern:$0x73625140] }
 0x20f   : > { %v13320_v56 = vld [vmem:[%s13878_s25 + $0x1a44] sm:$0xf]  ;;  %v11490_v63 = vor.u32 %v13256_v54, %v11487_v55  ;;  %6895 = vmatpush.bf16.msrb.mxu3 %v12290_v57  ;;  %v12589_v54 = vld [vmem:[%s13878_s25 + $0x364] sm:$0xf0] }
 0x210   : > { %v11743_v58 = vld [vmem:[%s13878_s25 + $0x1a60] sm:$0xf0]  ;;  %v9061_v55 = vld [vmem:[%s13878_s25 + $0x548] sm:$0xf] }
 0x211   : > { %v13384_v59 = vld [vmem:[%s13878_s25 + $0x1c44] sm:$0xf]  ;;  %v11746_v2 = vor.u32 %v13320_v56, %v11743_v58  ;;  %6857 = vmatpush.bf16.msrb.mxu0 %v11490_v63  ;;  %v12653_v56 = vld [vmem:[%s13878_s25 + $0x564] sm:$0xf0]  ;;  %v8806_v63 = vor.u32 %v12589_v54, %v8805_v50  ;;  %v6667_v50 = vpop.f32.mrf.mxu1 }
 0x212   : > { %v11999_v60 = vld [vmem:[%s13878_s25 + $0x1c60] sm:$0xf0]  ;;  %v13572_v57 = vld.sshfl [vmem:[#allocation1 + $0x30] sm:$0xff pattern:$0x73625140] }
 0x213   : > { %v13448_v61 = vld [vmem:[%s13878_s25 + $0x1e44] sm:$0xf]  ;;  %v12002_v3 = vor.u32 %v13384_v59, %v11999_v60  ;;  %6870 = vmatpush.bf16.msrb.mxu1 %v11746_v2  ;;  %v9317_v59 = vld [vmem:[%s13878_s25 + $0x748] sm:$0xf] }
 0x214   : > { %v12255_v62 = vld [vmem:[%s13878_s25 + $0x1e60] sm:$0xf0]  ;;  %v12717_v60 = vld [vmem:[%s13878_s25 + $0x764] sm:$0xf0] }
 0x215   : > { %v13248_v0 = vld [vmem:[%s13878_s25 + $0x1804] sm:$0xf]  ;;  %v12258_v7 = vor.u32 %v13448_v61, %v12255_v62  ;;  %6883 = vmatpush.bf16.msrb.mxu2 %v12002_v3  ;;  %v13574_v61 = vld.sshfl [vmem:[#allocation1 + $0x38] sm:$0xff pattern:$0x73625140]  ;;  %v8550_v62 = vor.u32 %v12525_v49, %v8549_v47 }
 0x216   : > { %v11455_v1 = vld [vmem:[%s13878_s25 + $0x1820] sm:$0xf0]  ;;  %v12517_v2 = vld [vmem:[%s13878_s25 + $0x124] sm:$0xf0] }
 0x217   : > { %v13312_v4 = vld [vmem:[%s13878_s25 + $0x1a04] sm:$0xf]  ;;  %v11458_v16 = vor.u32 %v13248_v0, %v11455_v1  ;;  %6896 = vmatpush.bf16.msrb.mxu3 %v12258_v7  ;;  %v9062_v0 = vor.u32 %v12653_v56, %v9061_v55  ;;  %v8517_v1 = vld [vmem:[%s13878_s25 + $0x108] sm:$0xf] }
 0x218   : > { %v11711_v5 = vld [vmem:[%s13878_s25 + $0x1a20] sm:$0xf0]  ;;  %v8773_v3 = vld [vmem:[%s13878_s25 + $0x308] sm:$0xf]  ;;  %v8518_v12 = vor.u32 %v12517_v2, %v8517_v1 }
 0x219   : > { %v13376_v6 = vld [vmem:[%s13878_s25 + $0x1c04] sm:$0xf]  ;;  %v11714_v21 = vor.u32 %v13312_v4, %v11711_v5  ;;  %6858 = vmatpush.bf16.msrb.mxu0 %v11458_v16  ;;  %v9318_v4 = vor.u32 %v12717_v60, %v9317_v59  ;;  %v12581_v5 = vld [vmem:[%s13878_s25 + $0x324] sm:$0xf0] }
 0x21a   : > { %v11967_v8 = vld [vmem:[%s13878_s25 + $0x1c20] sm:$0xf0]  ;;  %v12645_v7 = vld [vmem:[%s13878_s25 + $0x524] sm:$0xf0]  ;;  %v8774_v14 = vor.u32 %v12581_v5, %v8773_v3 }
 0x21b   : > { %v13440_v9 = vld [vmem:[%s13878_s25 + $0x1e04] sm:$0xf]  ;;  %v11970_v26 = vor.u32 %v13376_v6, %v11967_v8  ;;  %6871 = vmatpush.bf16.msrb.mxu1 %v11714_v21  ;;  %v9029_v6 = vld [vmem:[%s13878_s25 + $0x508] sm:$0xf]  ;;  %v6652_v8 = vpop.f32.mrf.mxu0 }
 0x21c   : > { %v12223_v10 = vld [vmem:[%s13878_s25 + $0x1e20] sm:$0xf0]  ;;  %6859 = vmatmul.bf16.vlgmr.msrb.gmra.mxu0 %v13571_v52  ;;  %v6653_v11 = vadd.f32 %v6652_v8, %v14434_v51  ;;  %v9030_v15 = vor.u32 %v12645_v7, %v9029_v6  ;;  %v8485_v16 = vld [vmem:[%s13878_s25 + $0xc8] sm:$0xf] }
 0x21d   : > { %v12226_v32 = vor.u32 %v13440_v9, %v12223_v10  ;;  %6884 = vmatpush.bf16.msrb.mxu2 %v11970_v26  ;;  %6903 = vmatpush.bf16.msra.mxu0 %v8614_v33  ;;  %v13573_v58 = vld.sshfl [vmem:[#allocation1 + $0x28] sm:$0xff pattern:$0x73625140]  ;;  %v9285_v9 = vld [vmem:[%s13878_s25 + $0x708] sm:$0xf]  ;;  %v8486_v33 = vor.u32 %v12509_v17, %v8485_v16 }
 0x21e   : > { %6872 = vmatmul.bf16.vlgmr.msrb.gmra.mxu1 %v13573_v58  ;;  %v12709_v10 = vld [vmem:[%s13878_s25 + $0x724] sm:$0xf0]  ;;  %v6666_v21 = vadd.f32 %v6665_v13, %v6653_v11 }
 0x21f   : > { %6897 = vmatpush.bf16.msrb.mxu3 %v12226_v32  ;;  %6916 = vmatpush.bf16.msra.mxu1 %v8870_v18  ;;  %v9286_v20 = vor.u32 %v12709_v10, %v9285_v9  ;;  %v12573_v26 = vld [vmem:[%s13878_s25 + $0x2e4] sm:$0xf0] }
 0x220   : > { %6885 = vmatmul.bf16.vlgmr.msrb.gmra.mxu2 %v13572_v57  ;;  %v8997_v48 = vld [vmem:[%s13878_s25 + $0x4c8] sm:$0xf]  ;;  %v8742_v18 = vor.u32 %v12573_v26, %v8741_v19  ;;  %v6679_v43 = vadd.f32 %v6678_v39, %v6666_v21 }
 0x221   : > { %6929 = vmatpush.bf16.msra.mxu2 %v9126_v34  ;;  %6904 = vmatpush.bf16.msra.mxu0 %v8582_v44  ;;  %v12637_v51 = vld [vmem:[%s13878_s25 + $0x4e4] sm:$0xf0]  ;;  %v6691_v44 = vpop.f32.mrf.mxu3 }
 0x222   : > { %6898 = vmatmul.bf16.vlgmr.msrb.gmra.mxu3 %v13574_v61  ;;  %v9253_v29 = vld [vmem:[%s13878_s25 + $0x6c8] sm:$0xf]  ;;  %v8998_v34 = vor.u32 %v12637_v51, %v8997_v48  ;;  %v14501_v52 = vadd.f32 %v6691_v44, %v6679_v43 }
 0x223   : > { %6942 = vmatpush.bf16.msra.mxu3 %v9382_v38  ;;  %6917 = vmatpush.bf16.msra.mxu1 %v8838_v45  ;;  %v12701_v32 = vld [vmem:[%s13878_s25 + $0x6e4] sm:$0xf0]  ;;  %v6654_v47 = vpop.f32.mrf.mxu0 }
 0x224   : > { %v8453_v35 = vld [vmem:[%s13878_s25 + $0x88] sm:$0xf]  ;;  %v9254_v38 = vor.u32 %v12701_v32, %v9253_v29 }
 0x225   : > { %6930 = vmatpush.bf16.msra.mxu2 %v9094_v46  ;;  %6905 = vmatpush.bf16.msra.mxu0 %v8550_v62  ;;  %v12501_v36 = vld [vmem:[%s13878_s25 + $0xa4] sm:$0xf0] }
 0x226   : > { %v8709_v37 = vld [vmem:[%s13878_s25 + $0x288] sm:$0xf]  ;;  %v8454_v49 = vor.u32 %v12501_v36, %v8453_v35 }
 0x227   : > { %6943 = vmatpush.bf16.msra.mxu3 %v9350_v53  ;;  %6918 = vmatpush.bf16.msra.mxu1 %v8806_v63  ;;  %v12565_v40 = vld [vmem:[%s13878_s25 + $0x2a4] sm:$0xf0] }
 0x228   : > { %v8965_v41 = vld [vmem:[%s13878_s25 + $0x488] sm:$0xf]  ;;  %v8710_v53 = vor.u32 %v12565_v40, %v8709_v37 }
 0x229   : > { %6931 = vmatpush.bf16.msra.mxu2 %v9062_v0  ;;  %6906 = vmatpush.bf16.msra.mxu0 %v8518_v12  ;;  %v12629_v42 = vld [vmem:[%s13878_s25 + $0x4a4] sm:$0xf0]  ;;  %v6680_v12 = vpop.f32.mrf.mxu2  ;;  %v6693_v16 = vpop.f32.mrf.mxu3 }
 0x22a   : > { %v9221_v45 = vld [vmem:[%s13878_s25 + $0x688] sm:$0xf]  ;;  %v8966_v54 = vor.u32 %v12629_v42, %v8965_v41 }
 0x22b   : > { %6944 = vmatpush.bf16.msra.mxu3 %v9318_v4  ;;  %6919 = vmatpush.bf16.msra.mxu1 %v8774_v14  ;;  %v12693_v46 = vld [vmem:[%s13878_s25 + $0x6a4] sm:$0xf0] }
 0x22c   : > { %v8421_v55 = vld [vmem:[%s13878_s25 + $0x48] sm:$0xf]  ;;  %v9222_v58 = vor.u32 %v12693_v46, %v9221_v45 }
 0x22d   : > { %6932 = vmatpush.bf16.msra.mxu2 %v9030_v15  ;;  %6907 = vmatpush.bf16.msra.mxu0 %v8486_v33  ;;  %v12493_v56 = vld [vmem:[%s13878_s25 + $0x64] sm:$0xf0] }
 0x22e   : > { %v8677_v57 = vld [vmem:[%s13878_s25 + $0x248] sm:$0xf]  ;;  %v8422_v0 = vor.u32 %v12493_v56, %v8421_v55 }
 0x22f   : > { %6945 = vmatpush.bf16.msra.mxu3 %v9286_v20  ;;  %6920 = vmatpush.bf16.msra.mxu1 %v8742_v18  ;;  %v12557_v59 = vld [vmem:[%s13878_s25 + $0x264] sm:$0xf0] }
 0x230   : > { %v8933_v60 = vld [vmem:[%s13878_s25 + $0x448] sm:$0xf]  ;;  %v8678_v3 = vor.u32 %v12557_v59, %v8677_v57 }
 0x231   : > { %6933 = vmatpush.bf16.msra.mxu2 %v8998_v34  ;;  %v12621_v61 = vld [vmem:[%s13878_s25 + $0x464] sm:$0xf0]  ;;  %6908 = vmatpush.bf16.msra.mxu0 %v8454_v49 }
 0x232   : > { %v9189_v62 = vld [vmem:[%s13878_s25 + $0x648] sm:$0xf]  ;;  %v8934_v4 = vor.u32 %v12621_v61, %v8933_v60 }
 0x233   : > { %6946 = vmatpush.bf16.msra.mxu3 %v9254_v38  ;;  %v12685_v63 = vld [vmem:[%s13878_s25 + $0x664] sm:$0xf0]  ;;  %6921 = vmatpush.bf16.msra.mxu1 %v8710_v53 }
 0x234   : > { %v8389_v1 = vld [vmem:[%s13878_s25 + $0x8] sm:$0xf]  ;;  %v9190_v8 = vor.u32 %v12685_v63, %v9189_v62 }
 0x235   : > { %v12485_v2 = vld [vmem:[%s13878_s25 + $0x24] sm:$0xf0]  ;;  %6934 = vmatpush.bf16.msra.mxu2 %v8966_v54  ;;  %6909 = vmatpush.bf16.msra.mxu0 %v8422_v0 }
 0x236   : > { %v8645_v5 = vld [vmem:[%s13878_s25 + $0x208] sm:$0xf]  ;;  %v8390_v17 = vor.u32 %v12485_v2, %v8389_v1 }
 0x237   : > { %v12549_v6 = vld [vmem:[%s13878_s25 + $0x224] sm:$0xf0]  ;;  %6947 = vmatpush.bf16.msra.mxu3 %v9222_v58  ;;  %6922 = vmatpush.bf16.msra.mxu1 %v8678_v3 }
 0x238   : > { %v8901_v7 = vld [vmem:[%s13878_s25 + $0x408] sm:$0xf]  ;;  %v8646_v26 = vor.u32 %v12549_v6, %v8645_v5 }
 0x239   : > { %v12613_v9 = vld [vmem:[%s13878_s25 + $0x424] sm:$0xf0]  ;;  %6935 = vmatpush.bf16.msra.mxu2 %v8934_v4  ;;  %6910 = vmatpush.bf16.msra.mxu0 %v8390_v17 }
 0x23a   : > { %v9157_v10 = vld [vmem:[%s13878_s25 + $0x608] sm:$0xf]  ;;  %v8902_v48 = vor.u32 %v12613_v9, %v8901_v7 }
 0x23b   : > { %v12677_v11 = vld [vmem:[%s13878_s25 + $0x624] sm:$0xf0]  ;;  %6948 = vmatpush.bf16.msra.mxu3 %v9190_v8  ;;  %6923 = vmatpush.bf16.msra.mxu1 %v8646_v26  ;;  %v6704_v8 = vpop.f32.mrf.mxu0 }
 0x23c   : > { %v9637_v13 = vld [vmem:[%s13878_s25 + $0x9c8] sm:$0xf]  ;;  %v9158_v32 = vor.u32 %v12677_v11, %v9157_v10  ;;  %6911 = vmatmul.bf16.vlgmr.msra.gmra.mxu0 %v14002_v25 }
 0x23d   : > { %v12797_v14 = vld [vmem:[%s13878_s25 + $0x9e4] sm:$0xf0]  ;;  %6936 = vmatpush.bf16.msra.mxu2 %v8902_v48 }
 0x23e   : > { %v9893_v15 = vld [vmem:[%s13878_s25 + $0xbc8] sm:$0xf]  ;;  %v9638_v33 = vor.u32 %v12797_v14, %v9637_v13  ;;  %6924 = vmatmul.bf16.vlgmr.msra.gmra.mxu1 %v14007_v28  ;;  %v6717_v14 = vpop.f32.mrf.mxu1 }
 0x23f   : > { %v12861_v19 = vld [vmem:[%s13878_s25 + $0xbe4] sm:$0xf0]  ;;  %6949 = vmatpush.bf16.msra.mxu3 %v9158_v32 }
 0x240   : > { %v10149_v20 = vld [vmem:[%s13878_s25 + $0xdc8] sm:$0xf]  ;;  %v9894_v18 = vor.u32 %v12861_v19, %v9893_v15  ;;  %6955 = vmatpush.bf16.msrb.mxu0 %v9638_v33  ;;  %6937 = vmatmul.bf16.vlgmr.msra.gmra.mxu2 %v14000_v24 }
 0x241   : > { %v12925_v21 = vld [vmem:[%s13878_s25 + $0xde4] sm:$0xf0] }
 0x242   : > { %v10405_v51 = vld [vmem:[%s13878_s25 + $0xfc8] sm:$0xf]  ;;  %v10150_v34 = vor.u32 %v12925_v21, %v10149_v20  ;;  %6968 = vmatpush.bf16.msrb.mxu1 %v9894_v18  ;;  %6950 = vmatmul.bf16.vlgmr.msra.gmra.mxu3 %v14005_v27  ;;  %v6718_v20 = vadd.f32 %v6717_v14, %v6704_v8 }
 0x243   : > { %v12989_v29 = vld [vmem:[%s13878_s25 + $0xfe4] sm:$0xf0] }
 0x244   : > { %v9605_v35 = vld [vmem:[%s13878_s25 + $0x988] sm:$0xf]  ;;  %v10406_v38 = vor.u32 %v12989_v29, %v10405_v51  ;;  %6981 = vmatpush.bf16.msrb.mxu2 %v10150_v34  ;;  %v6730_v34 = vpop.f32.mrf.mxu2 }
 0x245   : > { %v12789_v36 = vld [vmem:[%s13878_s25 + $0x9a4] sm:$0xf0] }
 0x246   : > { %v9861_v37 = vld [vmem:[%s13878_s25 + $0xb88] sm:$0xf]  ;;  %v9606_v44 = vor.u32 %v12789_v36, %v9605_v35  ;;  %6994 = vmatpush.bf16.msrb.mxu3 %v10406_v38 }
 0x247   : > { %v12853_v39 = vld [vmem:[%s13878_s25 + $0xba4] sm:$0xf0] }
 0x248   : > { %v10117_v40 = vld [vmem:[%s13878_s25 + $0xd88] sm:$0xf]  ;;  %v9862_v45 = vor.u32 %v12853_v39, %v9861_v37  ;;  %6956 = vmatpush.bf16.msrb.mxu0 %v9606_v44  ;;  %v6731_v39 = vadd.f32 %v6730_v34, %v6718_v20 }
 0x249   : > { %v12917_v41 = vld [vmem:[%s13878_s25 + $0xda4] sm:$0xf0] }
 0x24a   : > { %v10373_v42 = vld [vmem:[%s13878_s25 + $0xf88] sm:$0xf]  ;;  %v10118_v46 = vor.u32 %v12917_v41, %v10117_v40  ;;  %6969 = vmatpush.bf16.msrb.mxu1 %v9862_v45  ;;  %v6743_v40 = vpop.f32.mrf.mxu3  ;;  %v6706_v45 = vpop.f32.mrf.mxu0 }
 0x24b   : > { %v12981_v43 = vld [vmem:[%s13878_s25 + $0xfa4] sm:$0xf0]  ;;  %v14571_v44 = vadd.f32 %v6743_v40, %v6731_v39 }
 0x24c   : > { %v9573_v47 = vld [vmem:[%s13878_s25 + $0x948] sm:$0xf]  ;;  %v10374_v53 = vor.u32 %v12981_v43, %v10373_v42  ;;  %6982 = vmatpush.bf16.msrb.mxu2 %v10118_v46 }
 0x24d   : > { %v12781_v49 = vld [vmem:[%s13878_s25 + $0x964] sm:$0xf0] }
 0x24e   : > { %v9829_v50 = vld [vmem:[%s13878_s25 + $0xb48] sm:$0xf]  ;;  %v9574_v59 = vor.u32 %v12781_v49, %v9573_v47  ;;  %6995 = vmatpush.bf16.msrb.mxu3 %v10374_v53 }
 0x24f   : > { %v12845_v54 = vld [vmem:[%s13878_s25 + $0xb64] sm:$0xf0] }
 0x250   : > { %v10085_v55 = vld [vmem:[%s13878_s25 + $0xd48] sm:$0xf]  ;;  %v9830_v60 = vor.u32 %v12845_v54, %v9829_v50  ;;  %6957 = vmatpush.bf16.msrb.mxu0 %v9574_v59  ;;  %v6719_v54 = vpop.f32.mrf.mxu1 }
 0x251   : > { %v12909_v56 = vld [vmem:[%s13878_s25 + $0xd64] sm:$0xf0] }
 0x252   : > { %v10341_v57 = vld [vmem:[%s13878_s25 + $0xf48] sm:$0xf]  ;;  %v10086_v61 = vor.u32 %v12909_v56, %v10085_v55  ;;  %6970 = vmatpush.bf16.msrb.mxu1 %v9830_v60 }
 0x253   : > { %v12973_v58 = vld [vmem:[%s13878_s25 + $0xf64] sm:$0xf0] }
 0x254   : > { %v9541_v62 = vld [vmem:[%s13878_s25 + $0x908] sm:$0xf]  ;;  %v10342_v1 = vor.u32 %v12973_v58, %v10341_v57  ;;  %6983 = vmatpush.bf16.msrb.mxu2 %v10086_v61 }
 0x255   : > { %v12773_v63 = vld [vmem:[%s13878_s25 + $0x924] sm:$0xf0] }
 0x256   : > { %v9797_v0 = vld [vmem:[%s13878_s25 + $0xb08] sm:$0xf]  ;;  %v9542_v7 = vor.u32 %v12773_v63, %v9541_v62  ;;  %6996 = vmatpush.bf16.msrb.mxu3 %v10342_v1 }
 0x257   : > { %v12837_v2 = vld [vmem:[%s13878_s25 + $0xb24] sm:$0xf0] }
 0x258   : > { %v10053_v3 = vld [vmem:[%s13878_s25 + $0xd08] sm:$0xf]  ;;  %v9798_v9 = vor.u32 %v12837_v2, %v9797_v0  ;;  %6958 = vmatpush.bf16.msrb.mxu0 %v9542_v7 }
 0x259   : > { %v12901_v4 = vld [vmem:[%s13878_s25 + $0xd24] sm:$0xf0] }
 0x25a   : > { %v10309_v5 = vld [vmem:[%s13878_s25 + $0xf08] sm:$0xf]  ;;  %v10054_v10 = vor.u32 %v12901_v4, %v10053_v3  ;;  %6971 = vmatpush.bf16.msrb.mxu1 %v9798_v9 }
 0x25b   : > { %v12965_v6 = vld [vmem:[%s13878_s25 + $0xf24] sm:$0xf0] }
 0x25c   : > { %v9509_v11 = vld [vmem:[%s13878_s25 + $0x8c8] sm:$0xf]  ;;  %v10310_v15 = vor.u32 %v12965_v6, %v10309_v5  ;;  %6984 = vmatpush.bf16.msrb.mxu2 %v10054_v10  ;;  %v6732_v5 = vpop.f32.mrf.mxu2  ;;  %v6745_v10 = vpop.f32.mrf.mxu3 }
 0x25d   : > { %v12765_v12 = vld [vmem:[%s13878_s25 + $0x8e4] sm:$0xf0] }
 0x25e   : > { %v9765_v13 = vld [vmem:[%s13878_s25 + $0xac8] sm:$0xf]  ;;  %v9510_v48 = vor.u32 %v12765_v12, %v9509_v11  ;;  %6997 = vmatpush.bf16.msrb.mxu3 %v10310_v15 }
 0x25f   : > { %v12829_v16 = vld [vmem:[%s13878_s25 + $0xae4] sm:$0xf0] }
 0x260   : > { %v10021_v17 = vld [vmem:[%s13878_s25 + $0xcc8] sm:$0xf]  ;;  %v9766_v51 = vor.u32 %v12829_v16, %v9765_v13  ;;  %6959 = vmatpush.bf16.msrb.mxu0 %v9510_v48 }
 0x261   : > { %v12893_v19 = vld [vmem:[%s13878_s25 + $0xce4] sm:$0xf0] }
 0x262   : > { %v10277_v21 = vld [vmem:[%s13878_s25 + $0xec8] sm:$0xf]  ;;  %v10022_v29 = vor.u32 %v12893_v19, %v10021_v17  ;;  %6972 = vmatpush.bf16.msrb.mxu1 %v9766_v51 }
 0x263   : > { %v12957_v26 = vld [vmem:[%s13878_s25 + $0xee4] sm:$0xf0] }
 0x264   : > { %v9477_v32 = vld [vmem:[%s13878_s25 + $0x888] sm:$0xf]  ;;  %v10278_v35 = vor.u32 %v12957_v26, %v10277_v21  ;;  %6985 = vmatpush.bf16.msrb.mxu2 %v10022_v29 }
 0x265   : > { %v12757_v33 = vld [vmem:[%s13878_s25 + $0x8a4] sm:$0xf0] }
 0x266   : > { %v9733_v18 = vld [vmem:[%s13878_s25 + $0xa88] sm:$0xf]  ;;  %v9478_v43 = vor.u32 %v12757_v33, %v9477_v32  ;;  %6998 = vmatpush.bf16.msrb.mxu3 %v10278_v35 }
 0x267   : > { %v12821_v36 = vld [vmem:[%s13878_s25 + $0xaa4] sm:$0xf0] }
 0x268   : > { %v9989_v37 = vld [vmem:[%s13878_s25 + $0xc88] sm:$0xf]  ;;  %v9734_v46 = vor.u32 %v12821_v36, %v9733_v18  ;;  %6960 = vmatpush.bf16.msrb.mxu0 %v9478_v43 }
 0x269   : > { %v12885_v38 = vld [vmem:[%s13878_s25 + $0xca4] sm:$0xf0] }
 0x26a   : > { %v10245_v41 = vld [vmem:[%s13878_s25 + $0xe88] sm:$0xf]  ;;  %v9990_v47 = vor.u32 %v12885_v38, %v9989_v37  ;;  %6973 = vmatpush.bf16.msrb.mxu1 %v9734_v46 }
 0x26b   : > { %v12949_v42 = vld [vmem:[%s13878_s25 + $0xea4] sm:$0xf0] }
 0x26c   : > { %v9445_v49 = vld [vmem:[%s13878_s25 + $0x848] sm:$0xf]  ;;  %v10246_v55 = vor.u32 %v12949_v42, %v10245_v41  ;;  %6986 = vmatpush.bf16.msrb.mxu2 %v9990_v47 }
 0x26d   : > { %v12749_v50 = vld [vmem:[%s13878_s25 + $0x864] sm:$0xf0] }
 0x26e   : > { %v9701_v53 = vld [vmem:[%s13878_s25 + $0xa48] sm:$0xf]  ;;  %v9446_v61 = vor.u32 %v12749_v50, %v9445_v49  ;;  %6999 = vmatpush.bf16.msrb.mxu3 %v10246_v55 }
 0x26f   : > { %v12813_v56 = vld [vmem:[%s13878_s25 + $0xa64] sm:$0xf0] }
 0x270   : > { %v9957_v57 = vld [vmem:[%s13878_s25 + $0xc48] sm:$0xf]  ;;  %v9702_v0 = vor.u32 %v12813_v56, %v9701_v53  ;;  %6961 = vmatpush.bf16.msrb.mxu0 %v9446_v61 }
 0x271   : > { %v12877_v58 = vld [vmem:[%s13878_s25 + $0xc64] sm:$0xf0] }
 0x272   : > { %v10213_v59 = vld [vmem:[%s13878_s25 + $0xe48] sm:$0xf]  ;;  %v9958_v1 = vor.u32 %v12877_v58, %v9957_v57  ;;  %6974 = vmatpush.bf16.msrb.mxu1 %v9702_v0 }
 0x273   : > { %v12941_v60 = vld [vmem:[%s13878_s25 + $0xe64] sm:$0xf0] }
 0x274   : > { %v9413_v62 = vld [vmem:[%s13878_s25 + $0x808] sm:$0xf]  ;;  %v10214_v6 = vor.u32 %v12941_v60, %v10213_v59  ;;  %6987 = vmatpush.bf16.msrb.mxu2 %v9958_v1 }
 0x275   : > { %v12741_v63 = vld [vmem:[%s13878_s25 + $0x824] sm:$0xf0] }
 0x276   : > { %v9669_v2 = vld [vmem:[%s13878_s25 + $0xa08] sm:$0xf]  ;;  %v9414_v14 = vor.u32 %v12741_v63, %v9413_v62  ;;  %7000 = vmatpush.bf16.msrb.mxu3 %v10214_v6  ;;  %v14625_v6 = vpop.f32.mrf.mxu0 }
 0x277   : > { %v12805_v3 = vld [vmem:[%s13878_s25 + $0xa24] sm:$0xf0] }
 0x278   : > { %v9925_v4 = vld [vmem:[%s13878_s25 + $0xc08] sm:$0xf]  ;;  %v9670_v19 = vor.u32 %v12805_v3, %v9669_v2  ;;  %6962 = vmatpush.bf16.msrb.mxu0 %v9414_v14 }
 0x279   : > { %v12869_v7 = vld [vmem:[%s13878_s25 + $0xc24] sm:$0xf0] }
 0x27a   : > { %v10181_v8 = vld [vmem:[%s13878_s25 + $0xe08] sm:$0xf]  ;;  %v9926_v20 = vor.u32 %v12869_v7, %v9925_v4  ;;  %6975 = vmatpush.bf16.msrb.mxu1 %v9670_v19 }
 0x27b   : > { %v12933_v9 = vld [vmem:[%s13878_s25 + $0xe24] sm:$0xf0]  ;;  %6963 = vmatmul.bf16.vlgmr.msrb.gmra.mxu0 %v14054_v23 }
 0x27c   : > { %v10661_v11 = vld [vmem:[%s13878_s25 + $0x11c8] sm:$0xf]  ;;  %v10182_v48 = vor.u32 %v12933_v9, %v10181_v8  ;;  %6988 = vmatpush.bf16.msrb.mxu2 %v9926_v20 }
 0x27d   : > { %v13053_v12 = vld [vmem:[%s13878_s25 + $0x11e4] sm:$0xf0]  ;;  %6976 = vmatmul.bf16.vlgmr.msrb.gmra.mxu1 %v14058_v31 }
 0x27e   : > { %v10917_v13 = vld [vmem:[%s13878_s25 + $0x13c8] sm:$0xf]  ;;  %v10662_v51 = vor.u32 %v13053_v12, %v10661_v11  ;;  %7001 = vmatpush.bf16.msrb.mxu3 %v10182_v48  ;;  %v14630_v12 = vpop.f32.mrf.mxu1 }
 0x27f   : > { %v13117_v15 = vld [vmem:[%s13878_s25 + $0x13e4] sm:$0xf0]  ;;  %6989 = vmatmul.bf16.vlgmr.msrb.gmra.mxu2 %v14052_v22 }
 0x280   : > { %v11173_v16 = vld [vmem:[%s13878_s25 + $0x15c8] sm:$0xf]  ;;  %v10918_v29 = vor.u32 %v13117_v15, %v10917_v13  ;;  %7007 = vmatpush.bf16.msra.mxu0 %v10662_v51 }
 0x281   : > { %v13181_v17 = vld [vmem:[%s13878_s25 + $0x15e4] sm:$0xf0]  ;;  %7002 = vmatmul.bf16.vlgmr.msrb.gmra.mxu3 %v14056_v30 }
 0x282   : > { %v11429_v21 = vld [vmem:[%s13878_s25 + $0x17c8] sm:$0xf]  ;;  %v11174_v32 = vor.u32 %v13181_v17, %v11173_v16  ;;  %7020 = vmatpush.bf16.msra.mxu1 %v10918_v29 }
 0x283   : > { %v13245_v26 = vld [vmem:[%s13878_s25 + $0x17e4] sm:$0xf0] }
 0x284   : > { %v10629_v33 = vld [vmem:[%s13878_s25 + $0x1188] sm:$0xf]  ;;  %v11430_v35 = vor.u32 %v13245_v26, %v11429_v21  ;;  %7033 = vmatpush.bf16.msra.mxu2 %v11174_v32  ;;  %v14640_v32 = vpop.f32.mrf.mxu2 }
 0x285   : > { %v13045_v18 = vld [vmem:[%s13878_s25 + $0x11a4] sm:$0xf0] }
 0x286   : > { %v10885_v34 = vld [vmem:[%s13878_s25 + $0x1388] sm:$0xf]  ;;  %v10630_v41 = vor.u32 %v13045_v18, %v10629_v33  ;;  %7046 = vmatpush.bf16.msra.mxu3 %v11430_v35 }
 0x287   : > { %v13109_v36 = vld [vmem:[%s13878_s25 + $0x13a4] sm:$0xf0] }
 0x288   : > { %v11141_v37 = vld [vmem:[%s13878_s25 + $0x1588] sm:$0xf]  ;;  %v10886_v42 = vor.u32 %v13109_v36, %v10885_v34  ;;  %7008 = vmatpush.bf16.msra.mxu0 %v10630_v41  ;;  %v14645_v36 = vpop.f32.mrf.mxu3 }
 0x289   : > { %v13173_v38 = vld [vmem:[%s13878_s25 + $0x15a4] sm:$0xf0] }
 0x28a   : > { %v11397_v39 = vld [vmem:[%s13878_s25 + $0x1788] sm:$0xf]  ;;  %v11142_v43 = vor.u32 %v13173_v38, %v11141_v37  ;;  %7021 = vmatpush.bf16.msra.mxu1 %v10886_v42 }
 0x28b   : > { %v13237_v40 = vld [vmem:[%s13878_s25 + $0x17a4] sm:$0xf0] }
 0x28c   : > { %v10597_v45 = vld [vmem:[%s13878_s25 + $0x1148] sm:$0xf]  ;;  %v11398_v49 = vor.u32 %v13237_v40, %v11397_v39  ;;  %7034 = vmatpush.bf16.msra.mxu2 %v11142_v43  ;;  %v6758_v40 = vpop.f32.mrf.mxu0 }
 0x28d   : > { %v13037_v46 = vld [vmem:[%s13878_s25 + $0x1164] sm:$0xf0] }
 0x28e   : > { %v10853_v47 = vld [vmem:[%s13878_s25 + $0x1348] sm:$0xf]  ;;  %v10598_v57 = vor.u32 %v13037_v46, %v10597_v45  ;;  %7047 = vmatpush.bf16.msra.mxu3 %v11398_v49 }
 0x28f   : > { %v13101_v50 = vld [vmem:[%s13878_s25 + $0x1364] sm:$0xf0] }
 0x290   : > { %v11109_v53 = vld [vmem:[%s13878_s25 + $0x1548] sm:$0xf]  ;;  %v10854_v58 = vor.u32 %v13101_v50, %v10853_v47  ;;  %7009 = vmatpush.bf16.msra.mxu0 %v10598_v57  ;;  %v6771_v47 = vpop.f32.mrf.mxu1 }
 0x291   : > { %v13165_v54 = vld [vmem:[%s13878_s25 + $0x1564] sm:$0xf0] }
 0x292   : > { %v11365_v55 = vld [vmem:[%s13878_s25 + $0x1748] sm:$0xf]  ;;  %v11110_v59 = vor.u32 %v13165_v54, %v11109_v53  ;;  %7022 = vmatpush.bf16.msra.mxu1 %v10854_v58 }
 0x293   : > { %v13229_v56 = vld [vmem:[%s13878_s25 + $0x1764] sm:$0xf0] }
 0x294   : > { %v10565_v60 = vld [vmem:[%s13878_s25 + $0x1108] sm:$0xf]  ;;  %v11366_v63 = vor.u32 %v13229_v56, %v11365_v55  ;;  %7035 = vmatpush.bf16.msra.mxu2 %v11110_v59 }
 0x295   : > { %v13029_v61 = vld [vmem:[%s13878_s25 + $0x1124] sm:$0xf0] }
 0x296   : > { %v10821_v62 = vld [vmem:[%s13878_s25 + $0x1308] sm:$0xf]  ;;  %v10566_v5 = vor.u32 %v13029_v61, %v10565_v60  ;;  %7048 = vmatpush.bf16.msra.mxu3 %v11366_v63 }
 0x297   : > { %v13093_v0 = vld [vmem:[%s13878_s25 + $0x1324] sm:$0xf0] }
 0x298   : > { %v11077_v1 = vld [vmem:[%s13878_s25 + $0x1508] sm:$0xf]  ;;  %v10822_v7 = vor.u32 %v13093_v0, %v10821_v62  ;;  %7010 = vmatpush.bf16.msra.mxu0 %v10566_v5 }
 0x299   : > { %v13157_v2 = vld [vmem:[%s13878_s25 + $0x1524] sm:$0xf0] }
 0x29a   : > { %v11333_v3 = vld [vmem:[%s13878_s25 + $0x1708] sm:$0xf]  ;;  %v11078_v8 = vor.u32 %v13157_v2, %v11077_v1  ;;  %7023 = vmatpush.bf16.msra.mxu1 %v10822_v7  ;;  %v6784_v1 = vpop.f32.mrf.mxu2  ;;  %v6797_v7 = vpop.f32.mrf.mxu3 }
 0x29b   : > { %v13221_v4 = vld [vmem:[%s13878_s25 + $0x1724] sm:$0xf0] }
 0x29c   : > { %v10533_v9 = vld [vmem:[%s13878_s25 + $0x10c8] sm:$0xf]  ;;  %v11334_v13 = vor.u32 %v13221_v4, %v11333_v3  ;;  %7036 = vmatpush.bf16.msra.mxu2 %v11078_v8 }
 0x29d   : > { %v13021_v10 = vld [vmem:[%s13878_s25 + $0x10e4] sm:$0xf0] }
 0x29e   : > { %v10789_v11 = vld [vmem:[%s13878_s25 + $0x12c8] sm:$0xf]  ;;  %v10534_v20 = vor.u32 %v13021_v10, %v10533_v9  ;;  %7049 = vmatpush.bf16.msra.mxu3 %v11334_v13 }
 0x29f   : > { %v13085_v14 = vld [vmem:[%s13878_s25 + $0x12e4] sm:$0xf0] }
 0x2a0   : > { %v11045_v15 = vld [vmem:[%s13878_s25 + $0x14c8] sm:$0xf]  ;;  %v10790_v21 = vor.u32 %v13085_v14, %v10789_v11  ;;  %7011 = vmatpush.bf16.msra.mxu0 %v10534_v20 }
 0x2a1   : > { %v13149_v16 = vld [vmem:[%s13878_s25 + $0x14e4] sm:$0xf0] }
 0x2a2   : > { %v11301_v17 = vld [vmem:[%s13878_s25 + $0x16c8] sm:$0xf]  ;;  %v11046_v26 = vor.u32 %v13149_v16, %v11045_v15  ;;  %7024 = vmatpush.bf16.msra.mxu1 %v10790_v21 }
 0x2a3   : > { %v13213_v19 = vld [vmem:[%s13878_s25 + $0x16e4] sm:$0xf0] }
 0x2a4   : > { %v10501_v48 = vld [vmem:[%s13878_s25 + $0x1088] sm:$0xf]  ;;  %v11302_v33 = vor.u32 %v13213_v19, %v11301_v17  ;;  %7037 = vmatpush.bf16.msra.mxu2 %v11046_v26 }
 0x2a5   : > { %v13013_v51 = vld [vmem:[%s13878_s25 + $0x10a4] sm:$0xf0] }
 0x2a6   : > { %v10757_v29 = vld [vmem:[%s13878_s25 + $0x1288] sm:$0xf]  ;;  %v10502_v39 = vor.u32 %v13013_v51, %v10501_v48  ;;  %7050 = vmatpush.bf16.msra.mxu3 %v11302_v33 }
 0x2a7   : > { %v13077_v18 = vld [vmem:[%s13878_s25 + $0x12a4] sm:$0xf0] }
 0x2a8   : > { %v11013_v34 = vld [vmem:[%s13878_s25 + $0x1488] sm:$0xf]  ;;  %v10758_v41 = vor.u32 %v13077_v18, %v10757_v29  ;;  %7012 = vmatpush.bf16.msra.mxu0 %v10502_v39 }
 0x2a9   : > { %v13141_v35 = vld [vmem:[%s13878_s25 + $0x14a4] sm:$0xf0] }
 0x2aa   : > { %v11269_v37 = vld [vmem:[%s13878_s25 + $0x1688] sm:$0xf]  ;;  %v11014_v42 = vor.u32 %v13141_v35, %v11013_v34  ;;  %7025 = vmatpush.bf16.msra.mxu1 %v10758_v41 }
 0x2ab   : > { %v13205_v38 = vld [vmem:[%s13878_s25 + $0x16a4] sm:$0xf0] }
 0x2ac   : > { %v10469_v43 = vld [vmem:[%s13878_s25 + $0x1048] sm:$0xf]  ;;  %v11270_v49 = vor.u32 %v13205_v38, %v11269_v37  ;;  %7038 = vmatpush.bf16.msra.mxu2 %v11014_v42 }
 0x2ad   : > { %v13005_v45 = vld [vmem:[%s13878_s25 + $0x1064] sm:$0xf0] }
 0x2ae   : > { %v10725_v46 = vld [vmem:[%s13878_s25 + $0x1248] sm:$0xf]  ;;  %v10470_v57 = vor.u32 %v13005_v45, %v10469_v43  ;;  %7051 = vmatpush.bf16.msra.mxu3 %v11270_v49  ;;  %v13575_v49 = vld.sshfl [vmem:[#allocation1] sm:$0xff pattern:$0x73625140] }
 0x2af   : > { %v13069_v50 = vld [vmem:[%s13878_s25 + $0x1264] sm:$0xf0] }
 0x2b0   : > { %v10981_v53 = vld [vmem:[%s13878_s25 + $0x1448] sm:$0xf]  ;;  %v10726_v60 = vor.u32 %v13069_v50, %v10725_v46  ;;  %7013 = vmatpush.bf16.msra.mxu0 %v10470_v57  ;;  %v13577_v57 = vld.sshfl [vmem:[#allocation1 + $0x8] sm:$0xff pattern:$0x73625140] }
 0x2b1   : > { %v13133_v54 = vld [vmem:[%s13878_s25 + $0x1464] sm:$0xf0] }
 0x2b2   : > { %v11237_v55 = vld [vmem:[%s13878_s25 + $0x1648] sm:$0xf]  ;;  %v10982_v61 = vor.u32 %v13133_v54, %v10981_v53  ;;  %7026 = vmatpush.bf16.msra.mxu1 %v10726_v60  ;;  %v13578_v60 = vld.sshfl [vmem:[#allocation1 + $0x18] sm:$0xff pattern:$0x73625140] }
 0x2b3   : > { %v13197_v56 = vld [vmem:[%s13878_s25 + $0x1664] sm:$0xf0] }
 0x2b4   : > { %v10437_v58 = vld [vmem:[%s13878_s25 + $0x1008] sm:$0xf]  ;;  %v11238_v2 = vor.u32 %v13197_v56, %v11237_v55  ;;  %7039 = vmatpush.bf16.msra.mxu2 %v10982_v61 }
 0x2b5   : > { %v12997_v59 = vld [vmem:[%s13878_s25 + $0x1024] sm:$0xf0] }
 0x2b6   : > { %v10693_v62 = vld [vmem:[%s13878_s25 + $0x1208] sm:$0xf]  ;;  %v10438_v11 = vor.u32 %v12997_v59, %v10437_v58  ;;  %7052 = vmatpush.bf16.msra.mxu3 %v11238_v2 }
 0x2b7   : > { %v13061_v63 = vld [vmem:[%s13878_s25 + $0x1224] sm:$0xf0] }
 0x2b8   : > { %v10949_v0 = vld [vmem:[%s13878_s25 + $0x1408] sm:$0xf]  ;;  %v10694_v16 = vor.u32 %v13061_v63, %v10693_v62  ;;  %7014 = vmatpush.bf16.msra.mxu0 %v10438_v11 }
 0x2b9   : > { %v13125_v3 = vld [vmem:[%s13878_s25 + $0x1424] sm:$0xf0] }
 0x2ba   : > { %v11205_v4 = vld [vmem:[%s13878_s25 + $0x1608] sm:$0xf]  ;;  %v10950_v17 = vor.u32 %v13125_v3, %v10949_v0  ;;  %7027 = vmatpush.bf16.msra.mxu1 %v10694_v16 }
 0x2bb   : > { %v13189_v5 = vld [vmem:[%s13878_s25 + $0x1624] sm:$0xf0]  ;;  %7015 = vmatmul.bf16.vlgmr.msra.gmra.mxu0 %v13575_v49 }
 0x2bc   : > { %v11685_v8 = vld [vmem:[%s13878_s25 + $0x19c8] sm:$0xf]  ;;  %v11206_v21 = vor.u32 %v13189_v5, %v11205_v4  ;;  %7040 = vmatpush.bf16.msra.mxu2 %v10950_v17 }
 0x2bd   : > { %v13309_v9 = vld [vmem:[%s13878_s25 + $0x19e4] sm:$0xf0]  ;;  %7028 = vmatmul.bf16.vlgmr.msra.gmra.mxu1 %v13577_v57 }
 0x2be   : > { %v11941_v10 = vld [vmem:[%s13878_s25 + $0x1bc8] sm:$0xf]  ;;  %v11686_v26 = vor.u32 %v13309_v9, %v11685_v8  ;;  %7053 = vmatpush.bf16.msra.mxu3 %v11206_v21  ;;  %v14695_v8 = vpop.f32.mrf.mxu0 }
 0x2bf   : > { %v13373_v13 = vld [vmem:[%s13878_s25 + $0x1be4] sm:$0xf0] }
 0x2c0   : > { %v12197_v14 = vld [vmem:[%s13878_s25 + $0x1dc8] sm:$0xf]  ;;  %v11942_v48 = vor.u32 %v13373_v13, %v11941_v10  ;;  %7059 = vmatpush.bf16.msrb.mxu0 %v11686_v26  ;;  %v14699_v13 = vpop.f32.mrf.mxu1 }
 0x2c1   : > { %v13437_v15 = vld [vmem:[%s13878_s25 + $0x1de4] sm:$0xf0]  ;;  %7054 = vmatmul.bf16.vlgmr.msra.gmra.mxu3 %v13578_v60 }
 0x2c2   : > { %v12453_v19 = vld [vmem:[%s13878_s25 + $0x1fc8] sm:$0xf]  ;;  %v12198_v51 = vor.u32 %v13437_v15, %v12197_v14  ;;  %7072 = vmatpush.bf16.msrb.mxu1 %v11942_v48 }
 0x2c3   : > { %v13501_v20 = vld [vmem:[%s13878_s25 + $0x1fe4] sm:$0xf0] }
 0x2c4   : > { %v11653_v29 = vld [vmem:[%s13878_s25 + $0x1988] sm:$0xf]  ;;  %v12454_v34 = vor.u32 %v13501_v20, %v12453_v19  ;;  %7085 = vmatpush.bf16.msrb.mxu2 %v12198_v51 }
 0x2c5   : > { %v13301_v33 = vld [vmem:[%s13878_s25 + $0x19a4] sm:$0xf0] }
 0x2c6   : > { %v11909_v18 = vld [vmem:[%s13878_s25 + $0x1b88] sm:$0xf]  ;;  %v11654_v41 = vor.u32 %v13301_v33, %v11653_v29  ;;  %7098 = vmatpush.bf16.msrb.mxu3 %v12454_v34 }
 0x2c7   : > { %v13365_v35 = vld [vmem:[%s13878_s25 + $0x1ba4] sm:$0xf0] }
 0x2c8   : > { %v12165_v37 = vld [vmem:[%s13878_s25 + $0x1d88] sm:$0xf]  ;;  %v11910_v42 = vor.u32 %v13365_v35, %v11909_v18  ;;  %7060 = vmatpush.bf16.msrb.mxu0 %v11654_v41  ;;  %v6757_v18 = vadd.f32 %v14625_v6, %v14571_v44  ;;  %v14714_v41 = vpop.f32.mrf.mxu2 }
 0x2c9   : > { %v13429_v38 = vld [vmem:[%s13878_s25 + $0x1da4] sm:$0xf0] }
 0x2ca   : > { %v12421_v39 = vld [vmem:[%s13878_s25 + $0x1f88] sm:$0xf]  ;;  %v12166_v43 = vor.u32 %v13429_v38, %v12165_v37  ;;  %7073 = vmatpush.bf16.msrb.mxu1 %v11910_v42 }
 0x2cb   : > { %v13493_v40 = vld [vmem:[%s13878_s25 + $0x1fa4] sm:$0xf0] }
 0x2cc   : > { %v11621_v45 = vld [vmem:[%s13878_s25 + $0x1948] sm:$0xf]  ;;  %v12422_v50 = vor.u32 %v13493_v40, %v12421_v39  ;;  %7086 = vmatpush.bf16.msrb.mxu2 %v12166_v43 }
 0x2cd   : > { %v13293_v46 = vld [vmem:[%s13878_s25 + $0x1964] sm:$0xf0] }
 0x2ce   : > { %v11877_v47 = vld [vmem:[%s13878_s25 + $0x1b48] sm:$0xf]  ;;  %v11622_v61 = vor.u32 %v13293_v46, %v11621_v45  ;;  %7099 = vmatpush.bf16.msrb.mxu3 %v12422_v50  ;;  %v14719_v46 = vpop.f32.mrf.mxu3  ;;  %v6823_v50 = vpop.f32.mrf.mxu1 }
 0x2cf   : > { %v13357_v53 = vld [vmem:[%s13878_s25 + $0x1b64] sm:$0xf0]  ;;  %v9095_v50 = vld [vmem:[%s13878_s25 + $0x5a8] sm:$0xf0] }
 0x2d0   : > { %v12133_v54 = vld [vmem:[%s13878_s25 + $0x1d48] sm:$0xf]  ;;  %v11878_v62 = vor.u32 %v13357_v53, %v11877_v47  ;;  %7061 = vmatpush.bf16.msrb.mxu0 %v11622_v61  ;;  %v6810_v47 = vpop.f32.mrf.mxu0  ;;  %v6770_v53 = vadd.f32 %v14630_v12, %v6757_v18 }
 0x2d1   : > { %v13421_v55 = vld [vmem:[%s13878_s25 + $0x1d64] sm:$0xf0]  ;;  %v8839_v47 = vld [vmem:[%s13878_s25 + $0x3a8] sm:$0xf0] }
 0x2d2   : > { %v13576_v56 = vld.sshfl [vmem:[#allocation1 + $0x10] sm:$0xff pattern:$0x73625140]  ;;  %v12134_v63 = vor.u32 %v13421_v55, %v12133_v54  ;;  %7074 = vmatpush.bf16.msrb.mxu1 %v11878_v62 }
 0x2d3   : > { %7041 = vmatmul.bf16.vlgmr.msra.gmra.mxu2 %v13576_v56  ;;  %v12389_v58 = vld [vmem:[%s13878_s25 + $0x1f48] sm:$0xf] }
 0x2d4   : > { %v13485_v59 = vld [vmem:[%s13878_s25 + $0x1f64] sm:$0xf0]  ;;  %7087 = vmatpush.bf16.msrb.mxu2 %v12134_v63 }
 0x2d5   : > { %v11589_v0 = vld [vmem:[%s13878_s25 + $0x1908] sm:$0xf]  ;;  %v12390_v3 = vor.u32 %v13485_v59, %v12389_v58 }
 0x2d6   : > { %v13285_v1 = vld [vmem:[%s13878_s25 + $0x1924] sm:$0xf0] }
 0x2d7   : > { %v11845_v2 = vld [vmem:[%s13878_s25 + $0x1b08] sm:$0xf]  ;;  %v11590_v11 = vor.u32 %v13285_v1, %v11589_v0  ;;  %7100 = vmatpush.bf16.msrb.mxu3 %v12390_v3  ;;  %v6783_v3 = vadd.f32 %v14640_v32, %v6770_v53  ;;  %v12537_v32 = vld [vmem:[%s13878_s25 + $0x1cc] sm:$0xf] }
 0x2d8   : > { %v13349_v4 = vld [vmem:[%s13878_s25 + $0x1b24] sm:$0xf0]  ;;  %v12721_v53 = vld [vmem:[%s13878_s25 + $0x78c] sm:$0xf] }
 0x2d9   : > { %v12101_v5 = vld [vmem:[%s13878_s25 + $0x1d08] sm:$0xf]  ;;  %v11846_v14 = vor.u32 %v13349_v4, %v11845_v2  ;;  %7062 = vmatpush.bf16.msrb.mxu0 %v11590_v11 }
 0x2da   : > { %v13413_v7 = vld [vmem:[%s13878_s25 + $0x1d24] sm:$0xf0] }
 0x2db   : > { %v12357_v9 = vld [vmem:[%s13878_s25 + $0x1f08] sm:$0xf]  ;;  %v12102_v15 = vor.u32 %v13413_v7, %v12101_v5  ;;  %7075 = vmatpush.bf16.msrb.mxu1 %v11846_v14 }
 0x2dc   : > { %v13477_v10 = vld [vmem:[%s13878_s25 + $0x1f24] sm:$0xf0] }
 0x2dd   : > { %v11557_v16 = vld [vmem:[%s13878_s25 + $0x18c8] sm:$0xf]  ;;  %v12358_v20 = vor.u32 %v13477_v10, %v12357_v9  ;;  %7088 = vmatpush.bf16.msrb.mxu2 %v12102_v15 }
 0x2de   : > { %v13277_v17 = vld [vmem:[%s13878_s25 + $0x18e4] sm:$0xf0] }
 0x2df   : > { %v11813_v19 = vld [vmem:[%s13878_s25 + $0x1ac8] sm:$0xf]  ;;  %v11558_v33 = vor.u32 %v13277_v17, %v11557_v16  ;;  %7101 = vmatpush.bf16.msrb.mxu3 %v12358_v20  ;;  %v6836_v17 = vpop.f32.mrf.mxu2  ;;  %v12601_v20 = vld [vmem:[%s13878_s25 + $0x3cc] sm:$0xf] }
 0x2e0   : > { %v13341_v21 = vld [vmem:[%s13878_s25 + $0x1ae4] sm:$0xf0]  ;;  %v12641_v17 = vld [vmem:[%s13878_s25 + $0x50c] sm:$0xf] }
 0x2e1   : > { %v12069_v26 = vld [vmem:[%s13878_s25 + $0x1cc8] sm:$0xf]  ;;  %v11814_v34 = vor.u32 %v13341_v21, %v11813_v19  ;;  %7063 = vmatpush.bf16.msrb.mxu0 %v11558_v33  ;;  %v8615_v19 = vld [vmem:[%s13878_s25 + $0x1e8] sm:$0xf0]  ;;  %v6849_v21 = vpop.f32.mrf.mxu3  ;;  %v6796_v33 = vadd.f32 %v14645_v36, %v6783_v3 }
 0x2e2   : > { %v13405_v48 = vld [vmem:[%s13878_s25 + $0x1ce4] sm:$0xf0]  ;;  %v8583_v36 = vld [vmem:[%s13878_s25 + $0x1a8] sm:$0xf0] }
 0x2e3   : > { %v12325_v51 = vld [vmem:[%s13878_s25 + $0x1ec8] sm:$0xf]  ;;  %v12070_v35 = vor.u32 %v13405_v48, %v12069_v26  ;;  %7076 = vmatpush.bf16.msrb.mxu1 %v11814_v34  ;;  %v8871_v48 = vld [vmem:[%s13878_s25 + $0x3e8] sm:$0xf0] }
 0x2e4   : > { %v13469_v29 = vld [vmem:[%s13878_s25 + $0x1ee4] sm:$0xf0]  ;;  %v12713_v3 = vld [vmem:[%s13878_s25 + $0x74c] sm:$0xf] }
 0x2e5   : > { %v11525_v37 = vld [vmem:[%s13878_s25 + $0x1888] sm:$0xf]  ;;  %v12326_v40 = vor.u32 %v13469_v29, %v12325_v51  ;;  %7089 = vmatpush.bf16.msrb.mxu2 %v12070_v35  ;;  %v12665_v51 = vld [vmem:[%s13878_s25 + $0x5cc] sm:$0xf] }
 0x2e6   : > { %v13269_v38 = vld [vmem:[%s13878_s25 + $0x18a4] sm:$0xf0]  ;;  %v9127_v29 = vld [vmem:[%s13878_s25 + $0x5e8] sm:$0xf0] }
 0x2e7   : > { %v11781_v39 = vld [vmem:[%s13878_s25 + $0x1a88] sm:$0xf]  ;;  %v11526_v49 = vor.u32 %v13269_v38, %v11525_v37  ;;  %7102 = vmatpush.bf16.msrb.mxu3 %v12326_v40  ;;  %v12729_v35 = vld [vmem:[%s13878_s25 + $0x7cc] sm:$0xf]  ;;  %v6809_v40 = vadd.f32 %v14695_v8, %v6796_v33 }
 0x2e8   : > { %v13333_v42 = vld [vmem:[%s13878_s25 + $0x1aa4] sm:$0xf0]  ;;  %v9383_v37 = vld [vmem:[%s13878_s25 + $0x7e8] sm:$0xf0] }
 0x2e9   : > { %v12037_v43 = vld [vmem:[%s13878_s25 + $0x1c88] sm:$0xf]  ;;  %v11782_v54 = vor.u32 %v13333_v42, %v11781_v39  ;;  %7064 = vmatpush.bf16.msrb.mxu0 %v11526_v49  ;;  %v8618_v39 = vor.u32 %v12537_v32, %v8615_v19  ;;  %v8874_v42 = vor.u32 %v12601_v20, %v8871_v48  ;;  %v12657_v49 = vld [vmem:[%s13878_s25 + $0x58c] sm:$0xf]  ;;  %v6860_v20 = vpop.f32.mrf.mxu0 }
 0x2ea   : > { %v13397_v45 = vld [vmem:[%s13878_s25 + $0x1ca4] sm:$0xf0]  ;;  %v9031_v32 = vld [vmem:[%s13878_s25 + $0x528] sm:$0xf0] }
 0x2eb   : > { %v12293_v44 = vld [vmem:[%s13878_s25 + $0x1e88] sm:$0xf]  ;;  %v12038_v55 = vor.u32 %v13397_v45, %v12037_v43  ;;  %7077 = vmatpush.bf16.msrb.mxu1 %v11782_v54  ;;  %v9130_v43 = vor.u32 %v12665_v51, %v9127_v29  ;;  %v12529_v45 = vld [vmem:[%s13878_s25 + $0x18c] sm:$0xf]  ;;  %v6873_v51 = vpop.f32.mrf.mxu1 }
 0x2ec   : > { %v13461_v6 = vld [vmem:[%s13878_s25 + $0x1ea4] sm:$0xf0]  ;;  %v9351_v54 = vld [vmem:[%s13878_s25 + $0x7a8] sm:$0xf0]  ;;  %v8586_v8 = vor.u32 %v12529_v45, %v8583_v36 }
 0x2ed   : > { %v11493_v56 = vld [vmem:[%s13878_s25 + $0x1848] sm:$0xf]  ;;  %v12294_v59 = vor.u32 %v13461_v6, %v12293_v44  ;;  %7090 = vmatpush.bf16.msrb.mxu2 %v12038_v55  ;;  %v12593_v44 = vld [vmem:[%s13878_s25 + $0x38c] sm:$0xf]  ;;  %v9386_v6 = vor.u32 %v12729_v35, %v9383_v37  ;;  %v6822_v55 = vadd.f32 %v14699_v13, %v6809_v40 }
 0x2ee   : > { %v13261_v57 = vld [vmem:[%s13878_s25 + $0x1864] sm:$0xf0]  ;;  %v12705_v21 = vld [vmem:[%s13878_s25 + $0x70c] sm:$0xf] }
 0x2ef   : > { %v11749_v58 = vld [vmem:[%s13878_s25 + $0x1a48] sm:$0xf]  ;;  %v11494_v0 = vor.u32 %v13261_v57, %v11493_v56  ;;  %7103 = vmatpush.bf16.msrb.mxu3 %v12294_v59  ;;  %v8842_v56 = vor.u32 %v12593_v44, %v8839_v47  ;;  %v9098_v57 = vor.u32 %v12657_v49, %v9095_v50  ;;  %v8551_v59 = vld [vmem:[%s13878_s25 + $0x168] sm:$0xf0] }
 0x2f0   : > { %v13325_v60 = vld [vmem:[%s13878_s25 + $0x1a64] sm:$0xf0]  ;;  %v8487_v35 = vld [vmem:[%s13878_s25 + $0xe8] sm:$0xf0] }
 0x2f1   : > { %v12005_v61 = vld [vmem:[%s13878_s25 + $0x1c48] sm:$0xf]  ;;  %v11750_v4 = vor.u32 %v13325_v60, %v11749_v58  ;;  %7065 = vmatpush.bf16.msrb.mxu0 %v11494_v0  ;;  %v12521_v58 = vld [vmem:[%s13878_s25 + $0x14c] sm:$0xf] }
 0x2f2   : > { %v13389_v62 = vld [vmem:[%s13878_s25 + $0x1c64] sm:$0xf0]  ;;  %v12585_v60 = vld [vmem:[%s13878_s25 + $0x34c] sm:$0xf] }
 0x2f3   : > { %v12261_v63 = vld [vmem:[%s13878_s25 + $0x1e48] sm:$0xf]  ;;  %v12006_v5 = vor.u32 %v13389_v62, %v12005_v61  ;;  %7078 = vmatpush.bf16.msrb.mxu1 %v11750_v4  ;;  %v13579_v61 = vld.sshfl [vmem:[#allocation1 + $0x20] sm:$0xff pattern:$0x73625140]  ;;  %v9354_v62 = vor.u32 %v12721_v53, %v9351_v54  ;;  %v6886_v54 = vpop.f32.mrf.mxu2 }
 0x2f4   : > { %v13453_v12 = vld [vmem:[%s13878_s25 + $0x1e64] sm:$0xf0]  ;;  %v9063_v0 = vld [vmem:[%s13878_s25 + $0x568] sm:$0xf0] }
 0x2f5   : > { %v11461_v1 = vld [vmem:[%s13878_s25 + $0x1808] sm:$0xf]  ;;  %v12262_v11 = vor.u32 %v13453_v12, %v12261_v63  ;;  %7091 = vmatpush.bf16.msrb.mxu2 %v12006_v5  ;;  %v8807_v63 = vld [vmem:[%s13878_s25 + $0x368] sm:$0xf0] }
 0x2f6   : > { %v13253_v2 = vld [vmem:[%s13878_s25 + $0x1824] sm:$0xf0]  ;;  %v12649_v12 = vld [vmem:[%s13878_s25 + $0x54c] sm:$0xf] }
 0x2f7   : > { %v11717_v7 = vld [vmem:[%s13878_s25 + $0x1a08] sm:$0xf]  ;;  %v11462_v26 = vor.u32 %v13253_v2, %v11461_v1  ;;  %7104 = vmatpush.bf16.msrb.mxu3 %v12262_v11  ;;  %v6835_v1 = vadd.f32 %v14714_v41, %v6822_v55  ;;  %v13581_v2 = vld.sshfl [vmem:[#allocation1 + $0x28] sm:$0xff pattern:$0x73625140]  ;;  %v8810_v41 = vor.u32 %v12585_v60, %v8807_v63  ;;  %v6875_v63 = vpop.f32.mrf.mxu1 }
 0x2f8   : > { %v13317_v9 = vld [vmem:[%s13878_s25 + $0x1a24] sm:$0xf0]  ;;  %v9319_v4 = vld [vmem:[%s13878_s25 + $0x768] sm:$0xf0] }
 0x2f9   : > { %v11973_v10 = vld [vmem:[%s13878_s25 + $0x1c08] sm:$0xf]  ;;  %v11718_v18 = vor.u32 %v13317_v9, %v11717_v7  ;;  %7066 = vmatpush.bf16.msrb.mxu0 %v11462_v26  ;;  %v13582_v5 = vld.sshfl [vmem:[#allocation1 + $0x38] sm:$0xff pattern:$0x73625140]  ;;  %v8554_v7 = vor.u32 %v12521_v58, %v8551_v59  ;;  %v9066_v9 = vor.u32 %v12649_v12, %v9063_v0  ;;  %v6848_v19 = vadd.f32 %v14719_v46, %v6835_v1  ;;  %v6899_v58 = vpop.f32.mrf.mxu3 }
 0x2fa   : > { %v13381_v14 = vld [vmem:[%s13878_s25 + $0x1c24] sm:$0xf0]  ;;  %v8519_v11 = vld [vmem:[%s13878_s25 + $0x128] sm:$0xf0] }
 0x2fb   : > { %v12229_v15 = vld [vmem:[%s13878_s25 + $0x1e08] sm:$0xf]  ;;  %v11974_v34 = vor.u32 %v13381_v14, %v11973_v10  ;;  %7079 = vmatpush.bf16.msrb.mxu1 %v11718_v18  ;;  %v12513_v10 = vld [vmem:[%s13878_s25 + $0x10c] sm:$0xf]  ;;  %v6861_v29 = vadd.f32 %v6860_v20, %v6848_v19  ;;  %v9034_v18 = vor.u32 %v12641_v17, %v9031_v32 }
 0x2fc   : > { %v13445_v16 = vld [vmem:[%s13878_s25 + $0x1e24] sm:$0xf0]  ;;  %7067 = vmatmul.bf16.vlgmr.msrb.gmra.mxu0 %v13579_v61  ;;  %v12577_v14 = vld [vmem:[%s13878_s25 + $0x30c] sm:$0xf]  ;;  %v8522_v48 = vor.u32 %v12513_v10, %v8519_v11  ;;  %v6862_v61 = vpop.f32.mrf.mxu0 }
 0x2fd   : > { %v12230_v38 = vor.u32 %v13445_v16, %v12229_v15  ;;  %7092 = vmatpush.bf16.msrb.mxu2 %v11974_v34  ;;  %7111 = vmatpush.bf16.msra.mxu0 %v8618_v39  ;;  %v13580_v13 = vld.sshfl [vmem:[#allocation1 + $0x30] sm:$0xff pattern:$0x73625140]  ;;  %v9322_v15 = vor.u32 %v12713_v3, %v9319_v4  ;;  %v6874_v36 = vadd.f32 %v6873_v51, %v6861_v29 }
 0x2fe   : > { %7080 = vmatmul.bf16.vlgmr.msrb.gmra.mxu1 %v13581_v2  ;;  %v8775_v16 = vld [vmem:[%s13878_s25 + $0x328] sm:$0xf0] }
 0x2ff   : > { %7105 = vmatpush.bf16.msrb.mxu3 %v12230_v38  ;;  %7124 = vmatpush.bf16.msra.mxu1 %v8874_v42  ;;  %v9287_v26 = vld [vmem:[%s13878_s25 + $0x728] sm:$0xf0]  ;;  %v8778_v33 = vor.u32 %v12577_v14, %v8775_v16 }
 0x300   : > { %7093 = vmatmul.bf16.vlgmr.msrb.gmra.mxu2 %v13580_v13  ;;  %v12505_v34 = vld [vmem:[%s13878_s25 + $0xcc] sm:$0xf]  ;;  %v9290_v37 = vor.u32 %v12705_v21, %v9287_v26 }
 0x301   : > { %7137 = vmatpush.bf16.msra.mxu2 %v9130_v43  ;;  %7112 = vmatpush.bf16.msra.mxu0 %v8586_v8  ;;  %v12569_v46 = vld [vmem:[%s13878_s25 + $0x2cc] sm:$0xf]  ;;  %v8490_v45 = vor.u32 %v12505_v34, %v8487_v35 }
 0x302   : > { %7106 = vmatmul.bf16.vlgmr.msrb.gmra.mxu3 %v13582_v5  ;;  %v8743_v38 = vld [vmem:[%s13878_s25 + $0x2e8] sm:$0xf0] }
 0x303   : > { %7150 = vmatpush.bf16.msra.mxu3 %v9386_v6  ;;  %7125 = vmatpush.bf16.msra.mxu1 %v8842_v56  ;;  %v12633_v39 = vld [vmem:[%s13878_s25 + $0x4cc] sm:$0xf]  ;;  %v8746_v44 = vor.u32 %v12569_v46, %v8743_v38 }
 0x304   : > { %v8999_v40 = vld [vmem:[%s13878_s25 + $0x4e8] sm:$0xf0] }
 0x305   : > { %7138 = vmatpush.bf16.msra.mxu2 %v9098_v57  ;;  %7113 = vmatpush.bf16.msra.mxu0 %v8554_v7  ;;  %v12697_v42 = vld [vmem:[%s13878_s25 + $0x6cc] sm:$0xf]  ;;  %v9002_v6 = vor.u32 %v12633_v39, %v8999_v40  ;;  %v6887_v57 = vadd.f32 %v6886_v54, %v6874_v36  ;;  %v6901_v39 = vpop.f32.mrf.mxu3 }
 0x306   : > { %v9255_v43 = vld [vmem:[%s13878_s25 + $0x6e8] sm:$0xf0] }
 0x307   : > { %7151 = vmatpush.bf16.msra.mxu3 %v9354_v62  ;;  %7126 = vmatpush.bf16.msra.mxu1 %v8810_v41  ;;  %v12497_v47 = vld [vmem:[%s13878_s25 + $0x8c] sm:$0xf]  ;;  %v9258_v53 = vor.u32 %v12697_v42, %v9255_v43  ;;  %v6900_v12 = vadd.f32 %v6899_v58, %v6887_v57 }
 0x308   : > { %v8455_v49 = vld [vmem:[%s13878_s25 + $0xa8] sm:$0xf0] }
 0x309   : > { %7139 = vmatpush.bf16.msra.mxu2 %v9066_v9  ;;  %7114 = vmatpush.bf16.msra.mxu0 %v8522_v48  ;;  %v12561_v50 = vld [vmem:[%s13878_s25 + $0x28c] sm:$0xf]  ;;  %v8458_v62 = vor.u32 %v12497_v47, %v8455_v49  ;;  %v294_v9 = vld [vmem:[#allocation2 + $0x10] sm:$0xff]  ;;  %v8159_v10 = vrot.slane %v6900_v12, 4 }
 0x30a   : > { %v8711_v8 = vld [vmem:[%s13878_s25 + $0x2a8] sm:$0xf0] }
 0x30b   : > { %7152 = vmatpush.bf16.msra.mxu3 %v9322_v15  ;;  %7127 = vmatpush.bf16.msra.mxu1 %v8778_v33  ;;  %v12625_v55 = vld [vmem:[%s13878_s25 + $0x48c] sm:$0xf]  ;;  %v8714_v0 = vor.u32 %v12561_v50, %v8711_v8  ;;  %v8164_v19 = vsel %vm8163_vm0, %v14501_v52, %v8159_v10  ;;  %v6888_v52 = vpop.f32.mrf.mxu2 }
 0x30c   : > { %v8967_v56 = vld [vmem:[%s13878_s25 + $0x4a8] sm:$0xf0]  ;;  %v8172_v29 = vadd.f32 %v8164_v19, %v294_v9  ;;  %v6925_v52 = vpop.f32.mrf.mxu1 }
 0x30d   : > { %7140 = vmatpush.bf16.msra.mxu2 %v9034_v18  ;;  %v12689_v59 = vld [vmem:[%s13878_s25 + $0x68c] sm:$0xf]  ;;  %7115 = vmatpush.bf16.msra.mxu0 %v8490_v45  ;;  %v8970_v1 = vor.u32 %v12625_v55, %v8967_v56 }
 0x30e   : > { %v9223_v60 = vld [vmem:[%s13878_s25 + $0x6a8] sm:$0xf0]  ;;  %8176 = vst [vmem:[#allocation2 + $0x10] sm:$0xff] %v8172_v29 }
 0x30f   : > { %7153 = vmatpush.bf16.msra.mxu3 %v9290_v37  ;;  %7128 = vmatpush.bf16.msra.mxu1 %v8746_v44  ;;  %v12489_v13 = vld [vmem:[%s13878_s25 + $0x4c] sm:$0xf]  ;;  %v9226_v4 = vor.u32 %v12689_v59, %v9223_v60 }
 0x310   : > { %v8423_v2 = vld [vmem:[%s13878_s25 + $0x68] sm:$0xf0] }
 0x311   : > { %7141 = vmatpush.bf16.msra.mxu2 %v9002_v6  ;;  %v12553_v3 = vld [vmem:[%s13878_s25 + $0x24c] sm:$0xf]  ;;  %7116 = vmatpush.bf16.msra.mxu0 %v8458_v62  ;;  %v8426_v15 = vor.u32 %v12489_v13, %v8423_v2 }
 0x312   : > { %v8679_v5 = vld [vmem:[%s13878_s25 + $0x268] sm:$0xf0] }
 0x313   : > { %7154 = vmatpush.bf16.msra.mxu3 %v9258_v53  ;;  %v12617_v7 = vld [vmem:[%s13878_s25 + $0x44c] sm:$0xf]  ;;  %7129 = vmatpush.bf16.msra.mxu1 %v8714_v0  ;;  %v8682_v20 = vor.u32 %v12553_v3, %v8679_v5 }
 0x314   : > { %v8935_v41 = vld [vmem:[%s13878_s25 + $0x468] sm:$0xf0] }
 0x315   : > { %v12681_v11 = vld [vmem:[%s13878_s25 + $0x64c] sm:$0xf]  ;;  %7142 = vmatpush.bf16.msra.mxu2 %v8970_v1  ;;  %v8938_v21 = vor.u32 %v12617_v7, %v8935_v41  ;;  %7117 = vmatpush.bf16.msra.mxu0 %v8426_v15 }
 0x316   : > { %v9191_v14 = vld [vmem:[%s13878_s25 + $0x668] sm:$0xf0] }
 0x317   : > { %v12481_v16 = vld [vmem:[%s13878_s25 + $0xc] sm:$0xf]  ;;  %7155 = vmatpush.bf16.msra.mxu3 %v9226_v4  ;;  %v9194_v33 = vor.u32 %v12681_v11, %v9191_v14  ;;  %7130 = vmatpush.bf16.msra.mxu1 %v8682_v20 }
 0x318   : > { %v8391_v17 = vld [vmem:[%s13878_s25 + $0x28] sm:$0xf0] }
 0x319   : > { %v12545_v32 = vld [vmem:[%s13878_s25 + $0x20c] sm:$0xf]  ;;  %v8394_v40 = vor.u32 %v12481_v16, %v8391_v17  ;;  %7143 = vmatpush.bf16.msra.mxu2 %v8938_v21 }
 0x31a   : > { %v8647_v26 = vld [vmem:[%s13878_s25 + $0x228] sm:$0xf0] }
 0x31b   : > { %v12609_v48 = vld [vmem:[%s13878_s25 + $0x40c] sm:$0xf]  ;;  %v8650_v45 = vor.u32 %v12545_v32, %v8647_v26  ;;  %7156 = vmatpush.bf16.msra.mxu3 %v9194_v33  ;;  %7118 = vmatpush.bf16.msra.mxu0 %v8394_v40 }
 0x31c   : > { %v8903_v51 = vld [vmem:[%s13878_s25 + $0x428] sm:$0xf0] }
 0x31d   : > { %v12673_v18 = vld [vmem:[%s13878_s25 + $0x60c] sm:$0xf]  ;;  %v8906_v36 = vor.u32 %v12609_v48, %v8903_v51  ;;  %7131 = vmatpush.bf16.msra.mxu1 %v8650_v45  ;;  %v6912_v51 = vpop.f32.mrf.mxu0 }
 0x31e   : > { %v9159_v34 = vld [vmem:[%s13878_s25 + $0x628] sm:$0xf0]  ;;  %7119 = vmatmul.bf16.vlgmr.msra.gmra.mxu0 %v14002_v25  ;;  %v6926_v40 = vadd.f32 %v6925_v52, %v6912_v51 }
 0x31f   : > { %v12793_v35 = vld [vmem:[%s13878_s25 + $0x9cc] sm:$0xf]  ;;  %v9162_v47 = vor.u32 %v12673_v18, %v9159_v34  ;;  %7144 = vmatpush.bf16.msra.mxu2 %v8906_v36 }
 0x320   : > { %v9639_v46 = vld [vmem:[%s13878_s25 + $0x9e8] sm:$0xf0]  ;;  %7132 = vmatmul.bf16.vlgmr.msra.gmra.mxu1 %v14007_v28 }
 0x321   : > { %v12857_v37 = vld [vmem:[%s13878_s25 + $0xbcc] sm:$0xf]  ;;  %v9642_v49 = vor.u32 %v12793_v35, %v9639_v46  ;;  %7157 = vmatpush.bf16.msra.mxu3 %v9162_v47 }
 0x322   : > { %v9895_v38 = vld [vmem:[%s13878_s25 + $0xbe8] sm:$0xf0]  ;;  %7145 = vmatmul.bf16.vlgmr.msra.gmra.mxu2 %v14000_v24 }
 0x323   : > { %v12921_v42 = vld [vmem:[%s13878_s25 + $0xdcc] sm:$0xf]  ;;  %v9898_v50 = vor.u32 %v12857_v37, %v9895_v38  ;;  %7163 = vmatpush.bf16.msrb.mxu0 %v9642_v49 }
 0x324   : > { %v10151_v43 = vld [vmem:[%s13878_s25 + $0xde8] sm:$0xf0]  ;;  %7158 = vmatmul.bf16.vlgmr.msra.gmra.mxu3 %v14005_v27 }
 0x325   : > { %v12985_v44 = vld [vmem:[%s13878_s25 + $0xfcc] sm:$0xf]  ;;  %v10154_v53 = vor.u32 %v12921_v42, %v10151_v43  ;;  %7176 = vmatpush.bf16.msrb.mxu1 %v9898_v50  ;;  %v6938_v50 = vpop.f32.mrf.mxu2 }
 0x326   : > { %v10407_v6 = vld [vmem:[%s13878_s25 + $0xfe8] sm:$0xf0] }
 0x327   : > { %v12785_v54 = vld [vmem:[%s13878_s25 + $0x98c] sm:$0xf]  ;;  %v10410_v56 = vor.u32 %v12985_v44, %v10407_v6  ;;  %7189 = vmatpush.bf16.msrb.mxu2 %v10154_v53 }
 0x328   : > { %v9607_v8 = vld [vmem:[%s13878_s25 + $0x9a8] sm:$0xf0] }
 0x329   : > { %v12849_v55 = vld [vmem:[%s13878_s25 + $0xb8c] sm:$0xf]  ;;  %v9610_v62 = vor.u32 %v12785_v54, %v9607_v8  ;;  %7202 = vmatpush.bf16.msrb.mxu3 %v10410_v56  ;;  %v6939_v56 = vadd.f32 %v6938_v50, %v6926_v40 }
 0x32a   : > { %v9863_v57 = vld [vmem:[%s13878_s25 + $0xba8] sm:$0xf0] }
 0x32b   : > { %v12913_v58 = vld [vmem:[%s13878_s25 + $0xd8c] sm:$0xf]  ;;  %v9866_v63 = vor.u32 %v12849_v55, %v9863_v57  ;;  %7164 = vmatpush.bf16.msrb.mxu0 %v9610_v62  ;;  %v6951_v57 = vpop.f32.mrf.mxu3  ;;  %v6914_v62 = vpop.f32.mrf.mxu0 }
 0x32c   : > { %v10119_v59 = vld [vmem:[%s13878_s25 + $0xda8] sm:$0xf0] }
 0x32d   : > { %v12977_v60 = vld [vmem:[%s13878_s25 + $0xf8c] sm:$0xf]  ;;  %v10122_v12 = vor.u32 %v12913_v58, %v10119_v59  ;;  %7177 = vmatpush.bf16.msrb.mxu1 %v9866_v63 }
 0x32e   : > { %v10375_v61 = vld [vmem:[%s13878_s25 + $0xfa8] sm:$0xf0] }
 0x32f   : > { %v12777_v0 = vld [vmem:[%s13878_s25 + $0x94c] sm:$0xf]  ;;  %v10378_v2 = vor.u32 %v12977_v60, %v10375_v61  ;;  %7190 = vmatpush.bf16.msrb.mxu2 %v10122_v12  ;;  %v14864_v61 = vadd.f32 %v6951_v57, %v6939_v56 }
 0x330   : > { %v9575_v1 = vld [vmem:[%s13878_s25 + $0x968] sm:$0xf0] }
 0x331   : > { %v12841_v13 = vld [vmem:[%s13878_s25 + $0xb4c] sm:$0xf]  ;;  %v9578_v9 = vor.u32 %v12777_v0, %v9575_v1  ;;  %7203 = vmatpush.bf16.msrb.mxu3 %v10378_v2  ;;  %v6927_v2 = vpop.f32.mrf.mxu1 }
 0x332   : > { %v9831_v3 = vld [vmem:[%s13878_s25 + $0xb68] sm:$0xf0] }
 0x333   : > { %v12905_v4 = vld [vmem:[%s13878_s25 + $0xd4c] sm:$0xf]  ;;  %v9834_v10 = vor.u32 %v12841_v13, %v9831_v3  ;;  %7165 = vmatpush.bf16.msrb.mxu0 %v9578_v9 }
 0x334   : > { %v10087_v5 = vld [vmem:[%s13878_s25 + $0xd68] sm:$0xf0] }
 0x335   : > { %v12969_v7 = vld [vmem:[%s13878_s25 + $0xf4c] sm:$0xf]  ;;  %v10090_v11 = vor.u32 %v12905_v4, %v10087_v5  ;;  %7178 = vmatpush.bf16.msrb.mxu1 %v9834_v10 }
 0x336   : > { %v10343_v41 = vld [vmem:[%s13878_s25 + $0xf68] sm:$0xf0] }
 0x337   : > { %v12769_v14 = vld [vmem:[%s13878_s25 + $0x90c] sm:$0xf]  ;;  %v10346_v17 = vor.u32 %v12969_v7, %v10343_v41  ;;  %7191 = vmatpush.bf16.msrb.mxu2 %v10090_v11 }
 0x338   : > { %v9543_v15 = vld [vmem:[%s13878_s25 + $0x928] sm:$0xf0] }
 0x339   : > { %v12833_v16 = vld [vmem:[%s13878_s25 + $0xb0c] sm:$0xf]  ;;  %v9546_v48 = vor.u32 %v12769_v14, %v9543_v15  ;;  %7204 = vmatpush.bf16.msrb.mxu3 %v10346_v17 }
 0x33a   : > { %v9799_v32 = vld [vmem:[%s13878_s25 + $0xb28] sm:$0xf0] }
 0x33b   : > { %v12897_v19 = vld [vmem:[%s13878_s25 + $0xd0c] sm:$0xf]  ;;  %v9802_v29 = vor.u32 %v12833_v16, %v9799_v32  ;;  %7166 = vmatpush.bf16.msrb.mxu0 %v9546_v48 }
 0x33c   : > { %v10055_v20 = vld [vmem:[%s13878_s25 + $0xd28] sm:$0xf0] }
 0x33d   : > { %v12961_v21 = vld [vmem:[%s13878_s25 + $0xf0c] sm:$0xf]  ;;  %v10058_v33 = vor.u32 %v12897_v19, %v10055_v20  ;;  %7179 = vmatpush.bf16.msrb.mxu1 %v9802_v29  ;;  %v6940_v20 = vpop.f32.mrf.mxu2  ;;  %v6953_v29 = vpop.f32.mrf.mxu3 }
 0x33e   : > { %v10311_v26 = vld [vmem:[%s13878_s25 + $0xf28] sm:$0xf0]  ;;  %v6964_v20 = vpop.f32.mrf.mxu0 }
 0x33f   : > { %v12761_v18 = vld [vmem:[%s13878_s25 + $0x8cc] sm:$0xf]  ;;  %v10314_v46 = vor.u32 %v12961_v21, %v10311_v26  ;;  %7192 = vmatpush.bf16.msrb.mxu2 %v10058_v33 }
 0x340   : > { %v9511_v34 = vld [vmem:[%s13878_s25 + $0x8e8] sm:$0xf0] }
 0x341   : > { %v12825_v35 = vld [vmem:[%s13878_s25 + $0xacc] sm:$0xf]  ;;  %v9514_v45 = vor.u32 %v12761_v18, %v9511_v34  ;;  %7205 = vmatpush.bf16.msrb.mxu3 %v10314_v46 }
 0x342   : > { %v9767_v37 = vld [vmem:[%s13878_s25 + $0xae8] sm:$0xf0] }
 0x343   : > { %v12889_v38 = vld [vmem:[%s13878_s25 + $0xccc] sm:$0xf]  ;;  %v9770_v36 = vor.u32 %v12825_v35, %v9767_v37  ;;  %7167 = vmatpush.bf16.msrb.mxu0 %v9514_v45 }
 0x344   : > { %v10023_v39 = vld [vmem:[%s13878_s25 + $0xce8] sm:$0xf0] }
 0x345   : > { %v12953_v42 = vld [vmem:[%s13878_s25 + $0xecc] sm:$0xf]  ;;  %v10026_v44 = vor.u32 %v12889_v38, %v10023_v39  ;;  %7180 = vmatpush.bf16.msrb.mxu1 %v9770_v36 }
 0x346   : > { %v10279_v43 = vld [vmem:[%s13878_s25 + $0xee8] sm:$0xf0] }
 0x347   : > { %v12753_v6 = vld [vmem:[%s13878_s25 + $0x88c] sm:$0xf]  ;;  %v10282_v53 = vor.u32 %v12953_v42, %v10279_v43  ;;  %7193 = vmatpush.bf16.msrb.mxu2 %v10026_v44 }
 0x348   : > { %v9479_v47 = vld [vmem:[%s13878_s25 + $0x8a8] sm:$0xf0] }
 0x349   : > { %v12817_v49 = vld [vmem:[%s13878_s25 + $0xa8c] sm:$0xf]  ;;  %v9482_v60 = vor.u32 %v12753_v6, %v9479_v47  ;;  %7206 = vmatpush.bf16.msrb.mxu3 %v10282_v53 }
 0x34a   : > { %v9735_v54 = vld [vmem:[%s13878_s25 + $0xaa8] sm:$0xf0] }
 0x34b   : > { %v12881_v8 = vld [vmem:[%s13878_s25 + $0xc8c] sm:$0xf]  ;;  %v9738_v63 = vor.u32 %v12817_v49, %v9735_v54  ;;  %7168 = vmatpush.bf16.msrb.mxu0 %v9482_v60 }
 0x34c   : > { %v9991_v55 = vld [vmem:[%s13878_s25 + $0xca8] sm:$0xf0] }
 0x34d   : > { %v12945_v58 = vld [vmem:[%s13878_s25 + $0xe8c] sm:$0xf]  ;;  %v9994_v12 = vor.u32 %v12881_v8, %v9991_v55  ;;  %7181 = vmatpush.bf16.msrb.mxu1 %v9738_v63 }
 0x34e   : > { %v10247_v59 = vld [vmem:[%s13878_s25 + $0xea8] sm:$0xf0] }
 0x34f   : > { %v12745_v0 = vld [vmem:[%s13878_s25 + $0x84c] sm:$0xf]  ;;  %v10250_v3 = vor.u32 %v12945_v58, %v10247_v59  ;;  %7194 = vmatpush.bf16.msrb.mxu2 %v9994_v12 }
 0x350   : > { %v9447_v1 = vld [vmem:[%s13878_s25 + $0x868] sm:$0xf0] }
 0x351   : > { %v12809_v13 = vld [vmem:[%s13878_s25 + $0xa4c] sm:$0xf]  ;;  %v9450_v10 = vor.u32 %v12745_v0, %v9447_v1  ;;  %7207 = vmatpush.bf16.msrb.mxu3 %v10250_v3 }
 0x352   : > { %v9703_v4 = vld [vmem:[%s13878_s25 + $0xa68] sm:$0xf0] }
 0x353   : > { %v12873_v5 = vld [vmem:[%s13878_s25 + $0xc4c] sm:$0xf]  ;;  %v9706_v15 = vor.u32 %v12809_v13, %v9703_v4  ;;  %7169 = vmatpush.bf16.msrb.mxu0 %v9450_v10 }
 0x354   : > { %v9959_v7 = vld [vmem:[%s13878_s25 + $0xc68] sm:$0xf0] }
 0x355   : > { %v12937_v41 = vld [vmem:[%s13878_s25 + $0xe4c] sm:$0xf]  ;;  %v9962_v16 = vor.u32 %v12873_v5, %v9959_v7  ;;  %7182 = vmatpush.bf16.msrb.mxu1 %v9706_v15 }
 0x356   : > { %v10215_v9 = vld [vmem:[%s13878_s25 + $0xe68] sm:$0xf0] }
 0x357   : > { %v12737_v11 = vld [vmem:[%s13878_s25 + $0x80c] sm:$0xf]  ;;  %v10218_v21 = vor.u32 %v12937_v41, %v10215_v9  ;;  %7195 = vmatpush.bf16.msrb.mxu2 %v9962_v16 }
 0x358   : > { %v9415_v14 = vld [vmem:[%s13878_s25 + $0x828] sm:$0xf0] }
 0x359   : > { %v12801_v17 = vld [vmem:[%s13878_s25 + $0xa0c] sm:$0xf]  ;;  %v9418_v35 = vor.u32 %v12737_v11, %v9415_v14  ;;  %7208 = vmatpush.bf16.msrb.mxu3 %v10218_v21 }
 0x35a   : > { %v9671_v32 = vld [vmem:[%s13878_s25 + $0xa28] sm:$0xf0] }
 0x35b   : > { %v12865_v19 = vld [vmem:[%s13878_s25 + $0xc0c] sm:$0xf]  ;;  %v9674_v38 = vor.u32 %v12801_v17, %v9671_v32  ;;  %7170 = vmatpush.bf16.msrb.mxu0 %v9418_v35 }
 0x35c   : > { %v9927_v26 = vld [vmem:[%s13878_s25 + $0xc28] sm:$0xf0] }
 0x35d   : > { %v12929_v48 = vld [vmem:[%s13878_s25 + $0xe0c] sm:$0xf]  ;;  %v9930_v39 = vor.u32 %v12865_v19, %v9927_v26  ;;  %7183 = vmatpush.bf16.msrb.mxu1 %v9674_v38 }
 0x35e   : > { %v10183_v51 = vld [vmem:[%s13878_s25 + $0xe28] sm:$0xf0]  ;;  %7171 = vmatmul.bf16.vlgmr.msrb.gmra.mxu0 %v14054_v23 }
 0x35f   : > { %v13049_v33 = vld [vmem:[%s13878_s25 + $0x11cc] sm:$0xf]  ;;  %v10186_v43 = vor.u32 %v12929_v48, %v10183_v51  ;;  %7196 = vmatpush.bf16.msrb.mxu2 %v9930_v39 }
 0x360   : > { %v10663_v18 = vld [vmem:[%s13878_s25 + $0x11e8] sm:$0xf0]  ;;  %7184 = vmatmul.bf16.vlgmr.msrb.gmra.mxu1 %v14058_v31 }
 0x361   : > { %v13113_v34 = vld [vmem:[%s13878_s25 + $0x13cc] sm:$0xf]  ;;  %v10666_v45 = vor.u32 %v13049_v33, %v10663_v18  ;;  %7209 = vmatpush.bf16.msrb.mxu3 %v10186_v43  ;;  %v6965_v33 = vadd.f32 %v6964_v20, %v14864_v61  ;;  %v6977_v18 = vpop.f32.mrf.mxu1 }
 0x362   : > { %v10919_v52 = vld [vmem:[%s13878_s25 + $0x13e8] sm:$0xf0]  ;;  %7197 = vmatmul.bf16.vlgmr.msrb.gmra.mxu2 %v14052_v22 }
 0x363   : > { %v13177_v46 = vld [vmem:[%s13878_s25 + $0x15cc] sm:$0xf]  ;;  %v10922_v36 = vor.u32 %v13113_v34, %v10919_v52  ;;  %7215 = vmatpush.bf16.msra.mxu0 %v10666_v45  ;;  %v6978_v39 = vadd.f32 %v6977_v18, %v6965_v33 }
 0x364   : > { %v11175_v37 = vld [vmem:[%s13878_s25 + $0x15e8] sm:$0xf0]  ;;  %7210 = vmatmul.bf16.vlgmr.msrb.gmra.mxu3 %v14056_v30 }
 0x365   : > { %v13241_v40 = vld [vmem:[%s13878_s25 + $0x17cc] sm:$0xf]  ;;  %v11178_v44 = vor.u32 %v13177_v46, %v11175_v37  ;;  %7228 = vmatpush.bf16.msra.mxu1 %v10922_v36 }
 0x366   : > { %v11431_v42 = vld [vmem:[%s13878_s25 + $0x17e8] sm:$0xf0] }
 0x367   : > { %v13041_v6 = vld [vmem:[%s13878_s25 + $0x118c] sm:$0xf]  ;;  %v11434_v50 = vor.u32 %v13241_v40, %v11431_v42  ;;  %7241 = vmatpush.bf16.msra.mxu2 %v11178_v44  ;;  %v6990_v44 = vpop.f32.mrf.mxu2 }
 0x368   : > { %v10631_v47 = vld [vmem:[%s13878_s25 + $0x11a8] sm:$0xf0] }
 0x369   : > { %v13105_v49 = vld [vmem:[%s13878_s25 + $0x138c] sm:$0xf]  ;;  %v10634_v57 = vor.u32 %v13041_v6, %v10631_v47  ;;  %7254 = vmatpush.bf16.msra.mxu3 %v11434_v50 }
 0x36a   : > { %v10887_v53 = vld [vmem:[%s13878_s25 + $0x13a8] sm:$0xf0] }
 0x36b   : > { %v13169_v54 = vld [vmem:[%s13878_s25 + $0x158c] sm:$0xf]  ;;  %v10890_v58 = vor.u32 %v13105_v49, %v10887_v53  ;;  %7216 = vmatpush.bf16.msra.mxu0 %v10634_v57  ;;  %v6991_v53 = vadd.f32 %v6990_v44, %v6978_v39 }
 0x36c   : > { %v11143_v8 = vld [vmem:[%s13878_s25 + $0x15a8] sm:$0xf0] }
 0x36d   : > { %v13233_v55 = vld [vmem:[%s13878_s25 + $0x178c] sm:$0xf]  ;;  %v11146_v59 = vor.u32 %v13169_v54, %v11143_v8  ;;  %7229 = vmatpush.bf16.msra.mxu1 %v10890_v58  ;;  %v7003_v54 = vpop.f32.mrf.mxu3  ;;  %v6966_v58 = vpop.f32.mrf.mxu0 }
 0x36e   : > { %v11399_v56 = vld [vmem:[%s13878_s25 + $0x17a8] sm:$0xf0]  ;;  %v14935_v57 = vadd.f32 %v7003_v54, %v6991_v53 }
 0x36f   : > { %v13033_v60 = vld [vmem:[%s13878_s25 + $0x114c] sm:$0xf]  ;;  %v11402_v12 = vor.u32 %v13233_v55, %v11399_v56  ;;  %7242 = vmatpush.bf16.msra.mxu2 %v11146_v59 }
 0x370   : > { %v10599_v62 = vld [vmem:[%s13878_s25 + $0x1168] sm:$0xf0] }
 0x371   : > { %v13097_v63 = vld [vmem:[%s13878_s25 + $0x134c] sm:$0xf]  ;;  %v10602_v4 = vor.u32 %v13033_v60, %v10599_v62  ;;  %7255 = vmatpush.bf16.msra.mxu3 %v11402_v12 }
 0x372   : > { %v10855_v0 = vld [vmem:[%s13878_s25 + $0x1368] sm:$0xf0] }
 0x373   : > { %v13161_v1 = vld [vmem:[%s13878_s25 + $0x154c] sm:$0xf]  ;;  %v10858_v5 = vor.u32 %v13097_v63, %v10855_v0  ;;  %7217 = vmatpush.bf16.msra.mxu0 %v10602_v4  ;;  %v6979_v0 = vpop.f32.mrf.mxu1 }
 0x374   : > { %v11111_v13 = vld [vmem:[%s13878_s25 + $0x1568] sm:$0xf0] }
 0x375   : > { %v13225_v2 = vld [vmem:[%s13878_s25 + $0x174c] sm:$0xf]  ;;  %v11114_v7 = vor.u32 %v13161_v1, %v11111_v13  ;;  %7230 = vmatpush.bf16.msra.mxu1 %v10858_v5 }
 0x376   : > { %v11367_v3 = vld [vmem:[%s13878_s25 + $0x1768] sm:$0xf0] }
 0x377   : > { %v13025_v41 = vld [vmem:[%s13878_s25 + $0x110c] sm:$0xf]  ;;  %v11370_v11 = vor.u32 %v13225_v2, %v11367_v3  ;;  %7243 = vmatpush.bf16.msra.mxu2 %v11114_v7 }
 0x378   : > { %v10567_v9 = vld [vmem:[%s13878_s25 + $0x1128] sm:$0xf0] }
 0x379   : > { %v13089_v10 = vld [vmem:[%s13878_s25 + $0x130c] sm:$0xf]  ;;  %v10570_v19 = vor.u32 %v13025_v41, %v10567_v9  ;;  %7256 = vmatpush.bf16.msra.mxu3 %v11370_v11 }
 0x37a   : > { %v10823_v14 = vld [vmem:[%s13878_s25 + $0x1328] sm:$0xf0] }
 0x37b   : > { %v13153_v15 = vld [vmem:[%s13878_s25 + $0x150c] sm:$0xf]  ;;  %v10826_v21 = vor.u32 %v13089_v10, %v10823_v14  ;;  %7218 = vmatpush.bf16.msra.mxu0 %v10570_v19 }
 0x37c   : > { %v11079_v16 = vld [vmem:[%s13878_s25 + $0x1528] sm:$0xf0] }
 0x37d   : > { %v13217_v17 = vld [vmem:[%s13878_s25 + $0x170c] sm:$0xf]  ;;  %v11082_v26 = vor.u32 %v13153_v15, %v11079_v16  ;;  %7231 = vmatpush.bf16.msra.mxu1 %v10826_v21 }
 0x37e   : > { %v11335_v32 = vld [vmem:[%s13878_s25 + $0x1728] sm:$0xf0] }
 0x37f   : > { %v13017_v48 = vld [vmem:[%s13878_s25 + $0x10cc] sm:$0xf]  ;;  %v11338_v34 = vor.u32 %v13217_v17, %v11335_v32  ;;  %7244 = vmatpush.bf16.msra.mxu2 %v11082_v26  ;;  %v6992_v17 = vpop.f32.mrf.mxu2  ;;  %v7005_v26 = vpop.f32.mrf.mxu3 }
 0x380   : > { %v10535_v51 = vld [vmem:[%s13878_s25 + $0x10e8] sm:$0xf0] }
 0x381   : > { %v13081_v29 = vld [vmem:[%s13878_s25 + $0x12cc] sm:$0xf]  ;;  %v10538_v40 = vor.u32 %v13017_v48, %v10535_v51  ;;  %7257 = vmatpush.bf16.msra.mxu3 %v11338_v34 }
 0x382   : > { %v10791_v35 = vld [vmem:[%s13878_s25 + $0x12e8] sm:$0xf0] }
 0x383   : > { %v13145_v52 = vld [vmem:[%s13878_s25 + $0x14cc] sm:$0xf]  ;;  %v10794_v61 = vor.u32 %v13081_v29, %v10791_v35  ;;  %7219 = vmatpush.bf16.msra.mxu0 %v10538_v40 }
 0x384   : > { %v11047_v46 = vld [vmem:[%s13878_s25 + $0x14e8] sm:$0xf0] }
 0x385   : > { %v13209_v37 = vld [vmem:[%s13878_s25 + $0x16cc] sm:$0xf]  ;;  %v11050_v42 = vor.u32 %v13145_v52, %v11047_v46  ;;  %7232 = vmatpush.bf16.msra.mxu1 %v10794_v61 }
 0x386   : > { %v11303_v38 = vld [vmem:[%s13878_s25 + $0x16e8] sm:$0xf0] }
 0x387   : > { %v13009_v43 = vld [vmem:[%s13878_s25 + $0x108c] sm:$0xf]  ;;  %v11306_v6 = vor.u32 %v13209_v37, %v11303_v38  ;;  %7245 = vmatpush.bf16.msra.mxu2 %v11050_v42 }
 0x388   : > { %v10503_v45 = vld [vmem:[%s13878_s25 + $0x10a8] sm:$0xf0] }
 0x389   : > { %v13073_v36 = vld [vmem:[%s13878_s25 + $0x128c] sm:$0xf]  ;;  %v10506_v56 = vor.u32 %v13009_v43, %v10503_v45  ;;  %7258 = vmatpush.bf16.msra.mxu3 %v11306_v6 }
 0x38a   : > { %v10759_v47 = vld [vmem:[%s13878_s25 + $0x12a8] sm:$0xf0] }
 0x38b   : > { %v13137_v49 = vld [vmem:[%s13878_s25 + $0x148c] sm:$0xf]  ;;  %v10762_v59 = vor.u32 %v13073_v36, %v10759_v47  ;;  %7220 = vmatpush.bf16.msra.mxu0 %v10506_v56 }
 0x38c   : > { %v11015_v50 = vld [vmem:[%s13878_s25 + $0x14a8] sm:$0xf0] }
 0x38d   : > { %v13201_v8 = vld [vmem:[%s13878_s25 + $0x168c] sm:$0xf]  ;;  %v11018_v60 = vor.u32 %v13137_v49, %v11015_v50  ;;  %7233 = vmatpush.bf16.msra.mxu1 %v10762_v59 }
 0x38e   : > { %v11271_v55 = vld [vmem:[%s13878_s25 + $0x16a8] sm:$0xf0] }
 0x38f   : > { %v13001_v62 = vld [vmem:[%s13878_s25 + $0x104c] sm:$0xf]  ;;  %v11274_v1 = vor.u32 %v13201_v8, %v11271_v55  ;;  %7246 = vmatpush.bf16.msra.mxu2 %v11018_v60  ;;  %v13583_v60 = vld.sshfl [vmem:[#allocation1] sm:$0xff pattern:$0x73625140] }
 0x390   : > { %v10471_v63 = vld [vmem:[%s13878_s25 + $0x1068] sm:$0xf0] }
 0x391   : > { %v13065_v12 = vld [vmem:[%s13878_s25 + $0x124c] sm:$0xf]  ;;  %v10474_v7 = vor.u32 %v13001_v62, %v10471_v63  ;;  %7259 = vmatpush.bf16.msra.mxu3 %v11274_v1 }
 0x392   : > { %v10727_v13 = vld [vmem:[%s13878_s25 + $0x1268] sm:$0xf0] }
 0x393   : > { %v13129_v2 = vld [vmem:[%s13878_s25 + $0x144c] sm:$0xf]  ;;  %v10730_v10 = vor.u32 %v13065_v12, %v10727_v13  ;;  %7221 = vmatpush.bf16.msra.mxu0 %v10474_v7  ;;  %v13585_v13 = vld.sshfl [vmem:[#allocation1 + $0x8] sm:$0xff pattern:$0x73625140] }
 0x394   : > { %v10983_v3 = vld [vmem:[%s13878_s25 + $0x1468] sm:$0xf0] }
 0x395   : > { %v13193_v4 = vld [vmem:[%s13878_s25 + $0x164c] sm:$0xf]  ;;  %v10986_v11 = vor.u32 %v13129_v2, %v10983_v3  ;;  %7234 = vmatpush.bf16.msra.mxu1 %v10730_v10 }
 0x396   : > { %v11239_v5 = vld [vmem:[%s13878_s25 + $0x1668] sm:$0xf0] }
 0x397   : > { %v12993_v41 = vld [vmem:[%s13878_s25 + $0x100c] sm:$0xf]  ;;  %v11242_v32 = vor.u32 %v13193_v4, %v11239_v5  ;;  %7247 = vmatpush.bf16.msra.mxu2 %v10986_v11  ;;  %v13586_v4 = vld.sshfl [vmem:[#allocation1 + $0x18] sm:$0xff pattern:$0x73625140] }
 0x398   : > { %v10439_v9 = vld [vmem:[%s13878_s25 + $0x1028] sm:$0xf0] }
 0x399   : > { %v13057_v14 = vld [vmem:[%s13878_s25 + $0x120c] sm:$0xf]  ;;  %v10442_v33 = vor.u32 %v12993_v41, %v10439_v9  ;;  %7260 = vmatpush.bf16.msra.mxu3 %v11242_v32  ;;  %v7016_v32 = vpop.f32.mrf.mxu0 }
 0x39a   : > { %v10695_v15 = vld [vmem:[%s13878_s25 + $0x1228] sm:$0xf0] }
 0x39b   : > { %v13121_v16 = vld [vmem:[%s13878_s25 + $0x140c] sm:$0xf]  ;;  %v10698_v52 = vor.u32 %v13057_v14, %v10695_v15  ;;  %7222 = vmatpush.bf16.msra.mxu0 %v10442_v33 }
 0x39c   : > { %v10951_v19 = vld [vmem:[%s13878_s25 + $0x1428] sm:$0xf0] }
 0x39d   : > { %v13185_v20 = vld [vmem:[%s13878_s25 + $0x160c] sm:$0xf]  ;;  %v10954_v46 = vor.u32 %v13121_v16, %v10951_v19  ;;  %7235 = vmatpush.bf16.msra.mxu1 %v10698_v52 }
 0x39e   : > { %v11207_v21 = vld [vmem:[%s13878_s25 + $0x1628] sm:$0xf0]  ;;  %7223 = vmatmul.bf16.vlgmr.msra.gmra.mxu0 %v13583_v60 }
 0x39f   : > { %v13305_v48 = vld [vmem:[%s13878_s25 + $0x19cc] sm:$0xf]  ;;  %v11210_v39 = vor.u32 %v13185_v20, %v11207_v21  ;;  %7248 = vmatpush.bf16.msra.mxu2 %v10954_v46  ;;  %v7017_v21 = vadd.f32 %v7016_v32, %v14935_v57 }
 0x3a0   : > { %v11687_v51 = vld [vmem:[%s13878_s25 + $0x19e8] sm:$0xf0]  ;;  %7236 = vmatmul.bf16.vlgmr.msra.gmra.mxu1 %v13585_v13 }
 0x3a1   : > { %v13369_v29 = vld [vmem:[%s13878_s25 + $0x1bcc] sm:$0xf]  ;;  %v11690_v40 = vor.u32 %v13305_v48, %v11687_v51  ;;  %7261 = vmatpush.bf16.msra.mxu3 %v11210_v39  ;;  %v7029_v48 = vpop.f32.mrf.mxu1 }
 0x3a2   : > { %v11943_v18 = vld [vmem:[%s13878_s25 + $0x1be8] sm:$0xf0]  ;;  %v7030_v52 = vadd.f32 %v7029_v48, %v7017_v21  ;;  %v8621_v48 = vld [vmem:[%s13878_s25 + $0x1d0] sm:$0xf] }
 0x3a3   : > { %v13433_v34 = vld [vmem:[%s13878_s25 + $0x1dcc] sm:$0xf]  ;;  %v11946_v61 = vor.u32 %v13369_v29, %v11943_v18  ;;  %7267 = vmatpush.bf16.msrb.mxu0 %v11690_v40 }
 0x3a4   : > { %v12199_v35 = vld [vmem:[%s13878_s25 + $0x1de8] sm:$0xf0]  ;;  %7262 = vmatmul.bf16.vlgmr.msra.gmra.mxu3 %v13586_v4 }
 0x3a5   : > { %v13497_v37 = vld [vmem:[%s13878_s25 + $0x1fcc] sm:$0xf]  ;;  %v12202_v42 = vor.u32 %v13433_v34, %v12199_v35  ;;  %7280 = vmatpush.bf16.msrb.mxu1 %v11946_v61 }
 0x3a6   : > { %v12455_v38 = vld [vmem:[%s13878_s25 + $0x1fe8] sm:$0xf0] }
 0x3a7   : > { %v13297_v43 = vld [vmem:[%s13878_s25 + $0x198c] sm:$0xf]  ;;  %v12458_v44 = vor.u32 %v13497_v37, %v12455_v38  ;;  %7293 = vmatpush.bf16.msrb.mxu2 %v12202_v42 }
 0x3a8   : > { %v11655_v45 = vld [vmem:[%s13878_s25 + $0x19a8] sm:$0xf0] }
 0x3a9   : > { %v13361_v36 = vld [vmem:[%s13878_s25 + $0x1b8c] sm:$0xf]  ;;  %v11658_v54 = vor.u32 %v13297_v43, %v11655_v45  ;;  %7306 = vmatpush.bf16.msrb.mxu3 %v12458_v44 }
 0x3aa   : > { %v11911_v6 = vld [vmem:[%s13878_s25 + $0x1ba8] sm:$0xf0] }
 0x3ab   : > { %v13425_v47 = vld [vmem:[%s13878_s25 + $0x1d8c] sm:$0xf]  ;;  %v11914_v8 = vor.u32 %v13361_v36, %v11911_v6  ;;  %7268 = vmatpush.bf16.msrb.mxu0 %v11658_v54  ;;  %v7042_v6 = vpop.f32.mrf.mxu2  ;;  %v7055_v54 = vpop.f32.mrf.mxu3 }
 0x3ac   : > { %v12167_v49 = vld [vmem:[%s13878_s25 + $0x1da8] sm:$0xf0] }
 0x3ad   : > { %v13489_v50 = vld [vmem:[%s13878_s25 + $0x1f8c] sm:$0xf]  ;;  %v12170_v55 = vor.u32 %v13425_v47, %v12167_v49  ;;  %7281 = vmatpush.bf16.msrb.mxu1 %v11914_v8 }
 0x3ae   : > { %v12423_v53 = vld [vmem:[%s13878_s25 + $0x1fa8] sm:$0xf0] }
 0x3af   : > { %v13289_v56 = vld [vmem:[%s13878_s25 + $0x194c] sm:$0xf]  ;;  %v12426_v62 = vor.u32 %v13489_v50, %v12423_v53  ;;  %7294 = vmatpush.bf16.msrb.mxu2 %v12170_v55  ;;  %v7043_v53 = vadd.f32 %v7042_v6, %v7030_v52  ;;  %v12670_v52 = vld [vmem:[%s13878_s25 + $0x5ec] sm:$0xf0] }
 0x3b0   : > { %v11623_v58 = vld [vmem:[%s13878_s25 + $0x1968] sm:$0xf0]  ;;  %v12598_v6 = vld [vmem:[%s13878_s25 + $0x3ac] sm:$0xf0] }
 0x3b1   : > { %v13353_v59 = vld [vmem:[%s13878_s25 + $0x1b4c] sm:$0xf]  ;;  %v11626_v5 = vor.u32 %v13289_v56, %v11623_v58  ;;  %7307 = vmatpush.bf16.msrb.mxu3 %v12426_v62  ;;  %v7018_v56 = vpop.f32.mrf.mxu0  ;;  %v15002_v60 = vadd.f32 %v7055_v54, %v7043_v53  ;;  %v12726_v53 = vld [vmem:[%s13878_s25 + $0x7ac] sm:$0xf0] }
 0x3b2   : > { %v11879_v63 = vld [vmem:[%s13878_s25 + $0x1b68] sm:$0xf0]  ;;  %v8557_v56 = vld [vmem:[%s13878_s25 + $0x150] sm:$0xf] }
 0x3b3   : > { %v13417_v12 = vld [vmem:[%s13878_s25 + $0x1d4c] sm:$0xf]  ;;  %v11882_v7 = vor.u32 %v13353_v59, %v11879_v63  ;;  %7269 = vmatpush.bf16.msrb.mxu0 %v11626_v5  ;;  %v7031_v59 = vpop.f32.mrf.mxu1 }
 0x3b4   : > { %v12135_v0 = vld [vmem:[%s13878_s25 + $0x1d68] sm:$0xf0]  ;;  %v8813_v59 = vld [vmem:[%s13878_s25 + $0x350] sm:$0xf] }
 0x3b5   : > { %v13584_v1 = vld.sshfl [vmem:[#allocation1 + $0x10] sm:$0xff pattern:$0x73625140]  ;;  %v12138_v41 = vor.u32 %v13417_v12, %v12135_v0  ;;  %7282 = vmatpush.bf16.msrb.mxu1 %v11882_v7 }
 0x3b6   : > { %7249 = vmatmul.bf16.vlgmr.msra.gmra.mxu2 %v13584_v1  ;;  %v13481_v2 = vld [vmem:[%s13878_s25 + $0x1f4c] sm:$0xf] }
 0x3b7   : > { %v12391_v3 = vld [vmem:[%s13878_s25 + $0x1f68] sm:$0xf0]  ;;  %7295 = vmatpush.bf16.msrb.mxu2 %v12138_v41 }
 0x3b8   : > { %v13281_v9 = vld [vmem:[%s13878_s25 + $0x190c] sm:$0xf]  ;;  %v12394_v14 = vor.u32 %v13481_v2, %v12391_v3 }
 0x3b9   : > { %v11591_v10 = vld [vmem:[%s13878_s25 + $0x1928] sm:$0xf0] }
 0x3ba   : > { %v13345_v11 = vld [vmem:[%s13878_s25 + $0x1b0c] sm:$0xf]  ;;  %v11594_v26 = vor.u32 %v13281_v9, %v11591_v10  ;;  %7308 = vmatpush.bf16.msrb.mxu3 %v12394_v14 }
 0x3bb   : > { %v11847_v15 = vld [vmem:[%s13878_s25 + $0x1b28] sm:$0xf0] }
 0x3bc   : > { %v13409_v16 = vld [vmem:[%s13878_s25 + $0x1d0c] sm:$0xf]  ;;  %v11850_v51 = vor.u32 %v13345_v11, %v11847_v15  ;;  %7270 = vmatpush.bf16.msrb.mxu0 %v11594_v26  ;;  %v7044_v26 = vpop.f32.mrf.mxu2 }
 0x3bd   : > { %v12103_v17 = vld [vmem:[%s13878_s25 + $0x1d28] sm:$0xf0] }
 0x3be   : > { %v13473_v19 = vld [vmem:[%s13878_s25 + $0x1f0c] sm:$0xf]  ;;  %v12106_v29 = vor.u32 %v13409_v16, %v12103_v17  ;;  %7283 = vmatpush.bf16.msrb.mxu1 %v11850_v51  ;;  %v12542_v51 = vld [vmem:[%s13878_s25 + $0x1ec] sm:$0xf0] }
 0x3bf   : > { %v12359_v20 = vld [vmem:[%s13878_s25 + $0x1f28] sm:$0xf0] }
 0x3c0   : > { %v13273_v33 = vld [vmem:[%s13878_s25 + $0x18cc] sm:$0xf]  ;;  %v12362_v35 = vor.u32 %v13473_v19, %v12359_v20  ;;  %7296 = vmatpush.bf16.msrb.mxu2 %v12106_v29  ;;  %v8877_v29 = vld [vmem:[%s13878_s25 + $0x3d0] sm:$0xf] }
 0x3c1   : > { %v11559_v18 = vld [vmem:[%s13878_s25 + $0x18e8] sm:$0xf0] }
 0x3c2   : > { %v13337_v34 = vld [vmem:[%s13878_s25 + $0x1acc] sm:$0xf]  ;;  %v11562_v40 = vor.u32 %v13273_v33, %v11559_v18  ;;  %7309 = vmatpush.bf16.msrb.mxu3 %v12362_v35  ;;  %v7057_v33 = vpop.f32.mrf.mxu3  ;;  %v9133_v35 = vld [vmem:[%s13878_s25 + $0x5d0] sm:$0xf] }
 0x3c3   : > { %v11815_v46 = vld [vmem:[%s13878_s25 + $0x1ae8] sm:$0xf0] }
 0x3c4   : > { %v13401_v37 = vld [vmem:[%s13878_s25 + $0x1ccc] sm:$0xf]  ;;  %v11818_v61 = vor.u32 %v13337_v34, %v11815_v46  ;;  %7271 = vmatpush.bf16.msrb.mxu0 %v11562_v40  ;;  %v12606_v34 = vld [vmem:[%s13878_s25 + $0x3ec] sm:$0xf0]  ;;  %v8622_v40 = vor.u32 %v12542_v51, %v8621_v48  ;;  %v7081_v51 = vpop.f32.mrf.mxu1 }
 0x3c5   : > { %v12071_v57 = vld [vmem:[%s13878_s25 + $0x1ce8] sm:$0xf0] }
 0x3c6   : > { %v13465_v38 = vld [vmem:[%s13878_s25 + $0x1ecc] sm:$0xf]  ;;  %v12074_v42 = vor.u32 %v13401_v37, %v12071_v57  ;;  %7284 = vmatpush.bf16.msrb.mxu1 %v11818_v61  ;;  %v9389_v57 = vld [vmem:[%s13878_s25 + $0x7d0] sm:$0xf]  ;;  %v8878_v61 = vor.u32 %v12606_v34, %v8877_v29 }
 0x3c7   : > { %v12327_v39 = vld [vmem:[%s13878_s25 + $0x1ee8] sm:$0xf0]  ;;  %v12510_v34 = vld [vmem:[%s13878_s25 + $0xec] sm:$0xf0] }
 0x3c8   : > { %v13265_v43 = vld [vmem:[%s13878_s25 + $0x188c] sm:$0xf]  ;;  %v12330_v44 = vor.u32 %v13465_v38, %v12327_v39  ;;  %7297 = vmatpush.bf16.msrb.mxu2 %v12074_v42  ;;  %v12734_v38 = vld [vmem:[%s13878_s25 + $0x7ec] sm:$0xf0]  ;;  %v9134_v42 = vor.u32 %v12670_v52, %v9133_v35 }
 0x3c9   : > { %v11527_v45 = vld [vmem:[%s13878_s25 + $0x18a8] sm:$0xf0]  ;;  %v8749_v35 = vld [vmem:[%s13878_s25 + $0x2d0] sm:$0xf] }
 0x3ca   : > { %v13329_v36 = vld [vmem:[%s13878_s25 + $0x1a8c] sm:$0xf]  ;;  %v11530_v58 = vor.u32 %v13265_v43, %v11527_v45  ;;  %7310 = vmatpush.bf16.msrb.mxu3 %v12330_v44  ;;  %v8589_v43 = vld [vmem:[%s13878_s25 + $0x190] sm:$0xf]  ;;  %v9390_v44 = vor.u32 %v12734_v38, %v9389_v57 }
 0x3cb   : > { %v11783_v47 = vld [vmem:[%s13878_s25 + $0x1aa8] sm:$0xf0]  ;;  %v12534_v45 = vld [vmem:[%s13878_s25 + $0x1ac] sm:$0xf0] }
 0x3cc   : > { %v13393_v49 = vld [vmem:[%s13878_s25 + $0x1c8c] sm:$0xf]  ;;  %v11786_v62 = vor.u32 %v13329_v36, %v11783_v47  ;;  %7272 = vmatpush.bf16.msrb.mxu0 %v11530_v58  ;;  %v8845_v36 = vld [vmem:[%s13878_s25 + $0x390] sm:$0xf]  ;;  %v8590_v54 = vor.u32 %v12534_v45, %v8589_v43 }
 0x3cd   : > { %v12039_v50 = vld [vmem:[%s13878_s25 + $0x1ca8] sm:$0xf0]  ;;  %v9101_v47 = vld [vmem:[%s13878_s25 + $0x590] sm:$0xf] }
 0x3ce   : > { %v13457_v8 = vld [vmem:[%s13878_s25 + $0x1e8c] sm:$0xf]  ;;  %v12042_v63 = vor.u32 %v13393_v49, %v12039_v50  ;;  %7285 = vmatpush.bf16.msrb.mxu1 %v11786_v62  ;;  %v12662_v49 = vld [vmem:[%s13878_s25 + $0x5ac] sm:$0xf0] }
 0x3cf   : > { %v12295_v55 = vld [vmem:[%s13878_s25 + $0x1ea8] sm:$0xf0]  ;;  %v9357_v50 = vld [vmem:[%s13878_s25 + $0x790] sm:$0xf] }
 0x3d0   : > { %v13257_v12 = vld [vmem:[%s13878_s25 + $0x184c] sm:$0xf]  ;;  %v12298_v13 = vor.u32 %v13457_v8, %v12295_v55  ;;  %7298 = vmatpush.bf16.msrb.mxu2 %v12042_v63  ;;  %v8846_v8 = vor.u32 %v12598_v6, %v8845_v36  ;;  %v9102_v55 = vor.u32 %v12662_v49, %v9101_v47  ;;  %v12526_v58 = vld [vmem:[%s13878_s25 + $0x16c] sm:$0xf0]  ;;  %v9358_v63 = vor.u32 %v12726_v53, %v9357_v50  ;;  %v7094_v6 = vpop.f32.mrf.mxu2 }
 0x3d1   : > { %v11495_v0 = vld [vmem:[%s13878_s25 + $0x1868] sm:$0xf0]  ;;  %v13587_v62 = vld.sshfl [vmem:[#allocation1 + $0x20] sm:$0xff pattern:$0x73625140] }
 0x3d2   : > { %v13321_v1 = vld [vmem:[%s13878_s25 + $0x1a4c] sm:$0xf]  ;;  %v11498_v41 = vor.u32 %v13257_v12, %v11495_v0  ;;  %7311 = vmatpush.bf16.msrb.mxu3 %v12298_v13  ;;  %v12590_v12 = vld [vmem:[%s13878_s25 + $0x36c] sm:$0xf0] }
 0x3d3   : > { %v11751_v2 = vld [vmem:[%s13878_s25 + $0x1a68] sm:$0xf0]  ;;  %v9069_v0 = vld [vmem:[%s13878_s25 + $0x550] sm:$0xf] }
 0x3d4   : > { %v13385_v3 = vld [vmem:[%s13878_s25 + $0x1c4c] sm:$0xf]  ;;  %v11754_v11 = vor.u32 %v13321_v1, %v11751_v2  ;;  %7273 = vmatpush.bf16.msrb.mxu0 %v11498_v41  ;;  %v12654_v1 = vld [vmem:[%s13878_s25 + $0x56c] sm:$0xf0]  ;;  %v8814_v41 = vor.u32 %v12590_v12, %v8813_v59  ;;  %v7083_v59 = vpop.f32.mrf.mxu1 }
 0x3d5   : > { %v12007_v4 = vld [vmem:[%s13878_s25 + $0x1c68] sm:$0xf0]  ;;  %v13589_v2 = vld.sshfl [vmem:[#allocation1 + $0x28] sm:$0xff pattern:$0x73625140] }
 0x3d6   : > { %v13449_v5 = vld [vmem:[%s13878_s25 + $0x1e4c] sm:$0xf]  ;;  %v12010_v14 = vor.u32 %v13385_v3, %v12007_v4  ;;  %7286 = vmatpush.bf16.msrb.mxu1 %v11754_v11  ;;  %v9325_v3 = vld [vmem:[%s13878_s25 + $0x750] sm:$0xf] }
 0x3d7   : > { %v12263_v7 = vld [vmem:[%s13878_s25 + $0x1e68] sm:$0xf0]  ;;  %v12718_v4 = vld [vmem:[%s13878_s25 + $0x76c] sm:$0xf0] }
 0x3d8   : > { %v13249_v9 = vld [vmem:[%s13878_s25 + $0x180c] sm:$0xf]  ;;  %v12266_v32 = vor.u32 %v13449_v5, %v12263_v7  ;;  %7299 = vmatpush.bf16.msrb.mxu2 %v12010_v14  ;;  %v13590_v5 = vld.sshfl [vmem:[#allocation1 + $0x38] sm:$0xff pattern:$0x73625140]  ;;  %v8558_v7 = vor.u32 %v12526_v58, %v8557_v56 }
 0x3d9   : > { %v11463_v10 = vld [vmem:[%s13878_s25 + $0x1828] sm:$0xf0]  ;;  %v12518_v11 = vld [vmem:[%s13878_s25 + $0x12c] sm:$0xf0] }
 0x3da   : > { %v13313_v15 = vld [vmem:[%s13878_s25 + $0x1a0c] sm:$0xf]  ;;  %v11466_v18 = vor.u32 %v13249_v9, %v11463_v10  ;;  %7312 = vmatpush.bf16.msrb.mxu3 %v12266_v32  ;;  %v9070_v9 = vor.u32 %v12654_v1, %v9069_v0  ;;  %v8525_v10 = vld [vmem:[%s13878_s25 + $0x110] sm:$0xf] }
 0x3db   : > { %v11719_v16 = vld [vmem:[%s13878_s25 + $0x1a28] sm:$0xf0]  ;;  %v8781_v14 = vld [vmem:[%s13878_s25 + $0x310] sm:$0xf]  ;;  %v8526_v48 = vor.u32 %v12518_v11, %v8525_v10 }
 0x3dc   : > { %v13377_v17 = vld [vmem:[%s13878_s25 + $0x1c0c] sm:$0xf]  ;;  %v11722_v46 = vor.u32 %v13313_v15, %v11719_v16  ;;  %7274 = vmatpush.bf16.msrb.mxu0 %v11466_v18  ;;  %v9326_v15 = vor.u32 %v12718_v4, %v9325_v3  ;;  %v12582_v16 = vld [vmem:[%s13878_s25 + $0x32c] sm:$0xf0] }
 0x3dd   : > { %v11975_v19 = vld [vmem:[%s13878_s25 + $0x1c28] sm:$0xf0]  ;;  %v12646_v32 = vld [vmem:[%s13878_s25 + $0x52c] sm:$0xf0]  ;;  %v8782_v29 = vor.u32 %v12582_v16, %v8781_v14 }
 0x3de   : > { %v13441_v20 = vld [vmem:[%s13878_s25 + $0x1e0c] sm:$0xf]  ;;  %v11978_v37 = vor.u32 %v13377_v17, %v11975_v19  ;;  %7287 = vmatpush.bf16.msrb.mxu1 %v11722_v46  ;;  %v9037_v17 = vld [vmem:[%s13878_s25 + $0x510] sm:$0xf]  ;;  %v7068_v19 = vpop.f32.mrf.mxu0 }
 0x3df   : > { %v12231_v21 = vld [vmem:[%s13878_s25 + $0x1e28] sm:$0xf0]  ;;  %7275 = vmatmul.bf16.vlgmr.msrb.gmra.mxu0 %v13587_v62  ;;  %v7069_v26 = vadd.f32 %v7068_v19, %v15002_v60  ;;  %v9038_v33 = vor.u32 %v12646_v32, %v9037_v17  ;;  %v8493_v18 = vld [vmem:[%s13878_s25 + $0xd0] sm:$0xf] }
 0x3e0   : > { %v12234_v39 = vor.u32 %v13441_v20, %v12231_v21  ;;  %7300 = vmatpush.bf16.msrb.mxu2 %v11978_v37  ;;  %7319 = vmatpush.bf16.msra.mxu0 %v8622_v40  ;;  %v13588_v13 = vld.sshfl [vmem:[#allocation1 + $0x30] sm:$0xff pattern:$0x73625140]  ;;  %v9293_v20 = vld [vmem:[%s13878_s25 + $0x710] sm:$0xf]  ;;  %v8494_v40 = vor.u32 %v12510_v34, %v8493_v18 }
 0x3e1   : > { %7288 = vmatmul.bf16.vlgmr.msrb.gmra.mxu1 %v13589_v2  ;;  %v12710_v21 = vld [vmem:[%s13878_s25 + $0x72c] sm:$0xf0]  ;;  %v7082_v46 = vadd.f32 %v7081_v51, %v7069_v26 }
 0x3e2   : > { %7313 = vmatpush.bf16.msrb.mxu3 %v12234_v39  ;;  %7332 = vmatpush.bf16.msra.mxu1 %v8878_v61  ;;  %v9294_v52 = vor.u32 %v12710_v21, %v9293_v20  ;;  %v12574_v37 = vld [vmem:[%s13878_s25 + $0x2ec] sm:$0xf0] }
 0x3e3   : > { %7301 = vmatmul.bf16.vlgmr.msrb.gmra.mxu2 %v13588_v13  ;;  %v9005_v57 = vld [vmem:[%s13878_s25 + $0x4d0] sm:$0xf]  ;;  %v8750_v61 = vor.u32 %v12574_v37, %v8749_v35  ;;  %v7095_v53 = vadd.f32 %v7094_v6, %v7082_v46 }
 0x3e4   : > { %7345 = vmatpush.bf16.msra.mxu2 %v9134_v42  ;;  %7320 = vmatpush.bf16.msra.mxu0 %v8590_v54  ;;  %v12638_v60 = vld [vmem:[%s13878_s25 + $0x4ec] sm:$0xf0]  ;;  %v7107_v54 = vpop.f32.mrf.mxu3 }
 0x3e5   : > { %7314 = vmatmul.bf16.vlgmr.msrb.gmra.mxu3 %v13590_v5  ;;  %v9261_v38 = vld [vmem:[%s13878_s25 + $0x6d0] sm:$0xf]  ;;  %v9006_v42 = vor.u32 %v12638_v60, %v9005_v57  ;;  %v15069_v62 = vadd.f32 %v7107_v54, %v7095_v53 }
 0x3e6   : > { %7358 = vmatpush.bf16.msra.mxu3 %v9390_v44  ;;  %7333 = vmatpush.bf16.msra.mxu1 %v8846_v8  ;;  %v12702_v39 = vld [vmem:[%s13878_s25 + $0x6ec] sm:$0xf0]  ;;  %v7070_v56 = vpop.f32.mrf.mxu0 }
 0x3e7   : > { %v8461_v43 = vld [vmem:[%s13878_s25 + $0x90] sm:$0xf]  ;;  %v9262_v44 = vor.u32 %v12702_v39, %v9261_v38 }
 0x3e8   : > { %7346 = vmatpush.bf16.msra.mxu2 %v9102_v55  ;;  %7321 = vmatpush.bf16.msra.mxu0 %v8558_v7  ;;  %v12502_v45 = vld [vmem:[%s13878_s25 + $0xac] sm:$0xf0] }
 0x3e9   : > { %v8717_v36 = vld [vmem:[%s13878_s25 + $0x290] sm:$0xf]  ;;  %v8462_v58 = vor.u32 %v12502_v45, %v8461_v43 }
 0x3ea   : > { %7359 = vmatpush.bf16.msra.mxu3 %v9358_v63  ;;  %7334 = vmatpush.bf16.msra.mxu1 %v8814_v41  ;;  %v12566_v47 = vld [vmem:[%s13878_s25 + $0x2ac] sm:$0xf0] }
 0x3eb   : > { %v8973_v49 = vld [vmem:[%s13878_s25 + $0x490] sm:$0xf]  ;;  %v8718_v63 = vor.u32 %v12566_v47, %v8717_v36 }
 0x3ec   : > { %7347 = vmatpush.bf16.msra.mxu2 %v9070_v9  ;;  %7322 = vmatpush.bf16.msra.mxu0 %v8526_v48  ;;  %v12630_v50 = vld [vmem:[%s13878_s25 + $0x4ac] sm:$0xf0]  ;;  %v7096_v48 = vpop.f32.mrf.mxu2  ;;  %v7109_v18 = vpop.f32.mrf.mxu3 }
 0x3ed   : > { %v9229_v8 = vld [vmem:[%s13878_s25 + $0x690] sm:$0xf]  ;;  %v8974_v12 = vor.u32 %v12630_v50, %v8973_v49 }
 0x3ee   : > { %7360 = vmatpush.bf16.msra.mxu3 %v9326_v15  ;;  %7335 = vmatpush.bf16.msra.mxu1 %v8782_v29  ;;  %v12694_v55 = vld [vmem:[%s13878_s25 + $0x6ac] sm:$0xf0] }
 0x3ef   : > { %v8429_v0 = vld [vmem:[%s13878_s25 + $0x50] sm:$0xf]  ;;  %v9230_v2 = vor.u32 %v12694_v55, %v9229_v8 }
 0x3f0   : > { %7348 = vmatpush.bf16.msra.mxu2 %v9038_v33  ;;  %7323 = vmatpush.bf16.msra.mxu0 %v8494_v40  ;;  %v12494_v1 = vld [vmem:[%s13878_s25 + $0x6c] sm:$0xf0] }
 0x3f1   : > { %v8685_v13 = vld [vmem:[%s13878_s25 + $0x250] sm:$0xf]  ;;  %v8430_v9 = vor.u32 %v12494_v1, %v8429_v0 }
 0x3f2   : > { %7361 = vmatpush.bf16.msra.mxu3 %v9294_v52  ;;  %7336 = vmatpush.bf16.msra.mxu1 %v8750_v61  ;;  %v12558_v3 = vld [vmem:[%s13878_s25 + $0x26c] sm:$0xf0] }
 0x3f3   : > { %v8941_v4 = vld [vmem:[%s13878_s25 + $0x450] sm:$0xf]  ;;  %v8686_v14 = vor.u32 %v12558_v3, %v8685_v13 }
 0x3f4   : > { %7349 = vmatpush.bf16.msra.mxu2 %v9006_v42  ;;  %v12622_v5 = vld [vmem:[%s13878_s25 + $0x46c] sm:$0xf0]  ;;  %7324 = vmatpush.bf16.msra.mxu0 %v8462_v58 }
 0x3f5   : > { %v9197_v7 = vld [vmem:[%s13878_s25 + $0x650] sm:$0xf]  ;;  %v8942_v15 = vor.u32 %v12622_v5, %v8941_v4 }
 0x3f6   : > { %7362 = vmatpush.bf16.msra.mxu3 %v9262_v44  ;;  %v12686_v41 = vld [vmem:[%s13878_s25 + $0x66c] sm:$0xf0]  ;;  %7337 = vmatpush.bf16.msra.mxu1 %v8718_v63 }
 0x3f7   : > { %v8397_v10 = vld [vmem:[%s13878_s25 + $0x10] sm:$0xf]  ;;  %v9198_v19 = vor.u32 %v12686_v41, %v9197_v7 }
 0x3f8   : > { %v12486_v11 = vld [vmem:[%s13878_s25 + $0x2c] sm:$0xf0]  ;;  %7350 = vmatpush.bf16.msra.mxu2 %v8974_v12  ;;  %7325 = vmatpush.bf16.msra.mxu0 %v8430_v9 }
 0x3f9   : > { %v8653_v16 = vld [vmem:[%s13878_s25 + $0x210] sm:$0xf]  ;;  %v8398_v34 = vor.u32 %v12486_v11, %v8397_v10 }
 0x3fa   : > { %v12550_v17 = vld [vmem:[%s13878_s25 + $0x22c] sm:$0xf0]  ;;  %7363 = vmatpush.bf16.msra.mxu3 %v9230_v2  ;;  %7338 = vmatpush.bf16.msra.mxu1 %v8686_v14 }
 0x3fb   : > { %v8909_v32 = vld [vmem:[%s13878_s25 + $0x410] sm:$0xf]  ;;  %v8654_v37 = vor.u32 %v12550_v17, %v8653_v16 }
 0x3fc   : > { %v12614_v20 = vld [vmem:[%s13878_s25 + $0x42c] sm:$0xf0]  ;;  %7351 = vmatpush.bf16.msra.mxu2 %v8942_v15  ;;  %7326 = vmatpush.bf16.msra.mxu0 %v8398_v34 }
 0x3fd   : > { %v9165_v21 = vld [vmem:[%s13878_s25 + $0x610] sm:$0xf]  ;;  %v8910_v57 = vor.u32 %v12614_v20, %v8909_v32 }
 0x3fe   : > { %v12678_v26 = vld [vmem:[%s13878_s25 + $0x62c] sm:$0xf0]  ;;  %7364 = vmatpush.bf16.msra.mxu3 %v9198_v19  ;;  %7339 = vmatpush.bf16.msra.mxu1 %v8654_v37  ;;  %v7120_v19 = vpop.f32.mrf.mxu0 }
 0x3ff   : > { %v9645_v51 = vld [vmem:[%s13878_s25 + $0x9d0] sm:$0xf]  ;;  %v9166_v39 = vor.u32 %v12678_v26, %v9165_v21  ;;  %7327 = vmatmul.bf16.vlgmr.msra.gmra.mxu0 %v14002_v25 }
 0x400   : > { %v12798_v29 = vld [vmem:[%s13878_s25 + $0x9ec] sm:$0xf0]  ;;  %7352 = vmatpush.bf16.msra.mxu2 %v8910_v57 }
 0x401   : > { %v9901_v33 = vld [vmem:[%s13878_s25 + $0xbd0] sm:$0xf]  ;;  %v9646_v40 = vor.u32 %v12798_v29, %v9645_v51  ;;  %7340 = vmatmul.bf16.vlgmr.msra.gmra.mxu1 %v14007_v28  ;;  %v7133_v29 = vpop.f32.mrf.mxu1 }
 0x402   : > { %v12862_v35 = vld [vmem:[%s13878_s25 + $0xbec] sm:$0xf0]  ;;  %7365 = vmatpush.bf16.msra.mxu3 %v9166_v39 }
 0x403   : > { %v10157_v52 = vld [vmem:[%s13878_s25 + $0xdd0] sm:$0xf]  ;;  %v9902_v61 = vor.u32 %v12862_v35, %v9901_v33  ;;  %7371 = vmatpush.bf16.msrb.mxu0 %v9646_v40  ;;  %7353 = vmatmul.bf16.vlgmr.msra.gmra.mxu2 %v14000_v24 }
 0x404   : > { %v12926_v46 = vld [vmem:[%s13878_s25 + $0xdec] sm:$0xf0] }
 0x405   : > { %v10413_v60 = vld [vmem:[%s13878_s25 + $0xfd0] sm:$0xf]  ;;  %v10158_v42 = vor.u32 %v12926_v46, %v10157_v52  ;;  %7384 = vmatpush.bf16.msrb.mxu1 %v9902_v61  ;;  %7366 = vmatmul.bf16.vlgmr.msra.gmra.mxu3 %v14005_v27  ;;  %v7134_v52 = vadd.f32 %v7133_v29, %v7120_v19 }
 0x406   : > { %v12990_v38 = vld [vmem:[%s13878_s25 + $0xfec] sm:$0xf0] }
 0x407   : > { %v9613_v43 = vld [vmem:[%s13878_s25 + $0x990] sm:$0xf]  ;;  %v10414_v44 = vor.u32 %v12990_v38, %v10413_v60  ;;  %7397 = vmatpush.bf16.msrb.mxu2 %v10158_v42  ;;  %v7146_v42 = vpop.f32.mrf.mxu2 }
 0x408   : > { %v12790_v45 = vld [vmem:[%s13878_s25 + $0x9ac] sm:$0xf0] }
 0x409   : > { %v9869_v36 = vld [vmem:[%s13878_s25 + $0xb90] sm:$0xf]  ;;  %v9614_v54 = vor.u32 %v12790_v45, %v9613_v43  ;;  %7410 = vmatpush.bf16.msrb.mxu3 %v10414_v44 }
 0x40a   : > { %v12854_v6 = vld [vmem:[%s13878_s25 + $0xbac] sm:$0xf0] }
 0x40b   : > { %v10125_v47 = vld [vmem:[%s13878_s25 + $0xd90] sm:$0xf]  ;;  %v9870_v8 = vor.u32 %v12854_v6, %v9869_v36  ;;  %7372 = vmatpush.bf16.msrb.mxu0 %v9614_v54  ;;  %v7147_v6 = vadd.f32 %v7146_v42, %v7134_v52 }
 0x40c   : > { %v12918_v49 = vld [vmem:[%s13878_s25 + $0xdac] sm:$0xf0] }
 0x40d   : > { %v10381_v50 = vld [vmem:[%s13878_s25 + $0xf90] sm:$0xf]  ;;  %v10126_v55 = vor.u32 %v12918_v49, %v10125_v47  ;;  %7385 = vmatpush.bf16.msrb.mxu1 %v9870_v8  ;;  %v7159_v47 = vpop.f32.mrf.mxu3  ;;  %v7122_v8 = vpop.f32.mrf.mxu0 }
 0x40e   : > { %v12982_v53 = vld [vmem:[%s13878_s25 + $0xfac] sm:$0xf0]  ;;  %v15139_v54 = vadd.f32 %v7159_v47, %v7147_v6 }
 0x40f   : > { %v9581_v56 = vld [vmem:[%s13878_s25 + $0x950] sm:$0xf]  ;;  %v10382_v63 = vor.u32 %v12982_v53, %v10381_v50  ;;  %7398 = vmatpush.bf16.msrb.mxu2 %v10126_v55 }
 0x410   : > { %v12782_v58 = vld [vmem:[%s13878_s25 + $0x96c] sm:$0xf0] }
 0x411   : > { %v9837_v59 = vld [vmem:[%s13878_s25 + $0xb50] sm:$0xf]  ;;  %v9582_v3 = vor.u32 %v12782_v58, %v9581_v56  ;;  %7411 = vmatpush.bf16.msrb.mxu3 %v10382_v63 }
 0x412   : > { %v12846_v12 = vld [vmem:[%s13878_s25 + $0xb6c] sm:$0xf0] }
 0x413   : > { %v10093_v0 = vld [vmem:[%s13878_s25 + $0xd50] sm:$0xf]  ;;  %v9838_v4 = vor.u32 %v12846_v12, %v9837_v59  ;;  %7373 = vmatpush.bf16.msrb.mxu0 %v9582_v3  ;;  %v7135_v12 = vpop.f32.mrf.mxu1 }
 0x414   : > { %v12910_v1 = vld [vmem:[%s13878_s25 + $0xd6c] sm:$0xf0] }
 0x415   : > { %v10349_v13 = vld [vmem:[%s13878_s25 + $0xf50] sm:$0xf]  ;;  %v10094_v5 = vor.u32 %v12910_v1, %v10093_v0  ;;  %7386 = vmatpush.bf16.msrb.mxu1 %v9838_v4 }
 0x416   : > { %v12974_v2 = vld [vmem:[%s13878_s25 + $0xf6c] sm:$0xf0] }
 0x417   : > { %v9549_v7 = vld [vmem:[%s13878_s25 + $0x910] sm:$0xf]  ;;  %v10350_v10 = vor.u32 %v12974_v2, %v10349_v13  ;;  %7399 = vmatpush.bf16.msrb.mxu2 %v10094_v5 }
 0x418   : > { %v12774_v41 = vld [vmem:[%s13878_s25 + $0x92c] sm:$0xf0] }
 0x419   : > { %v9805_v9 = vld [vmem:[%s13878_s25 + $0xb10] sm:$0xf]  ;;  %v9550_v32 = vor.u32 %v12774_v41, %v9549_v7  ;;  %7412 = vmatpush.bf16.msrb.mxu3 %v10350_v10 }
 0x41a   : > { %v12838_v11 = vld [vmem:[%s13878_s25 + $0xb2c] sm:$0xf0] }
 0x41b   : > { %v10061_v14 = vld [vmem:[%s13878_s25 + $0xd10] sm:$0xf]  ;;  %v9806_v20 = vor.u32 %v12838_v11, %v9805_v9  ;;  %7374 = vmatpush.bf16.msrb.mxu0 %v9550_v32 }
 0x41c   : > { %v12902_v15 = vld [vmem:[%s13878_s25 + $0xd2c] sm:$0xf0] }
 0x41d   : > { %v10317_v16 = vld [vmem:[%s13878_s25 + $0xf10] sm:$0xf]  ;;  %v10062_v21 = vor.u32 %v12902_v15, %v10061_v14  ;;  %7387 = vmatpush.bf16.msrb.mxu1 %v9806_v20 }
 0x41e   : > { %v12966_v17 = vld [vmem:[%s13878_s25 + $0xf2c] sm:$0xf0] }
 0x41f   : > { %v9517_v26 = vld [vmem:[%s13878_s25 + $0x8d0] sm:$0xf]  ;;  %v10318_v33 = vor.u32 %v12966_v17, %v10317_v16  ;;  %7400 = vmatpush.bf16.msrb.mxu2 %v10062_v21  ;;  %v7148_v16 = vpop.f32.mrf.mxu2  ;;  %v7161_v21 = vpop.f32.mrf.mxu3 }
 0x420   : > { %v12766_v48 = vld [vmem:[%s13878_s25 + $0x8ec] sm:$0xf0] }
 0x421   : > { %v9773_v51 = vld [vmem:[%s13878_s25 + $0xad0] sm:$0xf]  ;;  %v9518_v57 = vor.u32 %v12766_v48, %v9517_v26  ;;  %7413 = vmatpush.bf16.msrb.mxu3 %v10318_v33 }
 0x422   : > { %v12830_v18 = vld [vmem:[%s13878_s25 + $0xaec] sm:$0xf0] }
 0x423   : > { %v10029_v34 = vld [vmem:[%s13878_s25 + $0xcd0] sm:$0xf]  ;;  %v9774_v60 = vor.u32 %v12830_v18, %v9773_v51  ;;  %7375 = vmatpush.bf16.msrb.mxu0 %v9518_v57 }
 0x424   : > { %v12894_v35 = vld [vmem:[%s13878_s25 + $0xcec] sm:$0xf0] }
 0x425   : > { %v10285_v46 = vld [vmem:[%s13878_s25 + $0xed0] sm:$0xf]  ;;  %v10030_v38 = vor.u32 %v12894_v35, %v10029_v34  ;;  %7388 = vmatpush.bf16.msrb.mxu1 %v9774_v60 }
 0x426   : > { %v12958_v37 = vld [vmem:[%s13878_s25 + $0xeec] sm:$0xf0] }
 0x427   : > { %v9485_v39 = vld [vmem:[%s13878_s25 + $0x890] sm:$0xf]  ;;  %v10286_v43 = vor.u32 %v12958_v37, %v10285_v46  ;;  %7401 = vmatpush.bf16.msrb.mxu2 %v10030_v38 }
 0x428   : > { %v12758_v40 = vld [vmem:[%s13878_s25 + $0x8ac] sm:$0xf0] }
 0x429   : > { %v9741_v61 = vld [vmem:[%s13878_s25 + $0xa90] sm:$0xf]  ;;  %v9486_v53 = vor.u32 %v12758_v40, %v9485_v39  ;;  %7414 = vmatpush.bf16.msrb.mxu3 %v10286_v43 }
 0x42a   : > { %v12822_v45 = vld [vmem:[%s13878_s25 + $0xaac] sm:$0xf0] }
 0x42b   : > { %v9997_v36 = vld [vmem:[%s13878_s25 + $0xc90] sm:$0xf]  ;;  %v9742_v55 = vor.u32 %v12822_v45, %v9741_v61  ;;  %7376 = vmatpush.bf16.msrb.mxu0 %v9486_v53 }
 0x42c   : > { %v12886_v44 = vld [vmem:[%s13878_s25 + $0xcac] sm:$0xf0] }
 0x42d   : > { %v10253_v49 = vld [vmem:[%s13878_s25 + $0xe90] sm:$0xf]  ;;  %v9998_v56 = vor.u32 %v12886_v44, %v9997_v36  ;;  %7389 = vmatpush.bf16.msrb.mxu1 %v9742_v55 }
 0x42e   : > { %v12950_v50 = vld [vmem:[%s13878_s25 + $0xeac] sm:$0xf0] }
 0x42f   : > { %v9453_v58 = vld [vmem:[%s13878_s25 + $0x850] sm:$0xf]  ;;  %v10254_v0 = vor.u32 %v12950_v50, %v10253_v49  ;;  %7402 = vmatpush.bf16.msrb.mxu2 %v9998_v56 }
 0x430   : > { %v12750_v59 = vld [vmem:[%s13878_s25 + $0x86c] sm:$0xf0] }
 0x431   : > { %v9709_v63 = vld [vmem:[%s13878_s25 + $0xa50] sm:$0xf]  ;;  %v9454_v5 = vor.u32 %v12750_v59, %v9453_v58  ;;  %7415 = vmatpush.bf16.msrb.mxu3 %v10254_v0 }
 0x432   : > { %v12814_v1 = vld [vmem:[%s13878_s25 + $0xa6c] sm:$0xf0] }
 0x433   : > { %v9965_v13 = vld [vmem:[%s13878_s25 + $0xc50] sm:$0xf]  ;;  %v9710_v9 = vor.u32 %v12814_v1, %v9709_v63  ;;  %7377 = vmatpush.bf16.msrb.mxu0 %v9454_v5 }
 0x434   : > { %v12878_v2 = vld [vmem:[%s13878_s25 + $0xc6c] sm:$0xf0] }
 0x435   : > { %v10221_v3 = vld [vmem:[%s13878_s25 + $0xe50] sm:$0xf]  ;;  %v9966_v10 = vor.u32 %v12878_v2, %v9965_v13  ;;  %7390 = vmatpush.bf16.msrb.mxu1 %v9710_v9 }
 0x436   : > { %v12942_v4 = vld [vmem:[%s13878_s25 + $0xe6c] sm:$0xf0] }
 0x437   : > { %v9421_v7 = vld [vmem:[%s13878_s25 + $0x810] sm:$0xf]  ;;  %v10222_v17 = vor.u32 %v12942_v4, %v10221_v3  ;;  %7403 = vmatpush.bf16.msrb.mxu2 %v9966_v10 }
 0x438   : > { %v12742_v41 = vld [vmem:[%s13878_s25 + $0x82c] sm:$0xf0] }
 0x439   : > { %v9677_v11 = vld [vmem:[%s13878_s25 + $0xa10] sm:$0xf]  ;;  %v9422_v29 = vor.u32 %v12742_v41, %v9421_v7  ;;  %7416 = vmatpush.bf16.msrb.mxu3 %v10222_v17  ;;  %v15193_v17 = vpop.f32.mrf.mxu0 }
 0x43a   : > { %v12806_v14 = vld [vmem:[%s13878_s25 + $0xa2c] sm:$0xf0] }
 0x43b   : > { %v9933_v15 = vld [vmem:[%s13878_s25 + $0xc10] sm:$0xf]  ;;  %v9678_v35 = vor.u32 %v12806_v14, %v9677_v11  ;;  %7378 = vmatpush.bf16.msrb.mxu0 %v9422_v29 }
 0x43c   : > { %v12870_v32 = vld [vmem:[%s13878_s25 + $0xc2c] sm:$0xf0] }
 0x43d   : > { %v10189_v19 = vld [vmem:[%s13878_s25 + $0xe10] sm:$0xf]  ;;  %v9934_v52 = vor.u32 %v12870_v32, %v9933_v15  ;;  %7391 = vmatpush.bf16.msrb.mxu1 %v9678_v35 }
 0x43e   : > { %v12934_v20 = vld [vmem:[%s13878_s25 + $0xe2c] sm:$0xf0]  ;;  %7379 = vmatmul.bf16.vlgmr.msrb.gmra.mxu0 %v14054_v23 }
 0x43f   : > { %v10669_v26 = vld [vmem:[%s13878_s25 + $0x11d0] sm:$0xf]  ;;  %v10190_v57 = vor.u32 %v12934_v20, %v10189_v19  ;;  %7404 = vmatpush.bf16.msrb.mxu2 %v9934_v52 }
 0x440   : > { %v13054_v48 = vld [vmem:[%s13878_s25 + $0x11ec] sm:$0xf0]  ;;  %7392 = vmatmul.bf16.vlgmr.msrb.gmra.mxu1 %v14058_v31 }
 0x441   : > { %v10925_v51 = vld [vmem:[%s13878_s25 + $0x13d0] sm:$0xf]  ;;  %v10670_v60 = vor.u32 %v13054_v48, %v10669_v26  ;;  %7417 = vmatpush.bf16.msrb.mxu3 %v10190_v57  ;;  %v15198_v48 = vpop.f32.mrf.mxu1 }
 0x442   : > { %v13118_v33 = vld [vmem:[%s13878_s25 + $0x13ec] sm:$0xf0]  ;;  %7405 = vmatmul.bf16.vlgmr.msrb.gmra.mxu2 %v14052_v22 }
 0x443   : > { %v11181_v18 = vld [vmem:[%s13878_s25 + $0x15d0] sm:$0xf]  ;;  %v10926_v38 = vor.u32 %v13118_v33, %v10925_v51  ;;  %7423 = vmatpush.bf16.msra.mxu0 %v10670_v60 }
 0x444   : > { %v13182_v34 = vld [vmem:[%s13878_s25 + $0x15ec] sm:$0xf0]  ;;  %7418 = vmatmul.bf16.vlgmr.msrb.gmra.mxu3 %v14056_v30 }
 0x445   : > { %v11437_v46 = vld [vmem:[%s13878_s25 + $0x17d0] sm:$0xf]  ;;  %v11182_v39 = vor.u32 %v13182_v34, %v11181_v18  ;;  %7436 = vmatpush.bf16.msra.mxu1 %v10926_v38 }
 0x446   : > { %v13246_v37 = vld [vmem:[%s13878_s25 + $0x17ec] sm:$0xf0] }
 0x447   : > { %v10637_v40 = vld [vmem:[%s13878_s25 + $0x1190] sm:$0xf]  ;;  %v11438_v43 = vor.u32 %v13246_v37, %v11437_v46  ;;  %7449 = vmatpush.bf16.msra.mxu2 %v11182_v39  ;;  %v15208_v39 = vpop.f32.mrf.mxu2 }
 0x448   : > { %v13046_v61 = vld [vmem:[%s13878_s25 + $0x11ac] sm:$0xf0] }
 0x449   : > { %v10893_v42 = vld [vmem:[%s13878_s25 + $0x1390] sm:$0xf]  ;;  %v10638_v49 = vor.u32 %v13046_v61, %v10637_v40  ;;  %7462 = vmatpush.bf16.msra.mxu3 %v11438_v43 }
 0x44a   : > { %v13110_v45 = vld [vmem:[%s13878_s25 + $0x13ac] sm:$0xf0] }
 0x44b   : > { %v11149_v36 = vld [vmem:[%s13878_s25 + $0x1590] sm:$0xf]  ;;  %v10894_v50 = vor.u32 %v13110_v45, %v10893_v42  ;;  %7424 = vmatpush.bf16.msra.mxu0 %v10638_v49  ;;  %v15213_v45 = vpop.f32.mrf.mxu3 }
 0x44c   : > { %v13174_v44 = vld [vmem:[%s13878_s25 + $0x15ac] sm:$0xf0] }
 0x44d   : > { %v11405_v6 = vld [vmem:[%s13878_s25 + $0x1790] sm:$0xf]  ;;  %v11150_v53 = vor.u32 %v13174_v44, %v11149_v36  ;;  %7437 = vmatpush.bf16.msra.mxu1 %v10894_v50 }
 0x44e   : > { %v13238_v47 = vld [vmem:[%s13878_s25 + $0x17ac] sm:$0xf0] }
 0x44f   : > { %v10605_v8 = vld [vmem:[%s13878_s25 + $0x1150] sm:$0xf]  ;;  %v11406_v58 = vor.u32 %v13238_v47, %v11405_v6  ;;  %7450 = vmatpush.bf16.msra.mxu2 %v11150_v53  ;;  %v7174_v47 = vpop.f32.mrf.mxu0 }
 0x450   : > { %v13038_v55 = vld [vmem:[%s13878_s25 + $0x116c] sm:$0xf0] }
 0x451   : > { %v10861_v56 = vld [vmem:[%s13878_s25 + $0x1350] sm:$0xf]  ;;  %v10606_v13 = vor.u32 %v13038_v55, %v10605_v8  ;;  %7463 = vmatpush.bf16.msra.mxu3 %v11406_v58 }
 0x452   : > { %v13102_v59 = vld [vmem:[%s13878_s25 + $0x136c] sm:$0xf0] }
 0x453   : > { %v11117_v63 = vld [vmem:[%s13878_s25 + $0x1550] sm:$0xf]  ;;  %v10862_v2 = vor.u32 %v13102_v59, %v10861_v56  ;;  %7425 = vmatpush.bf16.msra.mxu0 %v10606_v13  ;;  %v7187_v56 = vpop.f32.mrf.mxu1 }
 0x454   : > { %v13166_v12 = vld [vmem:[%s13878_s25 + $0x156c] sm:$0xf0] }
 0x455   : > { %v11373_v0 = vld [vmem:[%s13878_s25 + $0x1750] sm:$0xf]  ;;  %v11118_v3 = vor.u32 %v13166_v12, %v11117_v63  ;;  %7438 = vmatpush.bf16.msra.mxu1 %v10862_v2 }
 0x456   : > { %v13230_v1 = vld [vmem:[%s13878_s25 + $0x176c] sm:$0xf0] }
 0x457   : > { %v10573_v4 = vld [vmem:[%s13878_s25 + $0x1110] sm:$0xf]  ;;  %v11374_v41 = vor.u32 %v13230_v1, %v11373_v0  ;;  %7451 = vmatpush.bf16.msra.mxu2 %v11118_v3 }
 0x458   : > { %v13030_v5 = vld [vmem:[%s13878_s25 + $0x112c] sm:$0xf0] }
 0x459   : > { %v10829_v7 = vld [vmem:[%s13878_s25 + $0x1310] sm:$0xf]  ;;  %v10574_v16 = vor.u32 %v13030_v5, %v10573_v4  ;;  %7464 = vmatpush.bf16.msra.mxu3 %v11374_v41 }
 0x45a   : > { %v13094_v9 = vld [vmem:[%s13878_s25 + $0x132c] sm:$0xf0] }
 0x45b   : > { %v11085_v10 = vld [vmem:[%s13878_s25 + $0x1510] sm:$0xf]  ;;  %v10830_v32 = vor.u32 %v13094_v9, %v10829_v7  ;;  %7426 = vmatpush.bf16.msra.mxu0 %v10574_v16 }
 0x45c   : > { %v13158_v11 = vld [vmem:[%s13878_s25 + $0x152c] sm:$0xf0] }
 0x45d   : > { %v11341_v14 = vld [vmem:[%s13878_s25 + $0x1710] sm:$0xf]  ;;  %v11086_v19 = vor.u32 %v13158_v11, %v11085_v10  ;;  %7439 = vmatpush.bf16.msra.mxu1 %v10830_v32  ;;  %v7200_v10 = vpop.f32.mrf.mxu2  ;;  %v7213_v32 = vpop.f32.mrf.mxu3 }
 0x45e   : > { %v13222_v15 = vld [vmem:[%s13878_s25 + $0x172c] sm:$0xf0] }
 0x45f   : > { %v10541_v20 = vld [vmem:[%s13878_s25 + $0x10d0] sm:$0xf]  ;;  %v11342_v51 = vor.u32 %v13222_v15, %v11341_v14  ;;  %7452 = vmatpush.bf16.msra.mxu2 %v11086_v19 }
 0x460   : > { %v13022_v21 = vld [vmem:[%s13878_s25 + $0x10ec] sm:$0xf0] }
 0x461   : > { %v10797_v26 = vld [vmem:[%s13878_s25 + $0x12d0] sm:$0xf]  ;;  %v10542_v52 = vor.u32 %v13022_v21, %v10541_v20  ;;  %7465 = vmatpush.bf16.msra.mxu3 %v11342_v51 }
 0x462   : > { %v13086_v29 = vld [vmem:[%s13878_s25 + $0x12ec] sm:$0xf0] }
 0x463   : > { %v11053_v33 = vld [vmem:[%s13878_s25 + $0x14d0] sm:$0xf]  ;;  %v10798_v46 = vor.u32 %v13086_v29, %v10797_v26  ;;  %7427 = vmatpush.bf16.msra.mxu0 %v10542_v52 }
 0x464   : > { %v13150_v18 = vld [vmem:[%s13878_s25 + $0x14ec] sm:$0xf0] }
 0x465   : > { %v11309_v34 = vld [vmem:[%s13878_s25 + $0x16d0] sm:$0xf]  ;;  %v11054_v37 = vor.u32 %v13150_v18, %v11053_v33  ;;  %7440 = vmatpush.bf16.msra.mxu1 %v10798_v46 }
 0x466   : > { %v13214_v35 = vld [vmem:[%s13878_s25 + $0x16ec] sm:$0xf0] }
 0x467   : > { %v10509_v57 = vld [vmem:[%s13878_s25 + $0x1090] sm:$0xf]  ;;  %v11310_v40 = vor.u32 %v13214_v35, %v11309_v34  ;;  %7453 = vmatpush.bf16.msra.mxu2 %v11054_v37 }
 0x468   : > { %v13014_v60 = vld [vmem:[%s13878_s25 + $0x10ac] sm:$0xf0] }
 0x469   : > { %v10765_v38 = vld [vmem:[%s13878_s25 + $0x1290] sm:$0xf]  ;;  %v10510_v6 = vor.u32 %v13014_v60, %v10509_v57  ;;  %7466 = vmatpush.bf16.msra.mxu3 %v11310_v40 }
 0x46a   : > { %v13078_v61 = vld [vmem:[%s13878_s25 + $0x12ac] sm:$0xf0] }
 0x46b   : > { %v11021_v42 = vld [vmem:[%s13878_s25 + $0x1490] sm:$0xf]  ;;  %v10766_v49 = vor.u32 %v13078_v61, %v10765_v38  ;;  %7428 = vmatpush.bf16.msra.mxu0 %v10510_v6 }
 0x46c   : > { %v13142_v43 = vld [vmem:[%s13878_s25 + $0x14ac] sm:$0xf0] }
 0x46d   : > { %v11277_v36 = vld [vmem:[%s13878_s25 + $0x1690] sm:$0xf]  ;;  %v11022_v50 = vor.u32 %v13142_v43, %v11021_v42  ;;  %7441 = vmatpush.bf16.msra.mxu1 %v10766_v49 }
 0x46e   : > { %v13206_v44 = vld [vmem:[%s13878_s25 + $0x16ac] sm:$0xf0] }
 0x46f   : > { %v10477_v53 = vld [vmem:[%s13878_s25 + $0x1050] sm:$0xf]  ;;  %v11278_v58 = vor.u32 %v13206_v44, %v11277_v36  ;;  %7454 = vmatpush.bf16.msra.mxu2 %v11022_v50 }
 0x470   : > { %v13006_v8 = vld [vmem:[%s13878_s25 + $0x106c] sm:$0xf0] }
 0x471   : > { %v10733_v55 = vld [vmem:[%s13878_s25 + $0x1250] sm:$0xf]  ;;  %v10478_v13 = vor.u32 %v13006_v8, %v10477_v53  ;;  %7467 = vmatpush.bf16.msra.mxu3 %v11278_v58  ;;  %v13591_v58 = vld.sshfl [vmem:[#allocation1] sm:$0xff pattern:$0x73625140] }
 0x472   : > { %v13070_v59 = vld [vmem:[%s13878_s25 + $0x126c] sm:$0xf0] }
 0x473   : > { %v10989_v63 = vld [vmem:[%s13878_s25 + $0x1450] sm:$0xf]  ;;  %v10734_v4 = vor.u32 %v13070_v59, %v10733_v55  ;;  %7429 = vmatpush.bf16.msra.mxu0 %v10478_v13  ;;  %v13593_v13 = vld.sshfl [vmem:[#allocation1 + $0x8] sm:$0xff pattern:$0x73625140] }
 0x474   : > { %v13134_v12 = vld [vmem:[%s13878_s25 + $0x146c] sm:$0xf0] }
 0x475   : > { %v11245_v0 = vld [vmem:[%s13878_s25 + $0x1650] sm:$0xf]  ;;  %v10990_v5 = vor.u32 %v13134_v12, %v10989_v63  ;;  %7442 = vmatpush.bf16.msra.mxu1 %v10734_v4 }
 0x476   : > { %v13198_v1 = vld [vmem:[%s13878_s25 + $0x166c] sm:$0xf0] }
 0x477   : > { %v10445_v2 = vld [vmem:[%s13878_s25 + $0x1010] sm:$0xf]  ;;  %v11246_v11 = vor.u32 %v13198_v1, %v11245_v0  ;;  %7455 = vmatpush.bf16.msra.mxu2 %v10990_v5  ;;  %v13592_v1 = vld.sshfl [vmem:[#allocation1 + $0x10] sm:$0xff pattern:$0x73625140] }
 0x478   : > { %v12998_v3 = vld [vmem:[%s13878_s25 + $0x102c] sm:$0xf0] }
 0x479   : > { %v10701_v7 = vld [vmem:[%s13878_s25 + $0x1210] sm:$0xf]  ;;  %v10446_v26 = vor.u32 %v12998_v3, %v10445_v2  ;;  %7468 = vmatpush.bf16.msra.mxu3 %v11246_v11 }
 0x47a   : > { %v13062_v41 = vld [vmem:[%s13878_s25 + $0x122c] sm:$0xf0] }
 0x47b   : > { %v10957_v9 = vld [vmem:[%s13878_s25 + $0x1410] sm:$0xf]  ;;  %v10702_v18 = vor.u32 %v13062_v41, %v10701_v7  ;;  %7430 = vmatpush.bf16.msra.mxu0 %v10446_v26 }
 0x47c   : > { %v13126_v14 = vld [vmem:[%s13878_s25 + $0x142c] sm:$0xf0] }
 0x47d   : > { %v11213_v15 = vld [vmem:[%s13878_s25 + $0x1610] sm:$0xf]  ;;  %v10958_v34 = vor.u32 %v13126_v14, %v10957_v9  ;;  %7443 = vmatpush.bf16.msra.mxu1 %v10702_v18 }
 0x47e   : > { %v13190_v16 = vld [vmem:[%s13878_s25 + $0x162c] sm:$0xf0]  ;;  %7431 = vmatmul.bf16.vlgmr.msra.gmra.mxu0 %v13591_v58 }
 0x47f   : > { %v11693_v19 = vld [vmem:[%s13878_s25 + $0x19d0] sm:$0xf]  ;;  %v11214_v46 = vor.u32 %v13190_v16, %v11213_v15  ;;  %7456 = vmatpush.bf16.msra.mxu2 %v10958_v34 }
 0x480   : > { %v13310_v20 = vld [vmem:[%s13878_s25 + $0x19ec] sm:$0xf0]  ;;  %7444 = vmatmul.bf16.vlgmr.msra.gmra.mxu1 %v13593_v13 }
 0x481   : > { %v11949_v21 = vld [vmem:[%s13878_s25 + $0x1bd0] sm:$0xf]  ;;  %v11694_v37 = vor.u32 %v13310_v20, %v11693_v19  ;;  %7469 = vmatpush.bf16.msra.mxu3 %v11214_v46  ;;  %v15263_v19 = vpop.f32.mrf.mxu0 }
 0x482   : > { %v13374_v51 = vld [vmem:[%s13878_s25 + $0x1bec] sm:$0xf0]  ;;  %7457 = vmatmul.bf16.vlgmr.msra.gmra.mxu2 %v13592_v1 }
 0x483   : > { %v12205_v29 = vld [vmem:[%s13878_s25 + $0x1dd0] sm:$0xf]  ;;  %v11950_v57 = vor.u32 %v13374_v51, %v11949_v21  ;;  %7475 = vmatpush.bf16.msrb.mxu0 %v11694_v37  ;;  %v15267_v51 = vpop.f32.mrf.mxu1 }
 0x484   : > { %v13438_v33 = vld [vmem:[%s13878_s25 + $0x1dec] sm:$0xf0] }
 0x485   : > { %v12461_v35 = vld [vmem:[%s13878_s25 + $0x1fd0] sm:$0xf]  ;;  %v12206_v60 = vor.u32 %v13438_v33, %v12205_v29  ;;  %7488 = vmatpush.bf16.msrb.mxu1 %v11950_v57 }
 0x486   : > { %v13502_v52 = vld [vmem:[%s13878_s25 + $0x1fec] sm:$0xf0] }
 0x487   : > { %v11661_v38 = vld [vmem:[%s13878_s25 + $0x1990] sm:$0xf]  ;;  %v12462_v42 = vor.u32 %v13502_v52, %v12461_v35  ;;  %7501 = vmatpush.bf16.msrb.mxu2 %v12206_v60 }
 0x488   : > { %v13302_v40 = vld [vmem:[%s13878_s25 + $0x19ac] sm:$0xf0] }
 0x489   : > { %v11917_v61 = vld [vmem:[%s13878_s25 + $0x1b90] sm:$0xf]  ;;  %v11662_v49 = vor.u32 %v13302_v40, %v11661_v38  ;;  %7514 = vmatpush.bf16.msrb.mxu3 %v12462_v42 }
 0x48a   : > { %v13366_v43 = vld [vmem:[%s13878_s25 + $0x1bac] sm:$0xf0] }
 0x48b   : > { %v12173_v36 = vld [vmem:[%s13878_s25 + $0x1d90] sm:$0xf]  ;;  %v11918_v50 = vor.u32 %v13366_v43, %v11917_v61  ;;  %7476 = vmatpush.bf16.msrb.mxu0 %v11662_v49  ;;  %v7173_v61 = vadd.f32 %v15193_v17, %v15139_v54  ;;  %v15282_v49 = vpop.f32.mrf.mxu2 }
 0x48c   : > { %v13430_v44 = vld [vmem:[%s13878_s25 + $0x1dac] sm:$0xf0] }
 0x48d   : > { %v12429_v6 = vld [vmem:[%s13878_s25 + $0x1f90] sm:$0xf]  ;;  %v12174_v53 = vor.u32 %v13430_v44, %v12173_v36  ;;  %7489 = vmatpush.bf16.msrb.mxu1 %v11918_v50 }
 0x48e   : > { %v13494_v47 = vld [vmem:[%s13878_s25 + $0x1fac] sm:$0xf0] }
 0x48f   : > { %v11629_v8 = vld [vmem:[%s13878_s25 + $0x1950] sm:$0xf]  ;;  %v12430_v59 = vor.u32 %v13494_v47, %v12429_v6  ;;  %7502 = vmatpush.bf16.msrb.mxu2 %v12174_v53 }
 0x490   : > { %v13294_v55 = vld [vmem:[%s13878_s25 + $0x196c] sm:$0xf0] }
 0x491   : > { %v11885_v56 = vld [vmem:[%s13878_s25 + $0x1b50] sm:$0xf]  ;;  %v11630_v5 = vor.u32 %v13294_v55, %v11629_v8  ;;  %7515 = vmatpush.bf16.msrb.mxu3 %v12430_v59  ;;  %v15287_v55 = vpop.f32.mrf.mxu3  ;;  %v7239_v59 = vpop.f32.mrf.mxu1 }
 0x492   : > { %v13358_v63 = vld [vmem:[%s13878_s25 + $0x1b6c] sm:$0xf0]  ;;  %v9103_v59 = vld [vmem:[%s13878_s25 + $0x5b0] sm:$0xf0] }
 0x493   : > { %v12141_v12 = vld [vmem:[%s13878_s25 + $0x1d50] sm:$0xf]  ;;  %v11886_v7 = vor.u32 %v13358_v63, %v11885_v56  ;;  %7477 = vmatpush.bf16.msrb.mxu0 %v11630_v5  ;;  %v7226_v56 = vpop.f32.mrf.mxu0  ;;  %v7186_v63 = vadd.f32 %v15198_v48, %v7173_v61 }
 0x494   : > { %v13422_v0 = vld [vmem:[%s13878_s25 + $0x1d6c] sm:$0xf0]  ;;  %v8847_v56 = vld [vmem:[%s13878_s25 + $0x3b0] sm:$0xf0] }
 0x495   : > { %v12397_v2 = vld [vmem:[%s13878_s25 + $0x1f50] sm:$0xf]  ;;  %v12142_v41 = vor.u32 %v13422_v0, %v12141_v12  ;;  %7490 = vmatpush.bf16.msrb.mxu1 %v11886_v7 }
 0x496   : > { %v13486_v3 = vld [vmem:[%s13878_s25 + $0x1f6c] sm:$0xf0] }
 0x497   : > { %v13594_v4 = vld.sshfl [vmem:[#allocation1 + $0x18] sm:$0xff pattern:$0x73625140]  ;;  %v12398_v14 = vor.u32 %v13486_v3, %v12397_v2  ;;  %7503 = vmatpush.bf16.msrb.mxu2 %v12142_v41 }
 0x498   : > { %7470 = vmatmul.bf16.vlgmr.msra.gmra.mxu3 %v13594_v4  ;;  %v11597_v9 = vld [vmem:[%s13878_s25 + $0x1910] sm:$0xf] }
 0x499   : > { %v13286_v10 = vld [vmem:[%s13878_s25 + $0x192c] sm:$0xf0]  ;;  %7516 = vmatpush.bf16.msrb.mxu3 %v12398_v14  ;;  %v7199_v14 = vadd.f32 %v15208_v39, %v7186_v63  ;;  %v12538_v39 = vld [vmem:[%s13878_s25 + $0x1d4] sm:$0xf] }
 0x49a   : > { %v11853_v11 = vld [vmem:[%s13878_s25 + $0x1b10] sm:$0xf]  ;;  %v11598_v26 = vor.u32 %v13286_v10, %v11597_v9  ;;  %v12722_v63 = vld [vmem:[%s13878_s25 + $0x794] sm:$0xf] }
 0x49b   : > { %v13350_v15 = vld [vmem:[%s13878_s25 + $0x1b2c] sm:$0xf0] }
 0x49c   : > { %v12109_v16 = vld [vmem:[%s13878_s25 + $0x1d10] sm:$0xf]  ;;  %v11854_v29 = vor.u32 %v13350_v15, %v11853_v11  ;;  %7478 = vmatpush.bf16.msrb.mxu0 %v11598_v26 }
 0x49d   : > { %v13414_v32 = vld [vmem:[%s13878_s25 + $0x1d2c] sm:$0xf0] }
 0x49e   : > { %v12365_v20 = vld [vmem:[%s13878_s25 + $0x1f10] sm:$0xf]  ;;  %v12110_v33 = vor.u32 %v13414_v32, %v12109_v16  ;;  %7491 = vmatpush.bf16.msrb.mxu1 %v11854_v29 }
 0x49f   : > { %v13478_v21 = vld [vmem:[%s13878_s25 + $0x1f2c] sm:$0xf0] }
 0x4a0   : > { %v11565_v18 = vld [vmem:[%s13878_s25 + $0x18d0] sm:$0xf]  ;;  %v12366_v52 = vor.u32 %v13478_v21, %v12365_v20  ;;  %7504 = vmatpush.bf16.msrb.mxu2 %v12110_v33 }
 0x4a1   : > { %v13278_v34 = vld [vmem:[%s13878_s25 + $0x18ec] sm:$0xf0] }
 0x4a2   : > { %v11821_v35 = vld [vmem:[%s13878_s25 + $0x1ad0] sm:$0xf]  ;;  %v11566_v40 = vor.u32 %v13278_v34, %v11565_v18  ;;  %7517 = vmatpush.bf16.msrb.mxu3 %v12366_v52  ;;  %v7252_v34 = vpop.f32.mrf.mxu2  ;;  %v12602_v52 = vld [vmem:[%s13878_s25 + $0x3d4] sm:$0xf] }
 0x4a3   : > { %v13342_v46 = vld [vmem:[%s13878_s25 + $0x1aec] sm:$0xf0]  ;;  %v12642_v34 = vld [vmem:[%s13878_s25 + $0x514] sm:$0xf] }
 0x4a4   : > { %v12077_v37 = vld [vmem:[%s13878_s25 + $0x1cd0] sm:$0xf]  ;;  %v11822_v42 = vor.u32 %v13342_v46, %v11821_v35  ;;  %7479 = vmatpush.bf16.msrb.mxu0 %v11566_v40  ;;  %v8623_v35 = vld [vmem:[%s13878_s25 + $0x1f0] sm:$0xf0]  ;;  %v7265_v46 = vpop.f32.mrf.mxu3  ;;  %v7212_v40 = vadd.f32 %v15213_v45, %v7199_v14 }
 0x4a5   : > { %v13406_v57 = vld [vmem:[%s13878_s25 + $0x1cec] sm:$0xf0]  ;;  %v8591_v45 = vld [vmem:[%s13878_s25 + $0x1b0] sm:$0xf0] }
 0x4a6   : > { %v12333_v60 = vld [vmem:[%s13878_s25 + $0x1ed0] sm:$0xf]  ;;  %v12078_v43 = vor.u32 %v13406_v57, %v12077_v37  ;;  %7492 = vmatpush.bf16.msrb.mxu1 %v11822_v42  ;;  %v8879_v57 = vld [vmem:[%s13878_s25 + $0x3f0] sm:$0xf0] }
 0x4a7   : > { %v13470_v38 = vld [vmem:[%s13878_s25 + $0x1eec] sm:$0xf0]  ;;  %v12714_v14 = vld [vmem:[%s13878_s25 + $0x754] sm:$0xf] }
 0x4a8   : > { %v11533_v36 = vld [vmem:[%s13878_s25 + $0x1890] sm:$0xf]  ;;  %v12334_v47 = vor.u32 %v13470_v38, %v12333_v60  ;;  %7505 = vmatpush.bf16.msrb.mxu2 %v12078_v43  ;;  %v12666_v60 = vld [vmem:[%s13878_s25 + $0x5d4] sm:$0xf] }
 0x4a9   : > { %v13270_v44 = vld [vmem:[%s13878_s25 + $0x18ac] sm:$0xf0]  ;;  %v9135_v38 = vld [vmem:[%s13878_s25 + $0x5f0] sm:$0xf0] }
 0x4aa   : > { %v11789_v6 = vld [vmem:[%s13878_s25 + $0x1a90] sm:$0xf]  ;;  %v11534_v58 = vor.u32 %v13270_v44, %v11533_v36  ;;  %7518 = vmatpush.bf16.msrb.mxu3 %v12334_v47  ;;  %v12730_v43 = vld [vmem:[%s13878_s25 + $0x7d4] sm:$0xf]  ;;  %v7225_v47 = vadd.f32 %v15263_v19, %v7212_v40 }
 0x4ab   : > { %v13334_v50 = vld [vmem:[%s13878_s25 + $0x1aac] sm:$0xf0]  ;;  %v9391_v36 = vld [vmem:[%s13878_s25 + $0x7f0] sm:$0xf0] }
 0x4ac   : > { %v12045_v53 = vld [vmem:[%s13878_s25 + $0x1c90] sm:$0xf]  ;;  %v11790_v12 = vor.u32 %v13334_v50, %v11789_v6  ;;  %7480 = vmatpush.bf16.msrb.mxu0 %v11534_v58  ;;  %v8626_v6 = vor.u32 %v12538_v39, %v8623_v35  ;;  %v8882_v50 = vor.u32 %v12602_v52, %v8879_v57  ;;  %v12658_v58 = vld [vmem:[%s13878_s25 + $0x594] sm:$0xf]  ;;  %v7276_v52 = vpop.f32.mrf.mxu0 }
 0x4ad   : > { %v13398_v8 = vld [vmem:[%s13878_s25 + $0x1cac] sm:$0xf0]  ;;  %v9039_v39 = vld [vmem:[%s13878_s25 + $0x530] sm:$0xf0] }
 0x4ae   : > { %v12301_v54 = vld [vmem:[%s13878_s25 + $0x1e90] sm:$0xf]  ;;  %v12046_v0 = vor.u32 %v13398_v8, %v12045_v53  ;;  %7493 = vmatpush.bf16.msrb.mxu1 %v11790_v12  ;;  %v9138_v53 = vor.u32 %v12666_v60, %v9135_v38  ;;  %v12530_v8 = vld [vmem:[%s13878_s25 + $0x194] sm:$0xf]  ;;  %v7289_v60 = vpop.f32.mrf.mxu1 }
 0x4af   : > { %v13462_v17 = vld [vmem:[%s13878_s25 + $0x1eac] sm:$0xf0]  ;;  %v9359_v12 = vld [vmem:[%s13878_s25 + $0x7b0] sm:$0xf0]  ;;  %v8594_v19 = vor.u32 %v12530_v8, %v8591_v45 }
 0x4b0   : > { %v11501_v1 = vld [vmem:[%s13878_s25 + $0x1850] sm:$0xf]  ;;  %v12302_v3 = vor.u32 %v13462_v17, %v12301_v54  ;;  %7506 = vmatpush.bf16.msrb.mxu2 %v12046_v0  ;;  %v12594_v54 = vld [vmem:[%s13878_s25 + $0x394] sm:$0xf]  ;;  %v9394_v17 = vor.u32 %v12730_v43, %v9391_v36  ;;  %v7238_v0 = vadd.f32 %v15267_v51, %v7225_v47 }
 0x4b1   : > { %v13262_v13 = vld [vmem:[%s13878_s25 + $0x186c] sm:$0xf0]  ;;  %v13596_v51 = vld.sshfl [vmem:[#allocation1 + $0x30] sm:$0xff pattern:$0x73625140] }
 0x4b2   : > { %v11757_v2 = vld [vmem:[%s13878_s25 + $0x1a50] sm:$0xf]  ;;  %v11502_v9 = vor.u32 %v13262_v13, %v11501_v1  ;;  %7519 = vmatpush.bf16.msrb.mxu3 %v12302_v3  ;;  %v8850_v1 = vor.u32 %v12594_v54, %v8847_v56  ;;  %v9106_v13 = vor.u32 %v12658_v58, %v9103_v59  ;;  %v8559_v3 = vld [vmem:[%s13878_s25 + $0x170] sm:$0xf0] }
 0x4b3   : > { %v13326_v4 = vld [vmem:[%s13878_s25 + $0x1a6c] sm:$0xf0]  ;;  %v12706_v46 = vld [vmem:[%s13878_s25 + $0x714] sm:$0xf] }
 0x4b4   : > { %v12013_v5 = vld [vmem:[%s13878_s25 + $0x1c50] sm:$0xf]  ;;  %v11758_v15 = vor.u32 %v13326_v4, %v11757_v2  ;;  %7481 = vmatpush.bf16.msrb.mxu0 %v11502_v9  ;;  %v12522_v2 = vld [vmem:[%s13878_s25 + $0x154] sm:$0xf] }
 0x4b5   : > { %v13390_v7 = vld [vmem:[%s13878_s25 + $0x1c6c] sm:$0xf0]  ;;  %v12586_v4 = vld [vmem:[%s13878_s25 + $0x354] sm:$0xf] }
 0x4b6   : > { %v12269_v41 = vld [vmem:[%s13878_s25 + $0x1e50] sm:$0xf]  ;;  %v12014_v16 = vor.u32 %v13390_v7, %v12013_v5  ;;  %7494 = vmatpush.bf16.msrb.mxu1 %v11758_v15  ;;  %v13595_v5 = vld.sshfl [vmem:[#allocation1 + $0x20] sm:$0xff pattern:$0x73625140]  ;;  %v9362_v7 = vor.u32 %v12722_v63, %v9359_v12  ;;  %v7302_v12 = vpop.f32.mrf.mxu2 }
 0x4b7   : > { %v13454_v48 = vld [vmem:[%s13878_s25 + $0x1e6c] sm:$0xf0]  ;;  %v9071_v9 = vld [vmem:[%s13878_s25 + $0x570] sm:$0xf0] }
 0x4b8   : > { %v11469_v10 = vld [vmem:[%s13878_s25 + $0x1810] sm:$0xf]  ;;  %v12270_v26 = vor.u32 %v13454_v48, %v12269_v41  ;;  %7507 = vmatpush.bf16.msrb.mxu2 %v12014_v16  ;;  %v8815_v41 = vld [vmem:[%s13878_s25 + $0x370] sm:$0xf0] }
 0x4b9   : > { %v13254_v11 = vld [vmem:[%s13878_s25 + $0x182c] sm:$0xf0]  ;;  %v12650_v48 = vld [vmem:[%s13878_s25 + $0x554] sm:$0xf] }
 0x4ba   : > { %v11725_v32 = vld [vmem:[%s13878_s25 + $0x1a10] sm:$0xf]  ;;  %v11470_v37 = vor.u32 %v13254_v11, %v11469_v10  ;;  %7520 = vmatpush.bf16.msrb.mxu3 %v12270_v26  ;;  %v7251_v10 = vadd.f32 %v15282_v49, %v7238_v0  ;;  %v13597_v11 = vld.sshfl [vmem:[#allocation1 + $0x28] sm:$0xff pattern:$0x73625140]  ;;  %v8818_v49 = vor.u32 %v12586_v4, %v8815_v41  ;;  %v7291_v41 = vpop.f32.mrf.mxu1 }
 0x4bb   : > { %v13318_v20 = vld [vmem:[%s13878_s25 + $0x1a2c] sm:$0xf0]  ;;  %v9327_v15 = vld [vmem:[%s13878_s25 + $0x770] sm:$0xf0] }
 0x4bc   : > { %v11981_v21 = vld [vmem:[%s13878_s25 + $0x1c10] sm:$0xf]  ;;  %v11726_v61 = vor.u32 %v13318_v20, %v11725_v32  ;;  %7482 = vmatpush.bf16.msrb.mxu0 %v11470_v37  ;;  %v8562_v32 = vor.u32 %v12522_v2, %v8559_v3  ;;  %v9074_v20 = vor.u32 %v12650_v48, %v9071_v9  ;;  %v8527_v26 = vld [vmem:[%s13878_s25 + $0x130] sm:$0xf0]  ;;  %v7264_v35 = vadd.f32 %v15287_v55, %v7251_v10  ;;  %v7315_v2 = vpop.f32.mrf.mxu3 }
 0x4bd   : > { %v13382_v29 = vld [vmem:[%s13878_s25 + $0x1c2c] sm:$0xf0]  ;;  %v9295_v37 = vld [vmem:[%s13878_s25 + $0x730] sm:$0xf0] }
 0x4be   : > { %v12237_v33 = vld [vmem:[%s13878_s25 + $0x1e10] sm:$0xf]  ;;  %v11982_v42 = vor.u32 %v13382_v29, %v11981_v21  ;;  %7495 = vmatpush.bf16.msrb.mxu1 %v11726_v61  ;;  %v12514_v21 = vld [vmem:[%s13878_s25 + $0x114] sm:$0xf]  ;;  %v7277_v38 = vadd.f32 %v7276_v52, %v7264_v35  ;;  %v9042_v61 = vor.u32 %v12642_v34, %v9039_v39  ;;  %v9298_v36 = vor.u32 %v12706_v46, %v9295_v37 }
 0x4bf   : > { %v13446_v18 = vld [vmem:[%s13878_s25 + $0x1e2c] sm:$0xf0]  ;;  %7483 = vmatmul.bf16.vlgmr.msrb.gmra.mxu0 %v13595_v5  ;;  %v12578_v29 = vld [vmem:[%s13878_s25 + $0x314] sm:$0xf]  ;;  %v8530_v57 = vor.u32 %v12514_v21, %v8527_v26  ;;  %v7278_v5 = vpop.f32.mrf.mxu0 }
 0x4c0   : > { %v12238_v44 = vor.u32 %v13446_v18, %v12237_v33  ;;  %7508 = vmatpush.bf16.msrb.mxu2 %v11982_v42  ;;  %7527 = vmatpush.bf16.msra.mxu0 %v8626_v6  ;;  %v13598_v16 = vld.sshfl [vmem:[#allocation1 + $0x38] sm:$0xff pattern:$0x73625140]  ;;  %v9330_v33 = vor.u32 %v12714_v14, %v9327_v15  ;;  %v7290_v45 = vadd.f32 %v7289_v60, %v7277_v38 }
 0x4c1   : > { %7496 = vmatmul.bf16.vlgmr.msrb.gmra.mxu1 %v13597_v11  ;;  %v8783_v18 = vld [vmem:[%s13878_s25 + $0x330] sm:$0xf0] }
 0x4c2   : > { %7521 = vmatpush.bf16.msrb.mxu3 %v12238_v44  ;;  %7540 = vmatpush.bf16.msra.mxu1 %v8882_v50  ;;  %v8786_v40 = vor.u32 %v12578_v29, %v8783_v18  ;;  %v12506_v42 = vld [vmem:[%s13878_s25 + $0xd4] sm:$0xf] }
 0x4c3   : > { %7509 = vmatmul.bf16.vlgmr.msrb.gmra.mxu2 %v13596_v51  ;;  %v8495_v43 = vld [vmem:[%s13878_s25 + $0xf0] sm:$0xf0] }
 0x4c4   : > { %7553 = vmatpush.bf16.msra.mxu2 %v9138_v53  ;;  %7528 = vmatpush.bf16.msra.mxu0 %v8594_v19  ;;  %v12570_v55 = vld [vmem:[%s13878_s25 + $0x2d4] sm:$0xf]  ;;  %v8498_v8 = vor.u32 %v12506_v42, %v8495_v43 }
 0x4c5   : > { %7522 = vmatmul.bf16.vlgmr.msrb.gmra.mxu3 %v13598_v16  ;;  %v8751_v44 = vld [vmem:[%s13878_s25 + $0x2f0] sm:$0xf0] }
 0x4c6   : > { %7566 = vmatpush.bf16.msra.mxu3 %v9394_v17  ;;  %7541 = vmatpush.bf16.msra.mxu1 %v8850_v1  ;;  %v12634_v6 = vld [vmem:[%s13878_s25 + $0x4d4] sm:$0xf]  ;;  %v8754_v54 = vor.u32 %v12570_v55, %v8751_v44 }
 0x4c7   : > { %v9007_v47 = vld [vmem:[%s13878_s25 + $0x4f0] sm:$0xf0] }
 0x4c8   : > { %7554 = vmatpush.bf16.msra.mxu2 %v9106_v13  ;;  %7529 = vmatpush.bf16.msra.mxu0 %v8562_v32  ;;  %v12698_v50 = vld [vmem:[%s13878_s25 + $0x6d4] sm:$0xf]  ;;  %v9010_v17 = vor.u32 %v12634_v6, %v9007_v47  ;;  %v7303_v13 = vadd.f32 %v7302_v12, %v7290_v45  ;;  %v7317_v6 = vpop.f32.mrf.mxu3 }
 0x4c9   : > { %v9263_v53 = vld [vmem:[%s13878_s25 + $0x6f0] sm:$0xf0] }
 0x4ca   : > { %7567 = vmatpush.bf16.msra.mxu3 %v9362_v7  ;;  %7542 = vmatpush.bf16.msra.mxu1 %v8818_v49  ;;  %v12498_v56 = vld [vmem:[%s13878_s25 + $0x94] sm:$0xf]  ;;  %v9266_v63 = vor.u32 %v12698_v50, %v9263_v53  ;;  %v7316_v48 = vadd.f32 %v7315_v2, %v7303_v13 }
 0x4cb   : > { %v8463_v58 = vld [vmem:[%s13878_s25 + $0xb0] sm:$0xf0] }
 0x4cc   : > { %7555 = vmatpush.bf16.msra.mxu2 %v9074_v20  ;;  %7530 = vmatpush.bf16.msra.mxu0 %v8530_v57  ;;  %v12562_v59 = vld [vmem:[%s13878_s25 + $0x294] sm:$0xf]  ;;  %v8466_v7 = vor.u32 %v12498_v56, %v8463_v58  ;;  %v295_v20 = vld [vmem:[#allocation2] sm:$0xff]  ;;  %v8160_v21 = vrot.slane %v7316_v48, 4 }
 0x4cd   : > { %v8719_v19 = vld [vmem:[%s13878_s25 + $0x2b0] sm:$0xf0] }
 0x4ce   : > { %7568 = vmatpush.bf16.msra.mxu3 %v9330_v33  ;;  %7543 = vmatpush.bf16.msra.mxu1 %v8786_v40  ;;  %v12626_v0 = vld [vmem:[%s13878_s25 + $0x494] sm:$0xf]  ;;  %v8722_v9 = vor.u32 %v12562_v59, %v8719_v19  ;;  %v8165_v35 = vsel %vm8163_vm0, %v15069_v62, %v8160_v21  ;;  %v7304_v62 = vpop.f32.mrf.mxu2 }
 0x4cf   : > { %v8975_v1 = vld [vmem:[%s13878_s25 + $0x4b0] sm:$0xf0]  ;;  %v8173_v38 = vadd.f32 %v8165_v35, %v295_v20  ;;  %v7341_v62 = vpop.f32.mrf.mxu1 }
 0x4d0   : > { %7556 = vmatpush.bf16.msra.mxu2 %v9042_v61  ;;  %v12690_v3 = vld [vmem:[%s13878_s25 + $0x694] sm:$0xf]  ;;  %7531 = vmatpush.bf16.msra.mxu0 %v8498_v8  ;;  %v8978_v10 = vor.u32 %v12626_v0, %v8975_v1 }
 0x4d1   : > { %v9231_v4 = vld [vmem:[%s13878_s25 + $0x6b0] sm:$0xf0]  ;;  %8177 = vst [vmem:[#allocation2] sm:$0xff] %v8173_v38 }
 0x4d2   : > { %7569 = vmatpush.bf16.msra.mxu3 %v9298_v36  ;;  %7544 = vmatpush.bf16.msra.mxu1 %v8754_v54  ;;  %v12490_v51 = vld [vmem:[%s13878_s25 + $0x54] sm:$0xf]  ;;  %v9234_v15 = vor.u32 %v12690_v3, %v9231_v4 }
 0x4d3   : > { %v8431_v11 = vld [vmem:[%s13878_s25 + $0x70] sm:$0xf0] }
 0x4d4   : > { %7557 = vmatpush.bf16.msra.mxu2 %v9010_v17  ;;  %v12554_v14 = vld [vmem:[%s13878_s25 + $0x254] sm:$0xf]  ;;  %7532 = vmatpush.bf16.msra.mxu0 %v8466_v7  ;;  %v8434_v33 = vor.u32 %v12490_v51, %v8431_v11 }
 0x4d5   : > { %v8687_v16 = vld [vmem:[%s13878_s25 + $0x270] sm:$0xf0] }
 0x4d6   : > { %7570 = vmatpush.bf16.msra.mxu3 %v9266_v63  ;;  %v12618_v32 = vld [vmem:[%s13878_s25 + $0x454] sm:$0xf]  ;;  %7545 = vmatpush.bf16.msra.mxu1 %v8722_v9  ;;  %v8690_v52 = vor.u32 %v12554_v14, %v8687_v16 }
 0x4d7   : > { %v8943_v49 = vld [vmem:[%s13878_s25 + $0x470] sm:$0xf0] }
 0x4d8   : > { %v12682_v26 = vld [vmem:[%s13878_s25 + $0x654] sm:$0xf]  ;;  %7558 = vmatpush.bf16.msra.mxu2 %v8978_v10  ;;  %v8946_v46 = vor.u32 %v12618_v32, %v8943_v49  ;;  %7533 = vmatpush.bf16.msra.mxu0 %v8434_v33 }
 0x4d9   : > { %v9199_v29 = vld [vmem:[%s13878_s25 + $0x670] sm:$0xf0] }
 0x4da   : > { %v12482_v18 = vld [vmem:[%s13878_s25 + $0x14] sm:$0xf]  ;;  %7571 = vmatpush.bf16.msra.mxu3 %v9234_v15  ;;  %v9202_v40 = vor.u32 %v12682_v26, %v9199_v29  ;;  %7546 = vmatpush.bf16.msra.mxu1 %v8690_v52 }
 0x4db   : > { %v8399_v34 = vld [vmem:[%s13878_s25 + $0x30] sm:$0xf0] }
 0x4dc   : > { %v12546_v39 = vld [vmem:[%s13878_s25 + $0x214] sm:$0xf]  ;;  %v8402_v47 = vor.u32 %v12482_v18, %v8399_v34  ;;  %7559 = vmatpush.bf16.msra.mxu2 %v8946_v46 }
 0x4dd   : > { %v8655_v37 = vld [vmem:[%s13878_s25 + $0x230] sm:$0xf0] }
 0x4de   : > { %v12610_v57 = vld [vmem:[%s13878_s25 + $0x414] sm:$0xf]  ;;  %v8658_v8 = vor.u32 %v12546_v39, %v8655_v37  ;;  %7572 = vmatpush.bf16.msra.mxu3 %v9202_v40  ;;  %7534 = vmatpush.bf16.msra.mxu0 %v8402_v47 }
 0x4df   : > { %v8911_v60 = vld [vmem:[%s13878_s25 + $0x430] sm:$0xf0] }
 0x4e0   : > { %v12674_v61 = vld [vmem:[%s13878_s25 + $0x614] sm:$0xf]  ;;  %v8914_v45 = vor.u32 %v12610_v57, %v8911_v60  ;;  %7547 = vmatpush.bf16.msra.mxu1 %v8658_v8  ;;  %v7328_v60 = vpop.f32.mrf.mxu0 }
 0x4e1   : > { %v9167_v42 = vld [vmem:[%s13878_s25 + $0x630] sm:$0xf0]  ;;  %7535 = vmatmul.bf16.vlgmr.msra.gmra.mxu0 %v14002_v25  ;;  %v7342_v47 = vadd.f32 %v7341_v62, %v7328_v60 }
 0x4e2   : > { %v12794_v43 = vld [vmem:[%s13878_s25 + $0x9d4] sm:$0xf]  ;;  %v9170_v56 = vor.u32 %v12674_v61, %v9167_v42  ;;  %7560 = vmatpush.bf16.msra.mxu2 %v8914_v45 }
 0x4e3   : > { %v9647_v55 = vld [vmem:[%s13878_s25 + $0x9f0] sm:$0xf0]  ;;  %7548 = vmatmul.bf16.vlgmr.msra.gmra.mxu1 %v14007_v28 }
 0x4e4   : > { %v12858_v36 = vld [vmem:[%s13878_s25 + $0xbd4] sm:$0xf]  ;;  %v9650_v58 = vor.u32 %v12794_v43, %v9647_v55  ;;  %7573 = vmatpush.bf16.msra.mxu3 %v9170_v56 }
 0x4e5   : > { %v9903_v44 = vld [vmem:[%s13878_s25 + $0xbf0] sm:$0xf0]  ;;  %7561 = vmatmul.bf16.vlgmr.msra.gmra.mxu2 %v14000_v24 }
 0x4e6   : > { %v12922_v50 = vld [vmem:[%s13878_s25 + $0xdd4] sm:$0xf]  ;;  %v9906_v59 = vor.u32 %v12858_v36, %v9903_v44  ;;  %7579 = vmatpush.bf16.msrb.mxu0 %v9650_v58 }
 0x4e7   : > { %v10159_v53 = vld [vmem:[%s13878_s25 + $0xdf0] sm:$0xf0]  ;;  %7574 = vmatmul.bf16.vlgmr.msra.gmra.mxu3 %v14005_v27 }
 0x4e8   : > { %v12986_v54 = vld [vmem:[%s13878_s25 + $0xfd4] sm:$0xf]  ;;  %v10162_v63 = vor.u32 %v12922_v50, %v10159_v53  ;;  %7592 = vmatpush.bf16.msrb.mxu1 %v9906_v59  ;;  %v7354_v59 = vpop.f32.mrf.mxu2 }
 0x4e9   : > { %v10415_v17 = vld [vmem:[%s13878_s25 + $0xff0] sm:$0xf0] }
 0x4ea   : > { %v12786_v12 = vld [vmem:[%s13878_s25 + $0x994] sm:$0xf]  ;;  %v10418_v1 = vor.u32 %v12986_v54, %v10415_v17  ;;  %7605 = vmatpush.bf16.msrb.mxu2 %v10162_v63 }
 0x4eb   : > { %v9615_v19 = vld [vmem:[%s13878_s25 + $0x9b0] sm:$0xf0] }
 0x4ec   : > { %v12850_v0 = vld [vmem:[%s13878_s25 + $0xb94] sm:$0xf]  ;;  %v9618_v7 = vor.u32 %v12786_v12, %v9615_v19  ;;  %7618 = vmatpush.bf16.msrb.mxu3 %v10418_v1  ;;  %v7355_v1 = vadd.f32 %v7354_v59, %v7342_v47 }
 0x4ed   : > { %v9871_v13 = vld [vmem:[%s13878_s25 + $0xbb0] sm:$0xf0] }
 0x4ee   : > { %v12914_v2 = vld [vmem:[%s13878_s25 + $0xd94] sm:$0xf]  ;;  %v9874_v41 = vor.u32 %v12850_v0, %v9871_v13  ;;  %7580 = vmatpush.bf16.msrb.mxu0 %v9618_v7  ;;  %v7367_v13 = vpop.f32.mrf.mxu3  ;;  %v7330_v7 = vpop.f32.mrf.mxu0 }
 0x4ef   : > { %v10127_v3 = vld [vmem:[%s13878_s25 + $0xdb0] sm:$0xf0] }
 0x4f0   : > { %v12978_v4 = vld [vmem:[%s13878_s25 + $0xf94] sm:$0xf]  ;;  %v10130_v48 = vor.u32 %v12914_v2, %v10127_v3  ;;  %7593 = vmatpush.bf16.msrb.mxu1 %v9874_v41 }
 0x4f1   : > { %v10383_v5 = vld [vmem:[%s13878_s25 + $0xfb0] sm:$0xf0] }
 0x4f2   : > { %v12778_v9 = vld [vmem:[%s13878_s25 + $0x954] sm:$0xf]  ;;  %v10386_v11 = vor.u32 %v12978_v4, %v10383_v5  ;;  %7606 = vmatpush.bf16.msrb.mxu2 %v10130_v48  ;;  %v15432_v5 = vadd.f32 %v7367_v13, %v7355_v1 }
 0x4f3   : > { %v9583_v10 = vld [vmem:[%s13878_s25 + $0x970] sm:$0xf0] }
 0x4f4   : > { %v12842_v51 = vld [vmem:[%s13878_s25 + $0xb54] sm:$0xf]  ;;  %v9586_v20 = vor.u32 %v12778_v9, %v9583_v10  ;;  %7619 = vmatpush.bf16.msrb.mxu3 %v10386_v11  ;;  %v7343_v11 = vpop.f32.mrf.mxu1 }
 0x4f5   : > { %v9839_v14 = vld [vmem:[%s13878_s25 + $0xb70] sm:$0xf0] }
 0x4f6   : > { %v12906_v15 = vld [vmem:[%s13878_s25 + $0xd54] sm:$0xf]  ;;  %v9842_v21 = vor.u32 %v12842_v51, %v9839_v14  ;;  %7581 = vmatpush.bf16.msrb.mxu0 %v9586_v20 }
 0x4f7   : > { %v10095_v16 = vld [vmem:[%s13878_s25 + $0xd70] sm:$0xf0] }
 0x4f8   : > { %v12970_v32 = vld [vmem:[%s13878_s25 + $0xf54] sm:$0xf]  ;;  %v10098_v26 = vor.u32 %v12906_v15, %v10095_v16  ;;  %7594 = vmatpush.bf16.msrb.mxu1 %v9842_v21 }
 0x4f9   : > { %v10351_v49 = vld [vmem:[%s13878_s25 + $0xf70] sm:$0xf0] }
 0x4fa   : > { %v12770_v29 = vld [vmem:[%s13878_s25 + $0x914] sm:$0xf]  ;;  %v10354_v34 = vor.u32 %v12970_v32, %v10351_v49  ;;  %7607 = vmatpush.bf16.msrb.mxu2 %v10098_v26 }
 0x4fb   : > { %v9551_v33 = vld [vmem:[%s13878_s25 + $0x930] sm:$0xf0] }
 0x4fc   : > { %v12834_v18 = vld [vmem:[%s13878_s25 + $0xb14] sm:$0xf]  ;;  %v9554_v57 = vor.u32 %v12770_v29, %v9551_v33  ;;  %7620 = vmatpush.bf16.msrb.mxu3 %v10354_v34 }
 0x4fd   : > { %v9807_v39 = vld [vmem:[%s13878_s25 + $0xb30] sm:$0xf0] }
 0x4fe   : > { %v12898_v35 = vld [vmem:[%s13878_s25 + $0xd14] sm:$0xf]  ;;  %v9810_v38 = vor.u32 %v12834_v18, %v9807_v39  ;;  %7582 = vmatpush.bf16.msrb.mxu0 %v9554_v57 }
 0x4ff   : > { %v10063_v52 = vld [vmem:[%s13878_s25 + $0xd30] sm:$0xf0] }
 0x500   : > { %v12962_v46 = vld [vmem:[%s13878_s25 + $0xf14] sm:$0xf]  ;;  %v10066_v40 = vor.u32 %v12898_v35, %v10063_v52  ;;  %7595 = vmatpush.bf16.msrb.mxu1 %v9810_v38  ;;  %v7356_v52 = vpop.f32.mrf.mxu2  ;;  %v7369_v38 = vpop.f32.mrf.mxu3 }
 0x501   : > { %v10319_v37 = vld [vmem:[%s13878_s25 + $0xf30] sm:$0xf0]  ;;  %v7380_v52 = vpop.f32.mrf.mxu0 }
 0x502   : > { %v12762_v61 = vld [vmem:[%s13878_s25 + $0x8d4] sm:$0xf]  ;;  %v10322_v55 = vor.u32 %v12962_v46, %v10319_v37  ;;  %7608 = vmatpush.bf16.msrb.mxu2 %v10066_v40 }
 0x503   : > { %v9519_v42 = vld [vmem:[%s13878_s25 + $0x8f0] sm:$0xf0] }
 0x504   : > { %v12826_v43 = vld [vmem:[%s13878_s25 + $0xad4] sm:$0xf]  ;;  %v9522_v8 = vor.u32 %v12762_v61, %v9519_v42  ;;  %7621 = vmatpush.bf16.msrb.mxu3 %v10322_v55 }
 0x505   : > { %v9775_v36 = vld [vmem:[%s13878_s25 + $0xaf0] sm:$0xf0] }
 0x506   : > { %v12890_v44 = vld [vmem:[%s13878_s25 + $0xcd4] sm:$0xf]  ;;  %v9778_v45 = vor.u32 %v12826_v43, %v9775_v36  ;;  %7583 = vmatpush.bf16.msrb.mxu0 %v9522_v8 }
 0x507   : > { %v10031_v6 = vld [vmem:[%s13878_s25 + $0xcf0] sm:$0xf0] }
 0x508   : > { %v12954_v50 = vld [vmem:[%s13878_s25 + $0xed4] sm:$0xf]  ;;  %v10034_v54 = vor.u32 %v12890_v44, %v10031_v6  ;;  %7596 = vmatpush.bf16.msrb.mxu1 %v9778_v45 }
 0x509   : > { %v10287_v53 = vld [vmem:[%s13878_s25 + $0xef0] sm:$0xf0] }
 0x50a   : > { %v12754_v17 = vld [vmem:[%s13878_s25 + $0x894] sm:$0xf]  ;;  %v10290_v63 = vor.u32 %v12954_v50, %v10287_v53  ;;  %7609 = vmatpush.bf16.msrb.mxu2 %v10034_v54 }
 0x50b   : > { %v9487_v56 = vld [vmem:[%s13878_s25 + $0x8b0] sm:$0xf0] }
 0x50c   : > { %v12818_v58 = vld [vmem:[%s13878_s25 + $0xa94] sm:$0xf]  ;;  %v9490_v4 = vor.u32 %v12754_v17, %v9487_v56  ;;  %7622 = vmatpush.bf16.msrb.mxu3 %v10290_v63 }
 0x50d   : > { %v9743_v12 = vld [vmem:[%s13878_s25 + $0xab0] sm:$0xf0] }
 0x50e   : > { %v12882_v19 = vld [vmem:[%s13878_s25 + $0xc94] sm:$0xf]  ;;  %v9746_v41 = vor.u32 %v12818_v58, %v9743_v12  ;;  %7584 = vmatpush.bf16.msrb.mxu0 %v9490_v4 }
 0x50f   : > { %v9999_v0 = vld [vmem:[%s13878_s25 + $0xcb0] sm:$0xf0] }
 0x510   : > { %v12946_v2 = vld [vmem:[%s13878_s25 + $0xe94] sm:$0xf]  ;;  %v10002_v48 = vor.u32 %v12882_v19, %v9999_v0  ;;  %7597 = vmatpush.bf16.msrb.mxu1 %v9746_v41 }
 0x511   : > { %v10255_v3 = vld [vmem:[%s13878_s25 + $0xeb0] sm:$0xf0] }
 0x512   : > { %v12746_v9 = vld [vmem:[%s13878_s25 + $0x854] sm:$0xf]  ;;  %v10258_v14 = vor.u32 %v12946_v2, %v10255_v3  ;;  %7610 = vmatpush.bf16.msrb.mxu2 %v10002_v48 }
 0x513   : > { %v9455_v10 = vld [vmem:[%s13878_s25 + $0x870] sm:$0xf0] }
 0x514   : > { %v12810_v51 = vld [vmem:[%s13878_s25 + $0xa54] sm:$0xf]  ;;  %v9458_v21 = vor.u32 %v12746_v9, %v9455_v10  ;;  %7623 = vmatpush.bf16.msrb.mxu3 %v10258_v14 }
 0x515   : > { %v9711_v15 = vld [vmem:[%s13878_s25 + $0xa70] sm:$0xf0] }
 0x516   : > { %v12874_v16 = vld [vmem:[%s13878_s25 + $0xc54] sm:$0xf]  ;;  %v9714_v33 = vor.u32 %v12810_v51, %v9711_v15  ;;  %7585 = vmatpush.bf16.msrb.mxu0 %v9458_v21 }
 0x517   : > { %v9967_v32 = vld [vmem:[%s13878_s25 + $0xc70] sm:$0xf0] }
 0x518   : > { %v12938_v49 = vld [vmem:[%s13878_s25 + $0xe54] sm:$0xf]  ;;  %v9970_v18 = vor.u32 %v12874_v16, %v9967_v32  ;;  %7598 = vmatpush.bf16.msrb.mxu1 %v9714_v33 }
 0x519   : > { %v10223_v20 = vld [vmem:[%s13878_s25 + $0xe70] sm:$0xf0] }
 0x51a   : > { %v12738_v26 = vld [vmem:[%s13878_s25 + $0x814] sm:$0xf]  ;;  %v10226_v46 = vor.u32 %v12938_v49, %v10223_v20  ;;  %7611 = vmatpush.bf16.msrb.mxu2 %v9970_v18 }
 0x51b   : > { %v9423_v29 = vld [vmem:[%s13878_s25 + $0x830] sm:$0xf0] }
 0x51c   : > { %v12802_v34 = vld [vmem:[%s13878_s25 + $0xa14] sm:$0xf]  ;;  %v9426_v43 = vor.u32 %v12738_v26, %v9423_v29  ;;  %7624 = vmatpush.bf16.msrb.mxu3 %v10226_v46 }
 0x51d   : > { %v9679_v39 = vld [vmem:[%s13878_s25 + $0xa30] sm:$0xf0] }
 0x51e   : > { %v12866_v35 = vld [vmem:[%s13878_s25 + $0xc14] sm:$0xf]  ;;  %v9682_v44 = vor.u32 %v12802_v34, %v9679_v39  ;;  %7586 = vmatpush.bf16.msrb.mxu0 %v9426_v43 }
 0x51f   : > { %v9935_v37 = vld [vmem:[%s13878_s25 + $0xc30] sm:$0xf0] }
 0x520   : > { %v12930_v57 = vld [vmem:[%s13878_s25 + $0xe14] sm:$0xf]  ;;  %v9938_v6 = vor.u32 %v12866_v35, %v9935_v37  ;;  %7599 = vmatpush.bf16.msrb.mxu1 %v9682_v44 }
 0x521   : > { %v10191_v60 = vld [vmem:[%s13878_s25 + $0xe30] sm:$0xf0]  ;;  %7587 = vmatmul.bf16.vlgmr.msrb.gmra.mxu0 %v14054_v23 }
 0x522   : > { %v13050_v40 = vld [vmem:[%s13878_s25 + $0x11d4] sm:$0xf]  ;;  %v10194_v53 = vor.u32 %v12930_v57, %v10191_v60  ;;  %7612 = vmatpush.bf16.msrb.mxu2 %v9938_v6 }
 0x523   : > { %v10671_v61 = vld [vmem:[%s13878_s25 + $0x11f0] sm:$0xf0]  ;;  %7600 = vmatmul.bf16.vlgmr.msrb.gmra.mxu1 %v14058_v31 }
 0x524   : > { %v13114_v42 = vld [vmem:[%s13878_s25 + $0x13d4] sm:$0xf]  ;;  %v10674_v8 = vor.u32 %v13050_v40, %v10671_v61  ;;  %7625 = vmatpush.bf16.msrb.mxu3 %v10194_v53  ;;  %v7381_v40 = vadd.f32 %v7380_v52, %v15432_v5  ;;  %v7393_v61 = vpop.f32.mrf.mxu1 }
 0x525   : > { %v10927_v62 = vld [vmem:[%s13878_s25 + $0x13f0] sm:$0xf0]  ;;  %7613 = vmatmul.bf16.vlgmr.msrb.gmra.mxu2 %v14052_v22 }
 0x526   : > { %v13178_v55 = vld [vmem:[%s13878_s25 + $0x15d4] sm:$0xf]  ;;  %v10930_v45 = vor.u32 %v13114_v42, %v10927_v62  ;;  %7631 = vmatpush.bf16.msra.mxu0 %v10674_v8  ;;  %v7394_v6 = vadd.f32 %v7393_v61, %v7381_v40 }
 0x527   : > { %v11183_v36 = vld [vmem:[%s13878_s25 + $0x15f0] sm:$0xf0]  ;;  %7626 = vmatmul.bf16.vlgmr.msrb.gmra.mxu3 %v14056_v30 }
 0x528   : > { %v13242_v47 = vld [vmem:[%s13878_s25 + $0x17d4] sm:$0xf]  ;;  %v11186_v54 = vor.u32 %v13178_v55, %v11183_v36  ;;  %7644 = vmatpush.bf16.msra.mxu1 %v10930_v45 }
 0x529   : > { %v11439_v50 = vld [vmem:[%s13878_s25 + $0x17f0] sm:$0xf0] }
 0x52a   : > { %v13042_v17 = vld [vmem:[%s13878_s25 + $0x1194] sm:$0xf]  ;;  %v11442_v59 = vor.u32 %v13242_v47, %v11439_v50  ;;  %7657 = vmatpush.bf16.msra.mxu2 %v11186_v54  ;;  %v7406_v54 = vpop.f32.mrf.mxu2 }
 0x52b   : > { %v10639_v56 = vld [vmem:[%s13878_s25 + $0x11b0] sm:$0xf0] }
 0x52c   : > { %v13106_v58 = vld [vmem:[%s13878_s25 + $0x1394] sm:$0xf]  ;;  %v10642_v13 = vor.u32 %v13042_v17, %v10639_v56  ;;  %7670 = vmatpush.bf16.msra.mxu3 %v11442_v59 }
 0x52d   : > { %v10895_v63 = vld [vmem:[%s13878_s25 + $0x13b0] sm:$0xf0] }
 0x52e   : > { %v13170_v12 = vld [vmem:[%s13878_s25 + $0x1594] sm:$0xf]  ;;  %v10898_v2 = vor.u32 %v13106_v58, %v10895_v63  ;;  %7632 = vmatpush.bf16.msra.mxu0 %v10642_v13  ;;  %v7407_v63 = vadd.f32 %v7406_v54, %v7394_v6 }
 0x52f   : > { %v11151_v19 = vld [vmem:[%s13878_s25 + $0x15b0] sm:$0xf0] }
 0x530   : > { %v13234_v0 = vld [vmem:[%s13878_s25 + $0x1794] sm:$0xf]  ;;  %v11154_v3 = vor.u32 %v13170_v12, %v11151_v19  ;;  %7645 = vmatpush.bf16.msra.mxu1 %v10898_v2  ;;  %v7419_v12 = vpop.f32.mrf.mxu3  ;;  %v7382_v2 = vpop.f32.mrf.mxu0 }
 0x531   : > { %v11407_v1 = vld [vmem:[%s13878_s25 + $0x17b0] sm:$0xf0]  ;;  %v15503_v13 = vadd.f32 %v7419_v12, %v7407_v63 }
 0x532   : > { %v13034_v4 = vld [vmem:[%s13878_s25 + $0x1154] sm:$0xf]  ;;  %v11410_v48 = vor.u32 %v13234_v0, %v11407_v1  ;;  %7658 = vmatpush.bf16.msra.mxu2 %v11154_v3 }
 0x533   : > { %v10607_v7 = vld [vmem:[%s13878_s25 + $0x1170] sm:$0xf0] }
 0x534   : > { %v13098_v41 = vld [vmem:[%s13878_s25 + $0x1354] sm:$0xf]  ;;  %v10610_v15 = vor.u32 %v13034_v4, %v10607_v7  ;;  %7671 = vmatpush.bf16.msra.mxu3 %v11410_v48 }
 0x535   : > { %v10863_v9 = vld [vmem:[%s13878_s25 + $0x1370] sm:$0xf0] }
 0x536   : > { %v13162_v10 = vld [vmem:[%s13878_s25 + $0x1554] sm:$0xf]  ;;  %v10866_v16 = vor.u32 %v13098_v41, %v10863_v9  ;;  %7633 = vmatpush.bf16.msra.mxu0 %v10610_v15  ;;  %v7395_v9 = vpop.f32.mrf.mxu1 }
 0x537   : > { %v11119_v51 = vld [vmem:[%s13878_s25 + $0x1570] sm:$0xf0] }
 0x538   : > { %v13226_v11 = vld [vmem:[%s13878_s25 + $0x1754] sm:$0xf]  ;;  %v11122_v32 = vor.u32 %v13162_v10, %v11119_v51  ;;  %7646 = vmatpush.bf16.msra.mxu1 %v10866_v16 }
 0x539   : > { %v11375_v14 = vld [vmem:[%s13878_s25 + $0x1770] sm:$0xf0] }
 0x53a   : > { %v13026_v49 = vld [vmem:[%s13878_s25 + $0x1114] sm:$0xf]  ;;  %v11378_v26 = vor.u32 %v13226_v11, %v11375_v14  ;;  %7659 = vmatpush.bf16.msra.mxu2 %v11122_v32 }
 0x53b   : > { %v10575_v20 = vld [vmem:[%s13878_s25 + $0x1130] sm:$0xf0] }
 0x53c   : > { %v13090_v21 = vld [vmem:[%s13878_s25 + $0x1314] sm:$0xf]  ;;  %v10578_v35 = vor.u32 %v13026_v49, %v10575_v20  ;;  %7672 = vmatpush.bf16.msra.mxu3 %v11378_v26 }
 0x53d   : > { %v10831_v29 = vld [vmem:[%s13878_s25 + $0x1330] sm:$0xf0] }
 0x53e   : > { %v13154_v33 = vld [vmem:[%s13878_s25 + $0x1514] sm:$0xf]  ;;  %v10834_v46 = vor.u32 %v13090_v21, %v10831_v29  ;;  %7634 = vmatpush.bf16.msra.mxu0 %v10578_v35 }
 0x53f   : > { %v11087_v18 = vld [vmem:[%s13878_s25 + $0x1530] sm:$0xf0] }
 0x540   : > { %v13218_v34 = vld [vmem:[%s13878_s25 + $0x1714] sm:$0xf]  ;;  %v11090_v37 = vor.u32 %v13154_v33, %v11087_v18  ;;  %7647 = vmatpush.bf16.msra.mxu1 %v10834_v46 }
 0x541   : > { %v11343_v39 = vld [vmem:[%s13878_s25 + $0x1730] sm:$0xf0] }
 0x542   : > { %v13018_v57 = vld [vmem:[%s13878_s25 + $0x10d4] sm:$0xf]  ;;  %v11346_v42 = vor.u32 %v13218_v34, %v11343_v39  ;;  %7660 = vmatpush.bf16.msra.mxu2 %v11090_v37  ;;  %v7408_v34 = vpop.f32.mrf.mxu2  ;;  %v7421_v37 = vpop.f32.mrf.mxu3 }
 0x543   : > { %v10543_v60 = vld [vmem:[%s13878_s25 + $0x10f0] sm:$0xf0] }
 0x544   : > { %v13082_v38 = vld [vmem:[%s13878_s25 + $0x12d4] sm:$0xf]  ;;  %v10546_v47 = vor.u32 %v13018_v57, %v10543_v60  ;;  %7673 = vmatpush.bf16.msra.mxu3 %v11346_v42 }
 0x545   : > { %v10799_v43 = vld [vmem:[%s13878_s25 + $0x12f0] sm:$0xf0] }
 0x546   : > { %v13146_v62 = vld [vmem:[%s13878_s25 + $0x14d4] sm:$0xf]  ;;  %v10802_v5 = vor.u32 %v13082_v38, %v10799_v43  ;;  %7635 = vmatpush.bf16.msra.mxu0 %v10546_v47 }
 0x547   : > { %v11055_v55 = vld [vmem:[%s13878_s25 + $0x14f0] sm:$0xf0] }
 0x548   : > { %v13210_v36 = vld [vmem:[%s13878_s25 + $0x16d4] sm:$0xf]  ;;  %v11058_v50 = vor.u32 %v13146_v62, %v11055_v55  ;;  %7648 = vmatpush.bf16.msra.mxu1 %v10802_v5 }
 0x549   : > { %v11311_v44 = vld [vmem:[%s13878_s25 + $0x16f0] sm:$0xf0] }
 0x54a   : > { %v13010_v53 = vld [vmem:[%s13878_s25 + $0x1094] sm:$0xf]  ;;  %v11314_v17 = vor.u32 %v13210_v36, %v11311_v44  ;;  %7661 = vmatpush.bf16.msra.mxu2 %v11058_v50 }
 0x54b   : > { %v10511_v8 = vld [vmem:[%s13878_s25 + $0x10b0] sm:$0xf0] }
 0x54c   : > { %v13074_v45 = vld [vmem:[%s13878_s25 + $0x1294] sm:$0xf]  ;;  %v10514_v1 = vor.u32 %v13010_v53, %v10511_v8  ;;  %7674 = vmatpush.bf16.msra.mxu3 %v11314_v17 }
 0x54d   : > { %v10767_v56 = vld [vmem:[%s13878_s25 + $0x12b0] sm:$0xf0] }
 0x54e   : > { %v13138_v58 = vld [vmem:[%s13878_s25 + $0x1494] sm:$0xf]  ;;  %v10770_v3 = vor.u32 %v13074_v45, %v10767_v56  ;;  %7636 = vmatpush.bf16.msra.mxu0 %v10514_v1 }
 0x54f   : > { %v11023_v59 = vld [vmem:[%s13878_s25 + $0x14b0] sm:$0xf0] }
 0x550   : > { %v13202_v19 = vld [vmem:[%s13878_s25 + $0x1694] sm:$0xf]  ;;  %v11026_v4 = vor.u32 %v13138_v58, %v11023_v59  ;;  %7649 = vmatpush.bf16.msra.mxu1 %v10770_v3 }
 0x551   : > { %v11279_v0 = vld [vmem:[%s13878_s25 + $0x16b0] sm:$0xf0] }
 0x552   : > { %v13002_v7 = vld [vmem:[%s13878_s25 + $0x1054] sm:$0xf]  ;;  %v11282_v10 = vor.u32 %v13202_v19, %v11279_v0  ;;  %7662 = vmatpush.bf16.msra.mxu2 %v11026_v4  ;;  %v13599_v4 = vld.sshfl [vmem:[#allocation1] sm:$0xff pattern:$0x73625140] }
 0x553   : > { %v10479_v41 = vld [vmem:[%s13878_s25 + $0x1070] sm:$0xf0] }
 0x554   : > { %v13066_v48 = vld [vmem:[%s13878_s25 + $0x1254] sm:$0xf]  ;;  %v10482_v32 = vor.u32 %v13002_v7, %v10479_v41  ;;  %7675 = vmatpush.bf16.msra.mxu3 %v11282_v10  ;;  %v13600_v10 = vld.sshfl [vmem:[#allocation1 + $0x10] sm:$0xff pattern:$0x73625140] }
 0x555   : > { %v10735_v51 = vld [vmem:[%s13878_s25 + $0x1270] sm:$0xf0] }
 0x556   : > { %v13130_v11 = vld [vmem:[%s13878_s25 + $0x1454] sm:$0xf]  ;;  %v10738_v21 = vor.u32 %v13066_v48, %v10735_v51  ;;  %7637 = vmatpush.bf16.msra.mxu0 %v10482_v32  ;;  %v13601_v51 = vld.sshfl [vmem:[#allocation1 + $0x8] sm:$0xff pattern:$0x73625140] }
 0x557   : > { %v10991_v14 = vld [vmem:[%s13878_s25 + $0x1470] sm:$0xf0] }
 0x558   : > { %v13194_v15 = vld [vmem:[%s13878_s25 + $0x1654] sm:$0xf]  ;;  %v10994_v26 = vor.u32 %v13130_v11, %v10991_v14  ;;  %7650 = vmatpush.bf16.msra.mxu1 %v10738_v21 }
 0x559   : > { %v11247_v16 = vld [vmem:[%s13878_s25 + $0x1670] sm:$0xf0] }
 0x55a   : > { %v12994_v49 = vld [vmem:[%s13878_s25 + $0x1014] sm:$0xf]  ;;  %v11250_v39 = vor.u32 %v13194_v15, %v11247_v16  ;;  %7663 = vmatpush.bf16.msra.mxu2 %v10994_v26 }
 0x55b   : > { %v10447_v20 = vld [vmem:[%s13878_s25 + $0x1030] sm:$0xf0] }
 0x55c   : > { %v13058_v29 = vld [vmem:[%s13878_s25 + $0x1214] sm:$0xf]  ;;  %v10450_v40 = vor.u32 %v12994_v49, %v10447_v20  ;;  %7676 = vmatpush.bf16.msra.mxu3 %v11250_v39  ;;  %v7432_v39 = vpop.f32.mrf.mxu0 }
 0x55d   : > { %v10703_v33 = vld [vmem:[%s13878_s25 + $0x1230] sm:$0xf0] }
 0x55e   : > { %v13122_v18 = vld [vmem:[%s13878_s25 + $0x1414] sm:$0xf]  ;;  %v10706_v62 = vor.u32 %v13058_v29, %v10703_v33  ;;  %7638 = vmatpush.bf16.msra.mxu0 %v10450_v40 }
 0x55f   : > { %v10959_v35 = vld [vmem:[%s13878_s25 + $0x1430] sm:$0xf0] }
 0x560   : > { %v13186_v52 = vld [vmem:[%s13878_s25 + $0x1614] sm:$0xf]  ;;  %v10962_v55 = vor.u32 %v13122_v18, %v10959_v35  ;;  %7651 = vmatpush.bf16.msra.mxu1 %v10706_v62 }
 0x561   : > { %v11215_v46 = vld [vmem:[%s13878_s25 + $0x1630] sm:$0xf0]  ;;  %7639 = vmatmul.bf16.vlgmr.msra.gmra.mxu0 %v13599_v4 }
 0x562   : > { %v13306_v57 = vld [vmem:[%s13878_s25 + $0x19d4] sm:$0xf]  ;;  %v11218_v6 = vor.u32 %v13186_v52, %v11215_v46  ;;  %7664 = vmatpush.bf16.msra.mxu2 %v10962_v55  ;;  %v7433_v46 = vadd.f32 %v7432_v39, %v15503_v13 }
 0x563   : > { %v11695_v60 = vld [vmem:[%s13878_s25 + $0x19f0] sm:$0xf0]  ;;  %7652 = vmatmul.bf16.vlgmr.msra.gmra.mxu1 %v13601_v51 }
 0x564   : > { %v13370_v38 = vld [vmem:[%s13878_s25 + $0x1bd4] sm:$0xf]  ;;  %v11698_v47 = vor.u32 %v13306_v57, %v11695_v60  ;;  %7677 = vmatpush.bf16.msra.mxu3 %v11218_v6  ;;  %v7445_v57 = vpop.f32.mrf.mxu1 }
 0x565   : > { %v11951_v61 = vld [vmem:[%s13878_s25 + $0x1bf0] sm:$0xf0]  ;;  %7665 = vmatmul.bf16.vlgmr.msra.gmra.mxu2 %v13600_v10  ;;  %v7446_v62 = vadd.f32 %v7445_v57, %v7433_v46  ;;  %v8629_v57 = vld [vmem:[%s13878_s25 + $0x1d8] sm:$0xf] }
 0x566   : > { %v13434_v42 = vld [vmem:[%s13878_s25 + $0x1dd4] sm:$0xf]  ;;  %v11954_v5 = vor.u32 %v13370_v38, %v11951_v61  ;;  %7683 = vmatpush.bf16.msrb.mxu0 %v11698_v47 }
 0x567   : > { %v12207_v43 = vld [vmem:[%s13878_s25 + $0x1df0] sm:$0xf0] }
 0x568   : > { %v13498_v36 = vld [vmem:[%s13878_s25 + $0x1fd4] sm:$0xf]  ;;  %v12210_v50 = vor.u32 %v13434_v42, %v12207_v43  ;;  %7696 = vmatpush.bf16.msrb.mxu1 %v11954_v5 }
 0x569   : > { %v12463_v44 = vld [vmem:[%s13878_s25 + $0x1ff0] sm:$0xf0] }
 0x56a   : > { %v13298_v53 = vld [vmem:[%s13878_s25 + $0x1994] sm:$0xf]  ;;  %v12466_v54 = vor.u32 %v13498_v36, %v12463_v44  ;;  %7709 = vmatpush.bf16.msrb.mxu2 %v12210_v50 }
 0x56b   : > { %v11663_v8 = vld [vmem:[%s13878_s25 + $0x19b0] sm:$0xf0] }
 0x56c   : > { %v13362_v45 = vld [vmem:[%s13878_s25 + $0x1b94] sm:$0xf]  ;;  %v11666_v12 = vor.u32 %v13298_v53, %v11663_v8  ;;  %7722 = vmatpush.bf16.msrb.mxu3 %v12466_v54 }
 0x56d   : > { %v11919_v17 = vld [vmem:[%s13878_s25 + $0x1bb0] sm:$0xf0] }
 0x56e   : > { %v13426_v56 = vld [vmem:[%s13878_s25 + $0x1d94] sm:$0xf]  ;;  %v11922_v19 = vor.u32 %v13362_v45, %v11919_v17  ;;  %7684 = vmatpush.bf16.msrb.mxu0 %v11666_v12  ;;  %v7458_v17 = vpop.f32.mrf.mxu2  ;;  %v7471_v12 = vpop.f32.mrf.mxu3 }
 0x56f   : > { %v12175_v58 = vld [vmem:[%s13878_s25 + $0x1db0] sm:$0xf0] }
 0x570   : > { %v13490_v59 = vld [vmem:[%s13878_s25 + $0x1f94] sm:$0xf]  ;;  %v12178_v0 = vor.u32 %v13426_v56, %v12175_v58  ;;  %7697 = vmatpush.bf16.msrb.mxu1 %v11922_v19 }
 0x571   : > { %v12431_v63 = vld [vmem:[%s13878_s25 + $0x1fb0] sm:$0xf0] }
 0x572   : > { %v13290_v1 = vld [vmem:[%s13878_s25 + $0x1954] sm:$0xf]  ;;  %v12434_v7 = vor.u32 %v13490_v59, %v12431_v63  ;;  %7710 = vmatpush.bf16.msrb.mxu2 %v12178_v0  ;;  %v7459_v63 = vadd.f32 %v7458_v17, %v7446_v62  ;;  %v12671_v62 = vld [vmem:[%s13878_s25 + $0x5f4] sm:$0xf0] }
 0x573   : > { %v11631_v2 = vld [vmem:[%s13878_s25 + $0x1970] sm:$0xf0]  ;;  %v12599_v17 = vld [vmem:[%s13878_s25 + $0x3b4] sm:$0xf0] }
 0x574   : > { %v13354_v3 = vld [vmem:[%s13878_s25 + $0x1b54] sm:$0xf]  ;;  %v11634_v16 = vor.u32 %v13290_v1, %v11631_v2  ;;  %7723 = vmatpush.bf16.msrb.mxu3 %v12434_v7  ;;  %v7434_v1 = vpop.f32.mrf.mxu0  ;;  %v15570_v4 = vadd.f32 %v7471_v12, %v7459_v63  ;;  %v12727_v63 = vld [vmem:[%s13878_s25 + $0x7b4] sm:$0xf0] }
 0x575   : > { %v11887_v41 = vld [vmem:[%s13878_s25 + $0x1b70] sm:$0xf0]  ;;  %v8565_v1 = vld [vmem:[%s13878_s25 + $0x158] sm:$0xf] }
 0x576   : > { %v13418_v48 = vld [vmem:[%s13878_s25 + $0x1d54] sm:$0xf]  ;;  %v11890_v32 = vor.u32 %v13354_v3, %v11887_v41  ;;  %7685 = vmatpush.bf16.msrb.mxu0 %v11634_v16  ;;  %v7447_v3 = vpop.f32.mrf.mxu1 }
 0x577   : > { %v12143_v9 = vld [vmem:[%s13878_s25 + $0x1d70] sm:$0xf0]  ;;  %v8821_v3 = vld [vmem:[%s13878_s25 + $0x358] sm:$0xf] }
 0x578   : > { %v13482_v11 = vld [vmem:[%s13878_s25 + $0x1f54] sm:$0xf]  ;;  %v12146_v49 = vor.u32 %v13418_v48, %v12143_v9  ;;  %7698 = vmatpush.bf16.msrb.mxu1 %v11890_v32 }
 0x579   : > { %v12399_v14 = vld [vmem:[%s13878_s25 + $0x1f70] sm:$0xf0] }
 0x57a   : > { %v13602_v15 = vld.sshfl [vmem:[#allocation1 + $0x18] sm:$0xff pattern:$0x73625140]  ;;  %v12402_v29 = vor.u32 %v13482_v11, %v12399_v14  ;;  %7711 = vmatpush.bf16.msrb.mxu2 %v12146_v49 }
 0x57b   : > { %7678 = vmatmul.bf16.vlgmr.msra.gmra.mxu3 %v13602_v15  ;;  %v13282_v20 = vld [vmem:[%s13878_s25 + $0x1914] sm:$0xf] }
 0x57c   : > { %v11599_v21 = vld [vmem:[%s13878_s25 + $0x1930] sm:$0xf0]  ;;  %7724 = vmatpush.bf16.msrb.mxu3 %v12402_v29 }
 0x57d   : > { %v13346_v26 = vld [vmem:[%s13878_s25 + $0x1b14] sm:$0xf]  ;;  %v11602_v37 = vor.u32 %v13282_v20, %v11599_v21 }
 0x57e   : > { %v11855_v33 = vld [vmem:[%s13878_s25 + $0x1b30] sm:$0xf0] }
 0x57f   : > { %v13410_v18 = vld [vmem:[%s13878_s25 + $0x1d14] sm:$0xf]  ;;  %v11858_v60 = vor.u32 %v13346_v26, %v11855_v33  ;;  %7686 = vmatpush.bf16.msrb.mxu0 %v11602_v37  ;;  %v7460_v37 = vpop.f32.mrf.mxu2 }
 0x580   : > { %v12111_v34 = vld [vmem:[%s13878_s25 + $0x1d30] sm:$0xf0] }
 0x581   : > { %v13474_v35 = vld [vmem:[%s13878_s25 + $0x1f14] sm:$0xf]  ;;  %v12114_v38 = vor.u32 %v13410_v18, %v12111_v34  ;;  %7699 = vmatpush.bf16.msrb.mxu1 %v11858_v60  ;;  %v12543_v60 = vld [vmem:[%s13878_s25 + $0x1f4] sm:$0xf0] }
 0x582   : > { %v12367_v52 = vld [vmem:[%s13878_s25 + $0x1f30] sm:$0xf0] }
 0x583   : > { %v13274_v40 = vld [vmem:[%s13878_s25 + $0x18d4] sm:$0xf]  ;;  %v12370_v43 = vor.u32 %v13474_v35, %v12367_v52  ;;  %7712 = vmatpush.bf16.msrb.mxu2 %v12114_v38  ;;  %v8885_v38 = vld [vmem:[%s13878_s25 + $0x3d8] sm:$0xf] }
 0x584   : > { %v11567_v61 = vld [vmem:[%s13878_s25 + $0x18f0] sm:$0xf0] }
 0x585   : > { %v13338_v42 = vld [vmem:[%s13878_s25 + $0x1ad4] sm:$0xf]  ;;  %v11570_v47 = vor.u32 %v13274_v40, %v11567_v61  ;;  %7725 = vmatpush.bf16.msrb.mxu3 %v12370_v43  ;;  %v7473_v40 = vpop.f32.mrf.mxu3  ;;  %v9141_v43 = vld [vmem:[%s13878_s25 + $0x5d8] sm:$0xf] }
 0x586   : > { %v11823_v55 = vld [vmem:[%s13878_s25 + $0x1af0] sm:$0xf0] }
 0x587   : > { %v13402_v36 = vld [vmem:[%s13878_s25 + $0x1cd4] sm:$0xf]  ;;  %v11826_v5 = vor.u32 %v13338_v42, %v11823_v55  ;;  %7687 = vmatpush.bf16.msrb.mxu0 %v11570_v47  ;;  %v12607_v42 = vld [vmem:[%s13878_s25 + $0x3f4] sm:$0xf0]  ;;  %v8630_v47 = vor.u32 %v12543_v60, %v8629_v57  ;;  %v7497_v60 = vpop.f32.mrf.mxu1 }
 0x588   : > { %v12079_v13 = vld [vmem:[%s13878_s25 + $0x1cf0] sm:$0xf0] }
 0x589   : > { %v13466_v44 = vld [vmem:[%s13878_s25 + $0x1ed4] sm:$0xf]  ;;  %v12082_v50 = vor.u32 %v13402_v36, %v12079_v13  ;;  %7700 = vmatpush.bf16.msrb.mxu1 %v11826_v5  ;;  %v9397_v13 = vld [vmem:[%s13878_s25 + $0x7d8] sm:$0xf]  ;;  %v8886_v5 = vor.u32 %v12607_v42, %v8885_v38 }
 0x58a   : > { %v12335_v6 = vld [vmem:[%s13878_s25 + $0x1ef0] sm:$0xf0]  ;;  %v12511_v42 = vld [vmem:[%s13878_s25 + $0xf4] sm:$0xf0] }
 0x58b   : > { %v13266_v53 = vld [vmem:[%s13878_s25 + $0x1894] sm:$0xf]  ;;  %v12338_v54 = vor.u32 %v13466_v44, %v12335_v6  ;;  %7713 = vmatpush.bf16.msrb.mxu2 %v12082_v50  ;;  %v12735_v44 = vld [vmem:[%s13878_s25 + $0x7f4] sm:$0xf0]  ;;  %v9142_v50 = vor.u32 %v12671_v62, %v9141_v43 }
 0x58c   : > { %v11535_v8 = vld [vmem:[%s13878_s25 + $0x18b0] sm:$0xf0]  ;;  %v8757_v43 = vld [vmem:[%s13878_s25 + $0x2d8] sm:$0xf] }
 0x58d   : > { %v13330_v45 = vld [vmem:[%s13878_s25 + $0x1a94] sm:$0xf]  ;;  %v11538_v2 = vor.u32 %v13266_v53, %v11535_v8  ;;  %7726 = vmatpush.bf16.msrb.mxu3 %v12338_v54  ;;  %v8597_v53 = vld [vmem:[%s13878_s25 + $0x198] sm:$0xf]  ;;  %v9398_v54 = vor.u32 %v12735_v44, %v9397_v13 }
 0x58e   : > { %v11791_v56 = vld [vmem:[%s13878_s25 + $0x1ab0] sm:$0xf0]  ;;  %v12535_v8 = vld [vmem:[%s13878_s25 + $0x1b4] sm:$0xf0] }
 0x58f   : > { %v13394_v58 = vld [vmem:[%s13878_s25 + $0x1c94] sm:$0xf]  ;;  %v11794_v7 = vor.u32 %v13330_v45, %v11791_v56  ;;  %7688 = vmatpush.bf16.msrb.mxu0 %v11538_v2  ;;  %v8853_v45 = vld [vmem:[%s13878_s25 + $0x398] sm:$0xf]  ;;  %v8598_v12 = vor.u32 %v12535_v8, %v8597_v53 }
 0x590   : > { %v12047_v59 = vld [vmem:[%s13878_s25 + $0x1cb0] sm:$0xf0]  ;;  %v9109_v56 = vld [vmem:[%s13878_s25 + $0x598] sm:$0xf] }
 0x591   : > { %v13458_v19 = vld [vmem:[%s13878_s25 + $0x1e94] sm:$0xf]  ;;  %v12050_v41 = vor.u32 %v13394_v58, %v12047_v59  ;;  %7701 = vmatpush.bf16.msrb.mxu1 %v11794_v7  ;;  %v12663_v58 = vld [vmem:[%s13878_s25 + $0x5b4] sm:$0xf0] }
 0x592   : > { %v12303_v0 = vld [vmem:[%s13878_s25 + $0x1eb0] sm:$0xf0]  ;;  %v9365_v59 = vld [vmem:[%s13878_s25 + $0x798] sm:$0xf] }
 0x593   : > { %v13258_v48 = vld [vmem:[%s13878_s25 + $0x1854] sm:$0xf]  ;;  %v12306_v51 = vor.u32 %v13458_v19, %v12303_v0  ;;  %7714 = vmatpush.bf16.msrb.mxu2 %v12050_v41  ;;  %v8854_v19 = vor.u32 %v12599_v17, %v8853_v45  ;;  %v9110_v0 = vor.u32 %v12663_v58, %v9109_v56  ;;  %v12527_v2 = vld [vmem:[%s13878_s25 + $0x174] sm:$0xf0]  ;;  %v9366_v41 = vor.u32 %v12727_v63, %v9365_v59  ;;  %v7510_v17 = vpop.f32.mrf.mxu2 }
 0x594   : > { %v11503_v9 = vld [vmem:[%s13878_s25 + $0x1870] sm:$0xf0]  ;;  %v13603_v7 = vld.sshfl [vmem:[#allocation1 + $0x20] sm:$0xff pattern:$0x73625140] }
 0x595   : > { %v13322_v10 = vld [vmem:[%s13878_s25 + $0x1a54] sm:$0xf]  ;;  %v11506_v49 = vor.u32 %v13258_v48, %v11503_v9  ;;  %7727 = vmatpush.bf16.msrb.mxu3 %v12306_v51  ;;  %v12591_v48 = vld [vmem:[%s13878_s25 + $0x374] sm:$0xf0] }
 0x596   : > { %v11759_v11 = vld [vmem:[%s13878_s25 + $0x1a70] sm:$0xf0]  ;;  %v9077_v9 = vld [vmem:[%s13878_s25 + $0x558] sm:$0xf] }
 0x597   : > { %v13386_v14 = vld [vmem:[%s13878_s25 + $0x1c54] sm:$0xf]  ;;  %v11762_v26 = vor.u32 %v13322_v10, %v11759_v11  ;;  %7689 = vmatpush.bf16.msrb.mxu0 %v11506_v49  ;;  %v12655_v10 = vld [vmem:[%s13878_s25 + $0x574] sm:$0xf0]  ;;  %v8822_v49 = vor.u32 %v12591_v48, %v8821_v3  ;;  %v7499_v3 = vpop.f32.mrf.mxu1 }
 0x598   : > { %v12015_v15 = vld [vmem:[%s13878_s25 + $0x1c70] sm:$0xf0]  ;;  %v13604_v51 = vld.sshfl [vmem:[#allocation1 + $0x30] sm:$0xff pattern:$0x73625140] }
 0x599   : > { %v13450_v16 = vld [vmem:[%s13878_s25 + $0x1e54] sm:$0xf]  ;;  %v12018_v29 = vor.u32 %v13386_v14, %v12015_v15  ;;  %7702 = vmatpush.bf16.msrb.mxu1 %v11762_v26  ;;  %v13605_v11 = vld.sshfl [vmem:[#allocation1 + $0x28] sm:$0xff pattern:$0x73625140] }
 0x59a   : > { %v12271_v32 = vld [vmem:[%s13878_s25 + $0x1e70] sm:$0xf0]  ;;  %v9333_v14 = vld [vmem:[%s13878_s25 + $0x758] sm:$0xf] }
 0x59b   : > { %v13250_v20 = vld [vmem:[%s13878_s25 + $0x1814] sm:$0xf]  ;;  %v12274_v39 = vor.u32 %v13450_v16, %v12271_v32  ;;  %7715 = vmatpush.bf16.msrb.mxu2 %v12018_v29  ;;  %v12719_v15 = vld [vmem:[%s13878_s25 + $0x774] sm:$0xf0]  ;;  %v8566_v32 = vor.u32 %v12527_v2, %v8565_v1 }
 0x59c   : > { %v11471_v21 = vld [vmem:[%s13878_s25 + $0x1830] sm:$0xf0]  ;;  %v12519_v26 = vld [vmem:[%s13878_s25 + $0x134] sm:$0xf0] }
 0x59d   : > { %v13314_v33 = vld [vmem:[%s13878_s25 + $0x1a14] sm:$0xf]  ;;  %v11474_v61 = vor.u32 %v13250_v20, %v11471_v21  ;;  %7728 = vmatpush.bf16.msrb.mxu3 %v12274_v39  ;;  %v9078_v20 = vor.u32 %v12655_v10, %v9077_v9  ;;  %v8533_v21 = vld [vmem:[%s13878_s25 + $0x118] sm:$0xf] }
 0x59e   : > { %v11727_v18 = vld [vmem:[%s13878_s25 + $0x1a30] sm:$0xf0]  ;;  %v8789_v29 = vld [vmem:[%s13878_s25 + $0x318] sm:$0xf]  ;;  %v8534_v57 = vor.u32 %v12519_v26, %v8533_v21 }
 0x59f   : > { %v13378_v34 = vld [vmem:[%s13878_s25 + $0x1c14] sm:$0xf]  ;;  %v11730_v55 = vor.u32 %v13314_v33, %v11727_v18  ;;  %7690 = vmatpush.bf16.msrb.mxu0 %v11474_v61  ;;  %v9334_v33 = vor.u32 %v12719_v15, %v9333_v14  ;;  %v12583_v18 = vld [vmem:[%s13878_s25 + $0x334] sm:$0xf0] }
 0x5a0   : > { %v11983_v35 = vld [vmem:[%s13878_s25 + $0x1c30] sm:$0xf0]  ;;  %v12647_v39 = vld [vmem:[%s13878_s25 + $0x534] sm:$0xf0]  ;;  %v8790_v38 = vor.u32 %v12583_v18, %v8789_v29 }
 0x5a1   : > { %v13442_v52 = vld [vmem:[%s13878_s25 + $0x1e14] sm:$0xf]  ;;  %v11986_v36 = vor.u32 %v13378_v34, %v11983_v35  ;;  %7703 = vmatpush.bf16.msrb.mxu1 %v11730_v55  ;;  %v9045_v34 = vld [vmem:[%s13878_s25 + $0x518] sm:$0xf]  ;;  %v7484_v35 = vpop.f32.mrf.mxu0 }
 0x5a2   : > { %v12239_v46 = vld [vmem:[%s13878_s25 + $0x1e30] sm:$0xf0]  ;;  %7691 = vmatmul.bf16.vlgmr.msrb.gmra.mxu0 %v13603_v7  ;;  %v7485_v37 = vadd.f32 %v7484_v35, %v15570_v4  ;;  %v9046_v40 = vor.u32 %v12647_v39, %v9045_v34  ;;  %v8501_v61 = vld [vmem:[%s13878_s25 + $0xd8] sm:$0xf] }
 0x5a3   : > { %v12242_v6 = vor.u32 %v13442_v52, %v12239_v46  ;;  %7716 = vmatpush.bf16.msrb.mxu2 %v11986_v36  ;;  %7735 = vmatpush.bf16.msra.mxu0 %v8630_v47  ;;  %v13606_v16 = vld.sshfl [vmem:[#allocation1 + $0x38] sm:$0xff pattern:$0x73625140]  ;;  %v9301_v52 = vld [vmem:[%s13878_s25 + $0x718] sm:$0xf]  ;;  %v8502_v47 = vor.u32 %v12511_v42, %v8501_v61 }
 0x5a4   : > { %7704 = vmatmul.bf16.vlgmr.msrb.gmra.mxu1 %v13605_v11  ;;  %v12711_v46 = vld [vmem:[%s13878_s25 + $0x734] sm:$0xf0]  ;;  %v7498_v55 = vadd.f32 %v7497_v60, %v7485_v37 }
 0x5a5   : > { %7729 = vmatpush.bf16.msrb.mxu3 %v12242_v6  ;;  %7748 = vmatpush.bf16.msra.mxu1 %v8886_v5  ;;  %v9302_v62 = vor.u32 %v12711_v46, %v9301_v52  ;;  %v12575_v36 = vld [vmem:[%s13878_s25 + $0x2f4] sm:$0xf0] }
 0x5a6   : > { %7717 = vmatmul.bf16.vlgmr.msrb.gmra.mxu2 %v13604_v51  ;;  %v9013_v13 = vld [vmem:[%s13878_s25 + $0x4d8] sm:$0xf]  ;;  %v8758_v5 = vor.u32 %v12575_v36, %v8757_v43  ;;  %v7511_v63 = vadd.f32 %v7510_v17, %v7498_v55 }
 0x5a7   : > { %7761 = vmatpush.bf16.msra.mxu2 %v9142_v50  ;;  %7736 = vmatpush.bf16.msra.mxu0 %v8598_v12  ;;  %v12639_v4 = vld [vmem:[%s13878_s25 + $0x4f4] sm:$0xf0]  ;;  %v7523_v12 = vpop.f32.mrf.mxu3 }
 0x5a8   : > { %7730 = vmatmul.bf16.vlgmr.msrb.gmra.mxu3 %v13606_v16  ;;  %v9269_v44 = vld [vmem:[%s13878_s25 + $0x6d8] sm:$0xf]  ;;  %v9014_v50 = vor.u32 %v12639_v4, %v9013_v13  ;;  %v15637_v7 = vadd.f32 %v7523_v12, %v7511_v63 }
 0x5a9   : > { %7774 = vmatpush.bf16.msra.mxu3 %v9398_v54  ;;  %7749 = vmatpush.bf16.msra.mxu1 %v8854_v19  ;;  %v12703_v6 = vld [vmem:[%s13878_s25 + $0x6f4] sm:$0xf0]  ;;  %v7486_v1 = vpop.f32.mrf.mxu0 }
 0x5aa   : > { %v8469_v53 = vld [vmem:[%s13878_s25 + $0x98] sm:$0xf]  ;;  %v9270_v54 = vor.u32 %v12703_v6, %v9269_v44 }
 0x5ab   : > { %7762 = vmatpush.bf16.msra.mxu2 %v9110_v0  ;;  %7737 = vmatpush.bf16.msra.mxu0 %v8566_v32  ;;  %v12503_v8 = vld [vmem:[%s13878_s25 + $0xb4] sm:$0xf0] }
 0x5ac   : > { %v8725_v45 = vld [vmem:[%s13878_s25 + $0x298] sm:$0xf]  ;;  %v8470_v2 = vor.u32 %v12503_v8, %v8469_v53 }
 0x5ad   : > { %7775 = vmatpush.bf16.msra.mxu3 %v9366_v41  ;;  %7750 = vmatpush.bf16.msra.mxu1 %v8822_v49  ;;  %v12567_v56 = vld [vmem:[%s13878_s25 + $0x2b4] sm:$0xf0] }
 0x5ae   : > { %v8981_v58 = vld [vmem:[%s13878_s25 + $0x498] sm:$0xf]  ;;  %v8726_v41 = vor.u32 %v12567_v56, %v8725_v45 }
 0x5af   : > { %7763 = vmatpush.bf16.msra.mxu2 %v9078_v20  ;;  %7738 = vmatpush.bf16.msra.mxu0 %v8534_v57  ;;  %v12631_v59 = vld [vmem:[%s13878_s25 + $0x4b4] sm:$0xf0]  ;;  %v7512_v57 = vpop.f32.mrf.mxu2  ;;  %v7525_v61 = vpop.f32.mrf.mxu3 }
 0x5b0   : > { %v9237_v19 = vld [vmem:[%s13878_s25 + $0x698] sm:$0xf]  ;;  %v8982_v48 = vor.u32 %v12631_v59, %v8981_v58 }
 0x5b1   : > { %7776 = vmatpush.bf16.msra.mxu3 %v9334_v33  ;;  %7751 = vmatpush.bf16.msra.mxu1 %v8790_v38  ;;  %v12695_v0 = vld [vmem:[%s13878_s25 + $0x6b4] sm:$0xf0] }
 0x5b2   : > { %v8437_v9 = vld [vmem:[%s13878_s25 + $0x58] sm:$0xf]  ;;  %v9238_v11 = vor.u32 %v12695_v0, %v9237_v19 }
 0x5b3   : > { %7764 = vmatpush.bf16.msra.mxu2 %v9046_v40  ;;  %7739 = vmatpush.bf16.msra.mxu0 %v8502_v47  ;;  %v12495_v10 = vld [vmem:[%s13878_s25 + $0x74] sm:$0xf0] }
 0x5b4   : > { %v8693_v51 = vld [vmem:[%s13878_s25 + $0x258] sm:$0xf]  ;;  %v8438_v20 = vor.u32 %v12495_v10, %v8437_v9 }
 0x5b5   : > { %7777 = vmatpush.bf16.msra.mxu3 %v9302_v62  ;;  %7752 = vmatpush.bf16.msra.mxu1 %v8758_v5  ;;  %v12559_v14 = vld [vmem:[%s13878_s25 + $0x274] sm:$0xf0] }
 0x5b6   : > { %v8949_v15 = vld [vmem:[%s13878_s25 + $0x458] sm:$0xf]  ;;  %v8694_v29 = vor.u32 %v12559_v14, %v8693_v51 }
 0x5b7   : > { %7765 = vmatpush.bf16.msra.mxu2 %v9014_v50  ;;  %v12623_v16 = vld [vmem:[%s13878_s25 + $0x474] sm:$0xf0]  ;;  %7740 = vmatpush.bf16.msra.mxu0 %v8470_v2 }
 0x5b8   : > { %v9205_v32 = vld [vmem:[%s13878_s25 + $0x658] sm:$0xf]  ;;  %v8950_v33 = vor.u32 %v12623_v16, %v8949_v15 }
 0x5b9   : > { %7778 = vmatpush.bf16.msra.mxu3 %v9270_v54  ;;  %v12687_v49 = vld [vmem:[%s13878_s25 + $0x674] sm:$0xf0]  ;;  %7753 = vmatpush.bf16.msra.mxu1 %v8726_v41 }
 0x5ba   : > { %v8405_v21 = vld [vmem:[%s13878_s25 + $0x18] sm:$0xf]  ;;  %v9206_v35 = vor.u32 %v12687_v49, %v9205_v32 }
 0x5bb   : > { %v12487_v26 = vld [vmem:[%s13878_s25 + $0x34] sm:$0xf0]  ;;  %7766 = vmatpush.bf16.msra.mxu2 %v8982_v48  ;;  %7741 = vmatpush.bf16.msra.mxu0 %v8438_v20 }
 0x5bc   : > { %v8661_v18 = vld [vmem:[%s13878_s25 + $0x218] sm:$0xf]  ;;  %v8406_v42 = vor.u32 %v12487_v26, %v8405_v21 }
 0x5bd   : > { %v12551_v34 = vld [vmem:[%s13878_s25 + $0x234] sm:$0xf0]  ;;  %7779 = vmatpush.bf16.msra.mxu3 %v9238_v11  ;;  %7754 = vmatpush.bf16.msra.mxu1 %v8694_v29 }
 0x5be   : > { %v8917_v39 = vld [vmem:[%s13878_s25 + $0x418] sm:$0xf]  ;;  %v8662_v36 = vor.u32 %v12551_v34, %v8661_v18 }
 0x5bf   : > { %v12615_v52 = vld [vmem:[%s13878_s25 + $0x434] sm:$0xf0]  ;;  %7767 = vmatpush.bf16.msra.mxu2 %v8950_v33  ;;  %7742 = vmatpush.bf16.msra.mxu0 %v8406_v42 }
 0x5c0   : > { %v9173_v46 = vld [vmem:[%s13878_s25 + $0x618] sm:$0xf]  ;;  %v8918_v13 = vor.u32 %v12615_v52, %v8917_v39 }
 0x5c1   : > { %v12679_v37 = vld [vmem:[%s13878_s25 + $0x634] sm:$0xf0]  ;;  %7780 = vmatpush.bf16.msra.mxu3 %v9206_v35  ;;  %7755 = vmatpush.bf16.msra.mxu1 %v8662_v36  ;;  %v7536_v35 = vpop.f32.mrf.mxu0 }
 0x5c2   : > { %v9653_v60 = vld [vmem:[%s13878_s25 + $0x9d8] sm:$0xf]  ;;  %v9174_v6 = vor.u32 %v12679_v37, %v9173_v46  ;;  %7743 = vmatmul.bf16.vlgmr.msra.gmra.mxu0 %v14002_v25 }
 0x5c3   : > { %v12799_v38 = vld [vmem:[%s13878_s25 + $0x9f4] sm:$0xf0]  ;;  %7768 = vmatpush.bf16.msra.mxu2 %v8918_v13 }
 0x5c4   : > { %v9909_v40 = vld [vmem:[%s13878_s25 + $0xbd8] sm:$0xf]  ;;  %v9654_v47 = vor.u32 %v12799_v38, %v9653_v60  ;;  %7756 = vmatmul.bf16.vlgmr.msra.gmra.mxu1 %v14007_v28  ;;  %v7549_v38 = vpop.f32.mrf.mxu1 }
 0x5c5   : > { %v12863_v43 = vld [vmem:[%s13878_s25 + $0xbf4] sm:$0xf0]  ;;  %7781 = vmatpush.bf16.msra.mxu3 %v9174_v6 }
 0x5c6   : > { %v10165_v62 = vld [vmem:[%s13878_s25 + $0xdd8] sm:$0xf]  ;;  %v9910_v5 = vor.u32 %v12863_v43, %v9909_v40  ;;  %7787 = vmatpush.bf16.msrb.mxu0 %v9654_v47  ;;  %7769 = vmatmul.bf16.vlgmr.msra.gmra.mxu2 %v14000_v24 }
 0x5c7   : > { %v12927_v55 = vld [vmem:[%s13878_s25 + $0xdf4] sm:$0xf0] }
 0x5c8   : > { %v10421_v4 = vld [vmem:[%s13878_s25 + $0xfd8] sm:$0xf]  ;;  %v10166_v50 = vor.u32 %v12927_v55, %v10165_v62  ;;  %7800 = vmatpush.bf16.msrb.mxu1 %v9910_v5  ;;  %7782 = vmatmul.bf16.vlgmr.msra.gmra.mxu3 %v14005_v27  ;;  %v7550_v62 = vadd.f32 %v7549_v38, %v7536_v35 }
 0x5c9   : > { %v12991_v44 = vld [vmem:[%s13878_s25 + $0xff4] sm:$0xf0] }
 0x5ca   : > { %v9621_v53 = vld [vmem:[%s13878_s25 + $0x998] sm:$0xf]  ;;  %v10422_v54 = vor.u32 %v12991_v44, %v10421_v4  ;;  %7813 = vmatpush.bf16.msrb.mxu2 %v10166_v50  ;;  %v7562_v50 = vpop.f32.mrf.mxu2 }
 0x5cb   : > { %v12791_v8 = vld [vmem:[%s13878_s25 + $0x9b4] sm:$0xf0] }
 0x5cc   : > { %v9877_v45 = vld [vmem:[%s13878_s25 + $0xb98] sm:$0xf]  ;;  %v9622_v12 = vor.u32 %v12791_v8, %v9621_v53  ;;  %7826 = vmatpush.bf16.msrb.mxu3 %v10422_v54 }
 0x5cd   : > { %v12855_v17 = vld [vmem:[%s13878_s25 + $0xbb4] sm:$0xf0] }
 0x5ce   : > { %v10133_v56 = vld [vmem:[%s13878_s25 + $0xd98] sm:$0xf]  ;;  %v9878_v19 = vor.u32 %v12855_v17, %v9877_v45  ;;  %7788 = vmatpush.bf16.msrb.mxu0 %v9622_v12  ;;  %v7563_v17 = vadd.f32 %v7562_v50, %v7550_v62 }
 0x5cf   : > { %v12919_v58 = vld [vmem:[%s13878_s25 + $0xdb4] sm:$0xf0] }
 0x5d0   : > { %v10389_v59 = vld [vmem:[%s13878_s25 + $0xf98] sm:$0xf]  ;;  %v10134_v0 = vor.u32 %v12919_v58, %v10133_v56  ;;  %7801 = vmatpush.bf16.msrb.mxu1 %v9878_v19  ;;  %v7575_v56 = vpop.f32.mrf.mxu3  ;;  %v7538_v19 = vpop.f32.mrf.mxu0 }
 0x5d1   : > { %v12983_v63 = vld [vmem:[%s13878_s25 + $0xfb4] sm:$0xf0]  ;;  %v15707_v12 = vadd.f32 %v7575_v56, %v7563_v17 }
 0x5d2   : > { %v9589_v1 = vld [vmem:[%s13878_s25 + $0x958] sm:$0xf]  ;;  %v10390_v41 = vor.u32 %v12983_v63, %v10389_v59  ;;  %7814 = vmatpush.bf16.msrb.mxu2 %v10134_v0 }
 0x5d3   : > { %v12783_v2 = vld [vmem:[%s13878_s25 + $0x974] sm:$0xf0] }
 0x5d4   : > { %v9845_v3 = vld [vmem:[%s13878_s25 + $0xb58] sm:$0xf]  ;;  %v9590_v14 = vor.u32 %v12783_v2, %v9589_v1  ;;  %7827 = vmatpush.bf16.msrb.mxu3 %v10390_v41 }
 0x5d5   : > { %v12847_v48 = vld [vmem:[%s13878_s25 + $0xb74] sm:$0xf0] }
 0x5d6   : > { %v10101_v9 = vld [vmem:[%s13878_s25 + $0xd58] sm:$0xf]  ;;  %v9846_v15 = vor.u32 %v12847_v48, %v9845_v3  ;;  %7789 = vmatpush.bf16.msrb.mxu0 %v9590_v14  ;;  %v7551_v48 = vpop.f32.mrf.mxu1 }
 0x5d7   : > { %v12911_v10 = vld [vmem:[%s13878_s25 + $0xd74] sm:$0xf0] }
 0x5d8   : > { %v10357_v51 = vld [vmem:[%s13878_s25 + $0xf58] sm:$0xf]  ;;  %v10102_v16 = vor.u32 %v12911_v10, %v10101_v9  ;;  %7802 = vmatpush.bf16.msrb.mxu1 %v9846_v15 }
 0x5d9   : > { %v12975_v11 = vld [vmem:[%s13878_s25 + $0xf74] sm:$0xf0] }
 0x5da   : > { %v9557_v32 = vld [vmem:[%s13878_s25 + $0x918] sm:$0xf]  ;;  %v10358_v21 = vor.u32 %v12975_v11, %v10357_v51  ;;  %7815 = vmatpush.bf16.msrb.mxu2 %v10102_v16 }
 0x5db   : > { %v12775_v49 = vld [vmem:[%s13878_s25 + $0x934] sm:$0xf0] }
 0x5dc   : > { %v9813_v20 = vld [vmem:[%s13878_s25 + $0xb18] sm:$0xf]  ;;  %v9558_v39 = vor.u32 %v12775_v49, %v9557_v32  ;;  %7828 = vmatpush.bf16.msrb.mxu3 %v10358_v21 }
 0x5dd   : > { %v12839_v26 = vld [vmem:[%s13878_s25 + $0xb34] sm:$0xf0] }
 0x5de   : > { %v10069_v29 = vld [vmem:[%s13878_s25 + $0xd18] sm:$0xf]  ;;  %v9814_v52 = vor.u32 %v12839_v26, %v9813_v20  ;;  %7790 = vmatpush.bf16.msrb.mxu0 %v9558_v39 }
 0x5df   : > { %v12903_v33 = vld [vmem:[%s13878_s25 + $0xd34] sm:$0xf0] }
 0x5e0   : > { %v10325_v18 = vld [vmem:[%s13878_s25 + $0xf18] sm:$0xf]  ;;  %v10070_v46 = vor.u32 %v12903_v33, %v10069_v29  ;;  %7803 = vmatpush.bf16.msrb.mxu1 %v9814_v52 }
 0x5e1   : > { %v12967_v34 = vld [vmem:[%s13878_s25 + $0xf34] sm:$0xf0] }
 0x5e2   : > { %v9525_v37 = vld [vmem:[%s13878_s25 + $0x8d8] sm:$0xf]  ;;  %v10326_v40 = vor.u32 %v12967_v34, %v10325_v18  ;;  %7816 = vmatpush.bf16.msrb.mxu2 %v10070_v46  ;;  %v7564_v18 = vpop.f32.mrf.mxu2  ;;  %v7577_v46 = vpop.f32.mrf.mxu3 }
 0x5e3   : > { %v12767_v57 = vld [vmem:[%s13878_s25 + $0x8f4] sm:$0xf0] }
 0x5e4   : > { %v9781_v60 = vld [vmem:[%s13878_s25 + $0xad8] sm:$0xf]  ;;  %v9526_v13 = vor.u32 %v12767_v57, %v9525_v37  ;;  %7829 = vmatpush.bf16.msrb.mxu3 %v10326_v40 }
 0x5e5   : > { %v12831_v61 = vld [vmem:[%s13878_s25 + $0xaf4] sm:$0xf0] }
 0x5e6   : > { %v10037_v42 = vld [vmem:[%s13878_s25 + $0xcd8] sm:$0xf]  ;;  %v9782_v4 = vor.u32 %v12831_v61, %v9781_v60  ;;  %7791 = vmatpush.bf16.msrb.mxu0 %v9526_v13 }
 0x5e7   : > { %v12895_v43 = vld [vmem:[%s13878_s25 + $0xcf4] sm:$0xf0] }
 0x5e8   : > { %v10293_v55 = vld [vmem:[%s13878_s25 + $0xed8] sm:$0xf]  ;;  %v10038_v44 = vor.u32 %v12895_v43, %v10037_v42  ;;  %7804 = vmatpush.bf16.msrb.mxu1 %v9782_v4 }
 0x5e9   : > { %v12959_v36 = vld [vmem:[%s13878_s25 + $0xef4] sm:$0xf0] }
 0x5ea   : > { %v9493_v6 = vld [vmem:[%s13878_s25 + $0x898] sm:$0xf]  ;;  %v10294_v53 = vor.u32 %v12959_v36, %v10293_v55  ;;  %7817 = vmatpush.bf16.msrb.mxu2 %v10038_v44 }
 0x5eb   : > { %v12759_v47 = vld [vmem:[%s13878_s25 + $0x8b4] sm:$0xf0] }
 0x5ec   : > { %v9749_v5 = vld [vmem:[%s13878_s25 + $0xa98] sm:$0xf]  ;;  %v9494_v63 = vor.u32 %v12759_v47, %v9493_v6  ;;  %7830 = vmatpush.bf16.msrb.mxu3 %v10294_v53 }
 0x5ed   : > { %v12823_v8 = vld [vmem:[%s13878_s25 + $0xab4] sm:$0xf0] }
 0x5ee   : > { %v10005_v45 = vld [vmem:[%s13878_s25 + $0xc98] sm:$0xf]  ;;  %v9750_v0 = vor.u32 %v12823_v8, %v9749_v5  ;;  %7792 = vmatpush.bf16.msrb.mxu0 %v9494_v63 }
 0x5ef   : > { %v12887_v54 = vld [vmem:[%s13878_s25 + $0xcb4] sm:$0xf0] }
 0x5f0   : > { %v10261_v58 = vld [vmem:[%s13878_s25 + $0xe98] sm:$0xf]  ;;  %v10006_v1 = vor.u32 %v12887_v54, %v10005_v45  ;;  %7805 = vmatpush.bf16.msrb.mxu1 %v9750_v0 }
 0x5f1   : > { %v12951_v59 = vld [vmem:[%s13878_s25 + $0xeb4] sm:$0xf0] }
 0x5f2   : > { %v9461_v2 = vld [vmem:[%s13878_s25 + $0x858] sm:$0xf]  ;;  %v10262_v9 = vor.u32 %v12951_v59, %v10261_v58  ;;  %7818 = vmatpush.bf16.msrb.mxu2 %v10006_v1 }
 0x5f3   : > { %v12751_v3 = vld [vmem:[%s13878_s25 + $0x874] sm:$0xf0] }
 0x5f4   : > { %v9717_v41 = vld [vmem:[%s13878_s25 + $0xa58] sm:$0xf]  ;;  %v9462_v16 = vor.u32 %v12751_v3, %v9461_v2  ;;  %7831 = vmatpush.bf16.msrb.mxu3 %v10262_v9 }
 0x5f5   : > { %v12815_v10 = vld [vmem:[%s13878_s25 + $0xa74] sm:$0xf0] }
 0x5f6   : > { %v9973_v51 = vld [vmem:[%s13878_s25 + $0xc58] sm:$0xf]  ;;  %v9718_v20 = vor.u32 %v12815_v10, %v9717_v41  ;;  %7793 = vmatpush.bf16.msrb.mxu0 %v9462_v16 }
 0x5f7   : > { %v12879_v11 = vld [vmem:[%s13878_s25 + $0xc74] sm:$0xf0] }
 0x5f8   : > { %v10229_v14 = vld [vmem:[%s13878_s25 + $0xe58] sm:$0xf]  ;;  %v9974_v21 = vor.u32 %v12879_v11, %v9973_v51  ;;  %7806 = vmatpush.bf16.msrb.mxu1 %v9718_v20 }
 0x5f9   : > { %v12943_v15 = vld [vmem:[%s13878_s25 + $0xe74] sm:$0xf0] }
 0x5fa   : > { %v9429_v32 = vld [vmem:[%s13878_s25 + $0x818] sm:$0xf]  ;;  %v10230_v34 = vor.u32 %v12943_v15, %v10229_v14  ;;  %7819 = vmatpush.bf16.msrb.mxu2 %v9974_v21 }
 0x5fb   : > { %v12743_v49 = vld [vmem:[%s13878_s25 + $0x834] sm:$0xf0] }
 0x5fc   : > { %v9685_v26 = vld [vmem:[%s13878_s25 + $0xa18] sm:$0xf]  ;;  %v9430_v38 = vor.u32 %v12743_v49, %v9429_v32  ;;  %7832 = vmatpush.bf16.msrb.mxu3 %v10230_v34  ;;  %v15761_v34 = vpop.f32.mrf.mxu0 }
 0x5fd   : > { %v12807_v29 = vld [vmem:[%s13878_s25 + $0xa34] sm:$0xf0] }
 0x5fe   : > { %v9941_v33 = vld [vmem:[%s13878_s25 + $0xc18] sm:$0xf]  ;;  %v9686_v43 = vor.u32 %v12807_v29, %v9685_v26  ;;  %7794 = vmatpush.bf16.msrb.mxu0 %v9430_v38 }
 0x5ff   : > { %v12871_v39 = vld [vmem:[%s13878_s25 + $0xc34] sm:$0xf0] }
 0x600   : > { %v10197_v35 = vld [vmem:[%s13878_s25 + $0xe18] sm:$0xf]  ;;  %v9942_v62 = vor.u32 %v12871_v39, %v9941_v33  ;;  %7807 = vmatpush.bf16.msrb.mxu1 %v9686_v43 }
 0x601   : > { %v12935_v52 = vld [vmem:[%s13878_s25 + $0xe34] sm:$0xf0]  ;;  %7795 = vmatmul.bf16.vlgmr.msrb.gmra.mxu0 %v14054_v23 }
 0x602   : > { %v10677_v37 = vld [vmem:[%s13878_s25 + $0x11d8] sm:$0xf]  ;;  %v10198_v13 = vor.u32 %v12935_v52, %v10197_v35  ;;  %7820 = vmatpush.bf16.msrb.mxu2 %v9942_v62 }
 0x603   : > { %v13055_v57 = vld [vmem:[%s13878_s25 + $0x11f4] sm:$0xf0]  ;;  %7808 = vmatmul.bf16.vlgmr.msrb.gmra.mxu1 %v14058_v31 }
 0x604   : > { %v10933_v60 = vld [vmem:[%s13878_s25 + $0x13d8] sm:$0xf]  ;;  %v10678_v4 = vor.u32 %v13055_v57, %v10677_v37  ;;  %7833 = vmatpush.bf16.msrb.mxu3 %v10198_v13  ;;  %v15766_v57 = vpop.f32.mrf.mxu1 }
 0x605   : > { %v13119_v40 = vld [vmem:[%s13878_s25 + $0x13f4] sm:$0xf0]  ;;  %7821 = vmatmul.bf16.vlgmr.msrb.gmra.mxu2 %v14052_v22 }
 0x606   : > { %v11189_v61 = vld [vmem:[%s13878_s25 + $0x15d8] sm:$0xf]  ;;  %v10934_v44 = vor.u32 %v13119_v40, %v10933_v60  ;;  %7839 = vmatpush.bf16.msra.mxu0 %v10678_v4 }
 0x607   : > { %v13183_v42 = vld [vmem:[%s13878_s25 + $0x15f4] sm:$0xf0]  ;;  %7834 = vmatmul.bf16.vlgmr.msrb.gmra.mxu3 %v14056_v30 }
 0x608   : > { %v11445_v55 = vld [vmem:[%s13878_s25 + $0x17d8] sm:$0xf]  ;;  %v11190_v6 = vor.u32 %v13183_v42, %v11189_v61  ;;  %7852 = vmatpush.bf16.msra.mxu1 %v10934_v44 }
 0x609   : > { %v13247_v36 = vld [vmem:[%s13878_s25 + $0x17f4] sm:$0xf0] }
 0x60a   : > { %v10645_v47 = vld [vmem:[%s13878_s25 + $0x1198] sm:$0xf]  ;;  %v11446_v53 = vor.u32 %v13247_v36, %v11445_v55  ;;  %7865 = vmatpush.bf16.msra.mxu2 %v11190_v6  ;;  %v15776_v6 = vpop.f32.mrf.mxu2 }
 0x60b   : > { %v13047_v5 = vld [vmem:[%s13878_s25 + $0x11b4] sm:$0xf0] }
 0x60c   : > { %v10901_v50 = vld [vmem:[%s13878_s25 + $0x1398] sm:$0xf]  ;;  %v10646_v58 = vor.u32 %v13047_v5, %v10645_v47  ;;  %7878 = vmatpush.bf16.msra.mxu3 %v11446_v53 }
 0x60d   : > { %v13111_v8 = vld [vmem:[%s13878_s25 + $0x13b4] sm:$0xf0] }
 0x60e   : > { %v11157_v45 = vld [vmem:[%s13878_s25 + $0x1598] sm:$0xf]  ;;  %v10902_v59 = vor.u32 %v13111_v8, %v10901_v50  ;;  %7840 = vmatpush.bf16.msra.mxu0 %v10646_v58  ;;  %v15781_v8 = vpop.f32.mrf.mxu3 }
 0x60f   : > { %v13175_v54 = vld [vmem:[%s13878_s25 + $0x15b4] sm:$0xf0] }
 0x610   : > { %v11413_v17 = vld [vmem:[%s13878_s25 + $0x1798] sm:$0xf]  ;;  %v11158_v63 = vor.u32 %v13175_v54, %v11157_v45  ;;  %7853 = vmatpush.bf16.msra.mxu1 %v10902_v59 }
 0x611   : > { %v13239_v56 = vld [vmem:[%s13878_s25 + $0x17b4] sm:$0xf0] }
 0x612   : > { %v10613_v19 = vld [vmem:[%s13878_s25 + $0x1158] sm:$0xf]  ;;  %v11414_v2 = vor.u32 %v13239_v56, %v11413_v17  ;;  %7866 = vmatpush.bf16.msra.mxu2 %v11158_v63  ;;  %v7590_v56 = vpop.f32.mrf.mxu0 }
 0x613   : > { %v13039_v0 = vld [vmem:[%s13878_s25 + $0x1174] sm:$0xf0] }
 0x614   : > { %v10869_v1 = vld [vmem:[%s13878_s25 + $0x1358] sm:$0xf]  ;;  %v10614_v51 = vor.u32 %v13039_v0, %v10613_v19  ;;  %7879 = vmatpush.bf16.msra.mxu3 %v11414_v2 }
 0x615   : > { %v13103_v3 = vld [vmem:[%s13878_s25 + $0x1374] sm:$0xf0] }
 0x616   : > { %v11125_v41 = vld [vmem:[%s13878_s25 + $0x1558] sm:$0xf]  ;;  %v10870_v11 = vor.u32 %v13103_v3, %v10869_v1  ;;  %7841 = vmatpush.bf16.msra.mxu0 %v10614_v51  ;;  %v7603_v1 = vpop.f32.mrf.mxu1 }
 0x617   : > { %v13167_v48 = vld [vmem:[%s13878_s25 + $0x1574] sm:$0xf0] }
 0x618   : > { %v11381_v9 = vld [vmem:[%s13878_s25 + $0x1758] sm:$0xf]  ;;  %v11126_v14 = vor.u32 %v13167_v48, %v11125_v41  ;;  %7854 = vmatpush.bf16.msra.mxu1 %v10870_v11 }
 0x619   : > { %v13231_v10 = vld [vmem:[%s13878_s25 + $0x1774] sm:$0xf0] }
 0x61a   : > { %v10581_v15 = vld [vmem:[%s13878_s25 + $0x1118] sm:$0xf]  ;;  %v11382_v49 = vor.u32 %v13231_v10, %v11381_v9  ;;  %7867 = vmatpush.bf16.msra.mxu2 %v11126_v14 }
 0x61b   : > { %v13031_v16 = vld [vmem:[%s13878_s25 + $0x1134] sm:$0xf0] }
 0x61c   : > { %v10837_v32 = vld [vmem:[%s13878_s25 + $0x1318] sm:$0xf]  ;;  %v10582_v18 = vor.u32 %v13031_v16, %v10581_v15  ;;  %7880 = vmatpush.bf16.msra.mxu3 %v11382_v49 }
 0x61d   : > { %v13095_v20 = vld [vmem:[%s13878_s25 + $0x1334] sm:$0xf0] }
 0x61e   : > { %v11093_v21 = vld [vmem:[%s13878_s25 + $0x1518] sm:$0xf]  ;;  %v10838_v39 = vor.u32 %v13095_v20, %v10837_v32  ;;  %7842 = vmatpush.bf16.msra.mxu0 %v10582_v18 }
 0x61f   : > { %v13159_v26 = vld [vmem:[%s13878_s25 + $0x1534] sm:$0xf0] }
 0x620   : > { %v11349_v29 = vld [vmem:[%s13878_s25 + $0x1718] sm:$0xf]  ;;  %v11094_v35 = vor.u32 %v13159_v26, %v11093_v21  ;;  %7855 = vmatpush.bf16.msra.mxu1 %v10838_v39  ;;  %v7616_v21 = vpop.f32.mrf.mxu2  ;;  %v7629_v39 = vpop.f32.mrf.mxu3 }
 0x621   : > { %v13223_v33 = vld [vmem:[%s13878_s25 + $0x1734] sm:$0xf0] }
 0x622   : > { %v10549_v52 = vld [vmem:[%s13878_s25 + $0x10d8] sm:$0xf]  ;;  %v11350_v60 = vor.u32 %v13223_v33, %v11349_v29  ;;  %7868 = vmatpush.bf16.msra.mxu2 %v11094_v35 }
 0x623   : > { %v13023_v46 = vld [vmem:[%s13878_s25 + $0x10f4] sm:$0xf0] }
 0x624   : > { %v10805_v37 = vld [vmem:[%s13878_s25 + $0x12d8] sm:$0xf]  ;;  %v10550_v62 = vor.u32 %v13023_v46, %v10549_v52  ;;  %7881 = vmatpush.bf16.msra.mxu3 %v11350_v60 }
 0x625   : > { %v13087_v38 = vld [vmem:[%s13878_s25 + $0x12f4] sm:$0xf0] }
 0x626   : > { %v11061_v40 = vld [vmem:[%s13878_s25 + $0x14d8] sm:$0xf]  ;;  %v10806_v55 = vor.u32 %v13087_v38, %v10805_v37  ;;  %7843 = vmatpush.bf16.msra.mxu0 %v10550_v62 }
 0x627   : > { %v13151_v61 = vld [vmem:[%s13878_s25 + $0x14f4] sm:$0xf0] }
 0x628   : > { %v11317_v42 = vld [vmem:[%s13878_s25 + $0x16d8] sm:$0xf]  ;;  %v11062_v36 = vor.u32 %v13151_v61, %v11061_v40  ;;  %7856 = vmatpush.bf16.msra.mxu1 %v10806_v55 }
 0x629   : > { %v13215_v43 = vld [vmem:[%s13878_s25 + $0x16f4] sm:$0xf0] }
 0x62a   : > { %v10517_v13 = vld [vmem:[%s13878_s25 + $0x1098] sm:$0xf]  ;;  %v11318_v47 = vor.u32 %v13215_v43, %v11317_v42  ;;  %7869 = vmatpush.bf16.msra.mxu2 %v11062_v36 }
 0x62b   : > { %v13015_v4 = vld [vmem:[%s13878_s25 + $0x10b4] sm:$0xf0] }
 0x62c   : > { %v10773_v44 = vld [vmem:[%s13878_s25 + $0x1298] sm:$0xf]  ;;  %v10518_v17 = vor.u32 %v13015_v4, %v10517_v13  ;;  %7882 = vmatpush.bf16.msra.mxu3 %v11318_v47 }
 0x62d   : > { %v13079_v5 = vld [vmem:[%s13878_s25 + $0x12b4] sm:$0xf0] }
 0x62e   : > { %v11029_v50 = vld [vmem:[%s13878_s25 + $0x1498] sm:$0xf]  ;;  %v10774_v58 = vor.u32 %v13079_v5, %v10773_v44  ;;  %7844 = vmatpush.bf16.msra.mxu0 %v10518_v17 }
 0x62f   : > { %v13143_v53 = vld [vmem:[%s13878_s25 + $0x14b4] sm:$0xf0] }
 0x630   : > { %v11285_v45 = vld [vmem:[%s13878_s25 + $0x1698] sm:$0xf]  ;;  %v11030_v59 = vor.u32 %v13143_v53, %v11029_v50  ;;  %7857 = vmatpush.bf16.msra.mxu1 %v10774_v58 }
 0x631   : > { %v13207_v54 = vld [vmem:[%s13878_s25 + $0x16b4] sm:$0xf0] }
 0x632   : > { %v10485_v63 = vld [vmem:[%s13878_s25 + $0x1058] sm:$0xf]  ;;  %v11286_v2 = vor.u32 %v13207_v54, %v11285_v45  ;;  %7870 = vmatpush.bf16.msra.mxu2 %v11030_v59 }
 0x633   : > { %v13007_v19 = vld [vmem:[%s13878_s25 + $0x1074] sm:$0xf0] }
 0x634   : > { %v10741_v0 = vld [vmem:[%s13878_s25 + $0x1258] sm:$0xf]  ;;  %v10486_v51 = vor.u32 %v13007_v19, %v10485_v63  ;;  %7883 = vmatpush.bf16.msra.mxu3 %v11286_v2 }
 0x635   : > { %v13071_v3 = vld [vmem:[%s13878_s25 + $0x1274] sm:$0xf0] }
 0x636   : > { %v10997_v41 = vld [vmem:[%s13878_s25 + $0x1458] sm:$0xf]  ;;  %v10742_v15 = vor.u32 %v13071_v3, %v10741_v0  ;;  %7845 = vmatpush.bf16.msra.mxu0 %v10486_v51  ;;  %v13609_v51 = vld.sshfl [vmem:[#allocation1 + $0x8] sm:$0xff pattern:$0x73625140] }
 0x637   : > { %v13135_v48 = vld [vmem:[%s13878_s25 + $0x1474] sm:$0xf0] }
 0x638   : > { %v11253_v9 = vld [vmem:[%s13878_s25 + $0x1658] sm:$0xf]  ;;  %v10998_v16 = vor.u32 %v13135_v48, %v10997_v41  ;;  %7858 = vmatpush.bf16.msra.mxu1 %v10742_v15  ;;  %v13610_v15 = vld.sshfl [vmem:[#allocation1 + $0x18] sm:$0xff pattern:$0x73625140] }
 0x639   : > { %v13199_v10 = vld [vmem:[%s13878_s25 + $0x1674] sm:$0xf0] }
 0x63a   : > { %v10453_v11 = vld [vmem:[%s13878_s25 + $0x1018] sm:$0xf]  ;;  %v11254_v26 = vor.u32 %v13199_v10, %v11253_v9  ;;  %7871 = vmatpush.bf16.msra.mxu2 %v10998_v16  ;;  %v13608_v10 = vld.sshfl [vmem:[#allocation1 + $0x10] sm:$0xff pattern:$0x73625140] }
 0x63b   : > { %v12999_v14 = vld [vmem:[%s13878_s25 + $0x1034] sm:$0xf0] }
 0x63c   : > { %v10709_v32 = vld [vmem:[%s13878_s25 + $0x1218] sm:$0xf]  ;;  %v10454_v37 = vor.u32 %v12999_v14, %v10453_v11  ;;  %7884 = vmatpush.bf16.msra.mxu3 %v11254_v26 }
 0x63d   : > { %v13063_v49 = vld [vmem:[%s13878_s25 + $0x1234] sm:$0xf0] }
 0x63e   : > { %v10965_v20 = vld [vmem:[%s13878_s25 + $0x1418] sm:$0xf]  ;;  %v10710_v61 = vor.u32 %v13063_v49, %v10709_v32  ;;  %7846 = vmatpush.bf16.msra.mxu0 %v10454_v37 }
 0x63f   : > { %v13127_v29 = vld [vmem:[%s13878_s25 + $0x1434] sm:$0xf0] }
 0x640   : > { %v11221_v33 = vld [vmem:[%s13878_s25 + $0x1618] sm:$0xf]  ;;  %v10966_v42 = vor.u32 %v13127_v29, %v10965_v20  ;;  %7859 = vmatpush.bf16.msra.mxu1 %v10710_v61 }
 0x641   : > { %v13191_v18 = vld [vmem:[%s13878_s25 + $0x1634] sm:$0xf0] }
 0x642   : > { %v11701_v35 = vld [vmem:[%s13878_s25 + $0x19d8] sm:$0xf]  ;;  %v11222_v55 = vor.u32 %v13191_v18, %v11221_v33  ;;  %7872 = vmatpush.bf16.msra.mxu2 %v10966_v42 }
 0x643   : > { %v13311_v52 = vld [vmem:[%s13878_s25 + $0x19f4] sm:$0xf0]  ;;  %7860 = vmatmul.bf16.vlgmr.msra.gmra.mxu1 %v13609_v51 }
 0x644   : > { %v11957_v46 = vld [vmem:[%s13878_s25 + $0x1bd8] sm:$0xf]  ;;  %v11702_v36 = vor.u32 %v13311_v52, %v11701_v35  ;;  %7885 = vmatpush.bf16.msra.mxu3 %v11222_v55  ;;  %v15831_v35 = vpop.f32.mrf.mxu0 }
 0x645   : > { %v13375_v60 = vld [vmem:[%s13878_s25 + $0x1bf4] sm:$0xf0]  ;;  %7873 = vmatmul.bf16.vlgmr.msra.gmra.mxu2 %v13608_v10 }
 0x646   : > { %v12213_v38 = vld [vmem:[%s13878_s25 + $0x1dd8] sm:$0xf]  ;;  %v11958_v13 = vor.u32 %v13375_v60, %v11957_v46  ;;  %7891 = vmatpush.bf16.msrb.mxu0 %v11702_v36  ;;  %v15835_v60 = vpop.f32.mrf.mxu1 }
 0x647   : > { %v13439_v40 = vld [vmem:[%s13878_s25 + $0x1df4] sm:$0xf0]  ;;  %7886 = vmatmul.bf16.vlgmr.msra.gmra.mxu3 %v13610_v15 }
 0x648   : > { %v12469_v43 = vld [vmem:[%s13878_s25 + $0x1fd8] sm:$0xf]  ;;  %v12214_v4 = vor.u32 %v13439_v40, %v12213_v38  ;;  %7904 = vmatpush.bf16.msrb.mxu1 %v11958_v13 }
 0x649   : > { %v13503_v62 = vld [vmem:[%s13878_s25 + $0x1ff4] sm:$0xf0] }
 0x64a   : > { %v11669_v44 = vld [vmem:[%s13878_s25 + $0x1998] sm:$0xf]  ;;  %v12470_v50 = vor.u32 %v13503_v62, %v12469_v43  ;;  %7917 = vmatpush.bf16.msrb.mxu2 %v12214_v4 }
 0x64b   : > { %v13303_v47 = vld [vmem:[%s13878_s25 + $0x19b4] sm:$0xf0] }
 0x64c   : > { %v11925_v5 = vld [vmem:[%s13878_s25 + $0x1b98] sm:$0xf]  ;;  %v11670_v58 = vor.u32 %v13303_v47, %v11669_v44  ;;  %7930 = vmatpush.bf16.msrb.mxu3 %v12470_v50 }
 0x64d   : > { %v13367_v53 = vld [vmem:[%s13878_s25 + $0x1bb4] sm:$0xf0] }
 0x64e   : > { %v12181_v45 = vld [vmem:[%s13878_s25 + $0x1d98] sm:$0xf]  ;;  %v11926_v59 = vor.u32 %v13367_v53, %v11925_v5  ;;  %7892 = vmatpush.bf16.msrb.mxu0 %v11670_v58  ;;  %v7589_v5 = vadd.f32 %v15761_v34, %v15707_v12  ;;  %v15850_v58 = vpop.f32.mrf.mxu2 }
 0x64f   : > { %v13431_v54 = vld [vmem:[%s13878_s25 + $0x1db4] sm:$0xf0] }
 0x650   : > { %v12437_v17 = vld [vmem:[%s13878_s25 + $0x1f98] sm:$0xf]  ;;  %v12182_v63 = vor.u32 %v13431_v54, %v12181_v45  ;;  %7905 = vmatpush.bf16.msrb.mxu1 %v11926_v59 }
 0x651   : > { %v13495_v56 = vld [vmem:[%s13878_s25 + $0x1fb4] sm:$0xf0] }
 0x652   : > { %v11637_v19 = vld [vmem:[%s13878_s25 + $0x1958] sm:$0xf]  ;;  %v12438_v3 = vor.u32 %v13495_v56, %v12437_v17  ;;  %7918 = vmatpush.bf16.msrb.mxu2 %v12182_v63 }
 0x653   : > { %v13295_v0 = vld [vmem:[%s13878_s25 + $0x1974] sm:$0xf0] }
 0x654   : > { %v11893_v1 = vld [vmem:[%s13878_s25 + $0x1b58] sm:$0xf]  ;;  %v11638_v16 = vor.u32 %v13295_v0, %v11637_v19  ;;  %7931 = vmatpush.bf16.msrb.mxu3 %v12438_v3  ;;  %v15855_v0 = vpop.f32.mrf.mxu3  ;;  %v7655_v3 = vpop.f32.mrf.mxu1 }
 0x655   : > { %v13607_v2 = vld.sshfl [vmem:[#allocation1] sm:$0xff pattern:$0x73625140] }
 0x656   : > { %7847 = vmatmul.bf16.vlgmr.msra.gmra.mxu0 %v13607_v2  ;;  %v13359_v41 = vld [vmem:[%s13878_s25 + $0x1b74] sm:$0xf0]  ;;  %v9111_v3 = vld [vmem:[%s13878_s25 + $0x5b8] sm:$0xf0] }
 0x657   : > { %v12149_v48 = vld [vmem:[%s13878_s25 + $0x1d58] sm:$0xf]  ;;  %v11894_v32 = vor.u32 %v13359_v41, %v11893_v1  ;;  %7893 = vmatpush.bf16.msrb.mxu0 %v11638_v16  ;;  %v7642_v1 = vpop.f32.mrf.mxu0  ;;  %v7602_v41 = vadd.f32 %v15766_v57, %v7589_v5 }
 0x658   : > { %v13423_v9 = vld [vmem:[%s13878_s25 + $0x1d74] sm:$0xf0]  ;;  %v8855_v1 = vld [vmem:[%s13878_s25 + $0x3b8] sm:$0xf0] }
 0x659   : > { %v12405_v11 = vld [vmem:[%s13878_s25 + $0x1f58] sm:$0xf]  ;;  %v12150_v49 = vor.u32 %v13423_v9, %v12149_v48  ;;  %7906 = vmatpush.bf16.msrb.mxu1 %v11894_v32 }
 0x65a   : > { %v13487_v14 = vld [vmem:[%s13878_s25 + $0x1f74] sm:$0xf0] }
 0x65b   : > { %v11605_v20 = vld [vmem:[%s13878_s25 + $0x1918] sm:$0xf]  ;;  %v12406_v29 = vor.u32 %v13487_v14, %v12405_v11  ;;  %7919 = vmatpush.bf16.msrb.mxu2 %v12150_v49 }
 0x65c   : > { %v13287_v21 = vld [vmem:[%s13878_s25 + $0x1934] sm:$0xf0] }
 0x65d   : > { %v11861_v26 = vld [vmem:[%s13878_s25 + $0x1b18] sm:$0xf]  ;;  %v11606_v37 = vor.u32 %v13287_v21, %v11605_v20  ;;  %7932 = vmatpush.bf16.msrb.mxu3 %v12406_v29  ;;  %v7615_v29 = vadd.f32 %v15776_v6, %v7602_v41  ;;  %v12539_v6 = vld [vmem:[%s13878_s25 + $0x1dc] sm:$0xf] }
 0x65e   : > { %v13351_v33 = vld [vmem:[%s13878_s25 + $0x1b34] sm:$0xf0]  ;;  %v12723_v41 = vld [vmem:[%s13878_s25 + $0x79c] sm:$0xf] }
 0x65f   : > { %v12117_v18 = vld [vmem:[%s13878_s25 + $0x1d18] sm:$0xf]  ;;  %v11862_v38 = vor.u32 %v13351_v33, %v11861_v26  ;;  %7894 = vmatpush.bf16.msrb.mxu0 %v11606_v37 }
 0x660   : > { %v13415_v39 = vld [vmem:[%s13878_s25 + $0x1d34] sm:$0xf0] }
 0x661   : > { %v12373_v52 = vld [vmem:[%s13878_s25 + $0x1f18] sm:$0xf]  ;;  %v12118_v40 = vor.u32 %v13415_v39, %v12117_v18  ;;  %7907 = vmatpush.bf16.msrb.mxu1 %v11862_v38 }
 0x662   : > { %v13479_v46 = vld [vmem:[%s13878_s25 + $0x1f34] sm:$0xf0] }
 0x663   : > { %v11573_v61 = vld [vmem:[%s13878_s25 + $0x18d8] sm:$0xf]  ;;  %v12374_v62 = vor.u32 %v13479_v46, %v12373_v52  ;;  %7920 = vmatpush.bf16.msrb.mxu2 %v12118_v40 }
 0x664   : > { %v13279_v42 = vld [vmem:[%s13878_s25 + $0x18f4] sm:$0xf0] }
 0x665   : > { %v11829_v43 = vld [vmem:[%s13878_s25 + $0x1ad8] sm:$0xf]  ;;  %v11574_v47 = vor.u32 %v13279_v42, %v11573_v61  ;;  %7933 = vmatpush.bf16.msrb.mxu3 %v12374_v62  ;;  %v7668_v42 = vpop.f32.mrf.mxu2  ;;  %v12603_v62 = vld [vmem:[%s13878_s25 + $0x3dc] sm:$0xf] }
 0x666   : > { %v13343_v55 = vld [vmem:[%s13878_s25 + $0x1af4] sm:$0xf0]  ;;  %v12643_v42 = vld [vmem:[%s13878_s25 + $0x51c] sm:$0xf] }
 0x667   : > { %v12085_v36 = vld [vmem:[%s13878_s25 + $0x1cd8] sm:$0xf]  ;;  %v11830_v50 = vor.u32 %v13343_v55, %v11829_v43  ;;  %7895 = vmatpush.bf16.msrb.mxu0 %v11574_v47  ;;  %v8631_v43 = vld [vmem:[%s13878_s25 + $0x1f8] sm:$0xf0]  ;;  %v7681_v55 = vpop.f32.mrf.mxu3  ;;  %v7628_v47 = vadd.f32 %v15781_v8, %v7615_v29 }
 0x668   : > { %v13407_v13 = vld [vmem:[%s13878_s25 + $0x1cf4] sm:$0xf0]  ;;  %v8599_v8 = vld [vmem:[%s13878_s25 + $0x1b8] sm:$0xf0] }
 0x669   : > { %v12341_v4 = vld [vmem:[%s13878_s25 + $0x1ed8] sm:$0xf]  ;;  %v12086_v53 = vor.u32 %v13407_v13, %v12085_v36  ;;  %7908 = vmatpush.bf16.msrb.mxu1 %v11830_v50  ;;  %v8887_v13 = vld [vmem:[%s13878_s25 + $0x3f8] sm:$0xf0] }
 0x66a   : > { %v13471_v44 = vld [vmem:[%s13878_s25 + $0x1ef4] sm:$0xf0]  ;;  %v12715_v29 = vld [vmem:[%s13878_s25 + $0x75c] sm:$0xf] }
 0x66b   : > { %v11541_v45 = vld [vmem:[%s13878_s25 + $0x1898] sm:$0xf]  ;;  %v12342_v56 = vor.u32 %v13471_v44, %v12341_v4  ;;  %7921 = vmatpush.bf16.msrb.mxu2 %v12086_v53  ;;  %v12667_v4 = vld [vmem:[%s13878_s25 + $0x5dc] sm:$0xf] }
 0x66c   : > { %v13271_v54 = vld [vmem:[%s13878_s25 + $0x18b4] sm:$0xf0]  ;;  %v9143_v44 = vld [vmem:[%s13878_s25 + $0x5f8] sm:$0xf0] }
 0x66d   : > { %v11797_v17 = vld [vmem:[%s13878_s25 + $0x1a98] sm:$0xf]  ;;  %v11542_v2 = vor.u32 %v13271_v54, %v11541_v45  ;;  %7934 = vmatpush.bf16.msrb.mxu3 %v12342_v56  ;;  %v12731_v53 = vld [vmem:[%s13878_s25 + $0x7dc] sm:$0xf]  ;;  %v7641_v56 = vadd.f32 %v15831_v35, %v7628_v47 }
 0x66e   : > { %v13335_v59 = vld [vmem:[%s13878_s25 + $0x1ab4] sm:$0xf0]  ;;  %v9399_v45 = vld [vmem:[%s13878_s25 + $0x7f8] sm:$0xf0] }
 0x66f   : > { %v12053_v63 = vld [vmem:[%s13878_s25 + $0x1c98] sm:$0xf]  ;;  %v11798_v48 = vor.u32 %v13335_v59, %v11797_v17  ;;  %7896 = vmatpush.bf16.msrb.mxu0 %v11542_v2  ;;  %v8634_v17 = vor.u32 %v12539_v6, %v8631_v43  ;;  %v8890_v59 = vor.u32 %v12603_v62, %v8887_v13  ;;  %v12659_v2 = vld [vmem:[%s13878_s25 + $0x59c] sm:$0xf]  ;;  %v7692_v62 = vpop.f32.mrf.mxu0 }
 0x670   : > { %v13399_v19 = vld [vmem:[%s13878_s25 + $0x1cb4] sm:$0xf0]  ;;  %v9047_v6 = vld [vmem:[%s13878_s25 + $0x538] sm:$0xf0] }
 0x671   : > { %v12309_v12 = vld [vmem:[%s13878_s25 + $0x1e98] sm:$0xf]  ;;  %v12054_v9 = vor.u32 %v13399_v19, %v12053_v63  ;;  %7909 = vmatpush.bf16.msrb.mxu1 %v11798_v48  ;;  %v9146_v63 = vor.u32 %v12667_v4, %v9143_v44  ;;  %v12531_v19 = vld [vmem:[%s13878_s25 + $0x19c] sm:$0xf]  ;;  %v7705_v4 = vpop.f32.mrf.mxu1 }
 0x672   : > { %v13463_v34 = vld [vmem:[%s13878_s25 + $0x1eb4] sm:$0xf0]  ;;  %v9367_v48 = vld [vmem:[%s13878_s25 + $0x7b8] sm:$0xf0]  ;;  %v8602_v35 = vor.u32 %v12531_v19, %v8599_v8 }
 0x673   : > { %v11509_v10 = vld [vmem:[%s13878_s25 + $0x1858] sm:$0xf]  ;;  %v12310_v14 = vor.u32 %v13463_v34, %v12309_v12  ;;  %7922 = vmatpush.bf16.msrb.mxu2 %v12054_v9  ;;  %v12595_v12 = vld [vmem:[%s13878_s25 + $0x39c] sm:$0xf]  ;;  %v9402_v34 = vor.u32 %v12731_v53, %v9399_v45  ;;  %v7654_v9 = vadd.f32 %v15835_v60, %v7641_v56 }
 0x674   : > { %v13263_v51 = vld [vmem:[%s13878_s25 + $0x1874] sm:$0xf0]  ;;  %v13612_v60 = vld.sshfl [vmem:[#allocation1 + $0x30] sm:$0xff pattern:$0x73625140] }
 0x675   : > { %v11765_v11 = vld [vmem:[%s13878_s25 + $0x1a58] sm:$0xf]  ;;  %v11510_v20 = vor.u32 %v13263_v51, %v11509_v10  ;;  %7935 = vmatpush.bf16.msrb.mxu3 %v12310_v14  ;;  %v8858_v10 = vor.u32 %v12595_v12, %v8855_v1  ;;  %v9114_v51 = vor.u32 %v12659_v2, %v9111_v3  ;;  %v8567_v14 = vld [vmem:[%s13878_s25 + $0x178] sm:$0xf0] }
 0x676   : > { %v13327_v15 = vld [vmem:[%s13878_s25 + $0x1a74] sm:$0xf0]  ;;  %v12707_v55 = vld [vmem:[%s13878_s25 + $0x71c] sm:$0xf] }
 0x677   : > { %v12021_v16 = vld [vmem:[%s13878_s25 + $0x1c58] sm:$0xf]  ;;  %v11766_v33 = vor.u32 %v13327_v15, %v11765_v11  ;;  %7897 = vmatpush.bf16.msrb.mxu0 %v11510_v20  ;;  %v12523_v11 = vld [vmem:[%s13878_s25 + $0x15c] sm:$0xf] }
 0x678   : > { %v13391_v32 = vld [vmem:[%s13878_s25 + $0x1c74] sm:$0xf0]  ;;  %v12587_v15 = vld [vmem:[%s13878_s25 + $0x35c] sm:$0xf] }
 0x679   : > { %v12277_v49 = vld [vmem:[%s13878_s25 + $0x1e58] sm:$0xf]  ;;  %v12022_v18 = vor.u32 %v13391_v32, %v12021_v16  ;;  %7910 = vmatpush.bf16.msrb.mxu1 %v11766_v33  ;;  %v9370_v32 = vor.u32 %v12723_v41, %v9367_v48  ;;  %v9079_v20 = vld [vmem:[%s13878_s25 + $0x578] sm:$0xf0]  ;;  %v7718_v48 = vpop.f32.mrf.mxu2 }
 0x67a   : > { %v13455_v57 = vld [vmem:[%s13878_s25 + $0x1e74] sm:$0xf0]  ;;  %v9335_v33 = vld [vmem:[%s13878_s25 + $0x778] sm:$0xf0] }
 0x67b   : > { %v11477_v21 = vld [vmem:[%s13878_s25 + $0x1818] sm:$0xf]  ;;  %v12278_v37 = vor.u32 %v13455_v57, %v12277_v49  ;;  %7923 = vmatpush.bf16.msrb.mxu2 %v12022_v18  ;;  %v8823_v49 = vld [vmem:[%s13878_s25 + $0x378] sm:$0xf0] }
 0x67c   : > { %v13255_v26 = vld [vmem:[%s13878_s25 + $0x1834] sm:$0xf0]  ;;  %v12651_v57 = vld [vmem:[%s13878_s25 + $0x55c] sm:$0xf] }
 0x67d   : > { %v11733_v39 = vld [vmem:[%s13878_s25 + $0x1a18] sm:$0xf]  ;;  %v11478_v36 = vor.u32 %v13255_v26, %v11477_v21  ;;  %7936 = vmatpush.bf16.msrb.mxu3 %v12278_v37  ;;  %v7667_v21 = vadd.f32 %v15850_v58, %v7654_v9  ;;  %v13613_v26 = vld.sshfl [vmem:[#allocation1 + $0x28] sm:$0xff pattern:$0x73625140]  ;;  %v8826_v58 = vor.u32 %v12587_v15, %v8823_v49  ;;  %v7707_v49 = vpop.f32.mrf.mxu1 }
 0x67e   : > { %v13319_v52 = vld [vmem:[%s13878_s25 + $0x1a34] sm:$0xf0]  ;;  %v13614_v18 = vld.sshfl [vmem:[#allocation1 + $0x38] sm:$0xff pattern:$0x73625140] }
 0x67f   : > { %v11989_v46 = vld [vmem:[%s13878_s25 + $0x1c18] sm:$0xf]  ;;  %v11734_v5 = vor.u32 %v13319_v52, %v11733_v39  ;;  %7898 = vmatpush.bf16.msrb.mxu0 %v11478_v36  ;;  %v8570_v39 = vor.u32 %v12523_v11, %v8567_v14  ;;  %v9082_v52 = vor.u32 %v12651_v57, %v9079_v20  ;;  %v8535_v37 = vld [vmem:[%s13878_s25 + $0x138] sm:$0xf0]  ;;  %v7680_v43 = vadd.f32 %v15855_v0, %v7667_v21  ;;  %v7731_v11 = vpop.f32.mrf.mxu3 }
 0x680   : > { %v13383_v38 = vld [vmem:[%s13878_s25 + $0x1c34] sm:$0xf0]  ;;  %v9303_v36 = vld [vmem:[%s13878_s25 + $0x738] sm:$0xf0] }
 0x681   : > { %v12245_v40 = vld [vmem:[%s13878_s25 + $0x1e18] sm:$0xf]  ;;  %v11990_v50 = vor.u32 %v13383_v38, %v11989_v46  ;;  %7911 = vmatpush.bf16.msrb.mxu1 %v11734_v5  ;;  %v12515_v46 = vld [vmem:[%s13878_s25 + $0x11c] sm:$0xf]  ;;  %v7693_v44 = vadd.f32 %v7692_v62, %v7680_v43  ;;  %v9050_v5 = vor.u32 %v12643_v42, %v9047_v6  ;;  %v9306_v45 = vor.u32 %v12707_v55, %v9303_v36 }
 0x682   : > { %v13447_v61 = vld [vmem:[%s13878_s25 + $0x1e34] sm:$0xf0]  ;;  %v12579_v38 = vld [vmem:[%s13878_s25 + $0x31c] sm:$0xf]  ;;  %v8538_v13 = vor.u32 %v12515_v46, %v8535_v37 }
 0x683   : > { %v12246_v54 = vor.u32 %v13447_v61, %v12245_v40  ;;  %7924 = vmatpush.bf16.msrb.mxu2 %v11990_v50  ;;  %7943 = vmatpush.bf16.msra.mxu0 %v8634_v17  ;;  %v13611_v16 = vld.sshfl [vmem:[#allocation1 + $0x20] sm:$0xff pattern:$0x73625140]  ;;  %v9338_v40 = vor.u32 %v12715_v29, %v9335_v33  ;;  %v7706_v8 = vadd.f32 %v7705_v4, %v7693_v44 }
 0x684   : > { %7899 = vmatmul.bf16.vlgmr.msrb.gmra.mxu0 %v13611_v16  ;;  %7912 = vmatmul.bf16.vlgmr.msrb.gmra.mxu1 %v13613_v26  ;;  %v8791_v61 = vld [vmem:[%s13878_s25 + $0x338] sm:$0xf0]  ;;  %v7694_v16 = vpop.f32.mrf.mxu0 }
 0x685   : > { %7937 = vmatpush.bf16.msrb.mxu3 %v12246_v54  ;;  %7956 = vmatpush.bf16.msra.mxu1 %v8890_v59  ;;  %v8794_v47 = vor.u32 %v12579_v38, %v8791_v61  ;;  %v12507_v50 = vld [vmem:[%s13878_s25 + $0xdc] sm:$0xf] }
 0x686   : > { %7925 = vmatmul.bf16.vlgmr.msrb.gmra.mxu2 %v13612_v60  ;;  %v8503_v53 = vld [vmem:[%s13878_s25 + $0xf8] sm:$0xf0] }
 0x687   : > { %7969 = vmatpush.bf16.msra.mxu2 %v9146_v63  ;;  %7944 = vmatpush.bf16.msra.mxu0 %v8602_v35  ;;  %v12571_v0 = vld [vmem:[%s13878_s25 + $0x2dc] sm:$0xf]  ;;  %v8506_v19 = vor.u32 %v12507_v50, %v8503_v53 }
 0x688   : > { %7938 = vmatmul.bf16.vlgmr.msrb.gmra.mxu3 %v13614_v18  ;;  %v8759_v54 = vld [vmem:[%s13878_s25 + $0x2f8] sm:$0xf0] }
 0x689   : > { %7982 = vmatpush.bf16.msra.mxu3 %v9402_v34  ;;  %7957 = vmatpush.bf16.msra.mxu1 %v8858_v10  ;;  %v12635_v17 = vld [vmem:[%s13878_s25 + $0x4dc] sm:$0xf]  ;;  %v8762_v12 = vor.u32 %v12571_v0, %v8759_v54 }
 0x68a   : > { %v9015_v56 = vld [vmem:[%s13878_s25 + $0x4f8] sm:$0xf0] }
 0x68b   : > { %7970 = vmatpush.bf16.msra.mxu2 %v9114_v51  ;;  %7945 = vmatpush.bf16.msra.mxu0 %v8570_v39  ;;  %v12699_v59 = vld [vmem:[%s13878_s25 + $0x6dc] sm:$0xf]  ;;  %v9018_v34 = vor.u32 %v12635_v17, %v9015_v56  ;;  %v7719_v51 = vadd.f32 %v7718_v48, %v7706_v8  ;;  %v7733_v17 = vpop.f32.mrf.mxu3 }
 0x68c   : > { %v9271_v63 = vld [vmem:[%s13878_s25 + $0x6f8] sm:$0xf0] }
 0x68d   : > { %7983 = vmatpush.bf16.msra.mxu3 %v9370_v32  ;;  %7958 = vmatpush.bf16.msra.mxu1 %v8826_v58  ;;  %v12499_v1 = vld [vmem:[%s13878_s25 + $0x9c] sm:$0xf]  ;;  %v9274_v41 = vor.u32 %v12699_v59, %v9271_v63  ;;  %v7732_v57 = vadd.f32 %v7731_v11, %v7719_v51 }
 0x68e   : > { %v8471_v2 = vld [vmem:[%s13878_s25 + $0xb8] sm:$0xf0] }
 0x68f   : > { %7971 = vmatpush.bf16.msra.mxu2 %v9082_v52  ;;  %7946 = vmatpush.bf16.msra.mxu0 %v8538_v13  ;;  %v12563_v3 = vld [vmem:[%s13878_s25 + $0x29c] sm:$0xf]  ;;  %v8474_v32 = vor.u32 %v12499_v1, %v8471_v2  ;;  %v8161_v46 = vrot.slane %v7732_v57, 4 }
 0x690   : > { %v8727_v35 = vld [vmem:[%s13878_s25 + $0x2b8] sm:$0xf0] }
 0x691   : > { %7984 = vmatpush.bf16.msra.mxu3 %v9338_v40  ;;  %7959 = vmatpush.bf16.msra.mxu1 %v8794_v47  ;;  %v12627_v9 = vld [vmem:[%s13878_s25 + $0x49c] sm:$0xf]  ;;  %v8730_v20 = vor.u32 %v12563_v3, %v8727_v35  ;;  %v8166_v43 = vsel %vm8163_vm0, %v15637_v7, %v8161_v46  ;;  %v7720_v7 = vpop.f32.mrf.mxu2 }
 0x692   : > { %v8983_v10 = vld [vmem:[%s13878_s25 + $0x4b8] sm:$0xf0] }
 0x693   : > { %7972 = vmatpush.bf16.msra.mxu2 %v9050_v5  ;;  %v12691_v14 = vld [vmem:[%s13878_s25 + $0x69c] sm:$0xf]  ;;  %7947 = vmatpush.bf16.msra.mxu0 %v8506_v19  ;;  %v8986_v21 = vor.u32 %v12627_v9, %v8983_v10 }
 0x694   : > { %v9239_v15 = vld [vmem:[%s13878_s25 + $0x6b8] sm:$0xf0] }
 0x695   : > { %7985 = vmatpush.bf16.msra.mxu3 %v9306_v45  ;;  %7960 = vmatpush.bf16.msra.mxu1 %v8762_v12  ;;  %v12491_v60 = vld [vmem:[%s13878_s25 + $0x5c] sm:$0xf]  ;;  %v9242_v33 = vor.u32 %v12691_v14, %v9239_v15 }
 0x696   : > { %v8439_v26 = vld [vmem:[%s13878_s25 + $0x78] sm:$0xf0] }
 0x697   : > { %7973 = vmatpush.bf16.msra.mxu2 %v9018_v34  ;;  %v12555_v29 = vld [vmem:[%s13878_s25 + $0x25c] sm:$0xf]  ;;  %7948 = vmatpush.bf16.msra.mxu0 %v8474_v32  ;;  %v8442_v40 = vor.u32 %v12491_v60, %v8439_v26 }
 0x698   : > { %v8695_v18 = vld [vmem:[%s13878_s25 + $0x278] sm:$0xf0] }
 0x699   : > { %7986 = vmatpush.bf16.msra.mxu3 %v9274_v41  ;;  %v12619_v39 = vld [vmem:[%s13878_s25 + $0x45c] sm:$0xf]  ;;  %7961 = vmatpush.bf16.msra.mxu1 %v8730_v20  ;;  %v8698_v62 = vor.u32 %v12555_v29, %v8695_v18 }
 0x69a   : > { %v8951_v58 = vld [vmem:[%s13878_s25 + $0x478] sm:$0xf0] }
 0x69b   : > { %v296_v52 = vld [vmem:[#allocation2 + $0x18] sm:$0xff]  ;;  %7974 = vmatpush.bf16.msra.mxu2 %v8986_v21  ;;  %v8954_v55 = vor.u32 %v12619_v39, %v8951_v58  ;;  %7949 = vmatpush.bf16.msra.mxu0 %v8442_v40 }
 0x69c   : > { %v12683_v37 = vld [vmem:[%s13878_s25 + $0x65c] sm:$0xf]  ;;  %v8174_v44 = vadd.f32 %v8166_v43, %v296_v52 }
 0x69d   : > { %v9207_v38 = vld [vmem:[%s13878_s25 + $0x678] sm:$0xf0]  ;;  %7987 = vmatpush.bf16.msra.mxu3 %v9242_v33  ;;  %7962 = vmatpush.bf16.msra.mxu1 %v8698_v62  ;;  %v7744_v62 = vpop.f32.mrf.mxu0 }
 0x69e   : > { %v12483_v61 = vld [vmem:[%s13878_s25 + $0x1c] sm:$0xf]  ;;  %v9210_v47 = vor.u32 %v12683_v37, %v9207_v38  ;;  %8178 = vst [vmem:[#allocation2 + $0x18] sm:$0xff] %v8174_v44 }
 0x69f   : > { %v8407_v42 = vld [vmem:[%s13878_s25 + $0x38] sm:$0xf0]  ;;  %7975 = vmatpush.bf16.msra.mxu2 %v8954_v55 }
 0x6a0   : > { %v12547_v6 = vld [vmem:[%s13878_s25 + $0x21c] sm:$0xf]  ;;  %v8410_v56 = vor.u32 %v12483_v61, %v8407_v42 }
 0x6a1   : > { %v8663_v36 = vld [vmem:[%s13878_s25 + $0x238] sm:$0xf0]  ;;  %7988 = vmatpush.bf16.msra.mxu3 %v9210_v47  ;;  %v7757_v47 = vpop.f32.mrf.mxu1 }
 0x6a2   : > { %v12611_v13 = vld [vmem:[%s13878_s25 + $0x41c] sm:$0xf]  ;;  %v8666_v19 = vor.u32 %v12547_v6, %v8663_v36  ;;  %7950 = vmatpush.bf16.msra.mxu0 %v8410_v56 }
 0x6a3   : > { %v8919_v4 = vld [vmem:[%s13878_s25 + $0x438] sm:$0xf0] }
 0x6a4   : > { %v12675_v5 = vld [vmem:[%s13878_s25 + $0x61c] sm:$0xf]  ;;  %v8922_v8 = vor.u32 %v12611_v13, %v8919_v4  ;;  %7963 = vmatpush.bf16.msra.mxu1 %v8666_v19 }
 0x6a5   : > { %v9175_v50 = vld [vmem:[%s13878_s25 + $0x638] sm:$0xf0]  ;;  %7951 = vmatmul.bf16.vlgmr.msra.gmra.mxu0 %v14002_v25 }
 0x6a6   : > { %v12795_v53 = vld [vmem:[%s13878_s25 + $0x9dc] sm:$0xf]  ;;  %v9178_v1 = vor.u32 %v12675_v5, %v9175_v50  ;;  %7976 = vmatpush.bf16.msra.mxu2 %v8922_v8 }
 0x6a7   : > { %v9655_v0 = vld [vmem:[%s13878_s25 + $0x9f8] sm:$0xf0]  ;;  %7964 = vmatmul.bf16.vlgmr.msra.gmra.mxu1 %v14007_v28 }
 0x6a8   : > { %v12859_v45 = vld [vmem:[%s13878_s25 + $0xbdc] sm:$0xf]  ;;  %v9658_v2 = vor.u32 %v12795_v53, %v9655_v0  ;;  %7989 = vmatpush.bf16.msra.mxu3 %v9178_v1  ;;  %v7758_v0 = vadd.f32 %v7757_v47, %v7744_v62 }
 0x6a9   : > { %v9911_v54 = vld [vmem:[%s13878_s25 + $0xbf8] sm:$0xf0]  ;;  %7977 = vmatmul.bf16.vlgmr.msra.gmra.mxu2 %v14000_v24 }
 0x6aa   : > { %v12923_v59 = vld [vmem:[%s13878_s25 + $0xddc] sm:$0xf]  ;;  %v9914_v3 = vor.u32 %v12859_v45, %v9911_v54  ;;  %7995 = vmatpush.bf16.msrb.mxu0 %v9658_v2 }
 0x6ab   : > { %v10167_v63 = vld [vmem:[%s13878_s25 + $0xdf8] sm:$0xf0]  ;;  %7990 = vmatmul.bf16.vlgmr.msra.gmra.mxu3 %v14005_v27 }
 0x6ac   : > { %v12987_v12 = vld [vmem:[%s13878_s25 + $0xfdc] sm:$0xf]  ;;  %v10170_v41 = vor.u32 %v12923_v59, %v10167_v63  ;;  %8008 = vmatpush.bf16.msrb.mxu1 %v9914_v3 }
 0x6ad   : > { %v10423_v34 = vld [vmem:[%s13878_s25 + $0xff8] sm:$0xf0] }
 0x6ae   : > { %v12787_v48 = vld [vmem:[%s13878_s25 + $0x99c] sm:$0xf]  ;;  %v10426_v10 = vor.u32 %v12987_v12, %v10423_v34  ;;  %8021 = vmatpush.bf16.msrb.mxu2 %v10170_v41  ;;  %v7770_v12 = vpop.f32.mrf.mxu2 }
 0x6af   : > { %v9623_v35 = vld [vmem:[%s13878_s25 + $0x9b8] sm:$0xf0]  ;;  %v7771_v41 = vadd.f32 %v7770_v12, %v7758_v0 }
 0x6b0   : > { %v12851_v9 = vld [vmem:[%s13878_s25 + $0xb9c] sm:$0xf]  ;;  %v9626_v32 = vor.u32 %v12787_v48, %v9623_v35  ;;  %8034 = vmatpush.bf16.msrb.mxu3 %v10426_v10  ;;  %v7783_v48 = vpop.f32.mrf.mxu3 }
 0x6b1   : > { %v9879_v51 = vld [vmem:[%s13878_s25 + $0xbb8] sm:$0xf0] }
 0x6b2   : > { %v12915_v11 = vld [vmem:[%s13878_s25 + $0xd9c] sm:$0xf]  ;;  %v9882_v49 = vor.u32 %v12851_v9, %v9879_v51  ;;  %7996 = vmatpush.bf16.msrb.mxu0 %v9626_v32  ;;  %v16000_v51 = vadd.f32 %v7783_v48, %v7771_v41 }
 0x6b3   : > { %v10135_v14 = vld [vmem:[%s13878_s25 + $0xdb8] sm:$0xf0] }
 0x6b4   : > { %v12979_v15 = vld [vmem:[%s13878_s25 + $0xf9c] sm:$0xf]  ;;  %v10138_v57 = vor.u32 %v12915_v11, %v10135_v14  ;;  %8009 = vmatpush.bf16.msrb.mxu1 %v9882_v49  ;;  %v7746_v11 = vpop.f32.mrf.mxu0 }
 0x6b5   : > { %v10391_v16 = vld [vmem:[%s13878_s25 + $0xfb8] sm:$0xf0] }
 0x6b6   : > { %v12779_v20 = vld [vmem:[%s13878_s25 + $0x95c] sm:$0xf]  ;;  %v10394_v26 = vor.u32 %v12979_v15, %v10391_v16  ;;  %8022 = vmatpush.bf16.msrb.mxu2 %v10138_v57  ;;  %v7759_v57 = vpop.f32.mrf.mxu1 }
 0x6b7   : > { %v9591_v21 = vld [vmem:[%s13878_s25 + $0x978] sm:$0xf0] }
 0x6b8   : > { %v12843_v60 = vld [vmem:[%s13878_s25 + $0xb5c] sm:$0xf]  ;;  %v9594_v52 = vor.u32 %v12779_v20, %v9591_v21  ;;  %8035 = vmatpush.bf16.msrb.mxu3 %v10394_v26 }
 0x6b9   : > { %v9847_v29 = vld [vmem:[%s13878_s25 + $0xb78] sm:$0xf0] }
 0x6ba   : > { %v12907_v33 = vld [vmem:[%s13878_s25 + $0xd5c] sm:$0xf]  ;;  %v9850_v46 = vor.u32 %v12843_v60, %v9847_v29  ;;  %7997 = vmatpush.bf16.msrb.mxu0 %v9594_v52 }
 0x6bb   : > { %v10103_v18 = vld [vmem:[%s13878_s25 + $0xd78] sm:$0xf0] }
 0x6bc   : > { %v12971_v39 = vld [vmem:[%s13878_s25 + $0xf5c] sm:$0xf]  ;;  %v10106_v37 = vor.u32 %v12907_v33, %v10103_v18  ;;  %8010 = vmatpush.bf16.msrb.mxu1 %v9850_v46 }
 0x6bd   : > { %v10359_v58 = vld [vmem:[%s13878_s25 + $0xf78] sm:$0xf0] }
 0x6be   : > { %v12771_v24 = vld [vmem:[%s13878_s25 + $0x91c] sm:$0xf]  ;;  %v10362_v25 = vor.u32 %v12971_v39, %v10359_v58  ;;  %8023 = vmatpush.bf16.msrb.mxu2 %v10106_v37 }
 0x6bf   : > { %v9559_v38 = vld [vmem:[%s13878_s25 + $0x938] sm:$0xf0] }
 0x6c0   : > { %v12835_v40 = vld [vmem:[%s13878_s25 + $0xb1c] sm:$0xf]  ;;  %v9562_v28 = vor.u32 %v12771_v24, %v9559_v38  ;;  %8036 = vmatpush.bf16.msrb.mxu3 %v10362_v25 }
 0x6c1   : > { %v9815_v61 = vld [vmem:[%s13878_s25 + $0xb38] sm:$0xf0] }
 0x6c2   : > { %v12899_v27 = vld [vmem:[%s13878_s25 + $0xd1c] sm:$0xf]  ;;  %v9818_v55 = vor.u32 %v12835_v40, %v9815_v61  ;;  %7998 = vmatpush.bf16.msrb.mxu0 %v9562_v28  ;;  %v7772_v40 = vpop.f32.mrf.mxu2 }
 0x6c3   : > { %v10071_v42 = vld [vmem:[%s13878_s25 + $0xd38] sm:$0xf0] }
 0x6c4   : > { %v12963_v6 = vld [vmem:[%s13878_s25 + $0xf1c] sm:$0xf]  ;;  %v10074_v36 = vor.u32 %v12899_v27, %v10071_v42  ;;  %8011 = vmatpush.bf16.msrb.mxu1 %v9818_v55 }
 0x6c5   : > { %v10327_v43 = vld [vmem:[%s13878_s25 + $0xf38] sm:$0xf0] }
 0x6c6   : > { %v12763_v13 = vld [vmem:[%s13878_s25 + $0x8dc] sm:$0xf]  ;;  %v10330_v5 = vor.u32 %v12963_v6, %v10327_v43  ;;  %8024 = vmatpush.bf16.msrb.mxu2 %v10074_v36  ;;  %v7785_v6 = vpop.f32.mrf.mxu3 }
 0x6c7   : > { %v9527_v4 = vld [vmem:[%s13878_s25 + $0x8f8] sm:$0xf0] }
 0x6c8   : > { %v12827_v44 = vld [vmem:[%s13878_s25 + $0xadc] sm:$0xf]  ;;  %v9530_v17 = vor.u32 %v12763_v13, %v9527_v4  ;;  %8037 = vmatpush.bf16.msrb.mxu3 %v10330_v5 }
 0x6c9   : > { %v9783_v50 = vld [vmem:[%s13878_s25 + $0xaf8] sm:$0xf0] }
 0x6ca   : > { %v12891_v53 = vld [vmem:[%s13878_s25 + $0xcdc] sm:$0xf]  ;;  %v9786_v56 = vor.u32 %v12827_v44, %v9783_v50  ;;  %7999 = vmatpush.bf16.msrb.mxu0 %v9530_v17 }
 0x6cb   : > { %v10039_v7 = vld [vmem:[%s13878_s25 + $0xcf8] sm:$0xf0] }
 0x6cc   : > { %v12955_v45 = vld [vmem:[%s13878_s25 + $0xedc] sm:$0xf]  ;;  %v10042_v59 = vor.u32 %v12891_v53, %v10039_v7  ;;  %8012 = vmatpush.bf16.msrb.mxu1 %v9786_v56 }
 0x6cd   : > { %v10295_v54 = vld [vmem:[%s13878_s25 + $0xef8] sm:$0xf0] }
 0x6ce   : > { %v12755_v63 = vld [vmem:[%s13878_s25 + $0x89c] sm:$0xf]  ;;  %v10298_v34 = vor.u32 %v12955_v45, %v10295_v54  ;;  %8025 = vmatpush.bf16.msrb.mxu2 %v10042_v59 }
 0x6cf   : > { %v9495_v19 = vld [vmem:[%s13878_s25 + $0x8b8] sm:$0xf0] }
 0x6d0   : > { %v12819_v8 = vld [vmem:[%s13878_s25 + $0xa9c] sm:$0xf]  ;;  %v9498_v10 = vor.u32 %v12755_v63, %v9495_v19  ;;  %8038 = vmatpush.bf16.msrb.mxu3 %v10298_v34 }
 0x6d1   : > { %v9751_v1 = vld [vmem:[%s13878_s25 + $0xab8] sm:$0xf0] }
 0x6d2   : > { %v12883_v2 = vld [vmem:[%s13878_s25 + $0xc9c] sm:$0xf]  ;;  %v9754_v14 = vor.u32 %v12819_v8, %v9751_v1  ;;  %8000 = vmatpush.bf16.msrb.mxu0 %v9498_v10 }
 0x6d3   : > { %v10007_v3 = vld [vmem:[%s13878_s25 + $0xcb8] sm:$0xf0] }
 0x6d4   : > { %v12947_v35 = vld [vmem:[%s13878_s25 + $0xe9c] sm:$0xf]  ;;  %v10010_v15 = vor.u32 %v12883_v2, %v10007_v3  ;;  %8013 = vmatpush.bf16.msrb.mxu1 %v9754_v14 }
 0x6d5   : > { %v10263_v9 = vld [vmem:[%s13878_s25 + $0xeb8] sm:$0xf0] }
 0x6d6   : > { %v12747_v16 = vld [vmem:[%s13878_s25 + $0x85c] sm:$0xf]  ;;  %v10266_v20 = vor.u32 %v12947_v35, %v10263_v9  ;;  %8026 = vmatpush.bf16.msrb.mxu2 %v10010_v15 }
 0x6d7   : > { %v9463_v32 = vld [vmem:[%s13878_s25 + $0x878] sm:$0xf0] }
 0x6d8   : > { %v12811_v49 = vld [vmem:[%s13878_s25 + $0xa5c] sm:$0xf]  ;;  %v9466_v18 = vor.u32 %v12747_v16, %v9463_v32  ;;  %8039 = vmatpush.bf16.msrb.mxu3 %v10266_v20 }
 0x6d9   : > { %v9719_v21 = vld [vmem:[%s13878_s25 + $0xa78] sm:$0xf0] }
 0x6da   : > { %v12875_v60 = vld [vmem:[%s13878_s25 + $0xc5c] sm:$0xf]  ;;  %v9722_v52 = vor.u32 %v12811_v49, %v9719_v21  ;;  %8001 = vmatpush.bf16.msrb.mxu0 %v9466_v18  ;;  %v7796_v18 = vpop.f32.mrf.mxu0 }
 0x6db   : > { %v9975_v26 = vld [vmem:[%s13878_s25 + $0xc78] sm:$0xf0] }
 0x6dc   : > { %v12939_v29 = vld [vmem:[%s13878_s25 + $0xe5c] sm:$0xf]  ;;  %v9978_v46 = vor.u32 %v12875_v60, %v9975_v26  ;;  %8014 = vmatpush.bf16.msrb.mxu1 %v9722_v52 }
 0x6dd   : > { %v10231_v33 = vld [vmem:[%s13878_s25 + $0xe78] sm:$0xf0] }
 0x6de   : > { %v12739_v39 = vld [vmem:[%s13878_s25 + $0x81c] sm:$0xf]  ;;  %v10234_v25 = vor.u32 %v12939_v29, %v10231_v33  ;;  %8027 = vmatpush.bf16.msrb.mxu2 %v9978_v46 }
 0x6df   : > { %v9431_v58 = vld [vmem:[%s13878_s25 + $0x838] sm:$0xf0] }
 0x6e0   : > { %v12803_v37 = vld [vmem:[%s13878_s25 + $0xa1c] sm:$0xf]  ;;  %v9434_v55 = vor.u32 %v12739_v39, %v9431_v58  ;;  %8040 = vmatpush.bf16.msrb.mxu3 %v10234_v25 }
 0x6e1   : > { %v9687_v24 = vld [vmem:[%s13878_s25 + $0xa38] sm:$0xf0] }
 0x6e2   : > { %v12867_v38 = vld [vmem:[%s13878_s25 + $0xc1c] sm:$0xf]  ;;  %v9690_v44 = vor.u32 %v12803_v37, %v9687_v24  ;;  %8002 = vmatpush.bf16.msrb.mxu0 %v9434_v55  ;;  %v7797_v24 = vadd.f32 %v7796_v18, %v16000_v51 }
 0x6e3   : > { %v9943_v61 = vld [vmem:[%s13878_s25 + $0xc38] sm:$0xf0] }
 0x6e4   : > { %v12931_v27 = vld [vmem:[%s13878_s25 + $0xe1c] sm:$0xf]  ;;  %v9946_v47 = vor.u32 %v12867_v38, %v9943_v61  ;;  %8015 = vmatpush.bf16.msrb.mxu1 %v9690_v44  ;;  %v7809_v38 = vpop.f32.mrf.mxu1 }
 0x6e5   : > { %v10199_v42 = vld [vmem:[%s13878_s25 + $0xe38] sm:$0xf0]  ;;  %8003 = vmatmul.bf16.vlgmr.msrb.gmra.mxu0 %v14054_v23 }
 0x6e6   : > { %v13051_v43 = vld [vmem:[%s13878_s25 + $0x11dc] sm:$0xf]  ;;  %v10202_v53 = vor.u32 %v12931_v27, %v10199_v42  ;;  %8028 = vmatpush.bf16.msrb.mxu2 %v9946_v47 }
 0x6e7   : > { %v10679_v28 = vld [vmem:[%s13878_s25 + $0x11f8] sm:$0xf0]  ;;  %8016 = vmatmul.bf16.vlgmr.msrb.gmra.mxu1 %v14058_v31 }
 0x6e8   : > { %v13115_v62 = vld [vmem:[%s13878_s25 + $0x13dc] sm:$0xf]  ;;  %v10682_v7 = vor.u32 %v13051_v43, %v10679_v28  ;;  %8041 = vmatpush.bf16.msrb.mxu3 %v10202_v53  ;;  %v7810_v43 = vadd.f32 %v7809_v38, %v7797_v24 }
 0x6e9   : > { %v10935_v36 = vld [vmem:[%s13878_s25 + $0x13f8] sm:$0xf0]  ;;  %8029 = vmatmul.bf16.vlgmr.msrb.gmra.mxu2 %v14052_v22 }
 0x6ea   : > { %v13179_v13 = vld [vmem:[%s13878_s25 + $0x15dc] sm:$0xf]  ;;  %v10938_v0 = vor.u32 %v13115_v62, %v10935_v36  ;;  %8047 = vmatpush.bf16.msra.mxu0 %v10682_v7  ;;  %v7835_v7 = vpop.f32.mrf.mxu3 }
 0x6eb   : > { %v11191_v4 = vld [vmem:[%s13878_s25 + $0x15f8] sm:$0xf0]  ;;  %8042 = vmatmul.bf16.vlgmr.msrb.gmra.mxu3 %v14056_v30 }
 0x6ec   : > { %v13243_v5 = vld [vmem:[%s13878_s25 + $0x17dc] sm:$0xf]  ;;  %v11194_v45 = vor.u32 %v13179_v13, %v11191_v4  ;;  %8060 = vmatpush.bf16.msra.mxu1 %v10938_v0  ;;  %v7822_v4 = vpop.f32.mrf.mxu2 }
 0x6ed   : > { %v11447_v50 = vld [vmem:[%s13878_s25 + $0x17f8] sm:$0xf0]  ;;  %v7823_v53 = vadd.f32 %v7822_v4, %v7810_v43 }
 0x6ee   : > { %v13043_v54 = vld [vmem:[%s13878_s25 + $0x119c] sm:$0xf]  ;;  %v11450_v59 = vor.u32 %v13243_v5, %v11447_v50  ;;  %8073 = vmatpush.bf16.msra.mxu2 %v11194_v45 }
 0x6ef   : > { %v10647_v17 = vld [vmem:[%s13878_s25 + $0x11b8] sm:$0xf0] }
 0x6f0   : > { %v13107_v56 = vld [vmem:[%s13878_s25 + $0x139c] sm:$0xf]  ;;  %v10650_v1 = vor.u32 %v13043_v54, %v10647_v17  ;;  %8086 = vmatpush.bf16.msra.mxu3 %v11450_v59  ;;  %v16071_v17 = vadd.f32 %v7835_v7, %v7823_v53 }
 0x6f1   : > { %v10903_v63 = vld [vmem:[%s13878_s25 + $0x13b8] sm:$0xf0] }
 0x6f2   : > { %v13171_v19 = vld [vmem:[%s13878_s25 + $0x159c] sm:$0xf]  ;;  %v10906_v2 = vor.u32 %v13107_v56, %v10903_v63  ;;  %8048 = vmatpush.bf16.msra.mxu0 %v10650_v1  ;;  %v7798_v56 = vpop.f32.mrf.mxu0 }
 0x6f3   : > { %v11159_v8 = vld [vmem:[%s13878_s25 + $0x15b8] sm:$0xf0]  ;;  %v13617_v56 = vld.sshfl [vmem:[#allocation1 + $0x8] sm:$0xff pattern:$0x73625140] }
 0x6f4   : > { %v13235_v12 = vld [vmem:[%s13878_s25 + $0x179c] sm:$0xf]  ;;  %v11162_v3 = vor.u32 %v13171_v19, %v11159_v8  ;;  %8061 = vmatpush.bf16.msra.mxu1 %v10906_v2 }
 0x6f5   : > { %v11415_v34 = vld [vmem:[%s13878_s25 + $0x17b8] sm:$0xf0] }
 0x6f6   : > { %v13035_v41 = vld [vmem:[%s13878_s25 + $0x115c] sm:$0xf]  ;;  %v11418_v9 = vor.u32 %v13235_v12, %v11415_v34  ;;  %8074 = vmatpush.bf16.msra.mxu2 %v11162_v3  ;;  %v7811_v34 = vpop.f32.mrf.mxu1 }
 0x6f7   : > { %v10615_v48 = vld [vmem:[%s13878_s25 + $0x1178] sm:$0xf0] }
 0x6f8   : > { %v13099_v35 = vld [vmem:[%s13878_s25 + $0x135c] sm:$0xf]  ;;  %v10618_v32 = vor.u32 %v13035_v41, %v10615_v48  ;;  %8087 = vmatpush.bf16.msra.mxu3 %v11418_v9 }
 0x6f9   : > { %v10871_v10 = vld [vmem:[%s13878_s25 + $0x1378] sm:$0xf0] }
 0x6fa   : > { %v13163_v11 = vld [vmem:[%s13878_s25 + $0x155c] sm:$0xf]  ;;  %v10874_v22 = vor.u32 %v13099_v35, %v10871_v10  ;;  %8049 = vmatpush.bf16.msra.mxu0 %v10618_v32 }
 0x6fb   : > { %v11127_v14 = vld [vmem:[%s13878_s25 + $0x1578] sm:$0xf0] }
 0x6fc   : > { %v13227_v15 = vld [vmem:[%s13878_s25 + $0x175c] sm:$0xf]  ;;  %v11130_v49 = vor.u32 %v13163_v11, %v11127_v14  ;;  %8062 = vmatpush.bf16.msra.mxu1 %v10874_v22 }
 0x6fd   : > { %v11383_v16 = vld [vmem:[%s13878_s25 + $0x1778] sm:$0xf0] }
 0x6fe   : > { %v13027_v57 = vld [vmem:[%s13878_s25 + $0x111c] sm:$0xf]  ;;  %v11386_v30 = vor.u32 %v13227_v15, %v11383_v16  ;;  %8075 = vmatpush.bf16.msra.mxu2 %v11130_v49  ;;  %v7824_v49 = vpop.f32.mrf.mxu2 }
 0x6ff   : > { %v10583_v20 = vld [vmem:[%s13878_s25 + $0x1138] sm:$0xf0] }
 0x700   : > { %v13091_v23 = vld [vmem:[%s13878_s25 + $0x131c] sm:$0xf]  ;;  %v10586_v31 = vor.u32 %v13027_v57, %v10583_v20  ;;  %8088 = vmatpush.bf16.msra.mxu3 %v11386_v30 }
 0x701   : > { %v10839_v21 = vld [vmem:[%s13878_s25 + $0x1338] sm:$0xf0] }
 0x702   : > { %v13155_v60 = vld [vmem:[%s13878_s25 + $0x151c] sm:$0xf]  ;;  %v10842_v39 = vor.u32 %v13091_v23, %v10839_v21  ;;  %8050 = vmatpush.bf16.msra.mxu0 %v10586_v31  ;;  %v7837_v21 = vpop.f32.mrf.mxu3 }
 0x703   : > { %v11095_v26 = vld [vmem:[%s13878_s25 + $0x1538] sm:$0xf0] }
 0x704   : > { %v13219_v29 = vld [vmem:[%s13878_s25 + $0x171c] sm:$0xf]  ;;  %v11098_v58 = vor.u32 %v13155_v60, %v11095_v26  ;;  %8063 = vmatpush.bf16.msra.mxu1 %v10842_v39 }
 0x705   : > { %v11351_v33 = vld [vmem:[%s13878_s25 + $0x1738] sm:$0xf0] }
 0x706   : > { %v13019_v52 = vld [vmem:[%s13878_s25 + $0x10dc] sm:$0xf]  ;;  %v11354_v40 = vor.u32 %v13219_v29, %v11351_v33  ;;  %8076 = vmatpush.bf16.msra.mxu2 %v11098_v58 }
 0x707   : > { %v10551_v46 = vld [vmem:[%s13878_s25 + $0x10f8] sm:$0xf0] }
 0x708   : > { %v13083_v37 = vld [vmem:[%s13878_s25 + $0x12dc] sm:$0xf]  ;;  %v10554_v28 = vor.u32 %v13019_v52, %v10551_v46  ;;  %8089 = vmatpush.bf16.msra.mxu3 %v11354_v40 }
 0x709   : > { %v10807_v25 = vld [vmem:[%s13878_s25 + $0x12f8] sm:$0xf0] }
 0x70a   : > { %v13147_v61 = vld [vmem:[%s13878_s25 + $0x14dc] sm:$0xf]  ;;  %v10810_v51 = vor.u32 %v13083_v37, %v10807_v25  ;;  %8051 = vmatpush.bf16.msra.mxu0 %v10554_v28 }
 0x70b   : > { %v11063_v27 = vld [vmem:[%s13878_s25 + $0x14f8] sm:$0xf0] }
 0x70c   : > { %v13211_v42 = vld [vmem:[%s13878_s25 + $0x16dc] sm:$0xf]  ;;  %v11066_v62 = vor.u32 %v13147_v61, %v11063_v27  ;;  %8064 = vmatpush.bf16.msra.mxu1 %v10810_v51 }
 0x70d   : > { %v11319_v6 = vld [vmem:[%s13878_s25 + $0x16f8] sm:$0xf0] }
 0x70e   : > { %v13011_v55 = vld [vmem:[%s13878_s25 + $0x109c] sm:$0xf]  ;;  %v11322_v44 = vor.u32 %v13211_v42, %v11319_v6  ;;  %8077 = vmatpush.bf16.msra.mxu2 %v11066_v62 }
 0x70f   : > { %v10519_v36 = vld [vmem:[%s13878_s25 + $0x10b8] sm:$0xf0] }
 0x710   : > { %v13075_v13 = vld [vmem:[%s13878_s25 + $0x129c] sm:$0xf]  ;;  %v10522_v54 = vor.u32 %v13011_v55, %v10519_v36  ;;  %8090 = vmatpush.bf16.msra.mxu3 %v11322_v44 }
 0x711   : > { %v10775_v47 = vld [vmem:[%s13878_s25 + $0x12b8] sm:$0xf0] }
 0x712   : > { %v13139_v5 = vld [vmem:[%s13878_s25 + $0x149c] sm:$0xf]  ;;  %v10778_v59 = vor.u32 %v13075_v13, %v10775_v47  ;;  %8052 = vmatpush.bf16.msra.mxu0 %v10522_v54  ;;  %v13616_v54 = vld.sshfl [vmem:[#allocation1 + $0x10] sm:$0xff pattern:$0x73625140] }
 0x713   : > { %v11031_v50 = vld [vmem:[%s13878_s25 + $0x14b8] sm:$0xf0] }
 0x714   : > { %v13203_v0 = vld [vmem:[%s13878_s25 + $0x169c] sm:$0xf]  ;;  %v11034_v63 = vor.u32 %v13139_v5, %v11031_v50  ;;  %8065 = vmatpush.bf16.msra.mxu1 %v10778_v59 }
 0x715   : > { %v11287_v45 = vld [vmem:[%s13878_s25 + $0x16b8] sm:$0xf0] }
 0x716   : > { %v13003_v19 = vld [vmem:[%s13878_s25 + $0x105c] sm:$0xf]  ;;  %v11290_v1 = vor.u32 %v13203_v0, %v11287_v45  ;;  %8078 = vmatpush.bf16.msra.mxu2 %v11034_v63 }
 0x717   : > { %v10487_v8 = vld [vmem:[%s13878_s25 + $0x1078] sm:$0xf0] }
 0x718   : > { %v13067_v12 = vld [vmem:[%s13878_s25 + $0x125c] sm:$0xf]  ;;  %v10490_v9 = vor.u32 %v13003_v19, %v10487_v8  ;;  %8091 = vmatpush.bf16.msra.mxu3 %v11290_v1  ;;  %v13618_v19 = vld.sshfl [vmem:[#allocation1 + $0x18] sm:$0xff pattern:$0x73625140] }
 0x719   : > { %v10743_v2 = vld [vmem:[%s13878_s25 + $0x1278] sm:$0xf0] }
 0x71a   : > { %v13131_v3 = vld [vmem:[%s13878_s25 + $0x145c] sm:$0xf]  ;;  %v10746_v14 = vor.u32 %v13067_v12, %v10743_v2  ;;  %8053 = vmatpush.bf16.msra.mxu0 %v10490_v9 }
 0x71b   : > { %v10999_v41 = vld [vmem:[%s13878_s25 + $0x1478] sm:$0xf0] }
 0x71c   : > { %v13195_v48 = vld [vmem:[%s13878_s25 + $0x165c] sm:$0xf]  ;;  %v11002_v15 = vor.u32 %v13131_v3, %v10999_v41  ;;  %8066 = vmatpush.bf16.msra.mxu1 %v10746_v14 }
 0x71d   : > { %v11255_v35 = vld [vmem:[%s13878_s25 + $0x1678] sm:$0xf0] }
 0x71e   : > { %v12995_v10 = vld [vmem:[%s13878_s25 + $0x101c] sm:$0xf]  ;;  %v11258_v57 = vor.u32 %v13195_v48, %v11255_v35  ;;  %8079 = vmatpush.bf16.msra.mxu2 %v11002_v15 }
 0x71f   : > { %v10455_v11 = vld [vmem:[%s13878_s25 + $0x1038] sm:$0xf0] }
 0x720   : > { %v13059_v16 = vld [vmem:[%s13878_s25 + $0x121c] sm:$0xf]  ;;  %v10458_v33 = vor.u32 %v12995_v10, %v10455_v11  ;;  %8092 = vmatpush.bf16.msra.mxu3 %v11258_v57  ;;  %v7848_v10 = vpop.f32.mrf.mxu0 }
 0x721   : > { %v10711_v32 = vld [vmem:[%s13878_s25 + $0x1238] sm:$0xf0]  ;;  %v7849_v15 = vadd.f32 %v7848_v10, %v16071_v17 }
 0x722   : > { %v13123_v22 = vld [vmem:[%s13878_s25 + $0x141c] sm:$0xf]  ;;  %v10714_v58 = vor.u32 %v13059_v16, %v10711_v32  ;;  %8054 = vmatpush.bf16.msra.mxu0 %v10458_v33  ;;  %v7861_v32 = vpop.f32.mrf.mxu1 }
 0x723   : > { %v10967_v20 = vld [vmem:[%s13878_s25 + $0x1438] sm:$0xf0]  ;;  %v7862_v21 = vadd.f32 %v7861_v32, %v7849_v15  ;;  %v13620_v15 = vld.sshfl [vmem:[#allocation1 + $0x28] sm:$0xff pattern:$0x73625140] }
 0x724   : > { %v13187_v23 = vld [vmem:[%s13878_s25 + $0x161c] sm:$0xf]  ;;  %v10970_v52 = vor.u32 %v13123_v22, %v10967_v20  ;;  %8067 = vmatpush.bf16.msra.mxu1 %v10714_v58  ;;  %v13622_v32 = vld.sshfl [vmem:[#allocation1 + $0x38] sm:$0xff pattern:$0x73625140] }
 0x725   : > { %v11223_v30 = vld [vmem:[%s13878_s25 + $0x1638] sm:$0xf0] }
 0x726   : > { %v13307_v60 = vld [vmem:[%s13878_s25 + $0x19dc] sm:$0xf]  ;;  %v11226_v24 = vor.u32 %v13187_v23, %v11223_v30  ;;  %8080 = vmatpush.bf16.msra.mxu2 %v10970_v52 }
 0x727   : > { %v11703_v26 = vld [vmem:[%s13878_s25 + $0x19f8] sm:$0xf0]  ;;  %8068 = vmatmul.bf16.vlgmr.msra.gmra.mxu1 %v13617_v56 }
 0x728   : > { %v13371_v29 = vld [vmem:[%s13878_s25 + $0x1bdc] sm:$0xf]  ;;  %v11706_v38 = vor.u32 %v13307_v60, %v11703_v26  ;;  %8093 = vmatpush.bf16.msra.mxu3 %v11226_v24  ;;  %v7874_v24 = vpop.f32.mrf.mxu2 }
 0x729   : > { %v11959_v31 = vld [vmem:[%s13878_s25 + $0x1bf8] sm:$0xf0]  ;;  %8081 = vmatmul.bf16.vlgmr.msra.gmra.mxu2 %v13616_v54 }
 0x72a   : > { %v13435_v18 = vld [vmem:[%s13878_s25 + $0x1ddc] sm:$0xf]  ;;  %v11962_v40 = vor.u32 %v13371_v29, %v11959_v31  ;;  %8099 = vmatpush.bf16.msrb.mxu0 %v11706_v38 }
 0x72b   : > { %v12215_v39 = vld [vmem:[%s13878_s25 + $0x1df8] sm:$0xf0]  ;;  %8094 = vmatmul.bf16.vlgmr.msra.gmra.mxu3 %v13618_v19 }
 0x72c   : > { %v13499_v46 = vld [vmem:[%s13878_s25 + $0x1fdc] sm:$0xf]  ;;  %v12218_v25 = vor.u32 %v13435_v18, %v12215_v39  ;;  %8112 = vmatpush.bf16.msrb.mxu1 %v11962_v40 }
 0x72d   : > { %v12471_v37 = vld [vmem:[%s13878_s25 + $0x1ff8] sm:$0xf0] }
 0x72e   : > { %v13299_v61 = vld [vmem:[%s13878_s25 + $0x199c] sm:$0xf]  ;;  %v12474_v6 = vor.u32 %v13499_v46, %v12471_v37  ;;  %8125 = vmatpush.bf16.msrb.mxu2 %v12218_v25 }
 0x72f   : > { %v11671_v27 = vld [vmem:[%s13878_s25 + $0x19b8] sm:$0xf0] }
 0x730   : > { %v13363_v42 = vld [vmem:[%s13878_s25 + $0x1b9c] sm:$0xf]  ;;  %v11674_v36 = vor.u32 %v13299_v61, %v11671_v27  ;;  %8138 = vmatpush.bf16.msrb.mxu3 %v12474_v6  ;;  %v7875_v61 = vadd.f32 %v7874_v24, %v7862_v21  ;;  %v7887_v27 = vpop.f32.mrf.mxu3 }
 0x731   : > { %v11927_v43 = vld [vmem:[%s13878_s25 + $0x1bb8] sm:$0xf0] }
 0x732   : > { %v13427_v28 = vld [vmem:[%s13878_s25 + $0x1d9c] sm:$0xf]  ;;  %v11930_v13 = vor.u32 %v13363_v42, %v11927_v43  ;;  %8100 = vmatpush.bf16.msrb.mxu0 %v11674_v36  ;;  %v7850_v43 = vpop.f32.mrf.mxu0 }
 0x733   : > { %v12183_v51 = vld [vmem:[%s13878_s25 + $0x1db8] sm:$0xf0] }
 0x734   : > { %v13491_v62 = vld [vmem:[%s13878_s25 + $0x1f9c] sm:$0xf]  ;;  %v12186_v4 = vor.u32 %v13427_v28, %v12183_v51  ;;  %8113 = vmatpush.bf16.msrb.mxu1 %v11930_v13  ;;  %v7863_v51 = vpop.f32.mrf.mxu1 }
 0x735   : > { %v12439_v55 = vld [vmem:[%s13878_s25 + $0x1fb8] sm:$0xf0] }
 0x736   : > { %v13291_v44 = vld [vmem:[%s13878_s25 + $0x195c] sm:$0xf]  ;;  %v12442_v53 = vor.u32 %v13491_v62, %v12439_v55  ;;  %8126 = vmatpush.bf16.msrb.mxu2 %v12186_v4  ;;  %v7888_v62 = vadd.f32 %v7887_v27, %v7875_v61 }
 0x737   : > { %v11639_v47 = vld [vmem:[%s13878_s25 + $0x1978] sm:$0xf0] }
 0x738   : > { %v13355_v5 = vld [vmem:[%s13878_s25 + $0x1b5c] sm:$0xf]  ;;  %v11642_v8 = vor.u32 %v13291_v44, %v11639_v47  ;;  %8139 = vmatpush.bf16.msrb.mxu3 %v12442_v53 }
 0x739   : > { %v13615_v50 = vld.sshfl [vmem:[#allocation1] sm:$0xff pattern:$0x73625140] }
 0x73a   : > { %8055 = vmatmul.bf16.vlgmr.msra.gmra.mxu0 %v13615_v50  ;;  %v11895_v7 = vld [vmem:[%s13878_s25 + $0x1b78] sm:$0xf0] }
 0x73b   : > { %v13419_v0 = vld [vmem:[%s13878_s25 + $0x1d5c] sm:$0xf]  ;;  %v11898_v12 = vor.u32 %v13355_v5, %v11895_v7  ;;  %8101 = vmatpush.bf16.msrb.mxu0 %v11642_v8 }
 0x73c   : > { %v12151_v45 = vld [vmem:[%s13878_s25 + $0x1d78] sm:$0xf0] }
 0x73d   : > { %v13483_v59 = vld [vmem:[%s13878_s25 + $0x1f5c] sm:$0xf]  ;;  %v12154_v34 = vor.u32 %v13419_v0, %v12151_v45  ;;  %8114 = vmatpush.bf16.msrb.mxu1 %v11898_v12 }
 0x73e   : > { %v12407_v63 = vld [vmem:[%s13878_s25 + $0x1f78] sm:$0xf0] }
 0x73f   : > { %v13283_v1 = vld [vmem:[%s13878_s25 + $0x191c] sm:$0xf]  ;;  %v12410_v41 = vor.u32 %v13483_v59, %v12407_v63  ;;  %8127 = vmatpush.bf16.msrb.mxu2 %v12154_v34 }
 0x740   : > { %v11607_v2 = vld [vmem:[%s13878_s25 + $0x1938] sm:$0xf0] }
 0x741   : > { %v13347_v3 = vld [vmem:[%s13878_s25 + $0x1b1c] sm:$0xf]  ;;  %v11610_v16 = vor.u32 %v13283_v1, %v11607_v2  ;;  %8140 = vmatpush.bf16.msrb.mxu3 %v12410_v41  ;;  %v7876_v2 = vpop.f32.mrf.mxu2 }
 0x742   : > { %v11863_v48 = vld [vmem:[%s13878_s25 + $0x1b38] sm:$0xf0] }
 0x743   : > { %v13411_v35 = vld [vmem:[%s13878_s25 + $0x1d1c] sm:$0xf]  ;;  %v11866_v22 = vor.u32 %v13347_v3, %v11863_v48  ;;  %8102 = vmatpush.bf16.msrb.mxu0 %v11610_v16  ;;  %v7889_v48 = vpop.f32.mrf.mxu3  ;;  %v13621_v16 = vld.sshfl [vmem:[#allocation1 + $0x30] sm:$0xff pattern:$0x73625140] }
 0x744   : > { %v12119_v9 = vld [vmem:[%s13878_s25 + $0x1d38] sm:$0xf0] }
 0x745   : > { %v13475_v11 = vld [vmem:[%s13878_s25 + $0x1f1c] sm:$0xf]  ;;  %v12122_v49 = vor.u32 %v13411_v35, %v12119_v9  ;;  %8115 = vmatpush.bf16.msrb.mxu1 %v11866_v22  ;;  %v7900_v22 = vpop.f32.mrf.mxu0 }
 0x746   : > { %v12375_v14 = vld [vmem:[%s13878_s25 + $0x1f38] sm:$0xf0] }
 0x747   : > { %v13275_v57 = vld [vmem:[%s13878_s25 + $0x18dc] sm:$0xf]  ;;  %v12378_v30 = vor.u32 %v13475_v11, %v12375_v14  ;;  %8128 = vmatpush.bf16.msrb.mxu2 %v12122_v49  ;;  %v7901_v49 = vadd.f32 %v7900_v22, %v7888_v62 }
 0x748   : > { %v11575_v20 = vld [vmem:[%s13878_s25 + $0x18f8] sm:$0xf0] }
 0x749   : > { %v13339_v23 = vld [vmem:[%s13878_s25 + $0x1adc] sm:$0xf]  ;;  %v11578_v31 = vor.u32 %v13275_v57, %v11575_v20  ;;  %8141 = vmatpush.bf16.msrb.mxu3 %v12378_v30  ;;  %v7913_v57 = vpop.f32.mrf.mxu1 }
 0x74a   : > { %v11831_v60 = vld [vmem:[%s13878_s25 + $0x1af8] sm:$0xf0]  ;;  %v7914_v20 = vadd.f32 %v7913_v57, %v7901_v49 }
 0x74b   : > { %v13403_v26 = vld [vmem:[%s13878_s25 + $0x1cdc] sm:$0xf]  ;;  %v11834_v18 = vor.u32 %v13339_v23, %v11831_v60  ;;  %8103 = vmatpush.bf16.msrb.mxu0 %v11578_v31  ;;  %v7926_v23 = vpop.f32.mrf.mxu2  ;;  %v7939_v21 = vpop.f32.mrf.mxu3 }
 0x74c   : > { %v12087_v17 = vld [vmem:[%s13878_s25 + $0x1cf8] sm:$0xf0]  ;;  %v7927_v30 = vadd.f32 %v7926_v23, %v7914_v20 }
 0x74d   : > { %v13467_v29 = vld [vmem:[%s13878_s25 + $0x1edc] sm:$0xf]  ;;  %v12090_v39 = vor.u32 %v13403_v26, %v12087_v17  ;;  %8116 = vmatpush.bf16.msrb.mxu1 %v11834_v18  ;;  %v7902_v60 = vpop.f32.mrf.mxu0 }
 0x74e   : > { %v12343_v33 = vld [vmem:[%s13878_s25 + $0x1ef8] sm:$0xf0]  ;;  %v7940_v17 = vadd.f32 %v7939_v21, %v7927_v30 }
 0x74f   : > { %v13267_v58 = vld [vmem:[%s13878_s25 + $0x189c] sm:$0xf]  ;;  %v12346_v37 = vor.u32 %v13467_v29, %v12343_v33  ;;  %8129 = vmatpush.bf16.msrb.mxu2 %v12090_v39 }
 0x750   : > { %v11543_v52 = vld [vmem:[%s13878_s25 + $0x18b8] sm:$0xf0] }
 0x751   : > { %v13331_v46 = vld [vmem:[%s13878_s25 + $0x1a9c] sm:$0xf]  ;;  %v11546_v28 = vor.u32 %v13267_v58, %v11543_v52  ;;  %8142 = vmatpush.bf16.msrb.mxu3 %v12346_v37  ;;  %v7915_v26 = vpop.f32.mrf.mxu1 }
 0x752   : > { %v11799_v38 = vld [vmem:[%s13878_s25 + $0x1ab8] sm:$0xf0] }
 0x753   : > { %v13395_v40 = vld [vmem:[%s13878_s25 + $0x1c9c] sm:$0xf]  ;;  %v11802_v55 = vor.u32 %v13331_v46, %v11799_v38  ;;  %8104 = vmatpush.bf16.msrb.mxu0 %v11546_v28  ;;  %v7928_v29 = vpop.f32.mrf.mxu2  ;;  %v7941_v33 = vpop.f32.mrf.mxu3 }
 0x754   : > { %v12055_v25 = vld [vmem:[%s13878_s25 + $0x1cb8] sm:$0xf0] }
 0x755   : > { %v13459_v42 = vld [vmem:[%s13878_s25 + $0x1e9c] sm:$0xf]  ;;  %v12058_v36 = vor.u32 %v13395_v40, %v12055_v25  ;;  %8117 = vmatpush.bf16.msrb.mxu1 %v11802_v55  ;;  %v7952_v31 = vpop.f32.mrf.mxu0 }
 0x756   : > { %v12311_v6 = vld [vmem:[%s13878_s25 + $0x1eb8] sm:$0xf0] }
 0x757   : > { %v13259_v13 = vld [vmem:[%s13878_s25 + $0x185c] sm:$0xf]  ;;  %v12314_v47 = vor.u32 %v13459_v42, %v12311_v6  ;;  %8130 = vmatpush.bf16.msrb.mxu2 %v12058_v36 }
 0x758   : > { %v11511_v4 = vld [vmem:[%s13878_s25 + $0x1878] sm:$0xf0] }
 0x759   : > { %v13323_v44 = vld [vmem:[%s13878_s25 + $0x1a5c] sm:$0xf]  ;;  %v11514_v45 = vor.u32 %v13259_v13, %v11511_v4  ;;  %8143 = vmatpush.bf16.msrb.mxu3 %v12314_v47  ;;  %v7965_v18 = vpop.f32.mrf.mxu1 }
 0x75a   : > { %v11767_v5 = vld [vmem:[%s13878_s25 + $0x1a78] sm:$0xf0]  ;;  %v7966_v39 = vadd.f32 %v7965_v18, %v7952_v31 }
 0x75b   : > { %v13387_v50 = vld [vmem:[%s13878_s25 + $0x1c5c] sm:$0xf]  ;;  %v11770_v54 = vor.u32 %v13323_v44, %v11767_v5  ;;  %8105 = vmatpush.bf16.msrb.mxu0 %v11514_v45  ;;  %v7978_v58 = vpop.f32.mrf.mxu2  ;;  %v7991_v46 = vpop.f32.mrf.mxu3 }
 0x75c   : > { %v12023_v53 = vld [vmem:[%s13878_s25 + $0x1c78] sm:$0xf0]  ;;  %v7979_v52 = vadd.f32 %v7978_v58, %v7966_v39 }
 0x75d   : > { %v13451_v7 = vld [vmem:[%s13878_s25 + $0x1e5c] sm:$0xf]  ;;  %v12026_v56 = vor.u32 %v13387_v50, %v12023_v53  ;;  %8118 = vmatpush.bf16.msrb.mxu1 %v11770_v54  ;;  %v7954_v24 = vpop.f32.mrf.mxu0 }
 0x75e   : > { %v12279_v0 = vld [vmem:[%s13878_s25 + $0x1e78] sm:$0xf0]  ;;  %v7992_v37 = vadd.f32 %v7991_v46, %v7979_v52 }
 0x75f   : > { %v13251_v59 = vld [vmem:[%s13878_s25 + $0x181c] sm:$0xf]  ;;  %v12282_v8 = vor.u32 %v13451_v7, %v12279_v0  ;;  %8131 = vmatpush.bf16.msrb.mxu2 %v12026_v56 }
 0x760   : > { %v11479_v63 = vld [vmem:[%s13878_s25 + $0x1838] sm:$0xf0] }
 0x761   : > { %v13315_v19 = vld [vmem:[%s13878_s25 + $0x1a1c] sm:$0xf]  ;;  %v11482_v35 = vor.u32 %v13251_v59, %v11479_v63  ;;  %8144 = vmatpush.bf16.msrb.mxu3 %v12282_v8  ;;  %v7967_v38 = vpop.f32.mrf.mxu1 }
 0x762   : > { %v11735_v12 = vld [vmem:[%s13878_s25 + $0x1a38] sm:$0xf0] }
 0x763   : > { %v13379_v34 = vld [vmem:[%s13878_s25 + $0x1c1c] sm:$0xf]  ;;  %v11738_v9 = vor.u32 %v13315_v19, %v11735_v12  ;;  %8106 = vmatpush.bf16.msrb.mxu0 %v11482_v35  ;;  %v7980_v40 = vpop.f32.mrf.mxu2  ;;  %v7993_v25 = vpop.f32.mrf.mxu3 }
 0x764   : > { %v11991_v1 = vld [vmem:[%s13878_s25 + $0x1c38] sm:$0xf0] }
 0x765   : > { %v13443_v3 = vld [vmem:[%s13878_s25 + $0x1e1c] sm:$0xf]  ;;  %v11994_v10 = vor.u32 %v13379_v34, %v11991_v1  ;;  %8119 = vmatpush.bf16.msrb.mxu1 %v11738_v9  ;;  %v8004_v61 = vpop.f32.mrf.mxu0  ;;  %v297_v9 = vld [vmem:[#allocation2 + $0x8] sm:$0xff] }
 0x766   : > { %v12247_v41 = vld [vmem:[%s13878_s25 + $0x1e38] sm:$0xf0]  ;;  %v8005_v13 = vadd.f32 %v8004_v61, %v7992_v37 }
 0x767   : > { %v12250_v11 = vor.u32 %v13443_v3, %v12247_v41  ;;  %8132 = vmatpush.bf16.msrb.mxu2 %v11994_v10  ;;  %v13619_v14 = vld.sshfl [vmem:[#allocation1 + $0x20] sm:$0xff pattern:$0x73625140] }
 0x768   : > { %8107 = vmatmul.bf16.vlgmr.msrb.gmra.mxu0 %v13619_v14  ;;  %8120 = vmatmul.bf16.vlgmr.msrb.gmra.mxu1 %v13620_v15 }
 0x769   : > { %8145 = vmatpush.bf16.msrb.mxu3 %v12250_v11  ;;  %v8017_v27 = vpop.f32.mrf.mxu1 }
 0x76a   : > { %8133 = vmatmul.bf16.vlgmr.msrb.gmra.mxu2 %v13621_v16  ;;  %v8018_v5 = vadd.f32 %v8017_v27, %v8005_v13 }
 0x76c   : > { %8146 = vmatmul.bf16.vlgmr.msrb.gmra.mxu3 %v13622_v32  ;;  %v8030_v42 = vpop.f32.mrf.mxu2 }
 0x76d   : > { %v8006_v43 = vpop.f32.mrf.mxu0  ;;  %v8031_v53 = vadd.f32 %v8030_v42, %v8018_v5 }
 0x76e   : > { %v8043_v6 = vpop.f32.mrf.mxu3 }
 0x76f   : > { %v8044_v45 = vadd.f32 %v8043_v6, %v8031_v53 }
 0x771   : > { %v8019_v28 = vpop.f32.mrf.mxu1 }
 0x774   : > { %v8032_v51 = vpop.f32.mrf.mxu2 }
 0x776   : > { %v8045_v62 = vpop.f32.mrf.mxu3 }
 0x7a4   : > { %v8069_v36 = vpop.f32.mrf.mxu1 }
 0x7ac   : > { %v8082_v4 = vpop.f32.mrf.mxu2  ;;  %v8071_v50 = vpop.f32.mrf.mxu1 }
 0x7ae   : > { %v8095_v44 = vpop.f32.mrf.mxu3 }
 0x7b4   : > { %v8084_v7 = vpop.f32.mrf.mxu2 }
 0x7b6   : > { %v8097_v0 = vpop.f32.mrf.mxu3 }
 0x7b7   : > { %v8056_v55 = vpop.f32.mrf.mxu0 }
 0x7b8   : > { %v8057_v54 = vadd.f32 %v8056_v55, %v8044_v45 }
 0x7ba   : > { %v8070_v56 = vadd.f32 %v8069_v36, %v8057_v54 }
 0x7bc   : > { %v8083_v59 = vadd.f32 %v8082_v4, %v8070_v56 }
 0x7be   : > { %v8096_v63 = vadd.f32 %v8095_v44, %v8083_v59 }
 0x7bf   : > { %v8058_v47 = vpop.f32.mrf.mxu0 }
 0x7e5   : > { %v8108_v19 = vpop.f32.mrf.mxu0  ;;  %v8121_v8 = vpop.f32.mrf.mxu1 }
 0x7e6   : > { %v8109_v12 = vadd.f32 %v8108_v19, %v8096_v63 }
 0x7e8   : > { %v8122_v34 = vadd.f32 %v8121_v8, %v8109_v12 }
 0x7ed   : > { %v8134_v1 = vpop.f32.mrf.mxu2  ;;  %v8110_v41 = vpop.f32.mrf.mxu0 }
 0x7ee   : > { %v8135_v2 = vadd.f32 %v8134_v1, %v8122_v34  ;;  %v8123_v48 = vpop.f32.mrf.mxu1 }
 0x7ef   : > { %v8147_v3 = vpop.f32.mrf.mxu3 }
 0x7f0   : > { %v8148_v35 = vadd.f32 %v8147_v3, %v8135_v2 }
 0x7f2   : > { %v8162_v10 = vrot.slane %v8148_v35, 4 }
 0x7f3   : > { %8183 = sbr.rel (%p12475_p5) target bundleno = 2196 (0x894), region = 60 }
 0x7f4   : > { %v8167_v11 = vsel %vm8163_vm0, %v7940_v17, %v8162_v10 }
 0x7f5   : > { %v8175_v14 = vadd.f32 %v8167_v11, %v297_v9  ;;  %v8136_v15 = vpop.f32.mrf.mxu2 }
 0x7f7   : > { %v8149_v16 = vpop.f32.mrf.mxu3  ;;  %8179 = vst [vmem:[#allocation2 + $0x8] sm:$0xff] %v8175_v14 }
 0x7f8   : > { %v8188_v32 = vld [vmem:[#allocation6] sm:$0xff]  ;;  %v8218_v22 = vld [vmem:[#allocation8] sm:$0xff]  ;;  %v8184_v29 = vld [vmem:[#allocation2 + $0x10] sm:$0xff]  ;;  %vm8291_vm1 = vcmask 3072  }
 0x7f9   : > { %v8190_v49 = vperm.slane %v8188_v32, 0  ;;  %v8191_v57 = vperm.slane %v8188_v32, 1  ;;  %v8192_v20 = vperm.slane %v8188_v32, 2  ;;  %v8193_v23 = vperm.slane %v8188_v32, 3  ;;  %v8185_v33 = vld [vmem:[#allocation2] sm:$0xff]  ;;  %v8186_v58 = vld [vmem:[#allocation2 + $0x18] sm:$0xff] }
 0x7fa   : > { %v8194_v30 = vperm.slane %v8188_v32, 4  ;;  %v8195_v21 = vperm.slane %v8188_v32, 5  ;;  %v8196_v60 = vperm.slane %v8188_v32, 6  ;;  %v8197_v26 = vperm.slane %v8188_v32, 7 }
 0x7fb   : > { %v8198_v17 = vrot.slane %v8191_v57, 4  ;;  %v8199_v31 = vrot.slane %v8193_v23, 4  ;;  %v8220_v18 = vperm.slane %v8218_v22, 0  ;;  %v8221_v39 = vperm.slane %v8218_v22, 1 }
 0x7fc   : > { %v8200_v46 = vrot.slane %v8195_v21, 4  ;;  %v8201_v37 = vrot.slane %v8197_v26, 4  ;;  %v8222_v24 = vperm.slane %v8218_v22, 2  ;;  %v8223_v38 = vperm.slane %v8218_v22, 3 }
 0x7fd   : > { %v8202_v40 = vsel %vm8163_vm0, %v8190_v49, %v8198_v17  ;;  %v8203_v25 = vsel %vm8163_vm0, %v8192_v20, %v8199_v31  ;;  %v8224_v61 = vperm.slane %v8218_v22, 4  ;;  %v8225_v27 = vperm.slane %v8218_v22, 5 }
 0x7fe   : > { %v8187_v52 = vld [vmem:[#allocation2 + $0x8] sm:$0xff]  ;;  %v8204_v42 = vsel %vm8163_vm0, %v8194_v30, %v8200_v46  ;;  %v8205_v6 = vsel %vm8163_vm0, %v8196_v60, %v8201_v37  ;;  %v8210_v43 = vadd.f32 %v8202_v40, %v8184_v29  ;;  %v8211_v28 = vadd.f32 %v8203_v25, %v8185_v33 }
 0x7ff   : > { %v8212_v51 = vadd.f32 %v8204_v42, %v8186_v58  ;;  %v8213_v62 = vadd.f32 %v8205_v6, %v8187_v52  ;;  %v8226_v55 = vperm.slane %v8218_v22, 6  ;;  %v8227_v36 = vperm.slane %v8218_v22, 7 }
 0x800   : > { %v8214_v13 = vmax.f32 %v8210_v43, 0.0  ;;  %v8215_v4 = vmax.f32 %v8211_v28, 0.0  ;;  %v8228_v44 = vrot.slane %v8221_v39, 4  ;;  %v8229_v47 = vrot.slane %v8223_v38, 4 }
 0x801   : > { %v8216_v5 = vmax.f32 %v8212_v51, 0.0  ;;  %v8217_v50 = vmax.f32 %v8213_v62, 0.0  ;;  %v8230_v53 = vrot.slane %v8225_v27, 4  ;;  %v8231_v7 = vrot.slane %v8227_v36, 4 }
 0x802   : > { %v8232_v0 = vsel %vm8163_vm0, %v8220_v18, %v8228_v44  ;;  %v8233_v45 = vsel %vm8163_vm0, %v8222_v24, %v8229_v47  ;;  %v8289_v26 = vstv %s8288_s4 }
 0x803   : > { %v8234_v54 = vsel %vm8163_vm0, %v8224_v61, %v8230_v53  ;;  %v8235_v56 = vsel %vm8163_vm0, %v8226_v55, %v8231_v7  ;;  %v8240_v59 = vmul.f32 %v8232_v0, %v8214_v13  ;;  %v8241_v63 = vmul.f32 %v8233_v45, %v8215_v4 }
 0x804   : > { %v8242_v19 = vmul.f32 %v8234_v54, %v8216_v5  ;;  %v8243_v8 = vmul.f32 %v8235_v56, %v8217_v50 }
 0x805   : > { %8248 = vst [vmem:[#allocation1] ss:$2 sm:$0xff] %v8240_v59 }
 0x806   : > { %8250 = vst [vmem:[#allocation1 + $0x10] ss:$2 sm:$0xff] %v8241_v63 }
 0x807   : > { %8252 = vst [vmem:[#allocation1 + $0x20] ss:$2 sm:$0xff] %v8242_v19 }
 0x808   : > { %8254 = vst [vmem:[#allocation1 + $0x30] ss:$2 sm:$0xff] %v8243_v8 }
 0x80c   : > { %v8255_v12 = vld.sshfl [vmem:[#allocation1] sm:$0xff pattern:$0x75316420]  ;;  %v8256_v34 = vld.sshfl [vmem:[#allocation1 + $0x8] sm:$0xff pattern:$0x75316420] }
 0x80d   : > { %v8257_v1 = vld.sshfl [vmem:[#allocation1 + $0x10] sm:$0xff pattern:$0x75316420]  ;;  %v8258_v2 = vld.sshfl [vmem:[#allocation1 + $0x18] sm:$0xff pattern:$0x75316420] }
 0x80e   : > { %v8271_v3 = vsel %vm8163_vm0, %v8255_v12, 0.0  ;;  %v8272_v41 = vsel %vm8163_vm0, %v8256_v34, 0.0  ;;  %v8274_v48 = vsel %vm8163_vm0, %v8257_v1, 0.0  ;;  %v8259_v35 = vld.sshfl [vmem:[#allocation1 + $0x20] sm:$0xff pattern:$0x75316420] }
 0x80f   : > { %v8273_v9 = vadd.f32 %v8272_v41, %v8271_v3  ;;  %v8276_v10 = vsel %vm8163_vm0, %v8258_v2, 0.0  ;;  %v8260_v11 = vld.sshfl [vmem:[#allocation1 + $0x28] sm:$0xff pattern:$0x75316420]  ;;  %v8278_v15 = vsel %vm8163_vm0, %v8259_v35, 0.0 }
 0x810   : > { %v8261_v16 = vld.sshfl [vmem:[#allocation1 + $0x30] sm:$0xff pattern:$0x75316420]  ;;  %v8280_v22 = vsel %vm8163_vm0, %v8260_v11, 0.0 }
 0x811   : > { %v8275_v14 = vadd.f32 %v8274_v48, %v8273_v9  ;;  %v8262_v49 = vld.sshfl [vmem:[#allocation1 + $0x38] sm:$0xff pattern:$0x75316420]  ;;  %v8282_v20 = vsel %vm8163_vm0, %v8261_v16, 0.0 }
 0x812   : > { %v8284_v30 = vsel %vm8163_vm0, %v8262_v49, 0.0 }
 0x813   : > { %v8277_v32 = vadd.f32 %v8276_v10, %v8275_v14 }
 0x815   : > { %v8279_v57 = vadd.f32 %v8278_v15, %v8277_v32 }
 0x817   : > { %v8281_v23 = vadd.f32 %v8280_v22, %v8279_v57 }
 0x819   : > { %v8283_v21 = vadd.f32 %v8282_v20, %v8281_v23 }
 0x81b   : > { %v8285_v60 = vadd.f32 %v8284_v30, %v8283_v21 }
 0x81d   : > { %8286 = vadd.xlane.f32.xlu0 %v8285_v60 }
 0x890   : > { %v8287_v29 = vpop.xlane.xlu0 %8286 }
 0x891   : > { %v8290_v33 = vadd.f32 %v8289_v26, %v8287_v29 }
 0x893   : > { %8292 = vst.msk [vmem:[%s16193_s5] sm:$0xf] %vm8291_vm1, %v8290_v33 }
 0x894 PF: > { %p17_p8 = scmp.ge.s32.totalorder %s13813_s24, 6   ;;  %s16198_s20 = smov %s13743_s21 }
 0x895   : > { %s16199_s21 = smov %s13747_s22  ;;  %s16200_s22 = smov %s13823_s27 }
 0x896   : > { %s16201_s23 = smov %s13813_s24  ;;  %19 = sbr.rel (!%p17_p8) target bundleno = 6 (0x6), region = 99 }
 0x89b   :  { %8304 = vsyncpa [#allocation5], 1 }
 0x89c   :  { %8306 = vsyncpa [#allocation5 + $0x1], 1 }
 0x89d   :  { %8307 = vsyncpa [#allocation7], 1 }

</bundles_post_ra>
